<compile_context>
chip_gen: v6e
topology: v6e:2x2x1
jax: 0.10.0
libtpu: 0.0.40
codegen_flags: <defaults>
</compile_context>

<pallas_src>
import functools

import jax
import jax.numpy as jnp
from jax.experimental import pallas as pl
from jax.experimental.pallas import tpu as pltpu


def _pixel_shuffle_kernel(x_ref, o_ref, *, r, f, w):
    """One (b*c, row-tile) grid step.

    x_ref: (r*r, T, f*w)   the r^2 input channels feeding one output channel;
                           lane layout of each row: (h_lo, w), h_lo in [0, f)
    o_ref: (T, f*r*r*w)    lane layout of each row: (h_lo, rh, w, rw)
    """
    t = x_ref.shape[1]
    # r and f are small static ints -> these Python loops fully unroll into a
    # handful of vector ops (no vreg-spill risk at the block sizes used here).
    inters = []
    for rh in range(r):
        cols = [x_ref[rh * r + rw] for rw in range(r)]              # (T, f*w)
        # Fine lane interleave over rw: inter[:, (h_lo*w + iw)*r + rw]
        inters.append(jnp.stack(cols, axis=-1).reshape(t, f * w * r))
    # TODO(synk): for bf16 with r == 2 the rw interleave could use the u32
    # pack/bitcast trick instead of stack+reshape if profiling ever shows the
    # XLU/store slots saturated (this kernel should stay HBM-bound).
    if f == 1:
        out = inters[0] if r == 1 else jnp.concatenate(inters, axis=-1)
    else:
        # Reorder to (h_lo, rh, w, rw): per-rh, per-h_lo chunks of width w*r
        # (static lane slices) laid out h_lo-major, then one dense store.
        chunks = [inters[rh][:, h_lo * w * r:(h_lo + 1) * w * r]
                  for h_lo in range(f) for rh in range(r)]
        out = jnp.concatenate(chunks, axis=-1)
    o_ref[...] = out.astype(o_ref.dtype)


def _divisors(n):
    return [d for d in range(1, n + 1) if n % d == 0]


def _choose_fold(dh, w, r2):
    """Smallest fold factor f (dividing D*H) that makes the blocks lane-dense."""
    out_only = None
    for fcand in _divisors(dh):
        if fcand * w > 4096:                       # soft cap on lane width
            break
        if (fcand * w) % 128 == 0:                 # input AND output lane-dense
            return fcand
        if out_only is None and (fcand * r2 * w) % 128 == 0:
            out_only = fcand                       # at least the store is dense
    return out_only if out_only is not None else 1


def _padded_vmem_bytes(rows, lanes, itemsize, sub_q):
    rows_p = -(-rows // sub_q) * sub_q
    lanes_p = -(-lanes // 128) * 128
    return rows_p * lanes_p * itemsize


def pixel_shuffle3d(x, upscale_factor, *, block_bytes=2 << 20,
                    vmem_limit_bytes=None):
    """Pallas TPU implementation of pixel_shuffle3D (exact, any dtype).

    block_bytes: per-side (input or output) VMEM block budget.  2 MiB is safe
      on every generation (incl. v5e); 4-8 MiB amortizes better on v6e/v7x.
    """
    r = int(upscale_factor)
    B, C_in, D, H, W = x.shape
    if r == 1:
        return x
    r2 = r * r
    assert C_in % r2 == 0, "channels must be divisible by upscale_factor**2"
    C = C_in // r2
    DH = D * H
    itemsize = x.dtype.itemsize
    sub_q = max(8, 32 // itemsize)        # sublane tile: 8 f32 / 16 bf16 / 32 i8

    # Fold f consecutive (d, h) rows into the lane dim for lane density.
    f = _choose_fold(DH, W, r2)
    n_rows = DH // f                      # kernel row space per (b, c)

    # Row-tile so VMEM stays bounded and the pipeline has plenty of steps.
    def side_bytes(t):
        in_b = r2 * _padded_vmem_bytes(t, f * W, itemsize, sub_q)
        out_b = _padded_vmem_bytes(t, f * r2 * W, itemsize, sub_q)
        return max(in_b, out_b)

    valid = [t for t in _divisors(n_rows) if t % sub_q == 0 or t == n_rows]
    fitting = [t for t in valid if side_bytes(t) <= block_bytes]
    t_rows = max(fitting) if fitting else min(valid)
    n_tiles = n_rows // t_rows

    if vmem_limit_bytes is None:
        # double-buffered in + out blocks plus headroom for interleave temps.
        vmem_limit_bytes = max(32 << 20, 6 * side_bytes(t_rows))

    # Free contiguous-regroup reshape: split channels into (c, (rh, rw)),
    # merge (d, h) rows, fold f rows into the lane dim.
    xr = x.reshape(B * C, r2, n_rows, f * W)

    kernel = functools.partial(_pixel_shuffle_kernel, r=r, f=f, w=W)

    out_flat = pl.pallas_call(
        kernel,
        out_shape=jax.ShapeDtypeStruct((B * C, n_rows, f * r2 * W), x.dtype),
        grid_spec=pltpu.PrefetchScalarGridSpec(
            num_scalar_prefetch=0,
            grid=(B * C, n_tiles),
            in_specs=[
                pl.BlockSpec((pl.Squeezed(), r2, t_rows, f * W),
                             lambda bc, t: (bc, 0, t, 0)),
            ],
            out_specs=pl.BlockSpec((pl.Squeezed(), t_rows, f * r2 * W),
                                   lambda bc, t: (bc, t, 0)),
        ),
        # TODO(synk): on v7x consider pltpu.CORE_PARALLEL on the leading axis;
        # on v5e/v6e consider pipeline_mode=pl.Buffered(3) on the input spec.
        # Both are profile-gated per the review (kernel should be HBM-bound).
        compiler_params=pltpu.CompilerParams(
            dimension_semantics=("parallel", "arbitrary"),
            vmem_limit_bytes=vmem_limit_bytes),
        cost_estimate=pl.CostEstimate(
            flops=0, transcendentals=0,
            bytes_accessed=2 * x.size * itemsize),
    )(xr)

    # Free reshape back to the PyTorch output layout: (B*C, D*H/f, f*r^2*W)
    # and (B, C, D, H*r, W*r) share the same flat element ordering.
    return out_flat.reshape(B, C, D, H * r, W * r)


def _reference(x, r):
    """Pure-JAX transcription of the PyTorch pixel_shuffle3D for verification."""
    B, C_in, D, H, W = x.shape
    C = C_in // (r * r)
    xt = x.reshape(B, C, r, r, D, H, W)
    ot = jnp.transpose(xt, (0, 1, 4, 5, 2, 6, 3))
    return ot.reshape(B, C, D, H * r, W * r)


if __name__ == "__main__":
    key = jax.random.PRNGKey(0)
    B, C, r, D, H, W = 2, 4, 2, 4, 16, 16            # input channels = r^2*C = 16
    x = jax.random.normal(key, (B, C * r * r, D, H, W), dtype=jnp.float32)

    out = pixel_shuffle3d(x, r)
    out = jax.block_until_ready(out)

    ref = _reference(x, r)
    assert out.shape == (B, C, D, H * r, W * r), out.shape
    assert jnp.array_equal(out, ref), "Pallas output mismatch vs reference"
    print("KERNEL_OK")
</pallas_src>

<mosaic_0001>
module attributes {stable_mosaic.version = 11 : i64} {
  func.func @_pixel_shuffle_kernel(%arg0: i32, %arg1: i32, %arg2: memref<1x4x8x128xf32, #tpu.memory_space<vmem>>, %arg3: memref<1x8x512xf32, #tpu.memory_space<vmem>>) attributes {dimension_semantics = [#tpu.dimension_semantics<parallel>, #tpu.dimension_semantics<arbitrary>], iteration_bounds = array<i64: 8, 1>, scalar_prefetch = 0 : i64, scratch_operands = 0 : i64, tpu.core_type = #tpu.core_type<tc>, window_params = [{transform_indices = @transform_0, window_bounds = array<i64: 1, 4, 8, 128>}, {transform_indices = @transform_1, window_bounds = array<i64: 1, 8, 512>}]} {
    %c0 = arith.constant 0 : index
    %c0_0 = arith.constant 0 : index
    %c0_1 = arith.constant 0 : index
    %c0_2 = arith.constant 0 : index
    %0 = vector.load %arg2[%c0, %c0_0, %c0_1, %c0_2] : memref<1x4x8x128xf32, #tpu.memory_space<vmem>>, vector<1x1x8x128xf32>
    %1 = vector.shape_cast %0 : vector<1x1x8x128xf32> to vector<8x128xf32>
    %c0_3 = arith.constant 0 : index
    %c1 = arith.constant 1 : index
    %c0_4 = arith.constant 0 : index
    %c0_5 = arith.constant 0 : index
    %2 = vector.load %arg2[%c0_3, %c1, %c0_4, %c0_5] : memref<1x4x8x128xf32, #tpu.memory_space<vmem>>, vector<1x1x8x128xf32>
    %3 = vector.shape_cast %2 : vector<1x1x8x128xf32> to vector<8x128xf32>
    %4 = vector.shape_cast %1 : vector<8x128xf32> to vector<8x128x1xf32>
    %5 = vector.shape_cast %3 : vector<8x128xf32> to vector<8x128x1xf32>
    %6 = tpu.concatenate %4, %5 in 2 : vector<8x128x1xf32>, vector<8x128x1xf32> -> vector<8x128x2xf32>
    %7 = vector.shape_cast %6 : vector<8x128x2xf32> to vector<8x256xf32>
    %c0_6 = arith.constant 0 : index
    %c2 = arith.constant 2 : index
    %c0_7 = arith.constant 0 : index
    %c0_8 = arith.constant 0 : index
    %8 = vector.load %arg2[%c0_6, %c2, %c0_7, %c0_8] : memref<1x4x8x128xf32, #tpu.memory_space<vmem>>, vector<1x1x8x128xf32>
    %9 = vector.shape_cast %8 : vector<1x1x8x128xf32> to vector<8x128xf32>
    %c0_9 = arith.constant 0 : index
    %c3 = arith.constant 3 : index
    %c0_10 = arith.constant 0 : index
    %c0_11 = arith.constant 0 : index
    %10 = vector.load %arg2[%c0_9, %c3, %c0_10, %c0_11] : memref<1x4x8x128xf32, #tpu.memory_space<vmem>>, vector<1x1x8x128xf32>
    %11 = vector.shape_cast %10 : vector<1x1x8x128xf32> to vector<8x128xf32>
    %12 = vector.shape_cast %9 : vector<8x128xf32> to vector<8x128x1xf32>
    %13 = vector.shape_cast %11 : vector<8x128xf32> to vector<8x128x1xf32>
    %14 = tpu.concatenate %12, %13 in 2 : vector<8x128x1xf32>, vector<8x128x1xf32> -> vector<8x128x2xf32>
    %15 = vector.shape_cast %14 : vector<8x128x2xf32> to vector<8x256xf32>
    %16 = vector.extract_strided_slice %7 {offsets = [0, 0], sizes = [8, 32], strides = [1, 1]} : vector<8x256xf32> to vector<8x32xf32>
    %17 = vector.extract_strided_slice %15 {offsets = [0, 0], sizes = [8, 32], strides = [1, 1]} : vector<8x256xf32> to vector<8x32xf32>
    %18 = vector.extract_strided_slice %7 {offsets = [0, 32], sizes = [8, 32], strides = [1, 1]} : vector<8x256xf32> to vector<8x32xf32>
    %19 = vector.extract_strided_slice %15 {offsets = [0, 32], sizes = [8, 32], strides = [1, 1]} : vector<8x256xf32> to vector<8x32xf32>
    %20 = vector.extract_strided_slice %7 {offsets = [0, 64], sizes = [8, 32], strides = [1, 1]} : vector<8x256xf32> to vector<8x32xf32>
    %21 = vector.extract_strided_slice %15 {offsets = [0, 64], sizes = [8, 32], strides = [1, 1]} : vector<8x256xf32> to vector<8x32xf32>
    %22 = vector.extract_strided_slice %7 {offsets = [0, 96], sizes = [8, 32], strides = [1, 1]} : vector<8x256xf32> to vector<8x32xf32>
    %23 = vector.extract_strided_slice %15 {offsets = [0, 96], sizes = [8, 32], strides = [1, 1]} : vector<8x256xf32> to vector<8x32xf32>
    %24 = vector.extract_strided_slice %7 {offsets = [0, 128], sizes = [8, 32], strides = [1, 1]} : vector<8x256xf32> to vector<8x32xf32>
    %25 = vector.extract_strided_slice %15 {offsets = [0, 128], sizes = [8, 32], strides = [1, 1]} : vector<8x256xf32> to vector<8x32xf32>
    %26 = vector.extract_strided_slice %7 {offsets = [0, 160], sizes = [8, 32], strides = [1, 1]} : vector<8x256xf32> to vector<8x32xf32>
    %27 = vector.extract_strided_slice %15 {offsets = [0, 160], sizes = [8, 32], strides = [1, 1]} : vector<8x256xf32> to vector<8x32xf32>
    %28 = vector.extract_strided_slice %7 {offsets = [0, 192], sizes = [8, 32], strides = [1, 1]} : vector<8x256xf32> to vector<8x32xf32>
    %29 = vector.extract_strided_slice %15 {offsets = [0, 192], sizes = [8, 32], strides = [1, 1]} : vector<8x256xf32> to vector<8x32xf32>
    %30 = vector.extract_strided_slice %7 {offsets = [0, 224], sizes = [8, 32], strides = [1, 1]} : vector<8x256xf32> to vector<8x32xf32>
    %31 = vector.extract_strided_slice %15 {offsets = [0, 224], sizes = [8, 32], strides = [1, 1]} : vector<8x256xf32> to vector<8x32xf32>
    %32 = tpu.concatenate %16, %17, %18, %19, %20, %21, %22, %23, %24, %25, %26, %27, %28, %29, %30, %31 in 1 : vector<8x32xf32>, vector<8x32xf32>, vector<8x32xf32>, vector<8x32xf32>, vector<8x32xf32>, vector<8x32xf32>, vector<8x32xf32>, vector<8x32xf32>, vector<8x32xf32>, vector<8x32xf32>, vector<8x32xf32>, vector<8x32xf32>, vector<8x32xf32>, vector<8x32xf32>, vector<8x32xf32>, vector<8x32xf32> -> vector<8x512xf32>
    %c0_12 = arith.constant 0 : index
    %c0_13 = arith.constant 0 : index
    %c0_14 = arith.constant 0 : index
    %33 = vector.load %arg3[%c0_12, %c0_13, %c0_14] : memref<1x8x512xf32, #tpu.memory_space<vmem>>, vector<1x8x512xf32>
    %34 = vector.shape_cast %33 : vector<1x8x512xf32> to vector<8x512xf32>
    %35 = vector.shape_cast %32 : vector<8x512xf32> to vector<1x8x512xf32>
    tpu.vector_store %arg3[%c0_12, %c0_13, %c0_14], %35 {strides = array<i32>} : memref<1x8x512xf32, #tpu.memory_space<vmem>>, vector<1x8x512xf32>,
    return
  }
  func.func @transform_0(%arg0: i32, %arg1: i32) -> (i32, i32, i32, i32) {
    %c0_i32 = arith.constant 0 : i32
    %c0_i32_0 = arith.constant 0 : i32
    %c0_i32_1 = arith.constant 0 : i32
    return %arg0, %c0_i32, %arg1, %c0_i32_0 : i32, i32, i32, i32
  }
  func.func @transform_1(%arg0: i32, %arg1: i32) -> (i32, i32, i32) {
    %c0_i32 = arith.constant 0 : i32
    %c0_i32_0 = arith.constant 0 : i32
    return %arg0, %arg1, %c0_i32 : i32, i32, i32
  }
}

</mosaic_0001>

<bundles_post_ra>
// kernel: tpu_custom_call.1
= control target key start
LH: loop header
LB: loop body
LE: loop exit
PB: predicated region body
PF: predicated region fallthrough
CT: control target
= control target key end

     0   :  { %s12856_s0 = inlined_call_operand.hbm [shape: f32[8,4,8,128], index: 0, kind: input, shape index: {}]   ;;  %s12857_s1 = inlined_call_operand.hbm [shape: f32[8,8,512], index: 1, kind: output, shape index: {}]  }
   0x1   :  { %13071 = sst [smem:[#allocation337_spill]] %s12856_s0 }
   0x2   :  { %13072 = sst [smem:[#allocation338_spill]] %s12857_s1 }
   0x3   :  { %6 = vsyncpa [#allocation3], 0 }
   0x4   :  { %8 = vsyncpa [#allocation3 + $0x1], 0 }
   0x5   :  { %9 = vsyncpa [#allocation4], 0 }
   0x6   :  { %11 = vsyncpa [#allocation4 + $0x1], 0  ;;  %s8729_s6 = smov 0   ;;  %s8731_s7 = smov 0  }
   0x7   :  { %s8733_s8 = smov 0   ;;  %s8735_s9 = smov 0  }
   0x8   :  { %s8737_s10 = smov 0   ;;  %s8739_s11 = smov 0  }
   0x9 LB: > { %13073 = sst [smem:[#allocation8_spill]] %s8628_s6  ;;  %s8391_s12 = sadd.s32 4294967295, %s8648_s11   ;;  %s8648_s11 = sphi %s8739_s11, %s17_s11   ;;  %s8644_s10 = sphi %s8737_s10, %s14382_s10   ;;  %s8640_s9 = sphi %s8735_s9, %s14381_s9   ;;  %s8636_s8 = sphi %s8733_s8, %s14380_s8   ;;  %s8632_s7 = sphi %s8731_s7, %s14379_s7   ;;  %s8628_s6 = sphi %s8729_s6, %s14378_s6  }
   0xa   : > { %13074 = sst [smem:[#allocation9_spill]] %s8632_s7  ;;  %s8392_s13 = sadd.s32 4294967294, %s8648_s11  }
   0xb   : > { %13075 = sst [smem:[#allocation10_spill]] %s8636_s8  ;;  %s29_s14 = sadd.s32 1, %s8644_s10 }
   0xc   : > { %13076 = sst [smem:[#allocation11_spill]] %s8640_s9  ;;  %s38_s15 = sadd.s32 1, %s8636_s8 }
   0xd   : > { %13077 = sst [smem:[#allocation12_spill]] %s8644_s10  ;;  %p31_p0 = scmp.ge.s32.totalorder %s29_s14, 8 }
   0xe   : > { %13078 = sst [smem:[#allocation13_spill]] %s8648_s11  ;;  %p45_p1 = scmp.ne.s32.totalorder %s8636_s8, %s8632_s7 }
   0xf   : > { %p46_p2 = scmp.eq.s32.totalorder %s8648_s11, 0  ;;  %p51_p3 = scmp.ne.s32.totalorder %s8632_s7, %s8628_s6 }
  0x10   : > { %s14384_s14 = smov (%p31_p0, %s29_s14), 0  ;;  %p52_p5 = scmp.eq.s32.totalorder %s8391_s12, 0 }
  0x11   : > { %13079 = sst [smem:[#allocation14_spill]] %s14384_s14  ;;  %p8770_p4 = por %p46_p2, %p45_p1 }
  0x12   : > { %s33_s17 = ssub.s32 %s8644_s10, %s14384_s14  ;;  %p77_p6 = scmp.eq.s32.totalorder %s8391_s12, 7 }
  0x13   : > { %p36_p7 = scmp.eq.s32.totalorder %s33_s17, 0  ;;  %p8776_p8 = por %p52_p5, %p51_p3 }
  0x14   : > { %p8780_p9 = por %p77_p6, %p45_p1  ;;  %p83_p10 = scmp.eq.s32.totalorder %s8392_s13, 7 }
  0x15   : > { %s8785_s20 = scalar_select %p36_p7, %s8636_s8, %s38_s15  }
  0x16   : > { %s13082_s19 = scalar_select %p8780_p9, 1, 0 }
  0x17   : > { %13084 = sst [smem:[#allocation16_spill]] %s8785_s20  ;;  %p8787_p11 = por %p83_p10, %p51_p3 }
  0x18   : > { %13083 = sst [smem:[#allocation15_spill]] %s13082_s19  ;;  %p8423_p12 = scmp.lt.s32.totalorder %s8648_s11, 8 }
  0x19   : > { %s13085_s21 = scalar_select %p8787_p11, 1, 0 }
  0x1a   : > { %s103_s22 = sand.u32 1, %s8636_s8   ;;  %s8409_s24 = sshll.u32 %s8644_s10, 9 }
  0x1b   : > { %13086 = sst [smem:[#allocation17_spill]] %s13085_s21  ;;  %s8395_s23 = sshll.u32 %s103_s22, 5 }
  0x1c   : > { %s13087_s0 = sld [smem:[#allocation337_spill]]  ;;  %s107_s28 = scalar_lea.vmem [#allocation2], %s8395_s23 }
  0x1d   : > { %s115_s29 = sshll.u32 %s107_s28, 4  ;;  %p8799_p13 = pnand %p8423_p12, %p8770_p4  ;;  %s116_s29 = int_to_ptr.vmem [resolvable:$true] %s115_s29 }
  0x1e   : > { %p8398_p0 = scmp.ge.s32.totalorder %s8648_s11, 1  ;;  %s104_s2 = scalar_lea.sflag [#allocation3], %s103_s22 }
  0x1f   : > { %p8542_p1 = pneg %p8799_p13  ;;  %s8553_s3 = scalar_lea.vmem %s116_s29, 512 }
  0x20   : > { %p8554_p2 = scmp.ne.s32.totalorder %s116_s29, %s8553_s3  ;;  %s8650_s4 = smov [#allocation2]  }
  0x21   : > { %s8558_s5 = sshll.u32 %s8650_s4, 4  ;;  %s8559_s5 = int_to_ptr.vmem [resolvable:$false] %s8558_s5 }
  0x22   : > { %s114_s27 = scalar_lea.hbm %s13087_s0, %s8409_s24  ;;  %p8556_p3 = pnand %p8554_p2, %p8542_p1 }
  0x23   : > { %s8560_s12 = scalar_lea.vmem %s8559_s5, 1024  ;;  %p8561_p6 = scmp.lt.s32.totalorder %s116_s29, %s8559_s5 }
  0x24   : > { %p8557_p5 = pneg %p8556_p3  ;;  %p8562_p7 = scmp.lt.s32.totalorder %s8560_s12, %s8553_s3 }
  0x26   : > { %p8563_p10 = por %p8562_p7, %p8561_p6 }
  0x28   : > { %p8564_p4 = pnand %p8563_p10, %p8557_p5 }
  0x2a   : > { %8567 = shalt.err (!%p8564_p4)
}
  0x2b   : > { %s8651_s13 = smov 128   ;;  %s8652_s15 = smov 8  }
  0x2c   : > { %8418 = dma.hbm_to_vmem [thread:$0]  (!%p8799_p13), %s114_s27, 512, %s116_s29, %s104_s2, %s8651_s13, %s8651_s13, %s8652_s15  }
  0x2d   : > { %p123_p12 = scmp.lt.s32.totalorder %s8648_s11, 9 }
  0x2f   : > { %p124_p1 = pnand %p8398_p0, %p123_p12 }
  0x31   : > { %127 = sbr.rel (%p124_p1) target bundleno = 2047 (0x7ff), region = 24 }
  0x36   : > { %s8812_s16 = sand.u32 1, %s8632_s7  }
  0x37   : > { %13089 = sst [smem:[#allocation18_spill]] %s8812_s16  ;;  %s12874_s17 = sshll.u32 %s8812_s16, 5 }
  0x38   : > { %s130_s22 = scalar_lea.sflag [#allocation3], %s8812_s16  ;;  %s8818_s23 = scalar_lea.vmem [#allocation2], %s12874_s17 }
  0x39   : > { %8619 = dma.done.wait (%p8776_p8), %s130_s22, 512  }
  0x3a   : > { %8621 = vsyncadd (%p8776_p8), %s130_s22, 4294966784  ;;  %v155_v0 = vlaneseq  ;;  %v8830_v3 = vld [vmem:[%s8818_s23] sm:$0xff]  ;;  %vm1227_vm0 = vcmask 7168   ;;  %s12995_s18 = smov 4   ;;  %s12993_s24 = smov 2   ;;  %vm4036_vm1 = vcmask 15360  }
  0x3b   : > { %s12991_s25 = smov 8   ;;  %s12989_s26 = smov 6   ;;  %vm4038_vm2 = vcmask 31744   ;;  %vm13038_vm3 = vcmask 48128   ;;  %vm4042_vm4 = vcmask 64512   ;;  %vm13039_vm5 = vcmask 80896  }
  0x3c   : > { %v8824_v1 = vshrl.u32 %v155_v0, 7  ;;  %s12987_s27 = smov 12   ;;  %s12985_s28 = smov 10   ;;  %vm13046_vm6 = vcmask 97280   ;;  %vm13040_vm7 = vcmask 113664   ;;  %vm13045_vm8 = vcmask 130048  }
  0x3d   : > { %s12982_s29 = smov 16   ;;  %s12980_s30 = smov 14   ;;  %vm13043_vm9 = vcmask 146432   ;;  %vm13042_vm10 = vcmask 162816   ;;  %vm13041_vm11 = vcmask 179200   ;;  %vm13024_vm12 = vcmask 195584  }
  0x3e   : > { %v8827_v2 = vsub.s32 0, %v8824_v1  ;;  %v8835_v5 = vsub.s32 1, %v8824_v1  ;;  %v8840_v7 = vsub.s32 2, %v8824_v1  ;;  %v8845_v9 = vsub.s32 3, %v8824_v1  ;;  %s12978_s2 = smov 20   ;;  %s12976_s3 = smov 18  }
  0x3f   : > { %v8858_v15 = vsub.s32 4, %v8824_v1  ;;  %v8895_v33 = vsub.s32 5, %v8824_v1  ;;  %v8932_v51 = vsub.s32 6, %v8824_v1  ;;  %s12973_s4 = smov 24   ;;  %s12971_s5 = smov 22   ;;  %vm13017_vm13 = vcmask 211968  }
  0x40   : > { %13090 = vst [vmem:[#allocation19_spill] sm:$0xff] %v8827_v2  ;;  %v158_v4 = vrot.slane %v8830_v3, %v8827_v2  ;;  %13091 = vst [vmem:[#allocation20_spill] sm:$0xff] %v8835_v5  ;;  %v225_v6 = vrot.slane %v8830_v3, %v8835_v5  ;;  %v292_v8 = vrot.slane %v8830_v3, %v8840_v7  ;;  %s12877_s12 = smov 28   ;;  %s12969_s13 = smov 26   ;;  %vm13019_vm14 = vcmask 228352  }
  0x41   : > { %13092 = vst [vmem:[#allocation21_spill] sm:$0xff] %v8840_v7  ;;  %13093 = vst [vmem:[#allocation22_spill] sm:$0xff] %v8845_v9  ;;  %v359_v10 = vrot.slane %v8830_v3, %v8845_v9  ;;  %v426_v18 = vrot.slane %v8830_v3, %v8858_v15  ;;  %v493_v36 = vrot.slane %v8830_v3, %v8895_v33  ;;  %s12875_s15 = smov 32   ;;  %s12967_s22 = smov 30   ;;  %vm13018_vm15 = vcmask 244736  }
  0x42   : > { %168 = vbcast.lane.b32.xlu1 %v158_v4, 272  ;;  %160 = vbcast.lane.b32.xlu0 %v158_v4, 256  ;;  %13096 = vst [vmem:[#allocation25_spill] sm:$0xff] %v8858_v15  ;;  %13110 = vst [vmem:[#allocation39_spill] sm:$0xff] %v8895_v33  ;;  %v560_v54 = vrot.slane %v8830_v3, %v8932_v51  ;;  %s12879_s17 = smov 36   ;;  %s13500_s0 = smov 66  }
  0x43   : > { %13124 = vst [vmem:[#allocation53_spill] sm:$0xff] %v8932_v51  ;;  %s13503_s14 = smov 64   ;;  %s13504_s10 = smov 70  }
  0x44   : > { %s13507_s20 = smov 68   ;;  %s13508_s8 = smov 74  }
  0x45   : > { %s13514_s7 = smov 72   ;;  %s13515_s21 = smov 78  }
  0x46   : > { %172 = vbcast.lane.b32.xlu1 %v158_v4, 280  ;;  %164 = vbcast.lane.b32.xlu0 %v158_v4, 264  ;;  %s13530_s6 = smov 76   ;;  %s13531_s11 = smov 82  }
  0x47   : > { %s13534_s1 = smov 80   ;;  %s13535_s19 = smov 86  }
  0x48   : > { %s13538_s9 = smov 84   ;;  %s13539_s16 = smov 90  }
  0x4a   : > { %180 = vbcast.lane.b32.xlu1 %v158_v4, 296  ;;  %176 = vbcast.lane.b32.xlu0 %v158_v4, 288 }
  0x4e   : > { %188 = vbcast.lane.b32.xlu1 %v158_v4, 312  ;;  %184 = vbcast.lane.b32.xlu0 %v158_v4, 304 }
  0x52   : > { %196 = vbcast.lane.b32.xlu1 %v158_v4, 328  ;;  %192 = vbcast.lane.b32.xlu0 %v158_v4, 320 }
  0x56   : > { %204 = vbcast.lane.b32.xlu1 %v158_v4, 344  ;;  %200 = vbcast.lane.b32.xlu0 %v158_v4, 336 }
  0x5a   : > { %212 = vbcast.lane.b32.xlu1 %v158_v4, 360  ;;  %208 = vbcast.lane.b32.xlu0 %v158_v4, 352 }
  0x5e   : > { %220 = vbcast.lane.b32.xlu1 %v158_v4, 376  ;;  %216 = vbcast.lane.b32.xlu0 %v158_v4, 368 }
  0x62   : > { %231 = vbcast.lane.b32.xlu1 %v225_v6, 264  ;;  %227 = vbcast.lane.b32.xlu0 %v225_v6, 256 }
  0x66   : > { %239 = vbcast.lane.b32.xlu1 %v225_v6, 280  ;;  %235 = vbcast.lane.b32.xlu0 %v225_v6, 272 }
  0x6a   : > { %247 = vbcast.lane.b32.xlu1 %v225_v6, 296  ;;  %243 = vbcast.lane.b32.xlu0 %v225_v6, 288 }
  0x6e   : > { %255 = vbcast.lane.b32.xlu1 %v225_v6, 312  ;;  %251 = vbcast.lane.b32.xlu0 %v225_v6, 304 }
  0x72   : > { %263 = vbcast.lane.b32.xlu1 %v225_v6, 328  ;;  %259 = vbcast.lane.b32.xlu0 %v225_v6, 320 }
  0x76   : > { %271 = vbcast.lane.b32.xlu1 %v225_v6, 344  ;;  %267 = vbcast.lane.b32.xlu0 %v225_v6, 336 }
  0x7a   : > { %279 = vbcast.lane.b32.xlu1 %v225_v6, 360  ;;  %275 = vbcast.lane.b32.xlu0 %v225_v6, 352 }
  0x7e   : > { %287 = vbcast.lane.b32.xlu1 %v225_v6, 376  ;;  %283 = vbcast.lane.b32.xlu0 %v225_v6, 368 }
  0x82   : > { %298 = vbcast.lane.b32.xlu1 %v292_v8, 264  ;;  %294 = vbcast.lane.b32.xlu0 %v292_v8, 256 }
  0x86   : > { %306 = vbcast.lane.b32.xlu1 %v292_v8, 280  ;;  %302 = vbcast.lane.b32.xlu0 %v292_v8, 272 }
  0x8a   : > { %314 = vbcast.lane.b32.xlu1 %v292_v8, 296  ;;  %310 = vbcast.lane.b32.xlu0 %v292_v8, 288 }
  0x8e   : > { %322 = vbcast.lane.b32.xlu1 %v292_v8, 312  ;;  %318 = vbcast.lane.b32.xlu0 %v292_v8, 304 }
  0x92   : > { %330 = vbcast.lane.b32.xlu1 %v292_v8, 328  ;;  %326 = vbcast.lane.b32.xlu0 %v292_v8, 320 }
  0x96   : > { %338 = vbcast.lane.b32.xlu1 %v292_v8, 344  ;;  %334 = vbcast.lane.b32.xlu0 %v292_v8, 336 }
  0x9a   : > { %346 = vbcast.lane.b32.xlu1 %v292_v8, 360  ;;  %342 = vbcast.lane.b32.xlu0 %v292_v8, 352 }
  0x9e   : > { %354 = vbcast.lane.b32.xlu1 %v292_v8, 376  ;;  %350 = vbcast.lane.b32.xlu0 %v292_v8, 368 }
  0xa2   : > { %365 = vbcast.lane.b32.xlu1 %v359_v10, 264  ;;  %361 = vbcast.lane.b32.xlu0 %v359_v10, 256 }
  0xa6   : > { %373 = vbcast.lane.b32.xlu1 %v359_v10, 280  ;;  %369 = vbcast.lane.b32.xlu0 %v359_v10, 272 }
  0xaa   : > { %381 = vbcast.lane.b32.xlu1 %v359_v10, 296  ;;  %377 = vbcast.lane.b32.xlu0 %v359_v10, 288 }
  0xae   : > { %389 = vbcast.lane.b32.xlu1 %v359_v10, 312  ;;  %385 = vbcast.lane.b32.xlu0 %v359_v10, 304 }
  0xb2   : > { %397 = vbcast.lane.b32.xlu1 %v359_v10, 328  ;;  %393 = vbcast.lane.b32.xlu0 %v359_v10, 320 }
  0xb4   : > { %v8849_v11 = vpop.permute.xlu1 %168  ;;  %v8851_v12 = vpop.permute.xlu0 %160 }
  0xb5   : > { %13094 = vst [vmem:[#allocation23_spill] sm:$0xff] %v8849_v11 }
  0xb6   : > { %405 = vbcast.lane.b32.xlu1 %v359_v10, 344  ;;  %401 = vbcast.lane.b32.xlu0 %v359_v10, 336 }
  0xb8   : > { %v8853_v13 = vpop.permute.xlu1 %172  ;;  %v8855_v14 = vpop.permute.xlu0 %164 }
  0xb9   : > { %13095 = vst [vmem:[#allocation24_spill] sm:$0xff] %v8853_v13 }
  0xba   : > { %413 = vbcast.lane.b32.xlu1 %v359_v10, 360  ;;  %409 = vbcast.lane.b32.xlu0 %v359_v10, 352 }
  0xbc   : > { %v8860_v16 = vpop.permute.xlu1 %180  ;;  %v8862_v17 = vpop.permute.xlu0 %176 }
  0xbd   : > { %13097 = vst [vmem:[#allocation26_spill] sm:$0xff] %v8860_v16  ;;  %13098 = vst [vmem:[#allocation27_spill] sm:$0xff] %v8862_v17 }
  0xbe   : > { %421 = vbcast.lane.b32.xlu1 %v359_v10, 376  ;;  %417 = vbcast.lane.b32.xlu0 %v359_v10, 368 }
  0xc0   : > { %v8866_v19 = vpop.permute.xlu1 %188  ;;  %v8868_v20 = vpop.permute.xlu0 %184 }
  0xc1   : > { %13099 = vst [vmem:[#allocation28_spill] sm:$0xff] %v8866_v19  ;;  %13100 = vst [vmem:[#allocation29_spill] sm:$0xff] %v8868_v20 }
  0xc2   : > { %432 = vbcast.lane.b32.xlu1 %v426_v18, 264  ;;  %428 = vbcast.lane.b32.xlu0 %v426_v18, 256 }
  0xc4   : > { %v8870_v21 = vpop.permute.xlu1 %196  ;;  %v8872_v22 = vpop.permute.xlu0 %192 }
  0xc5   : > { %13101 = vst [vmem:[#allocation30_spill] sm:$0xff] %v8870_v21 }
  0xc6   : > { %440 = vbcast.lane.b32.xlu1 %v426_v18, 280  ;;  %436 = vbcast.lane.b32.xlu0 %v426_v18, 272 }
  0xc8   : > { %v8874_v23 = vpop.permute.xlu1 %204  ;;  %v8876_v24 = vpop.permute.xlu0 %200 }
  0xc9   : > { %13102 = vst [vmem:[#allocation31_spill] sm:$0xff] %v8874_v23  ;;  %13103 = vst [vmem:[#allocation32_spill] sm:$0xff] %v8876_v24 }
  0xca   : > { %448 = vbcast.lane.b32.xlu1 %v426_v18, 296  ;;  %444 = vbcast.lane.b32.xlu0 %v426_v18, 288 }
  0xcc   : > { %v8878_v25 = vpop.permute.xlu1 %212  ;;  %v8880_v26 = vpop.permute.xlu0 %208 }
  0xcd   : > { %13104 = vst [vmem:[#allocation33_spill] sm:$0xff] %v8878_v25  ;;  %13105 = vst [vmem:[#allocation34_spill] sm:$0xff] %v8880_v26 }
  0xce   : > { %456 = vbcast.lane.b32.xlu1 %v426_v18, 312  ;;  %452 = vbcast.lane.b32.xlu0 %v426_v18, 304 }
  0xd0   : > { %v8882_v27 = vpop.permute.xlu1 %220  ;;  %v8884_v28 = vpop.permute.xlu0 %216 }
  0xd1   : > { %13106 = vst [vmem:[#allocation35_spill] sm:$0xff] %v8882_v27  ;;  %13107 = vst [vmem:[#allocation36_spill] sm:$0xff] %v8884_v28 }
  0xd2   : > { %464 = vbcast.lane.b32.xlu1 %v426_v18, 328  ;;  %460 = vbcast.lane.b32.xlu0 %v426_v18, 320 }
  0xd4   : > { %v8886_v29 = vpop.permute.xlu1 %231  ;;  %v8888_v30 = vpop.permute.xlu0 %227 }
  0xd6   : > { %472 = vbcast.lane.b32.xlu1 %v426_v18, 344  ;;  %468 = vbcast.lane.b32.xlu0 %v426_v18, 336 }
  0xd8   : > { %v8890_v31 = vpop.permute.xlu1 %239  ;;  %v8892_v32 = vpop.permute.xlu0 %235 }
  0xd9   : > { %13108 = vst [vmem:[#allocation37_spill] sm:$0xff] %v8890_v31  ;;  %13109 = vst [vmem:[#allocation38_spill] sm:$0xff] %v8892_v32 }
  0xda   : > { %480 = vbcast.lane.b32.xlu1 %v426_v18, 360  ;;  %476 = vbcast.lane.b32.xlu0 %v426_v18, 352 }
  0xdc   : > { %v8897_v34 = vpop.permute.xlu1 %247  ;;  %v8899_v35 = vpop.permute.xlu0 %243 }
  0xdd   : > { %13111 = vst [vmem:[#allocation40_spill] sm:$0xff] %v8897_v34  ;;  %13112 = vst [vmem:[#allocation41_spill] sm:$0xff] %v8899_v35 }
  0xde   : > { %488 = vbcast.lane.b32.xlu1 %v426_v18, 376  ;;  %484 = vbcast.lane.b32.xlu0 %v426_v18, 368  ;;  %v8969_v18 = vsub.s32 7, %v8824_v1 }
  0xe0   : > { %v8903_v37 = vpop.permute.xlu1 %255  ;;  %v8905_v38 = vpop.permute.xlu0 %251  ;;  %13137 = vst [vmem:[#allocation66_spill] sm:$0xff] %v8969_v18  ;;  %v627_v27 = vrot.slane %v8830_v3, %v8969_v18 }
  0xe1   : > { %13113 = vst [vmem:[#allocation42_spill] sm:$0xff] %v8903_v37  ;;  %13114 = vst [vmem:[#allocation43_spill] sm:$0xff] %v8905_v38 }
  0xe2   : > { %499 = vbcast.lane.b32.xlu1 %v493_v36, 264  ;;  %495 = vbcast.lane.b32.xlu0 %v493_v36, 256 }
  0xe4   : > { %v8907_v39 = vpop.permute.xlu1 %263  ;;  %v8909_v40 = vpop.permute.xlu0 %259 }
  0xe5   : > { %13115 = vst [vmem:[#allocation44_spill] sm:$0xff] %v8907_v39 }
  0xe6   : > { %507 = vbcast.lane.b32.xlu1 %v493_v36, 280  ;;  %503 = vbcast.lane.b32.xlu0 %v493_v36, 272 }
  0xe8   : > { %v8911_v41 = vpop.permute.xlu1 %271  ;;  %v8913_v42 = vpop.permute.xlu0 %267 }
  0xe9   : > { %13116 = vst [vmem:[#allocation45_spill] sm:$0xff] %v8911_v41  ;;  %13117 = vst [vmem:[#allocation46_spill] sm:$0xff] %v8913_v42 }
  0xea   : > { %515 = vbcast.lane.b32.xlu1 %v493_v36, 296  ;;  %511 = vbcast.lane.b32.xlu0 %v493_v36, 288 }
  0xec   : > { %v8915_v43 = vpop.permute.xlu1 %279  ;;  %v8917_v44 = vpop.permute.xlu0 %275 }
  0xed   : > { %13118 = vst [vmem:[#allocation47_spill] sm:$0xff] %v8915_v43  ;;  %13119 = vst [vmem:[#allocation48_spill] sm:$0xff] %v8917_v44 }
  0xee   : > { %523 = vbcast.lane.b32.xlu1 %v493_v36, 312  ;;  %519 = vbcast.lane.b32.xlu0 %v493_v36, 304 }
  0xf0   : > { %v8919_v45 = vpop.permute.xlu1 %287  ;;  %v8921_v46 = vpop.permute.xlu0 %283 }
  0xf1   : > { %13120 = vst [vmem:[#allocation49_spill] sm:$0xff] %v8919_v45  ;;  %13121 = vst [vmem:[#allocation50_spill] sm:$0xff] %v8921_v46 }
  0xf2   : > { %531 = vbcast.lane.b32.xlu1 %v493_v36, 328  ;;  %527 = vbcast.lane.b32.xlu0 %v493_v36, 320 }
  0xf4   : > { %v8923_v47 = vpop.permute.xlu1 %298  ;;  %v8925_v48 = vpop.permute.xlu0 %294 }
  0xf6   : > { %539 = vbcast.lane.b32.xlu1 %v493_v36, 344  ;;  %535 = vbcast.lane.b32.xlu0 %v493_v36, 336 }
  0xf8   : > { %v8927_v49 = vpop.permute.xlu1 %306  ;;  %v8929_v50 = vpop.permute.xlu0 %302 }
  0xf9   : > { %13122 = vst [vmem:[#allocation51_spill] sm:$0xff] %v8927_v49  ;;  %13123 = vst [vmem:[#allocation52_spill] sm:$0xff] %v8929_v50 }
  0xfa   : > { %547 = vbcast.lane.b32.xlu1 %v493_v36, 360  ;;  %543 = vbcast.lane.b32.xlu0 %v493_v36, 352 }
  0xfc   : > { %v8934_v52 = vpop.permute.xlu1 %314  ;;  %v8936_v53 = vpop.permute.xlu0 %310 }
  0xfd   : > { %13125 = vst [vmem:[#allocation54_spill] sm:$0xff] %v8934_v52  ;;  %13126 = vst [vmem:[#allocation55_spill] sm:$0xff] %v8936_v53 }
  0xfe   : > { %555 = vbcast.lane.b32.xlu1 %v493_v36, 376  ;;  %551 = vbcast.lane.b32.xlu0 %v493_v36, 368 }
 0x100   : > { %v8940_v55 = vpop.permute.xlu1 %322  ;;  %v8942_v56 = vpop.permute.xlu0 %318 }
 0x101   : > { %13127 = vst [vmem:[#allocation56_spill] sm:$0xff] %v8940_v55  ;;  %13128 = vst [vmem:[#allocation57_spill] sm:$0xff] %v8942_v56 }
 0x102   : > { %566 = vbcast.lane.b32.xlu1 %v560_v54, 264  ;;  %562 = vbcast.lane.b32.xlu0 %v560_v54, 256 }
 0x104   : > { %v8944_v57 = vpop.permute.xlu1 %330  ;;  %v8946_v58 = vpop.permute.xlu0 %326 }
 0x105   : > { %13129 = vst [vmem:[#allocation58_spill] sm:$0xff] %v8944_v57 }
 0x106   : > { %574 = vbcast.lane.b32.xlu1 %v560_v54, 280  ;;  %570 = vbcast.lane.b32.xlu0 %v560_v54, 272 }
 0x108   : > { %v8948_v59 = vpop.permute.xlu1 %338  ;;  %v8950_v60 = vpop.permute.xlu0 %334 }
 0x109   : > { %13130 = vst [vmem:[#allocation59_spill] sm:$0xff] %v8948_v59  ;;  %13131 = vst [vmem:[#allocation60_spill] sm:$0xff] %v8950_v60 }
 0x10a   : > { %582 = vbcast.lane.b32.xlu1 %v560_v54, 296  ;;  %578 = vbcast.lane.b32.xlu0 %v560_v54, 288 }
 0x10c   : > { %v8952_v61 = vpop.permute.xlu1 %346  ;;  %v8954_v62 = vpop.permute.xlu0 %342 }
 0x10d   : > { %13132 = vst [vmem:[#allocation61_spill] sm:$0xff] %v8952_v61  ;;  %13133 = vst [vmem:[#allocation62_spill] sm:$0xff] %v8954_v62 }
 0x10e   : > { %590 = vbcast.lane.b32.xlu1 %v560_v54, 312  ;;  %586 = vbcast.lane.b32.xlu0 %v560_v54, 304 }
 0x110   : > { %v8956_v63 = vpop.permute.xlu1 %354  ;;  %v8958_v0 = vpop.permute.xlu0 %350 }
 0x111   : > { %13134 = vst [vmem:[#allocation63_spill] sm:$0xff] %v8956_v63  ;;  %13135 = vst [vmem:[#allocation64_spill] sm:$0xff] %v8958_v0 }
 0x112   : > { %598 = vbcast.lane.b32.xlu1 %v560_v54, 328  ;;  %594 = vbcast.lane.b32.xlu0 %v560_v54, 320 }
 0x114   : > { %v8960_v4 = vpop.permute.xlu1 %365  ;;  %v8962_v6 = vpop.permute.xlu0 %361 }
 0x116   : > { %606 = vbcast.lane.b32.xlu1 %v560_v54, 344  ;;  %602 = vbcast.lane.b32.xlu0 %v560_v54, 336 }
 0x118   : > { %v8964_v8 = vpop.permute.xlu1 %373  ;;  %v8966_v10 = vpop.permute.xlu0 %369 }
 0x119   : > { %13136 = vst [vmem:[#allocation65_spill] sm:$0xff] %v8964_v8 }
 0x11a   : > { %614 = vbcast.lane.b32.xlu1 %v560_v54, 360  ;;  %610 = vbcast.lane.b32.xlu0 %v560_v54, 352 }
 0x11c   : > { %v8971_v36 = vpop.permute.xlu1 %381  ;;  %v8973_v45 = vpop.permute.xlu0 %377 }
 0x11d   : > { %13138 = vst [vmem:[#allocation67_spill] sm:$0xff] %v8971_v36  ;;  %13139 = vst [vmem:[#allocation68_spill] sm:$0xff] %v8973_v45 }
 0x11e   : > { %622 = vbcast.lane.b32.xlu1 %v560_v54, 376  ;;  %618 = vbcast.lane.b32.xlu0 %v560_v54, 368 }
 0x120   : > { %v8977_v63 = vpop.permute.xlu1 %389  ;;  %v8979_v46 = vpop.permute.xlu0 %385 }
 0x121   : > { %13140 = vst [vmem:[#allocation69_spill] sm:$0xff] %v8977_v63  ;;  %13141 = vst [vmem:[#allocation70_spill] sm:$0xff] %v8979_v46 }
 0x122   : > { %633 = vbcast.lane.b32.xlu1 %v627_v27, 264  ;;  %629 = vbcast.lane.b32.xlu0 %v627_v27, 256 }
 0x124   : > { %v8981_v28 = vpop.permute.xlu1 %397  ;;  %v8983_v0 = vpop.permute.xlu0 %393 }
 0x125   : > { %13142 = vst [vmem:[#allocation71_spill] sm:$0xff] %v8981_v28 }
 0x126   : > { %641 = vbcast.lane.b32.xlu1 %v627_v27, 280  ;;  %637 = vbcast.lane.b32.xlu0 %v627_v27, 272 }
 0x128   : > { %v8985_v43 = vpop.permute.xlu1 %405  ;;  %v8987_v25 = vpop.permute.xlu0 %401 }
 0x129   : > { %13143 = vst [vmem:[#allocation72_spill] sm:$0xff] %v8985_v43  ;;  %13144 = vst [vmem:[#allocation73_spill] sm:$0xff] %v8987_v25 }
 0x12a   : > { %649 = vbcast.lane.b32.xlu1 %v627_v27, 296  ;;  %645 = vbcast.lane.b32.xlu0 %v627_v27, 288 }
 0x12c   : > { %v8989_v54 = vpop.permute.xlu1 %413  ;;  %v8991_v3 = vpop.permute.xlu0 %409 }
 0x12d   : > { %13145 = vst [vmem:[#allocation74_spill] sm:$0xff] %v8989_v54  ;;  %13146 = vst [vmem:[#allocation75_spill] sm:$0xff] %v8991_v3  ;;  %v9006_v3 = vld [vmem:[%s8818_s23 + $0x8] sm:$0xff] }
 0x12e   : > { %657 = vbcast.lane.b32.xlu1 %v627_v27, 312  ;;  %653 = vbcast.lane.b32.xlu0 %v627_v27, 304 }
 0x130   : > { %v8993_v61 = vpop.permute.xlu1 %421  ;;  %v8995_v44 = vpop.permute.xlu0 %417 }
 0x131   : > { %13147 = vst [vmem:[#allocation76_spill] sm:$0xff] %v8993_v61  ;;  %13148 = vst [vmem:[#allocation77_spill] sm:$0xff] %v8995_v44  ;;  %v694_v44 = vrot.slane %v9006_v3, %v8827_v2 }
 0x132   : > { %665 = vbcast.lane.b32.xlu1 %v627_v27, 328  ;;  %661 = vbcast.lane.b32.xlu0 %v627_v27, 320 }
 0x134   : > { %v8997_v26 = vpop.permute.xlu1 %432  ;;  %v8999_v62 = vpop.permute.xlu0 %428 }
 0x136   : > { %673 = vbcast.lane.b32.xlu1 %v627_v27, 344  ;;  %669 = vbcast.lane.b32.xlu0 %v627_v27, 336 }
 0x138   : > { %v9001_v41 = vpop.permute.xlu1 %440  ;;  %v9003_v54 = vpop.permute.xlu0 %436 }
 0x139   : > { %13149 = vst [vmem:[#allocation78_spill] sm:$0xff] %v9001_v41  ;;  %13150 = vst [vmem:[#allocation79_spill] sm:$0xff] %v9003_v54 }
 0x13a   : > { %681 = vbcast.lane.b32.xlu1 %v627_v27, 360  ;;  %677 = vbcast.lane.b32.xlu0 %v627_v27, 352 }
 0x13c   : > { %v9008_v23 = vpop.permute.xlu1 %448  ;;  %v9010_v61 = vpop.permute.xlu0 %444 }
 0x13d   : > { %13151 = vst [vmem:[#allocation80_spill] sm:$0xff] %v9008_v23  ;;  %13152 = vst [vmem:[#allocation81_spill] sm:$0xff] %v9010_v61 }
 0x13e   : > { %689 = vbcast.lane.b32.xlu1 %v627_v27, 376  ;;  %685 = vbcast.lane.b32.xlu0 %v627_v27, 368 }
 0x140   : > { %v9014_v43 = vpop.permute.xlu1 %456  ;;  %v9016_v59 = vpop.permute.xlu0 %452 }
 0x141   : > { %13153 = vst [vmem:[#allocation82_spill] sm:$0xff] %v9014_v43  ;;  %13154 = vst [vmem:[#allocation83_spill] sm:$0xff] %v9016_v59 }
 0x142   : > { %700 = vbcast.lane.b32.xlu1 %v694_v44, 264  ;;  %696 = vbcast.lane.b32.xlu0 %v694_v44, 256 }
 0x144   : > { %v9018_v42 = vpop.permute.xlu1 %464  ;;  %v9020_v24 = vpop.permute.xlu0 %460 }
 0x145   : > { %13155 = vst [vmem:[#allocation84_spill] sm:$0xff] %v9018_v42 }
 0x146   : > { %708 = vbcast.lane.b32.xlu1 %v694_v44, 280  ;;  %704 = vbcast.lane.b32.xlu0 %v694_v44, 272 }
 0x148   : > { %v9022_v25 = vpop.permute.xlu1 %472  ;;  %v9024_v60 = vpop.permute.xlu0 %468 }
 0x149   : > { %13156 = vst [vmem:[#allocation85_spill] sm:$0xff] %v9022_v25  ;;  %13157 = vst [vmem:[#allocation86_spill] sm:$0xff] %v9024_v60 }
 0x14a   : > { %716 = vbcast.lane.b32.xlu1 %v694_v44, 296  ;;  %712 = vbcast.lane.b32.xlu0 %v694_v44, 288 }
 0x14c   : > { %v9026_v27 = vpop.permute.xlu1 %480  ;;  %v9028_v2 = vpop.permute.xlu0 %476 }
 0x14d   : > { %13158 = vst [vmem:[#allocation87_spill] sm:$0xff] %v9026_v27  ;;  %13159 = vst [vmem:[#allocation88_spill] sm:$0xff] %v9028_v2 }
 0x14e   : > { %724 = vbcast.lane.b32.xlu1 %v694_v44, 312  ;;  %720 = vbcast.lane.b32.xlu0 %v694_v44, 304 }
 0x150   : > { %v9030_v39 = vpop.permute.xlu1 %488  ;;  %v9032_v21 = vpop.permute.xlu0 %484 }
 0x151   : > { %13160 = vst [vmem:[#allocation89_spill] sm:$0xff] %v9030_v39  ;;  %13161 = vst [vmem:[#allocation90_spill] sm:$0xff] %v9032_v21  ;;  %v761_v39 = vrot.slane %v9006_v3, %v8835_v5 }
 0x152   : > { %732 = vbcast.lane.b32.xlu1 %v694_v44, 328  ;;  %728 = vbcast.lane.b32.xlu0 %v694_v44, 320 }
 0x154   : > { %v9034_v42 = vpop.permute.xlu1 %499  ;;  %v9036_v28 = vpop.permute.xlu0 %495 }
 0x156   : > { %740 = vbcast.lane.b32.xlu1 %v694_v44, 344  ;;  %736 = vbcast.lane.b32.xlu0 %v694_v44, 336 }
 0x158   : > { %v9038_v25 = vpop.permute.xlu1 %507  ;;  %v9040_v60 = vpop.permute.xlu0 %503 }
 0x159   : > { %13162 = vst [vmem:[#allocation91_spill] sm:$0xff] %v9038_v25 }
 0x15a   : > { %748 = vbcast.lane.b32.xlu1 %v694_v44, 360  ;;  %744 = vbcast.lane.b32.xlu0 %v694_v44, 352 }
 0x15c   : > { %v9042_v27 = vpop.permute.xlu1 %515  ;;  %v9044_v2 = vpop.permute.xlu0 %511 }
 0x15d   : > { %13163 = vst [vmem:[#allocation92_spill] sm:$0xff] %v9042_v27  ;;  %13164 = vst [vmem:[#allocation93_spill] sm:$0xff] %v9044_v2 }
 0x15e   : > { %756 = vbcast.lane.b32.xlu1 %v694_v44, 376  ;;  %752 = vbcast.lane.b32.xlu0 %v694_v44, 368 }
 0x160   : > { %v9048_v21 = vpop.permute.xlu1 %523  ;;  %v9050_v57 = vpop.permute.xlu0 %519 }
 0x161   : > { %13165 = vst [vmem:[#allocation94_spill] sm:$0xff] %v9048_v21  ;;  %13166 = vst [vmem:[#allocation95_spill] sm:$0xff] %v9050_v57 }
 0x162   : > { %767 = vbcast.lane.b32.xlu1 %v761_v39, 264  ;;  %763 = vbcast.lane.b32.xlu0 %v761_v39, 256 }
 0x164   : > { %v9052_v43 = vpop.permute.xlu1 %531  ;;  %v9054_v37 = vpop.permute.xlu0 %527 }
 0x165   : > { %13167 = vst [vmem:[#allocation96_spill] sm:$0xff] %v9052_v43 }
 0x166   : > { %775 = vbcast.lane.b32.xlu1 %v761_v39, 280  ;;  %771 = vbcast.lane.b32.xlu0 %v761_v39, 272 }
 0x168   : > { %v9056_v19 = vpop.permute.xlu1 %539  ;;  %v9058_v63 = vpop.permute.xlu0 %535 }
 0x169   : > { %13168 = vst [vmem:[#allocation97_spill] sm:$0xff] %v9056_v19  ;;  %13169 = vst [vmem:[#allocation98_spill] sm:$0xff] %v9058_v63 }
 0x16a   : > { %783 = vbcast.lane.b32.xlu1 %v761_v39, 296  ;;  %779 = vbcast.lane.b32.xlu0 %v761_v39, 288 }
 0x16c   : > { %v9060_v44 = vpop.permute.xlu1 %547  ;;  %v9062_v5 = vpop.permute.xlu0 %543 }
 0x16d   : > { %13170 = vst [vmem:[#allocation99_spill] sm:$0xff] %v9060_v44  ;;  %13171 = vst [vmem:[#allocation100_spill] sm:$0xff] %v9062_v5 }
 0x16e   : > { %791 = vbcast.lane.b32.xlu1 %v761_v39, 312  ;;  %787 = vbcast.lane.b32.xlu0 %v761_v39, 304 }
 0x170   : > { %v9064_v21 = vpop.permute.xlu1 %555  ;;  %v9066_v55 = vpop.permute.xlu0 %551 }
 0x171   : > { %13172 = vst [vmem:[#allocation101_spill] sm:$0xff] %v9064_v21  ;;  %13173 = vst [vmem:[#allocation102_spill] sm:$0xff] %v9066_v55  ;;  %v828_v21 = vrot.slane %v9006_v3, %v8840_v7 }
 0x172   : > { %799 = vbcast.lane.b32.xlu1 %v761_v39, 328  ;;  %795 = vbcast.lane.b32.xlu0 %v761_v39, 320 }
 0x174   : > { %v9068_v43 = vpop.permute.xlu1 %566  ;;  %v9070_v59 = vpop.permute.xlu0 %562 }
 0x176   : > { %807 = vbcast.lane.b32.xlu1 %v761_v39, 344  ;;  %803 = vbcast.lane.b32.xlu0 %v761_v39, 336 }
 0x178   : > { %v9072_v19 = vpop.permute.xlu1 %574  ;;  %v9074_v63 = vpop.permute.xlu0 %570 }
 0x179   : > { %13174 = vst [vmem:[#allocation103_spill] sm:$0xff] %v9072_v19  ;;  %13175 = vst [vmem:[#allocation104_spill] sm:$0xff] %v9074_v63 }
 0x17a   : > { %815 = vbcast.lane.b32.xlu1 %v761_v39, 360  ;;  %811 = vbcast.lane.b32.xlu0 %v761_v39, 352 }
 0x17c   : > { %v9076_v44 = vpop.permute.xlu1 %582  ;;  %v9078_v5 = vpop.permute.xlu0 %578 }
 0x17d   : > { %13176 = vst [vmem:[#allocation105_spill] sm:$0xff] %v9076_v44  ;;  %13177 = vst [vmem:[#allocation106_spill] sm:$0xff] %v9078_v5 }
 0x17e   : > { %823 = vbcast.lane.b32.xlu1 %v761_v39, 376  ;;  %819 = vbcast.lane.b32.xlu0 %v761_v39, 368 }
 0x180   : > { %v9082_v55 = vpop.permute.xlu1 %590  ;;  %v9084_v38 = vpop.permute.xlu0 %586 }
 0x181   : > { %13178 = vst [vmem:[#allocation107_spill] sm:$0xff] %v9082_v55  ;;  %13179 = vst [vmem:[#allocation108_spill] sm:$0xff] %v9084_v38 }
 0x182   : > { %834 = vbcast.lane.b32.xlu1 %v828_v21, 264  ;;  %830 = vbcast.lane.b32.xlu0 %v828_v21, 256 }
 0x184   : > { %v9086_v20 = vpop.permute.xlu1 %598  ;;  %v9088_v57 = vpop.permute.xlu0 %594 }
 0x185   : > { %13180 = vst [vmem:[#allocation109_spill] sm:$0xff] %v9086_v20 }
 0x186   : > { %842 = vbcast.lane.b32.xlu1 %v828_v21, 280  ;;  %838 = vbcast.lane.b32.xlu0 %v828_v21, 272 }
 0x188   : > { %v9090_v46 = vpop.permute.xlu1 %606  ;;  %v9092_v56 = vpop.permute.xlu0 %602 }
 0x189   : > { %13181 = vst [vmem:[#allocation110_spill] sm:$0xff] %v9090_v46  ;;  %13182 = vst [vmem:[#allocation111_spill] sm:$0xff] %v9092_v56 }
 0x18a   : > { %850 = vbcast.lane.b32.xlu1 %v828_v21, 296  ;;  %846 = vbcast.lane.b32.xlu0 %v828_v21, 288 }
 0x18c   : > { %v9094_v39 = vpop.permute.xlu1 %614  ;;  %v9096_v7 = vpop.permute.xlu0 %610 }
 0x18d   : > { %13183 = vst [vmem:[#allocation112_spill] sm:$0xff] %v9094_v39  ;;  %13184 = vst [vmem:[#allocation113_spill] sm:$0xff] %v9096_v7 }
 0x18e   : > { %858 = vbcast.lane.b32.xlu1 %v828_v21, 312  ;;  %854 = vbcast.lane.b32.xlu0 %v828_v21, 304 }
 0x190   : > { %v9098_v55 = vpop.permute.xlu1 %622  ;;  %v9100_v38 = vpop.permute.xlu0 %618 }
 0x191   : > { %13185 = vst [vmem:[#allocation114_spill] sm:$0xff] %v9098_v55  ;;  %13186 = vst [vmem:[#allocation115_spill] sm:$0xff] %v9100_v38  ;;  %v895_v55 = vrot.slane %v9006_v3, %v8845_v9 }
 0x192   : > { %866 = vbcast.lane.b32.xlu1 %v828_v21, 328  ;;  %862 = vbcast.lane.b32.xlu0 %v828_v21, 320 }
 0x194   : > { %v9102_v20 = vpop.permute.xlu1 %633  ;;  %v9104_v23 = vpop.permute.xlu0 %629 }
 0x196   : > { %874 = vbcast.lane.b32.xlu1 %v828_v21, 344  ;;  %870 = vbcast.lane.b32.xlu0 %v828_v21, 336 }
 0x198   : > { %v9106_v46 = vpop.permute.xlu1 %641  ;;  %v9108_v56 = vpop.permute.xlu0 %637 }
 0x199   : > { %13187 = vst [vmem:[#allocation116_spill] sm:$0xff] %v9106_v46 }
 0x19a   : > { %882 = vbcast.lane.b32.xlu1 %v828_v21, 360  ;;  %878 = vbcast.lane.b32.xlu0 %v828_v21, 352 }
 0x19c   : > { %v9110_v39 = vpop.permute.xlu1 %649  ;;  %v9112_v7 = vpop.permute.xlu0 %645 }
 0x19d   : > { %13188 = vst [vmem:[#allocation117_spill] sm:$0xff] %v9110_v39  ;;  %13189 = vst [vmem:[#allocation118_spill] sm:$0xff] %v9112_v7 }
 0x19e   : > { %890 = vbcast.lane.b32.xlu1 %v828_v21, 376  ;;  %886 = vbcast.lane.b32.xlu0 %v828_v21, 368 }
 0x1a0   : > { %v9116_v38 = vpop.permute.xlu1 %657  ;;  %v9118_v34 = vpop.permute.xlu0 %653 }
 0x1a1   : > { %13190 = vst [vmem:[#allocation119_spill] sm:$0xff] %v9116_v38  ;;  %13191 = vst [vmem:[#allocation120_spill] sm:$0xff] %v9118_v34 }
 0x1a2   : > { %901 = vbcast.lane.b32.xlu1 %v895_v55, 264  ;;  %897 = vbcast.lane.b32.xlu0 %v895_v55, 256 }
 0x1a4   : > { %v9120_v16 = vpop.permute.xlu1 %665  ;;  %v9122_v44 = vpop.permute.xlu0 %661 }
 0x1a5   : > { %13192 = vst [vmem:[#allocation121_spill] sm:$0xff] %v9120_v16 }
 0x1a6   : > { %909 = vbcast.lane.b32.xlu1 %v895_v55, 280  ;;  %905 = vbcast.lane.b32.xlu0 %v895_v55, 272 }
 0x1a8   : > { %v9124_v27 = vpop.permute.xlu1 %673  ;;  %v9126_v36 = vpop.permute.xlu0 %669 }
 0x1a9   : > { %13193 = vst [vmem:[#allocation122_spill] sm:$0xff] %v9124_v27  ;;  %13194 = vst [vmem:[#allocation123_spill] sm:$0xff] %v9126_v36 }
 0x1aa   : > { %917 = vbcast.lane.b32.xlu1 %v895_v55, 296  ;;  %913 = vbcast.lane.b32.xlu0 %v895_v55, 288 }
 0x1ac   : > { %v9128_v21 = vpop.permute.xlu1 %681  ;;  %v9130_v9 = vpop.permute.xlu0 %677 }
 0x1ad   : > { %13195 = vst [vmem:[#allocation124_spill] sm:$0xff] %v9128_v21  ;;  %13196 = vst [vmem:[#allocation125_spill] sm:$0xff] %v9130_v9 }
 0x1ae   : > { %925 = vbcast.lane.b32.xlu1 %v895_v55, 312  ;;  %921 = vbcast.lane.b32.xlu0 %v895_v55, 304 }
 0x1b0   : > { %v9132_v38 = vpop.permute.xlu1 %689  ;;  %v9134_v34 = vpop.permute.xlu0 %685 }
 0x1b1   : > { %13197 = vst [vmem:[#allocation126_spill] sm:$0xff] %v9132_v38  ;;  %13198 = vst [vmem:[#allocation127_spill] sm:$0xff] %v9134_v34  ;;  %v962_v38 = vrot.slane %v9006_v3, %v8858_v15 }
 0x1b2   : > { %933 = vbcast.lane.b32.xlu1 %v895_v55, 328  ;;  %929 = vbcast.lane.b32.xlu0 %v895_v55, 320 }
 0x1b4   : > { %v9136_v16 = vpop.permute.xlu1 %700  ;;  %v9138_v39 = vpop.permute.xlu0 %696 }
 0x1b6   : > { %941 = vbcast.lane.b32.xlu1 %v895_v55, 344  ;;  %937 = vbcast.lane.b32.xlu0 %v895_v55, 336 }
 0x1b8   : > { %v9140_v27 = vpop.permute.xlu1 %708  ;;  %v9142_v36 = vpop.permute.xlu0 %704 }
 0x1b9   : > { %13199 = vst [vmem:[#allocation128_spill] sm:$0xff] %v9140_v27  ;;  %13200 = vst [vmem:[#allocation129_spill] sm:$0xff] %v9142_v36 }
 0x1ba   : > { %949 = vbcast.lane.b32.xlu1 %v895_v55, 360  ;;  %945 = vbcast.lane.b32.xlu0 %v895_v55, 352 }
 0x1bc   : > { %v9144_v21 = vpop.permute.xlu1 %716  ;;  %v9146_v9 = vpop.permute.xlu0 %712 }
 0x1bd   : > { %13201 = vst [vmem:[#allocation130_spill] sm:$0xff] %v9144_v21  ;;  %13202 = vst [vmem:[#allocation131_spill] sm:$0xff] %v9146_v9 }
 0x1be   : > { %957 = vbcast.lane.b32.xlu1 %v895_v55, 376  ;;  %953 = vbcast.lane.b32.xlu0 %v895_v55, 368 }
 0x1c0   : > { %v9150_v34 = vpop.permute.xlu1 %724  ;;  %v9152_v52 = vpop.permute.xlu0 %720 }
 0x1c1   : > { %13203 = vst [vmem:[#allocation132_spill] sm:$0xff] %v9150_v34  ;;  %13204 = vst [vmem:[#allocation133_spill] sm:$0xff] %v9152_v52 }
 0x1c2   : > { %968 = vbcast.lane.b32.xlu1 %v962_v38, 264  ;;  %964 = vbcast.lane.b32.xlu0 %v962_v38, 256 }
 0x1c4   : > { %v9154_v61 = vpop.permute.xlu1 %732  ;;  %v9156_v35 = vpop.permute.xlu0 %728 }
 0x1c5   : > { %13205 = vst [vmem:[#allocation134_spill] sm:$0xff] %v9154_v61 }
 0x1c6   : > { %976 = vbcast.lane.b32.xlu1 %v962_v38, 280  ;;  %972 = vbcast.lane.b32.xlu0 %v962_v38, 272 }
 0x1c8   : > { %v9158_v21 = vpop.permute.xlu1 %740  ;;  %v9160_v17 = vpop.permute.xlu0 %736 }
 0x1c9   : > { %13206 = vst [vmem:[#allocation135_spill] sm:$0xff] %v9158_v21  ;;  %13207 = vst [vmem:[#allocation136_spill] sm:$0xff] %v9160_v17 }
 0x1ca   : > { %984 = vbcast.lane.b32.xlu1 %v962_v38, 296  ;;  %980 = vbcast.lane.b32.xlu0 %v962_v38, 288 }
 0x1cc   : > { %v9162_v55 = vpop.permute.xlu1 %748  ;;  %v9164_v15 = vpop.permute.xlu0 %744 }
 0x1cd   : > { %13208 = vst [vmem:[#allocation137_spill] sm:$0xff] %v9162_v55  ;;  %13209 = vst [vmem:[#allocation138_spill] sm:$0xff] %v9164_v15 }
 0x1ce   : > { %992 = vbcast.lane.b32.xlu1 %v962_v38, 312  ;;  %988 = vbcast.lane.b32.xlu0 %v962_v38, 304 }
 0x1d0   : > { %v9166_v34 = vpop.permute.xlu1 %756  ;;  %v9168_v52 = vpop.permute.xlu0 %752 }
 0x1d1   : > { %13210 = vst [vmem:[#allocation139_spill] sm:$0xff] %v9166_v34  ;;  %13211 = vst [vmem:[#allocation140_spill] sm:$0xff] %v9168_v52  ;;  %v1029_v34 = vrot.slane %v9006_v3, %v8895_v33 }
 0x1d2   : > { %1000 = vbcast.lane.b32.xlu1 %v962_v38, 328  ;;  %996 = vbcast.lane.b32.xlu0 %v962_v38, 320 }
 0x1d4   : > { %v9170_v61 = vpop.permute.xlu1 %767  ;;  %v9172_v9 = vpop.permute.xlu0 %763 }
 0x1d6   : > { %1008 = vbcast.lane.b32.xlu1 %v962_v38, 344  ;;  %1004 = vbcast.lane.b32.xlu0 %v962_v38, 336 }
 0x1d8   : > { %v9174_v21 = vpop.permute.xlu1 %775  ;;  %v9176_v17 = vpop.permute.xlu0 %771 }
 0x1d9   : > { %13212 = vst [vmem:[#allocation141_spill] sm:$0xff] %v9174_v21  ;;  %13213 = vst [vmem:[#allocation142_spill] sm:$0xff] %v9176_v17 }
 0x1da   : > { %1016 = vbcast.lane.b32.xlu1 %v962_v38, 360  ;;  %1012 = vbcast.lane.b32.xlu0 %v962_v38, 352 }
 0x1dc   : > { %v9178_v55 = vpop.permute.xlu1 %783  ;;  %v9180_v15 = vpop.permute.xlu0 %779 }
 0x1dd   : > { %13214 = vst [vmem:[#allocation143_spill] sm:$0xff] %v9178_v55  ;;  %13215 = vst [vmem:[#allocation144_spill] sm:$0xff] %v9180_v15 }
 0x1de   : > { %1024 = vbcast.lane.b32.xlu1 %v962_v38, 376  ;;  %1020 = vbcast.lane.b32.xlu0 %v962_v38, 368 }
 0x1e0   : > { %v9184_v52 = vpop.permute.xlu1 %791  ;;  %v9186_v5 = vpop.permute.xlu0 %787 }
 0x1e1   : > { %13216 = vst [vmem:[#allocation145_spill] sm:$0xff] %v9184_v52  ;;  %13217 = vst [vmem:[#allocation146_spill] sm:$0xff] %v9186_v5 }
 0x1e2   : > { %1035 = vbcast.lane.b32.xlu1 %v1029_v34, 264  ;;  %1031 = vbcast.lane.b32.xlu0 %v1029_v34, 256 }
 0x1e4   : > { %v9188_v2 = vpop.permute.xlu1 %799  ;;  %v9190_v45 = vpop.permute.xlu0 %795 }
 0x1e5   : > { %13218 = vst [vmem:[#allocation147_spill] sm:$0xff] %v9188_v2 }
 0x1e6   : > { %1043 = vbcast.lane.b32.xlu1 %v1029_v34, 280  ;;  %1039 = vbcast.lane.b32.xlu0 %v1029_v34, 272 }
 0x1e8   : > { %v9192_v55 = vpop.permute.xlu1 %807  ;;  %v9194_v15 = vpop.permute.xlu0 %803 }
 0x1e9   : > { %13219 = vst [vmem:[#allocation148_spill] sm:$0xff] %v9192_v55  ;;  %13220 = vst [vmem:[#allocation149_spill] sm:$0xff] %v9194_v15 }
 0x1ea   : > { %1051 = vbcast.lane.b32.xlu1 %v1029_v34, 296  ;;  %1047 = vbcast.lane.b32.xlu0 %v1029_v34, 288 }
 0x1ec   : > { %v9196_v38 = vpop.permute.xlu1 %815  ;;  %v9198_v33 = vpop.permute.xlu0 %811 }
 0x1ed   : > { %13221 = vst [vmem:[#allocation150_spill] sm:$0xff] %v9196_v38  ;;  %13222 = vst [vmem:[#allocation151_spill] sm:$0xff] %v9198_v33 }
 0x1ee   : > { %1059 = vbcast.lane.b32.xlu1 %v1029_v34, 312  ;;  %1055 = vbcast.lane.b32.xlu0 %v1029_v34, 304 }
 0x1f0   : > { %v9200_v52 = vpop.permute.xlu1 %823  ;;  %v9202_v5 = vpop.permute.xlu0 %819 }
 0x1f1   : > { %13223 = vst [vmem:[#allocation152_spill] sm:$0xff] %v9200_v52  ;;  %13224 = vst [vmem:[#allocation153_spill] sm:$0xff] %v9202_v5  ;;  %v1096_v52 = vrot.slane %v9006_v3, %v8932_v51 }
 0x1f2   : > { %1067 = vbcast.lane.b32.xlu1 %v1029_v34, 328  ;;  %1063 = vbcast.lane.b32.xlu0 %v1029_v34, 320 }
 0x1f4   : > { %v9204_v2 = vpop.permute.xlu1 %834  ;;  %v9206_v7 = vpop.permute.xlu0 %830 }
 0x1f6   : > { %1075 = vbcast.lane.b32.xlu1 %v1029_v34, 344  ;;  %1071 = vbcast.lane.b32.xlu0 %v1029_v34, 336 }
 0x1f8   : > { %v9208_v55 = vpop.permute.xlu1 %842  ;;  %v9210_v15 = vpop.permute.xlu0 %838 }
 0x1f9   : > { %13225 = vst [vmem:[#allocation154_spill] sm:$0xff] %v9208_v55  ;;  %13226 = vst [vmem:[#allocation155_spill] sm:$0xff] %v9210_v15 }
 0x1fa   : > { %1083 = vbcast.lane.b32.xlu1 %v1029_v34, 360  ;;  %1079 = vbcast.lane.b32.xlu0 %v1029_v34, 352 }
 0x1fc   : > { %v9212_v38 = vpop.permute.xlu1 %850  ;;  %v9214_v33 = vpop.permute.xlu0 %846 }
 0x1fd   : > { %13227 = vst [vmem:[#allocation156_spill] sm:$0xff] %v9212_v38  ;;  %13228 = vst [vmem:[#allocation157_spill] sm:$0xff] %v9214_v33 }
 0x1fe   : > { %1091 = vbcast.lane.b32.xlu1 %v1029_v34, 376  ;;  %1087 = vbcast.lane.b32.xlu0 %v1029_v34, 368 }
 0x200   : > { %v9218_v5 = vpop.permute.xlu1 %858  ;;  %v9220_v53 = vpop.permute.xlu0 %854 }
 0x201   : > { %13229 = vst [vmem:[#allocation158_spill] sm:$0xff] %v9218_v5  ;;  %13230 = vst [vmem:[#allocation159_spill] sm:$0xff] %v9220_v53 }
 0x202   : > { %1102 = vbcast.lane.b32.xlu1 %v1096_v52, 264  ;;  %1098 = vbcast.lane.b32.xlu0 %v1096_v52, 256 }
 0x204   : > { %v9222_v41 = vpop.permute.xlu1 %866  ;;  %v9224_v31 = vpop.permute.xlu0 %862 }
 0x205   : > { %13231 = vst [vmem:[#allocation160_spill] sm:$0xff] %v9222_v41 }
 0x206   : > { %1110 = vbcast.lane.b32.xlu1 %v1096_v52, 280  ;;  %1106 = vbcast.lane.b32.xlu0 %v1096_v52, 272 }
 0x208   : > { %v9226_v38 = vpop.permute.xlu1 %874  ;;  %v9228_v33 = vpop.permute.xlu0 %870 }
 0x209   : > { %13232 = vst [vmem:[#allocation161_spill] sm:$0xff] %v9226_v38  ;;  %13233 = vst [vmem:[#allocation162_spill] sm:$0xff] %v9228_v33 }
 0x20a   : > { %1118 = vbcast.lane.b32.xlu1 %v1096_v52, 296  ;;  %1114 = vbcast.lane.b32.xlu0 %v1096_v52, 288 }
 0x20c   : > { %v9230_v51 = vpop.permute.xlu1 %882  ;;  %v9232_v34 = vpop.permute.xlu0 %878 }
 0x20d   : > { %13234 = vst [vmem:[#allocation163_spill] sm:$0xff] %v9230_v51  ;;  %13235 = vst [vmem:[#allocation164_spill] sm:$0xff] %v9232_v34 }
 0x20e   : > { %1126 = vbcast.lane.b32.xlu1 %v1096_v52, 312  ;;  %1122 = vbcast.lane.b32.xlu0 %v1096_v52, 304 }
 0x210   : > { %v9234_v5 = vpop.permute.xlu1 %890  ;;  %v9236_v53 = vpop.permute.xlu0 %886 }
 0x211   : > { %13236 = vst [vmem:[#allocation165_spill] sm:$0xff] %v9234_v5  ;;  %13237 = vst [vmem:[#allocation166_spill] sm:$0xff] %v9236_v53  ;;  %v1163_v5 = vrot.slane %v9006_v3, %v8969_v18 }
 0x212   : > { %1134 = vbcast.lane.b32.xlu1 %v1096_v52, 328  ;;  %1130 = vbcast.lane.b32.xlu0 %v1096_v52, 320 }
 0x214   : > { %v9238_v41 = vpop.permute.xlu1 %901  ;;  %v9240_v21 = vpop.permute.xlu0 %897 }
 0x216   : > { %1142 = vbcast.lane.b32.xlu1 %v1096_v52, 344  ;;  %1138 = vbcast.lane.b32.xlu0 %v1096_v52, 336 }
 0x218   : > { %v9242_v38 = vpop.permute.xlu1 %909  ;;  %v9244_v33 = vpop.permute.xlu0 %905 }
 0x219   : > { %13238 = vst [vmem:[#allocation167_spill] sm:$0xff] %v9242_v38 }
 0x21a   : > { %1150 = vbcast.lane.b32.xlu1 %v1096_v52, 360  ;;  %1146 = vbcast.lane.b32.xlu0 %v1096_v52, 352 }
 0x21c   : > { %v9246_v51 = vpop.permute.xlu1 %917  ;;  %v9248_v34 = vpop.permute.xlu0 %913 }
 0x21d   : > { %13239 = vst [vmem:[#allocation168_spill] sm:$0xff] %v9246_v51  ;;  %13240 = vst [vmem:[#allocation169_spill] sm:$0xff] %v9248_v34 }
 0x21e   : > { %1158 = vbcast.lane.b32.xlu1 %v1096_v52, 376  ;;  %1154 = vbcast.lane.b32.xlu0 %v1096_v52, 368 }
 0x220   : > { %v9252_v53 = vpop.permute.xlu1 %925  ;;  %v9254_v13 = vpop.permute.xlu0 %921 }
 0x221   : > { %13241 = vst [vmem:[#allocation170_spill] sm:$0xff] %v9252_v53  ;;  %13242 = vst [vmem:[#allocation171_spill] sm:$0xff] %v9254_v13 }
 0x222   : > { %1169 = vbcast.lane.b32.xlu1 %v1163_v5, 264  ;;  %1165 = vbcast.lane.b32.xlu0 %v1163_v5, 256 }
 0x224   : > { %v9256_v27 = vpop.permute.xlu1 %933  ;;  %v9258_v19 = vpop.permute.xlu0 %929 }
 0x225   : > { %13243 = vst [vmem:[#allocation172_spill] sm:$0xff] %v9256_v27 }
 0x226   : > { %1177 = vbcast.lane.b32.xlu1 %v1163_v5, 280  ;;  %1173 = vbcast.lane.b32.xlu0 %v1163_v5, 272 }
 0x228   : > { %v9260_v51 = vpop.permute.xlu1 %941  ;;  %v9262_v34 = vpop.permute.xlu0 %937 }
 0x229   : > { %13244 = vst [vmem:[#allocation173_spill] sm:$0xff] %v9260_v51  ;;  %13245 = vst [vmem:[#allocation174_spill] sm:$0xff] %v9262_v34 }
 0x22a   : > { %1185 = vbcast.lane.b32.xlu1 %v1163_v5, 296  ;;  %1181 = vbcast.lane.b32.xlu0 %v1163_v5, 288 }
 0x22c   : > { %v9264_v3 = vpop.permute.xlu1 %949  ;;  %v9266_v52 = vpop.permute.xlu0 %945 }
 0x22d   : > { %13246 = vst [vmem:[#allocation175_spill] sm:$0xff] %v9264_v3  ;;  %13247 = vst [vmem:[#allocation176_spill] sm:$0xff] %v9266_v52 }
 0x22e   : > { %1193 = vbcast.lane.b32.xlu1 %v1163_v5, 312  ;;  %1189 = vbcast.lane.b32.xlu0 %v1163_v5, 304 }
 0x230   : > { %v9268_v18 = vpop.permute.xlu1 %957  ;;  %v9270_v53 = vpop.permute.xlu0 %953 }
 0x231   : > { %13248 = vst [vmem:[#allocation177_spill] sm:$0xff] %v9268_v18  ;;  %13249 = vst [vmem:[#allocation178_spill] sm:$0xff] %v9270_v53 }
 0x232   : > { %1201 = vbcast.lane.b32.xlu1 %v1163_v5, 328  ;;  %1197 = vbcast.lane.b32.xlu0 %v1163_v5, 320 }
 0x234   : > { %v9272_v27 = vpop.permute.xlu1 %968  ;;  %v9274_v13 = vpop.permute.xlu0 %964 }
 0x236   : > { %1209 = vbcast.lane.b32.xlu1 %v1163_v5, 344  ;;  %1205 = vbcast.lane.b32.xlu0 %v1163_v5, 336 }
 0x238   : > { %v9276_v51 = vpop.permute.xlu1 %976  ;;  %v9278_v34 = vpop.permute.xlu0 %972 }
 0x239   : > { %13250 = vst [vmem:[#allocation179_spill] sm:$0xff] %v9276_v51  ;;  %13251 = vst [vmem:[#allocation180_spill] sm:$0xff] %v9278_v34 }
 0x23a   : > { %1217 = vbcast.lane.b32.xlu1 %v1163_v5, 360  ;;  %1213 = vbcast.lane.b32.xlu0 %v1163_v5, 352 }
 0x23c   : > { %v9280_v3 = vpop.permute.xlu1 %984  ;;  %v9282_v52 = vpop.permute.xlu0 %980 }
 0x23d   : > { %13252 = vst [vmem:[#allocation181_spill] sm:$0xff] %v9280_v3  ;;  %13253 = vst [vmem:[#allocation182_spill] sm:$0xff] %v9282_v52 }
 0x23e   : > { %1225 = vbcast.lane.b32.xlu1 %v1163_v5, 376  ;;  %1221 = vbcast.lane.b32.xlu0 %v1163_v5, 368 }
 0x240   : > { %v9284_v18 = vpop.permute.xlu1 %992  ;;  %v9286_v53 = vpop.permute.xlu0 %988 }
 0x241   : > { %13254 = vst [vmem:[#allocation183_spill] sm:$0xff] %v9284_v18  ;;  %13255 = vst [vmem:[#allocation184_spill] sm:$0xff] %v9286_v53 }
 0x244   : > { %v9288_v25 = vpop.permute.xlu1 %1000  ;;  %v9290_v8 = vpop.permute.xlu0 %996 }
 0x245   : > { %13256 = vst [vmem:[#allocation185_spill] sm:$0xff] %v9288_v25 }
 0x248   : > { %v9292_v38 = vpop.permute.xlu1 %1008  ;;  %v9294_v51 = vpop.permute.xlu0 %1004 }
 0x249   : > { %13257 = vst [vmem:[#allocation186_spill] sm:$0xff] %v9292_v38  ;;  %13258 = vst [vmem:[#allocation187_spill] sm:$0xff] %v9294_v51 }
 0x24c   : > { %v9296_v46 = vpop.permute.xlu1 %1016  ;;  %v9298_v49 = vpop.permute.xlu0 %1012 }
 0x24d   : > { %13259 = vst [vmem:[#allocation188_spill] sm:$0xff] %v9296_v46  ;;  %13260 = vst [vmem:[#allocation189_spill] sm:$0xff] %v9298_v49 }
 0x250   : > { %v9300_v3 = vpop.permute.xlu1 %1024  ;;  %v9302_v52 = vpop.permute.xlu0 %1020 }
 0x251   : > { %13261 = vst [vmem:[#allocation190_spill] sm:$0xff] %v9300_v3  ;;  %13262 = vst [vmem:[#allocation191_spill] sm:$0xff] %v9302_v52 }
 0x254   : > { %v9304_v5 = vpop.permute.xlu1 %1035  ;;  %v1032_v18 = vpop.permute.xlu0 %1031 }
 0x258   : > { %v9306_v53 = vpop.permute.xlu1 %1043  ;;  %v9308_v25 = vpop.permute.xlu0 %1039 }
 0x259   : > { %13263 = vst [vmem:[#allocation192_spill] sm:$0xff] %v9306_v53 }
 0x25c   : > { %v9310_v55 = vpop.permute.xlu1 %1051  ;;  %v9312_v38 = vpop.permute.xlu0 %1047 }
 0x25d   : > { %13264 = vst [vmem:[#allocation193_spill] sm:$0xff] %v9310_v55  ;;  %13265 = vst [vmem:[#allocation194_spill] sm:$0xff] %v9312_v38 }
 0x260   : > { %v9314_v51 = vpop.permute.xlu1 %1059  ;;  %v9316_v46 = vpop.permute.xlu0 %1055 }
 0x261   : > { %13266 = vst [vmem:[#allocation195_spill] sm:$0xff] %v9314_v51  ;;  %13267 = vst [vmem:[#allocation196_spill] sm:$0xff] %v9316_v46 }
 0x264   : > { %v9318_v49 = vpop.permute.xlu1 %1067  ;;  %v9320_v3 = vpop.permute.xlu0 %1063 }
 0x265   : > { %13268 = vst [vmem:[#allocation197_spill] sm:$0xff] %v9318_v49 }
 0x268   : > { %v9322_v52 = vpop.permute.xlu1 %1075  ;;  %v9324_v11 = vpop.permute.xlu0 %1071 }
 0x269   : > { %13269 = vst [vmem:[#allocation198_spill] sm:$0xff] %v9322_v52  ;;  %13270 = vst [vmem:[#allocation199_spill] sm:$0xff] %v9324_v11 }
 0x26c   : > { %v9326_v36 = vpop.permute.xlu1 %1083  ;;  %v9328_v53 = vpop.permute.xlu0 %1079 }
 0x26d   : > { %13271 = vst [vmem:[#allocation200_spill] sm:$0xff] %v9326_v36  ;;  %13272 = vst [vmem:[#allocation201_spill] sm:$0xff] %v9328_v53 }
 0x270   : > { %v9330_v54 = vpop.permute.xlu1 %1091  ;;  %v9332_v55 = vpop.permute.xlu0 %1087 }
 0x271   : > { %13273 = vst [vmem:[#allocation202_spill] sm:$0xff] %v9330_v54  ;;  %13274 = vst [vmem:[#allocation203_spill] sm:$0xff] %v9332_v55  ;;  %v8653_v55 = vmov 1983009808  }
 0x272   : > { %v1359_v50 = vunpack.c.l.s4 %v8653_v55 }
 0x274   : > { %v9334_v38 = vpop.permute.xlu1 %1102  ;;  %v1099_v51 = vpop.permute.xlu0 %1098 }
 0x278   : > { %v9336_v46 = vpop.permute.xlu1 %1110  ;;  %v9338_v49 = vpop.permute.xlu0 %1106 }
 0x279   : > { %13275 = vst [vmem:[#allocation204_spill] sm:$0xff] %v9336_v46 }
 0x27c   : > { %v9340_v34 = vpop.permute.xlu0 %1114  ;;  %v9342_v52 = vpop.permute.xlu1 %1118 }
 0x27d   : > { %13276 = vst [vmem:[#allocation205_spill] sm:$0xff] %v9340_v34  ;;  %13277 = vst [vmem:[#allocation206_spill] sm:$0xff] %v9342_v52  ;;  %v1276_v34 = vsel %vm1227_vm0, %v8962_v6, %v9240_v21  ;;  %v1360_v52 = vunpack.c.0.s8 %v1359_v50  ;;  %v1228_v6 = vsel %vm1227_vm0, %v8851_v12, %v9138_v39  ;;  %v1324_v50 = vsel %vm1227_vm0, %v9070_v59, %v1099_v51 }
 0x280   : > { %v9344_v11 = vpop.permute.xlu0 %1122  ;;  %v9346_v36 = vpop.permute.xlu1 %1126 }
 0x281   : > { %13278 = vst [vmem:[#allocation207_spill] sm:$0xff] %v9344_v11  ;;  %13279 = vst [vmem:[#allocation208_spill] sm:$0xff] %v9346_v36  ;;  %v1244_v36 = vsel %vm1227_vm0, %v8888_v30, %v9172_v9  ;;  %v8654_v11 = vmov 1934713408   ;;  %v9375_v9 = vsub.s32 %v1360_v52, %v8824_v1 }
 0x282   : > { %v1423_v55 = vunpack.c.l.s4 %v8654_v11  ;;  %v1372_v32 = vcombine.low %v1244_v36, %v1276_v34 }
 0x284   : > { %v9348_v53 = vpop.permute.xlu0 %1130  ;;  %v9352_v15 = vpop.permute.xlu1 %1134  ;;  %v1424_v11 = vunpack.c.0.s8 %v1423_v55 }
 0x285   : > { %13281 = vst [vmem:[#allocation210_spill] sm:$0xff] %v9352_v15 }
 0x286   : > { %v9389_v52 = vsub.s32 %v1424_v11, %v8824_v1 }
 0x288   : > { %v9350_v54 = vpop.permute.xlu0 %1138  ;;  %v9365_v15 = vpop.permute.xlu1 %1142 }
 0x289   : > { %13280 = vst [vmem:[#allocation209_spill] sm:$0xff] %v9350_v54  ;;  %v1260_v54 = vsel %vm1227_vm0, %v8925_v48, %v9206_v7  ;;  %13283 = vst [vmem:[#allocation212_spill] sm:$0xff] %v9365_v15  ;;  %v1292_v7 = vsel %vm1227_vm0, %v8999_v62, %v9274_v13  ;;  %v1380_v48 = vrot.slane %v1372_v32, %v9375_v9 }
 0x28a   : > { %v1356_v30 = vcombine.low %v1228_v6, %v1260_v54  ;;  %v1388_v21 = vcombine.low %v1292_v7, %v1324_v50  ;;  %v1389_v1 = vcombine.high %v1292_v7, %v1324_v50 }
 0x28c   : > { %v9354_v46 = vpop.permute.xlu0 %1146  ;;  %v1364_v51 = vrot.slane %v1356_v30, %v9375_v9  ;;  %v9386_v59 = vpop.permute.xlu1 %1150  ;;  %v1396_v62 = vrot.slane %v1388_v21, %v9375_v9  ;;  %v1373_v30 = vcombine.high %v1244_v36, %v1276_v34 }
 0x28d   : > { %13282 = vst [vmem:[#allocation211_spill] sm:$0xff] %v9354_v46  ;;  %v1308_v46 = vsel %vm1227_vm0, %v9036_v28, %v1032_v18  ;;  %13285 = vst [vmem:[#allocation214_spill] sm:$0xff] %v9386_v59  ;;  %v1357_v59 = vcombine.high %v1228_v6, %v1260_v54  ;;  %v9420_v6 = vsel %vm1227_vm0, %v8960_v4, %v9238_v41 }
 0x28e   : > { %v1420_v13 = vcombine.low %v1364_v51, %v1380_v48  ;;  %v9437_v41 = vsel %vm1227_vm0, %v8886_v29, %v9170_v61  ;;  %v9442_v4 = vsel %vm1227_vm0, %v8923_v47, %v9204_v2  ;;  %v9455_v29 = vsel %vm1227_vm0, %v8997_v26, %v9272_v27 }
 0x28f   : > { %v1371_v36 = vrot.slane %v1357_v59, %v9375_v9  ;;  %v9427_v59 = vsel %vm1227_vm0, %v9034_v42, %v9304_v5  ;;  %v9461_v2 = vsel %vm1227_vm0, %v8855_v14, %v9136_v16  ;;  %v9471_v26 = vsel %vm1227_vm0, %v8983_v0, %v9258_v19 }
 0x290   : > { %v9367_v17 = vpop.permute.xlu0 %1154  ;;  %v9394_v15 = vrot.slane %v1420_v13, %v9389_v52  ;;  %v9396_v28 = vpop.permute.xlu1 %1158  ;;  %v1387_v13 = vrot.slane %v1373_v30, %v9375_v9  ;;  %v1492_v5 = vcombine.low %v9461_v2, %v9442_v4  ;;  %v9479_v14 = vsel %vm1227_vm0, %v8909_v40, %v9190_v45 }
 0x291   : > { %13284 = vst [vmem:[#allocation213_spill] sm:$0xff] %v9367_v17  ;;  %13286 = vst [vmem:[#allocation215_spill] sm:$0xff] %v9396_v28  ;;  %v1403_v28 = vrot.slane %v1389_v1, %v9375_v9  ;;  %v9484_v16 = vsel %vm1227_vm0, %v8946_v58, %v9224_v31  ;;  %v2460_v0 = vcombine.low %v9479_v14, %v9471_v26 }
 0x292   : > { %v1436_v7 = vcombine.low %v1371_v36, %v1387_v13  ;;  %v1437_v19 = vcombine.high %v1371_v36, %v1387_v13  ;;  %v9496_v40 = vsel %vm1227_vm0, %v8872_v22, %v9156_v35  ;;  %v1500_v31 = vrot.slane %v1492_v5, %v9375_v9 }
 0x293   : > { %v9502_v45 = vsel %vm1227_vm0, %v9088_v57, %v9348_v53  ;;  %v2444_v58 = vcombine.low %v9496_v40, %v9484_v16  ;;  %v9512_v22 = vsel %vm1227_vm0, %v9020_v24, %v9290_v8  ;;  %v9520_v57 = vrot.slane %v2460_v0, %v9375_v9  ;;  %v13291_v0 = vld [vmem:[#allocation38_spill] sm:$0xff] }
 0x294   : > { %v1166_v17 = vpop.permute.xlu0 %1165  ;;  %v1444_v47 = vrot.slane %v1436_v7, %v9389_v52  ;;  %v1451_v53 = vrot.slane %v1437_v19, %v9389_v52  ;;  %v9527_v36 = vsel %vm1227_vm0, %v9054_v37, %v9320_v3 }
 0x295   : > { %v1340_v12 = vsel %vm1227_vm0, %v9104_v23, %v1166_v17  ;;  %v9531_v24 = vrot.slane %v2444_v58, %v9375_v9  ;;  %v13292_v58 = vld [vmem:[#allocation155_spill] sm:$0xff] }
 0x296   : > { %v1404_v39 = vcombine.low %v1308_v46, %v1340_v12  ;;  %v1405_v17 = vcombine.high %v1308_v46, %v1340_v12  ;;  %v1170_v46 = vpop.permute.xlu1 %1169 }
 0x297   : > { %v9415_v54 = vsel %vm1227_vm0, %v9102_v20, %v1170_v46  ;;  %v9432_v20 = vsel %vm1227_vm0, %v9068_v43, %v9334_v38  ;;  %v1508_v38 = vcombine.low %v9437_v41, %v9420_v6  ;;  %v2476_v46 = vcombine.low %v9512_v22, %v9502_v45 }
 0x298   : > { %v1412_v32 = vrot.slane %v1404_v39, %v9375_v9  ;;  %v9401_v18 = vpop.permute.xlu0 %1173  ;;  %v1421_v39 = vcombine.high %v1364_v51, %v1380_v48  ;;  %v1419_v63 = vrot.slane %v1405_v17, %v9375_v9  ;;  %v1524_v61 = vcombine.low %v9455_v29, %v9432_v20 }
 0x299   : > { %v9487_v30 = vrot.slane %v1508_v38, %v9375_v9  ;;  %v9540_v37 = vrot.slane %v2476_v46, %v9375_v9  ;;  %v1541_v3 = vcombine.high %v9427_v59, %v9415_v54 }
 0x29a   : > { %v1452_v55 = vcombine.low %v1396_v62, %v1412_v32  ;;  %v1453_v11 = vcombine.high %v1396_v62, %v1412_v32  ;;  %v1435_v34 = vrot.slane %v1421_v39, %v9389_v52  ;;  %v1468_v50 = vcombine.low %v1403_v28, %v1419_v63 }
 0x29b   : > { %v1540_v62 = vcombine.low %v9427_v59, %v9415_v54  ;;  %v1469_v32 = vcombine.high %v1403_v28, %v1419_v63  ;;  %v1532_v63 = vrot.slane %v1524_v61, %v9375_v9  ;;  %v1556_v39 = vcombine.low %v1500_v31, %v9487_v30 }
 0x29c   : > { %v9399_v23 = vrot.slane %v1452_v55, %v9389_v52  ;;  %v1467_v12 = vrot.slane %v1453_v11, %v9389_v52  ;;  %v9409_v55 = vpop.permute.xlu0 %1181  ;;  %v1476_v42 = vrot.slane %v1468_v50, %v9389_v52  ;;  %v2508_v50 = vcombine.low %v9531_v24, %v9520_v57 }
 0x29d   : > { %v9474_v27 = vrot.slane %v1540_v62, %v9375_v9  ;;  %v1483_v11 = vrot.slane %v1469_v32, %v9389_v52  ;;  %v1525_v62 = vcombine.high %v9455_v29, %v9432_v20  ;;  %v1493_v54 = vcombine.high %v9461_v2, %v9442_v4 }
 0x29e   : > { %v1486_v48 = vcombine.low %v1435_v34, %v1467_v12  ;;  %v1485_v51 = vcombine.high %v9394_v15, %v9399_v23  ;;  %v1488_v17 = vcombine.low %v1444_v47, %v1476_v42  ;;  %v1487_v35 = vcombine.high %v1435_v34, %v1467_v12 }
 0x29f   : > { %v1588_v1 = vcombine.low %v1532_v63, %v9474_v27  ;;  %v1490_v12 = vcombine.low %v1451_v53, %v1483_v11  ;;  %v1564_v34 = vrot.slane %v1556_v39, %v9389_v52  ;;  %v9558_v59 = vrot.slane %v2508_v50, %v9389_v52  ;;  %v13295_v39 = vld [vmem:[#allocation79_spill] sm:$0xff] }
 0x2a0   : > { %3537 = vrot.lane.b32.xlu1 %v1486_v48, %s12995_s18  ;;  %v9448_v43 = vpop.permute.xlu0 %1189  ;;  %3533 = vrot.lane.b32.xlu0 %v1485_v51, %s12993_s24  ;;  %v1509_v48 = vcombine.high %v9437_v41, %v9420_v6  ;;  %v1489_v51 = vcombine.high %v1444_v47, %v1476_v42  ;;  %v1555_v5 = vrot.slane %v1541_v3, %v9375_v9 }
 0x2a1   : > { %v1596_v8 = vrot.slane %v1588_v1, %v9389_v52  ;;  %13287 = vst [vmem:[#allocation216_spill] sm:$0xff] %v9558_v59  ;;  %v1589_v6 = vcombine.high %v1532_v63, %v9474_v27  ;;  %v1557_v4 = vcombine.high %v1500_v31, %v9487_v30  ;;  %v1539_v42 = vrot.slane %v1525_v62, %v9375_v9  ;;  %v13293_v1 = vld [vmem:[#allocation52_spill] sm:$0xff] }
 0x2a2   : > { %v1523_v20 = vrot.slane %v1509_v48, %v9375_v9  ;;  %v1342_v29 = vsel %vm1227_vm0, %v9108_v56, %v9401_v18  ;;  %v1507_v47 = vrot.slane %v1493_v54, %v9375_v9  ;;  %v1278_v27 = vsel %vm1227_vm0, %v8966_v10, %v9244_v33  ;;  %v13290_v18 = vld [vmem:[#allocation142_spill] sm:$0xff] }
 0x2a3   : > { %v1620_v61 = vcombine.low %v1564_v34, %v1596_v8  ;;  %v1310_v32 = vsel %vm1227_vm0, %v9040_v60, %v9308_v25  ;;  %v1603_v19 = vrot.slane %v1589_v6, %v9389_v52  ;;  %v1604_v56 = vcombine.low %v1539_v42, %v1555_v5  ;;  %v13294_v60 = vld [vmem:[#allocation180_spill] sm:$0xff] }
 0x2a4   : > { %3545 = vrot.lane.b32.xlu1 %v1488_v17, %s12991_s25  ;;  %v1198_v28 = vpop.permute.xlu0 %1197  ;;  %3541 = vrot.lane.b32.xlu0 %v1487_v35, %s12989_s26  ;;  %v13289_v17 = vld [vmem:[#allocation104_spill] sm:$0xff]  ;;  %v1246_v63 = vsel %vm1227_vm0, %v13291_v0, %v13290_v18  ;;  %v1491_v31 = vcombine.high %v1451_v53, %v1483_v11  ;;  %v1262_v33 = vsel %vm1227_vm0, %v13293_v1, %v13292_v58  ;;  %v1178_v0 = vpop.permute.xlu1 %1177 }
 0x2a5   : > { %v9516_v13 = vsel %vm1227_vm0, %v9122_v44, %v1198_v28  ;;  %v1326_v30 = vsel %vm1227_vm0, %v13289_v17, %v9338_v49  ;;  %v1676_v28 = vcombine.low %v1310_v32, %v1342_v29  ;;  %v1571_v10 = vrot.slane %v1557_v4, %v9389_v52 }
 0x2a6   : > { %v2492_v44 = vcombine.low %v9527_v36, %v9516_v13  ;;  %v1572_v25 = vcombine.low %v1507_v47, %v1523_v20  ;;  %v1294_v49 = vsel %vm1227_vm0, %v13295_v39, %v13294_v60  ;;  %v1644_v35 = vcombine.low %v1246_v63, %v1278_v27  ;;  %v13298_v60 = vld [vmem:[#allocation154_spill] sm:$0xff]  ;;  %v13300_v39 = vld [vmem:[#allocation116_spill] sm:$0xff] }
 0x2a7   : > { %v1660_v46 = vcombine.low %v1294_v49, %v1326_v30  ;;  %v1612_v53 = vrot.slane %v1604_v56, %v9389_v52  ;;  %v1622_v50 = vcombine.low %v1571_v10, %v1603_v19  ;;  %v1605_v48 = vcombine.high %v1539_v42, %v1555_v5 }
 0x2a8   : > { %v9545_v7 = vrot.slane %v2492_v44, %v9375_v9  ;;  %3553 = vrot.lane.b32.xlu1 %v1490_v12, %s12987_s27  ;;  %3549 = vrot.lane.b32.xlu0 %v1489_v51, %s12985_s28  ;;  %v13296_v44 = vld [vmem:[#allocation129_spill] sm:$0xff]  ;;  %v13297_v12 = vld [vmem:[#allocation23_spill] sm:$0xff]  ;;  %v1684_v51 = vrot.slane %v1676_v28, %v9375_v9  ;;  %v1621_v62 = vcombine.high %v1564_v34, %v1596_v8 }
 0x2a9   : > { %v1230_v11 = vsel %vm1227_vm0, %v13297_v12, %v13296_v44  ;;  %v1652_v54 = vrot.slane %v1644_v35, %v9375_v9  ;;  %v1668_v6 = vrot.slane %v1660_v46, %v9375_v9  ;;  %v1619_v5 = vrot.slane %v1605_v48, %v9389_v52  ;;  %v13302_v35 = vld [vmem:[#allocation65_spill] sm:$0xff]  ;;  %v13303_v44 = vld [vmem:[#allocation192_spill] sm:$0xff]  ;;  %v13304_v12 = vld [vmem:[#allocation91_spill] sm:$0xff] }
 0x2aa   : > { %v2540_v38 = vcombine.low %v9540_v37, %v9545_v7  ;;  %v1628_v3 = vcombine.low %v1230_v11, %v1262_v33  ;;  %v1677_v42 = vcombine.high %v1310_v32, %v1342_v29  ;;  %v1629_v34 = vcombine.high %v1230_v11, %v1262_v33  ;;  %v13299_v29 = vld [vmem:[#allocation51_spill] sm:$0xff] }
 0x2ab   : > { %v1724_v8 = vcombine.low %v1668_v6, %v1684_v51  ;;  %v1661_v18 = vcombine.high %v1294_v49, %v1326_v30  ;;  %v1623_v28 = vcombine.high %v1571_v10, %v1603_v19  ;;  %v1725_v58 = vcombine.high %v1668_v6, %v1684_v51  ;;  %v13301_v49 = vld [vmem:[#allocation167_spill] sm:$0xff] }
 0x2ac   : > { %v9563_v41 = vrot.slane %v2540_v38, %v9389_v52  ;;  %3561 = vrot.lane.b32.xlu1 %v1620_v61, %s12982_s29  ;;  %3557 = vrot.lane.b32.xlu0 %v1491_v31, %s12980_s30  ;;  %v1580_v38 = vrot.slane %v1572_v25, %v9389_v52  ;;  %v1573_v61 = vcombine.high %v1507_v47, %v1523_v20 }
 0x2ad   : > { %v1636_v17 = vrot.slane %v1628_v3, %v9375_v9  ;;  %v1645_v47 = vcombine.high %v1246_v63, %v1278_v27  ;;  %v1691_v31 = vrot.slane %v1677_v42, %v9375_v9  ;;  %v1732_v1 = vrot.slane %v1724_v8, %v9389_v52  ;;  %v13306_v3 = vld [vmem:[#allocation103_spill] sm:$0xff]  ;;  %v13309_v8 = vld [vmem:[#allocation141_spill] sm:$0xff] }
 0x2ae   : > { %13288 = vst [vmem:[#allocation217_spill] sm:$0xff] %v9563_v41  ;;  %v1624_v4 = vcombine.low %v1580_v38, %v1612_v53  ;;  %v1587_v20 = vrot.slane %v1573_v61, %v9389_v52  ;;  %v9615_v32 = vsel %vm1227_vm0, %v13299_v29, %v13298_v60  ;;  %v1643_v33 = vrot.slane %v1629_v34, %v9375_v9  ;;  %v13310_v34 = vld [vmem:[#allocation37_spill] sm:$0xff] }
 0x2af   : > { %v1692_v56 = vcombine.low %v1636_v17, %v1652_v54  ;;  %v1343_v27 = vsel %vm1227_vm0, %v13300_v39, %v1178_v0  ;;  %v1659_v30 = vrot.slane %v1645_v47, %v9375_v9  ;;  %v1693_v19 = vcombine.high %v1636_v17, %v1652_v54  ;;  %v13308_v17 = vld [vmem:[#allocation24_spill] sm:$0xff] }
 0x2b0   : > { %3569 = vrot.lane.b32.xlu1 %v1622_v50, %s12978_s2  ;;  %3565 = vrot.lane.b32.xlu0 %v1621_v62, %s12976_s3  ;;  %v1626_v25 = vcombine.low %v1587_v20, %v1619_v5  ;;  %v1675_v10 = vrot.slane %v1661_v18, %v9375_v9  ;;  %v1279_v46 = vsel %vm1227_vm0, %v13302_v35, %v13301_v49  ;;  %v13305_v50 = vld [vmem:[#allocation204_spill] sm:$0xff]  ;;  %v13312_v18 = vld [vmem:[#allocation78_spill] sm:$0xff] }
 0x2b1   : > { %v1700_v63 = vrot.slane %v1692_v56, %v9389_v52  ;;  %v1311_v11 = vsel %vm1227_vm0, %v13304_v12, %v13303_v44  ;;  %v1327_v48 = vsel %vm1227_vm0, %v13306_v3, %v13305_v50  ;;  %v1625_v51 = vcombine.high %v1580_v38, %v1612_v53  ;;  %v13311_v56 = vld [vmem:[#allocation179_spill] sm:$0xff] }
 0x2b2   : > { %v1812_v62 = vcombine.low %v1311_v11, %v1343_v27  ;;  %v1739_v61 = vrot.slane %v1725_v58, %v9389_v52  ;;  %v1740_v54 = vcombine.low %v1675_v10, %v1691_v31  ;;  %v1247_v47 = vsel %vm1227_vm0, %v13310_v34, %v13309_v8  ;;  %v13315_v8 = vld [vmem:[#allocation118_spill] sm:$0xff] }
 0x2b3   : > { %v1756_v6 = vcombine.low %v1700_v63, %v1732_v1  ;;  %v1295_v0 = vsel %vm1227_vm0, %v13312_v18, %v13311_v56  ;;  %v1780_v53 = vcombine.low %v1247_v47, %v1279_v46  ;;  %v1707_v38 = vrot.slane %v1693_v19, %v9389_v52  ;;  %v13316_v18 = vld [vmem:[#allocation169_spill] sm:$0xff] }
 0x2b4   : > { %3577 = vrot.lane.b32.xlu1 %v1624_v4, %s12973_s4  ;;  %3573 = vrot.lane.b32.xlu0 %v1623_v28, %s12971_s5  ;;  %v13307_v4 = vld [vmem:[#allocation128_spill] sm:$0xff]  ;;  %v1708_v28 = vcombine.low %v1643_v33, %v1659_v30  ;;  %v1796_v58 = vcombine.low %v1295_v0, %v1327_v48  ;;  %v1627_v60 = vcombine.high %v1587_v20, %v1619_v5 }
 0x2b5   : > { %v1231_v42 = vsel %vm1227_vm0, %v13308_v17, %v13307_v4  ;;  %v1820_v29 = vrot.slane %v1812_v62, %v9375_v9  ;;  %v1741_v39 = vcombine.high %v1675_v10, %v1691_v31  ;;  %v1748_v49 = vrot.slane %v1740_v54, %v9389_v52  ;;  %v13313_v17 = vld [vmem:[#allocation157_spill] sm:$0xff] }
 0x2b6   : > { %v1758_v35 = vcombine.low %v1707_v38, %v1739_v61  ;;  %v1788_v44 = vrot.slane %v1780_v53, %v9375_v9  ;;  %v1709_v19 = vcombine.high %v1643_v33, %v1659_v30  ;;  %v1716_v12 = vrot.slane %v1708_v28, %v9389_v52  ;;  %v13319_v28 = vld [vmem:[#allocation93_spill] sm:$0xff] }
 0x2b7   : > { %v1804_v50 = vrot.slane %v1796_v58, %v9375_v9  ;;  %v1757_v20 = vcombine.high %v1700_v63, %v1732_v1  ;;  %v1813_v31 = vcombine.high %v1311_v11, %v1343_v27  ;;  %v1755_v3 = vrot.slane %v1741_v39, %v9389_v52  ;;  %v13320_v58 = vld [vmem:[#allocation205_spill] sm:$0xff] }
 0x2b8   : > { %3585 = vrot.lane.b32.xlu1 %v1626_v25, %s12877_s12  ;;  %3581 = vrot.lane.b32.xlu0 %v1625_v51, %s12969_s13  ;;  %v1764_v25 = vcombine.low %v1231_v42, %v9615_v32  ;;  %v1760_v51 = vcombine.low %v1716_v12, %v1748_v49  ;;  %v1765_v62 = vcombine.high %v1231_v42, %v9615_v32  ;;  %s12881_s12 = smov 40   ;;  %v13314_v42 = vld [vmem:[#allocation55_spill] sm:$0xff] }
 0x2b9   : > { %v1860_v10 = vcombine.low %v1804_v50, %v1820_v29  ;;  %v1781_v33 = vcombine.high %v1247_v47, %v1279_v46  ;;  %v1723_v54 = vrot.slane %v1709_v19, %v9389_v52  ;;  %v1759_v4 = vcombine.high %v1707_v38, %v1739_v61  ;;  %v13318_v38 = vld [vmem:[#allocation194_spill] sm:$0xff] }
 0x2ba   : > { %v1772_v5 = vrot.slane %v1764_v25, %v9375_v9  ;;  %v1827_v1 = vrot.slane %v1813_v31, %v9375_v9  ;;  %v1861_v27 = vcombine.high %v1804_v50, %v1820_v29  ;;  %v1779_v32 = vrot.slane %v1765_v62, %v9375_v9  ;;  %v13321_v25 = vld [vmem:[#allocation106_spill] sm:$0xff]  ;;  %v13322_v50 = vld [vmem:[#allocation131_spill] sm:$0xff]  ;;  %v13324_v31 = vld [vmem:[#allocation144_spill] sm:$0xff] }
 0x2bb   : > { %v1868_v63 = vrot.slane %v1860_v10, %v9389_v52  ;;  %v1762_v11 = vcombine.low %v1723_v54, %v1755_v3  ;;  %v9667_v46 = vsel %vm1227_vm0, %v13314_v42, %v13313_v17  ;;  %v1795_v61 = vrot.slane %v1781_v33, %v9375_v9  ;;  %v13325_v10 = vld [vmem:[#allocation41_spill] sm:$0xff]  ;;  %v13326_v62 = vld [vmem:[#allocation182_spill] sm:$0xff] }
 0x2bc   : > { %3593 = vrot.lane.b32.xlu1 %v1756_v6, %s12875_s15  ;;  %3589 = vrot.lane.b32.xlu0 %v1627_v60, %s12967_s22  ;;  %s12887_s15 = smov 34   ;;  %v1828_v30 = vcombine.low %v1772_v5, %v1788_v44  ;;  %v1797_v6 = vcombine.high %v1295_v0, %v1327_v48  ;;  %v1344_v48 = vsel %vm1227_vm0, %v13315_v8, %v9409_v55  ;;  %v13317_v0 = vld [vmem:[#allocation68_spill] sm:$0xff]  ;;  %v13327_v33 = vld [vmem:[#allocation81_spill] sm:$0xff] }
 0x2bd   : > { %v1829_v34 = vcombine.high %v1772_v5, %v1788_v44  ;;  %v1280_v53 = vsel %vm1227_vm0, %v13317_v0, %v13316_v18  ;;  %v1312_v55 = vsel %vm1227_vm0, %v13319_v28, %v13318_v38  ;;  %v1328_v60 = vsel %vm1227_vm0, %v13321_v25, %v13320_v58  ;;  %v13323_v5 = vld [vmem:[#allocation27_spill] sm:$0xff] }
 0x2be   : > { %v1836_v47 = vrot.slane %v1828_v30, %v9389_v52  ;;  %v1811_v56 = vrot.slane %v1797_v6, %v9375_v9  ;;  %v1761_v29 = vcombine.high %v1716_v12, %v1748_v49  ;;  %v1875_v39 = vrot.slane %v1861_v27, %v9389_v52 }
 0x2bf   : > { %v1948_v44 = vcombine.low %v1312_v55, %v1344_v48  ;;  %v1296_v30 = vsel %vm1227_vm0, %v13327_v33, %v13326_v62  ;;  %v1843_v49 = vrot.slane %v1829_v34, %v9389_v52  ;;  %v1844_v12 = vcombine.low %v1779_v32, %v1795_v61  ;;  %v13331_v33 = vld [vmem:[#allocation168_spill] sm:$0xff] }
 0x2c0   : > { %3601 = vrot.lane.b32.xlu1 %v1758_v35, %s12879_s17  ;;  %3597 = vrot.lane.b32.xlu0 %v1757_v20, %s12887_s15  ;;  %s12885_s17 = smov 38   ;;  %v1876_v35 = vcombine.low %v1811_v56, %v1827_v1  ;;  %v1892_v19 = vcombine.low %v1836_v47, %v1868_v63  ;;  %v1232_v20 = vsel %vm1227_vm0, %v13323_v5, %v13322_v50  ;;  %s12891_s15 = smov 46   ;;  %v13329_v5 = vld [vmem:[#allocation54_spill] sm:$0xff] }
 0x2c1   : > { %v1900_v27 = vcombine.low %v1232_v20, %v9667_v46  ;;  %v1877_v17 = vcombine.high %v1811_v56, %v1827_v1  ;;  %v1956_v8 = vrot.slane %v1948_v44, %v9375_v9  ;;  %v1894_v18 = vcombine.low %v1843_v49, %v1875_v39 }
 0x2c2   : > { %v1884_v42 = vrot.slane %v1876_v35, %v9389_v52  ;;  %v1845_v0 = vcombine.high %v1779_v32, %v1795_v61  ;;  %v1852_v34 = vrot.slane %v1844_v12, %v9389_v52  ;;  %v1949_v56 = vcombine.high %v1312_v55, %v1344_v48  ;;  %v13333_v12 = vld [vmem:[#allocation193_spill] sm:$0xff] }
 0x2c3   : > { %v1891_v1 = vrot.slane %v1877_v17, %v9389_v52  ;;  %v1933_v44 = vcombine.high %v1296_v30, %v1328_v60 }
 0x2c4   : > { %3609 = vrot.lane.b32.xlu1 %v1760_v51, %s12881_s12  ;;  %3605 = vrot.lane.b32.xlu0 %v1759_v4, %s12885_s17  ;;  %s12883_s12 = smov 44   ;;  %v1248_v51 = vsel %vm1227_vm0, %v13325_v10, %v13324_v31  ;;  %v1932_v4 = vcombine.low %v1296_v30, %v1328_v60  ;;  %s12889_s17 = smov 48   ;;  %v1896_v25 = vcombine.low %v1852_v34, %v1884_v42  ;;  %v13330_v31 = vld [vmem:[#allocation117_spill] sm:$0xff]  ;;  %v13332_v30 = vld [vmem:[#allocation67_spill] sm:$0xff] }
 0x2c5   : > { %v1916_v6 = vcombine.low %v1248_v51, %v1280_v53  ;;  %v1859_v32 = vrot.slane %v1845_v0, %v9389_v52  ;;  %v1917_v61 = vcombine.high %v1248_v51, %v1280_v53  ;;  %v1947_v62 = vrot.slane %v1933_v44, %v9375_v9 }
 0x2c6   : > { %v1940_v28 = vrot.slane %v1932_v4, %v9375_v9 }
 0x2c7   : > { %v1924_v38 = vrot.slane %v1916_v6, %v9375_v9  ;;  %v1898_v50 = vcombine.low %v1859_v32, %v1891_v1  ;;  %v13334_v6 = vld [vmem:[#allocation92_spill] sm:$0xff] }
 0x2c8   : > { %3617 = vrot.lane.b32.xlu1 %v1762_v11, %s12883_s12  ;;  %s12903_s12 = smov 42   ;;  %v1763_v11 = vcombine.high %v1723_v54, %v1755_v3  ;;  %v1908_v3 = vrot.slane %v1900_v27, %v9375_v9  ;;  %v1893_v54 = vcombine.high %v1836_v47, %v1868_v63  ;;  %v1996_v58 = vcombine.low %v1940_v28, %v1956_v8  ;;  %v13335_v27 = vld [vmem:[#allocation206_spill] sm:$0xff] }
 0x2c9   : > { %3613 = vrot.lane.b32.xlu0 %v1761_v29, %s12903_s12  ;;  %v1901_v29 = vcombine.high %v1232_v20, %v9667_v46  ;;  %v1895_v63 = vcombine.high %v1843_v49, %v1875_v39  ;;  %v1963_v47 = vrot.slane %v1949_v56, %v9375_v9  ;;  %v1997_v48 = vcombine.high %v1940_v28, %v1956_v8  ;;  %v13328_v46 = vld [vmem:[#allocation156_spill] sm:$0xff]  ;;  %s12907_s12 = smov 62  }
 0x2ca   : > { %v1964_v35 = vcombine.low %v1908_v3, %v1924_v38  ;;  %v2004_v55 = vrot.slane %v1996_v58, %v9389_v52  ;;  %v9718_v20 = vsel %vm1227_vm0, %v13329_v5, %v13328_v46  ;;  %v1931_v39 = vrot.slane %v1917_v61, %v9375_v9  ;;  %v13339_v58 = vld [vmem:[#allocation143_spill] sm:$0xff]  ;;  %v13341_v61 = vld [vmem:[#allocation181_spill] sm:$0xff] }
 0x2cb   : > { %v1915_v53 = vrot.slane %v1901_v29, %v9375_v9  ;;  %v1965_v10 = vcombine.high %v1908_v3, %v1924_v38  ;;  %v1281_v49 = vsel %vm1227_vm0, %v13332_v30, %v13331_v33  ;;  %v1313_v4 = vsel %vm1227_vm0, %v13334_v6, %v13333_v12  ;;  %v13337_v3 = vld [vmem:[#allocation130_spill] sm:$0xff] }
 0x2cc   : > { %3625 = vrot.lane.b32.xlu1 %v1892_v19, %s12889_s17  ;;  %s12893_s17 = smov 52   ;;  %v1186_v19 = vpop.permute.xlu1 %1185  ;;  %v1972_v51 = vrot.slane %v1964_v35, %v9389_v52  ;;  %v1897_v8 = vcombine.high %v1852_v34, %v1884_v42  ;;  %v2011_v0 = vrot.slane %v1997_v48, %v9389_v52  ;;  %v2012_v38 = vcombine.low %v1947_v62, %v1963_v47  ;;  %v13342_v35 = vld [vmem:[#allocation80_spill] sm:$0xff] }
 0x2cd   : > { %3621 = vrot.lane.b32.xlu0 %v1763_v11, %s12891_s15  ;;  %s12895_s15 = smov 50   ;;  %v1345_v60 = vsel %vm1227_vm0, %v13330_v31, %v1186_v19  ;;  %v13336_v11 = vld [vmem:[#allocation105_spill] sm:$0xff]  ;;  %v1297_v44 = vsel %vm1227_vm0, %v13342_v35, %v13341_v61  ;;  %v1979_v34 = vrot.slane %v1965_v10, %v9389_v52  ;;  %v1980_v19 = vcombine.low %v1915_v53, %v1931_v39  ;;  %v13346_v61 = vld [vmem:[#allocation171_spill] sm:$0xff]  ;;  %v13347_v35 = vld [vmem:[#allocation70_spill] sm:$0xff] }
 0x2ce   : > { %v1329_v17 = vsel %vm1227_vm0, %v13336_v11, %v13335_v27  ;;  %v2028_v28 = vcombine.low %v1972_v51, %v2004_v55  ;;  %v2013_v5 = vcombine.high %v1947_v62, %v1963_v47  ;;  %v2020_v31 = vrot.slane %v2012_v38, %v9389_v52 }
 0x2cf   : > { %v2030_v33 = vcombine.low %v1979_v34, %v2011_v0  ;;  %v1981_v10 = vcombine.high %v1915_v53, %v1931_v39  ;;  %v1988_v12 = vrot.slane %v1980_v19, %v9389_v52  ;;  %v2085_v47 = vcombine.high %v1313_v4, %v1345_v60  ;;  %v13350_v19 = vld [vmem:[#allocation207_spill] sm:$0xff] }
 0x2d0   : > { %3633 = vrot.lane.b32.xlu1 %v1894_v18, %s12893_s17  ;;  %s12897_s17 = smov 56   ;;  %v2084_v18 = vcombine.low %v1313_v4, %v1345_v60  ;;  %v2027_v27 = vrot.slane %v2013_v5, %v9389_v52  ;;  %v2069_v38 = vcombine.high %v1297_v44, %v1329_v17 }
 0x2d1   : > { %3629 = vrot.lane.b32.xlu0 %v1893_v54, %s12895_s15  ;;  %s12901_s15 = smov 54   ;;  %v13338_v54 = vld [vmem:[#allocation26_spill] sm:$0xff]  ;;  %v2032_v11 = vcombine.low %v1988_v12, %v2020_v31 }
 0x2d2   : > { %v1233_v56 = vsel %vm1227_vm0, %v13338_v54, %v13337_v3  ;;  %v2092_v46 = vrot.slane %v2084_v18, %v9375_v9  ;;  %v1995_v18 = vrot.slane %v1981_v10, %v9389_v52  ;;  %v13343_v3 = vld [vmem:[#allocation159_spill] sm:$0xff]  ;;  %v13344_v54 = vld [vmem:[#allocation57_spill] sm:$0xff] }
 0x2d3   : > { %v2036_v48 = vcombine.low %v1233_v56, %v9718_v20  ;;  %v13352_v10 = vld [vmem:[#allocation133_spill] sm:$0xff] }
 0x2d4   : > { %3641 = vrot.lane.b32.xlu1 %v1896_v25, %s12897_s17  ;;  %s12899_s17 = smov 60   ;;  %v13340_v25 = vld [vmem:[#allocation40_spill] sm:$0xff]  ;;  %v2034_v4 = vcombine.low %v1995_v18, %v2027_v27 }
 0x2d5   : > { %3637 = vrot.lane.b32.xlu0 %v1895_v63, %s12901_s15  ;;  %v1249_v29 = vsel %vm1227_vm0, %v13340_v25, %v13339_v58  ;;  %v2068_v63 = vcombine.low %v1297_v44, %v1329_v17  ;;  %s12905_s15 = smov 64   ;;  %v1282_v44 = vsel %vm1227_vm0, %v13347_v35, %v13346_v61 }
 0x2d6   : > { %v2052_v42 = vcombine.low %v1249_v29, %v1281_v49  ;;  %v2053_v53 = vcombine.high %v1249_v29, %v1281_v49  ;;  %v9770_v49 = vsel %vm1227_vm0, %v13344_v54, %v13343_v3  ;;  %v2083_v29 = vrot.slane %v2069_v38, %v9375_v9 }
 0x2d7   : > { %v2076_v6 = vrot.slane %v2068_v63, %v9375_v9  ;;  %v13351_v63 = vld [vmem:[#allocation108_spill] sm:$0xff] }
 0x2d8   : > { %3649 = vrot.lane.b32.xlu1 %v1898_v50, %s12899_s17  ;;  %s12909_s17 = smov 58   ;;  %v1899_v50 = vcombine.high %v1859_v32, %v1891_v1  ;;  %v2060_v30 = vrot.slane %v2052_v42, %v9375_v9  ;;  %v2044_v1 = vrot.slane %v2036_v48, %v9375_v9  ;;  %v2029_v32 = vcombine.high %v1972_v51, %v2004_v55  ;;  %v13348_v42 = vld [vmem:[#allocation196_spill] sm:$0xff] }
 0x2d9   : > { %3645 = vrot.lane.b32.xlu0 %v1897_v8, %s12909_s17  ;;  %v2132_v62 = vcombine.low %v2076_v6, %v2092_v46  ;;  %v2037_v8 = vcombine.high %v1233_v56, %v9718_v20  ;;  %s12913_s17 = smov 72   ;;  %v2099_v55 = vrot.slane %v2085_v47, %v9375_v9  ;;  %v2133_v60 = vcombine.high %v2076_v6, %v2092_v46  ;;  %v13345_v56 = vld [vmem:[#allocation120_spill] sm:$0xff]  ;;  %v13353_v6 = vld [vmem:[#allocation29_spill] sm:$0xff]  ;;  %v13355_v47 = vld [vmem:[#allocation43_spill] sm:$0xff] }
 0x2da   : > { %v2100_v39 = vcombine.low %v2044_v1, %v2060_v30  ;;  %v1346_v17 = vsel %vm1227_vm0, %v13345_v56, %v9448_v43  ;;  %v2101_v58 = vcombine.high %v2044_v1, %v2060_v30  ;;  %v1330_v48 = vsel %vm1227_vm0, %v13351_v63, %v13350_v19 }
 0x2db   : > { %v2140_v51 = vrot.slane %v2132_v62, %v9389_v52  ;;  %v2051_v20 = vrot.slane %v2037_v8, %v9375_v9  ;;  %v2147_v46 = vrot.slane %v2133_v60, %v9389_v52  ;;  %v2148_v5 = vcombine.low %v2083_v29, %v2099_v55  ;;  %v13357_v8 = vld [vmem:[#allocation83_spill] sm:$0xff]  ;;  %v1194_v60 = vpop.permute.xlu1 %1193 }
 0x2dc   : > { %3657 = vrot.lane.b32.xlu1 %v2028_v28, %s12905_s15  ;;  %s12911_s15 = smov 68   ;;  %v2031_v28 = vcombine.high %v1979_v34, %v2011_v0  ;;  %v2067_v0 = vrot.slane %v2053_v53, %v9375_v9  ;;  %v2108_v25 = vrot.slane %v2100_v39, %v9389_v52  ;;  %v13349_v34 = vld [vmem:[#allocation95_spill] sm:$0xff]  ;;  %v1234_v1 = vsel %vm1227_vm0, %v13353_v6, %v13352_v10  ;;  %v13358_v10 = vld [vmem:[#allocation158_spill] sm:$0xff]  ;;  %v13359_v6 = vld [vmem:[#allocation56_spill] sm:$0xff] }
 0x2dd   : > { %3653 = vrot.lane.b32.xlu0 %v1899_v50, %s12907_s12  ;;  %s12919_s12 = smov 66   ;;  %v1314_v43 = vsel %vm1227_vm0, %v13349_v34, %v13348_v42  ;;  %v2033_v50 = vcombine.high %v1988_v12, %v2020_v31  ;;  %v2115_v31 = vrot.slane %v2101_v58, %v9389_v52  ;;  %v2149_v3 = vcombine.high %v2083_v29, %v2099_v55 }
 0x2de   : > { %v2164_v30 = vcombine.low %v2108_v25, %v2140_v51  ;;  %v2116_v12 = vcombine.low %v2051_v20, %v2067_v0  ;;  %v2156_v54 = vrot.slane %v2148_v5, %v9389_v52  ;;  %v2117_v58 = vcombine.high %v2051_v20, %v2067_v0 }
 0x2df   : > { %v2166_v61 = vcombine.low %v2115_v31, %v2147_v46  ;;  %v2163_v55 = vrot.slane %v2149_v3, %v9389_v52  ;;  %v2221_v29 = vcombine.high %v1314_v43, %v1346_v17  ;;  %v9813_v20 = vpop.permute.xlu1 %1201 }
 0x2e0   : > { %3665 = vrot.lane.b32.xlu1 %v2030_v33, %s12911_s15  ;;  %s12917_s15 = smov 70   ;;  %v2220_v33 = vcombine.low %v1314_v43, %v1346_v17  ;;  %v2124_v35 = vrot.slane %v2116_v12, %v9389_v52  ;;  %v2131_v0 = vrot.slane %v2117_v58, %v9389_v52  ;;  %v13363_v12 = vld [vmem:[#allocation195_spill] sm:$0xff] }
 0x2e1   : > { %3661 = vrot.lane.b32.xlu0 %v2029_v32, %s12919_s12  ;;  %v13354_v32 = vld [vmem:[#allocation146_spill] sm:$0xff]  ;;  %s12923_s12 = smov 78   ;;  %v2235_v17 = vrot.slane %v2221_v29, %v9375_v9 }
 0x2e2   : > { %v1250_v62 = vsel %vm1227_vm0, %v13355_v47, %v13354_v32  ;;  %v2228_v56 = vrot.slane %v2220_v33, %v9375_v9  ;;  %v2168_v63 = vcombine.low %v2124_v35, %v2156_v54 }
 0x2e3   : > { %v2188_v39 = vcombine.low %v1250_v62, %v1282_v44  ;;  %v2189_v5 = vcombine.high %v1250_v62, %v1282_v44  ;;  %v13360_v44 = vld [vmem:[#allocation119_spill] sm:$0xff]  ;;  %v9844_v3 = vpop.permute.xlu1 %1209 }
 0x2e4   : > { %3673 = vrot.lane.b32.xlu1 %v2032_v11, %s12913_s17  ;;  %s12915_s17 = smov 76   ;;  %v13356_v11 = vld [vmem:[#allocation184_spill] sm:$0xff] }
 0x2e5   : > { %3669 = vrot.lane.b32.xlu0 %v2031_v28, %s12917_s15  ;;  %v1298_v53 = vsel %vm1227_vm0, %v13357_v8, %v13356_v11  ;;  %s12921_s15 = smov 80   ;;  %v2172_v28 = vcombine.low %v1234_v1, %v9770_v49  ;;  %v2196_v42 = vrot.slane %v2188_v39, %v9375_v9  ;;  %v13361_v8 = vld [vmem:[#allocation170_spill] sm:$0xff] }
 0x2e6   : > { %v2204_v38 = vcombine.low %v1298_v53, %v1330_v48  ;;  %v13364_v39 = vld [vmem:[#allocation94_spill] sm:$0xff] }
 0x2e8   : > { %3681 = vrot.lane.b32.xlu1 %v2034_v4, %s12915_s17  ;;  %s12949_s17 = smov 74   ;;  %v2035_v4 = vcombine.high %v1995_v18, %v2027_v27  ;;  %v2212_v34 = vrot.slane %v2204_v38, %v9375_v9  ;;  %v2180_v27 = vrot.slane %v2172_v28, %v9375_v9  ;;  %v2165_v18 = vcombine.high %v2108_v25, %v2140_v51  ;;  %v13365_v28 = vld [vmem:[#allocation208_spill] sm:$0xff] }
 0x2e9   : > { %3677 = vrot.lane.b32.xlu0 %v2033_v50, %s12949_s17  ;;  %v2173_v50 = vcombine.high %v1234_v1, %v9770_v49  ;;  %v2167_v51 = vcombine.high %v2115_v31, %v2147_v46  ;;  %v2170_v49 = vcombine.low %v2131_v0, %v2163_v55  ;;  %v9823_v1 = vsel %vm1227_vm0, %v13359_v6, %v13358_v10  ;;  %s12955_s17 = smov 112  }
 0x2ea   : > { %v2268_v19 = vcombine.low %v2212_v34, %v2228_v56  ;;  %v2236_v33 = vcombine.low %v2180_v27, %v2196_v42  ;;  %v2269_v25 = vcombine.high %v2212_v34, %v2228_v56  ;;  %v2203_v46 = vrot.slane %v2189_v5, %v9375_v9  ;;  %v13371_v5 = vld [vmem:[#allocation183_spill] sm:$0xff] }
 0x2eb   : > { %v2187_v32 = vrot.slane %v2173_v50, %v9375_v9  ;;  %v2237_v47 = vcombine.high %v2180_v27, %v2196_v42  ;;  %v1315_v38 = vsel %vm1227_vm0, %v13364_v39, %v13363_v12  ;;  %v2169_v56 = vcombine.high %v2124_v35, %v2156_v54  ;;  %v13367_v27 = vld [vmem:[#allocation132_spill] sm:$0xff]  ;;  %v9865_v39 = vpop.permute.xlu1 %1217 }
 0x2ec   : > { %3689 = vrot.lane.b32.xlu1 %v2164_v30, %s12921_s15  ;;  %s12925_s15 = smov 84   ;;  %v2205_v30 = vcombine.high %v1298_v53, %v1330_v48  ;;  %v2276_v43 = vrot.slane %v2268_v19, %v9389_v52  ;;  %v9828_v48 = vsel %vm1227_vm0, %v13360_v44, %v1194_v60  ;;  %v2244_v62 = vrot.slane %v2236_v33, %v9389_v52  ;;  %v13362_v53 = vld [vmem:[#allocation69_spill] sm:$0xff]  ;;  %v13366_v60 = vld [vmem:[#allocation107_spill] sm:$0xff]  ;;  %v13372_v33 = vld [vmem:[#allocation82_spill] sm:$0xff] }
 0x2ed   : > { %3685 = vrot.lane.b32.xlu0 %v2035_v4, %s12923_s12  ;;  %s12927_s12 = smov 82   ;;  %v1283_v31 = vsel %vm1227_vm0, %v13362_v53, %v13361_v8  ;;  %v1331_v4 = vsel %vm1227_vm0, %v13366_v60, %v13365_v28  ;;  %v2283_v58 = vrot.slane %v2269_v25, %v9389_v52  ;;  %v13369_v19 = vld [vmem:[#allocation145_spill] sm:$0xff]  ;;  %v2251_v35 = vrot.slane %v2237_v47, %v9389_v52 }
 0x2ee   : > { %v2219_v11 = vrot.slane %v2205_v30, %v9375_v9  ;;  %v2300_v34 = vcombine.low %v2244_v62, %v2276_v43  ;;  %v1299_v30 = vsel %vm1227_vm0, %v13372_v33, %v13371_v5  ;;  %v2171_v6 = vcombine.high %v2131_v0, %v2163_v55 }
 0x2ef   : > { %v2340_v25 = vcombine.low %v1299_v30, %v1331_v4  ;;  %v2302_v12 = vcombine.low %v2251_v35, %v2283_v58  ;;  %v2253_v28 = vcombine.high %v2187_v32, %v2203_v46  ;;  %v2301_v0 = vcombine.high %v2244_v62, %v2276_v43 }
 0x2f0   : > { %3697 = vrot.lane.b32.xlu1 %v2166_v61, %s12925_s15  ;;  %s12929_s15 = smov 88   ;;  %v2356_v61 = vcombine.low %v1315_v38, %v9828_v48  ;;  %v2284_v42 = vcombine.low %v2219_v11, %v2235_v17  ;;  %v2285_v8 = vcombine.high %v2219_v11, %v2235_v17  ;;  %v2357_v17 = vcombine.high %v1315_v38, %v9828_v48  ;;  %v9881_v48 = vpop.permute.xlu1 %1225 }
 0x2f1   : > { %3693 = vrot.lane.b32.xlu0 %v2165_v18, %s12927_s12  ;;  %s12933_s12 = smov 86   ;;  %v13368_v18 = vld [vmem:[#allocation28_spill] sm:$0xff]  ;;  %v2303_v62 = vcombine.high %v2251_v35, %v2283_v58 }
 0x2f2   : > { %v1235_v29 = vsel %vm1227_vm0, %v13368_v18, %v13367_v27  ;;  %v2364_v44 = vrot.slane %v2356_v61, %v9375_v9  ;;  %v2292_v53 = vrot.slane %v2284_v42, %v9389_v52  ;;  %v2299_v61 = vrot.slane %v2285_v8, %v9389_v52 }
 0x2f3   : > { %v2308_v10 = vcombine.low %v1235_v29, %v9823_v1  ;;  %v2267_v27 = vrot.slane %v2253_v28, %v9389_v52  ;;  %v2341_v18 = vcombine.high %v1299_v30, %v1331_v4  ;;  %v2309_v43 = vcombine.high %v1235_v29, %v9823_v1 }
 0x2f4   : > { %3705 = vrot.lane.b32.xlu1 %v2168_v63, %s12929_s15  ;;  %s12931_s15 = smov 92   ;;  %v13370_v63 = vld [vmem:[#allocation42_spill] sm:$0xff]  ;;  %v2371_v38 = vrot.slane %v2357_v17, %v9375_v9 }
 0x2f5   : > { %3701 = vrot.lane.b32.xlu0 %v2167_v51, %s12933_s12  ;;  %v1251_v50 = vsel %vm1227_vm0, %v13370_v63, %v13369_v19  ;;  %v2252_v51 = vcombine.low %v2187_v32, %v2203_v46  ;;  %s12937_s12 = smov 96   ;;  %v2316_v55 = vrot.slane %v2308_v10, %v9375_v9  ;;  %v2306_v5 = vcombine.low %v2267_v27, %v2299_v61 }
 0x2f6   : > { %v2324_v54 = vcombine.low %v1251_v50, %v1283_v31  ;;  %v2325_v32 = vcombine.high %v1251_v50, %v1283_v31  ;;  %v2355_v33 = vrot.slane %v2341_v18, %v9375_v9  ;;  %v2323_v30 = vrot.slane %v2309_v43, %v9375_v9  ;;  %v13377_v43 = vld [vmem:[#allocation58_spill] sm:$0xff] }
 0x2f7   : > { %v2260_v60 = vrot.slane %v2252_v51, %v9389_v52  ;;  %v2541_v18 = vcombine.high %v9540_v37, %v9545_v7  ;;  %v2509_v37 = vcombine.high %v9531_v24, %v9520_v57 }
 0x2f8   : > { %3713 = vrot.lane.b32.xlu1 %v2170_v49, %s12931_s15  ;;  %s12935_s15 = smov 90   ;;  %v9859_v49 = vpop.permute.xlu0 %1205  ;;  %v2332_v47 = vrot.slane %v2324_v54, %v9375_v9  ;;  %v2339_v31 = vrot.slane %v2325_v32, %v9375_v9  ;;  %v2420_v35 = vcombine.low %v2355_v33, %v2371_v38  ;;  %v2421_v8 = vcombine.high %v2355_v33, %v2371_v38  ;;  %v13385_v33 = vld [vmem:[#allocation109_spill] sm:$0xff] }
 0x2f9   : > { %3709 = vrot.lane.b32.xlu0 %v2169_v56, %s12935_s15  ;;  %s12939_s15 = smov 94   ;;  %v2348_v56 = vrot.slane %v2340_v25, %v9375_v9  ;;  %v2305_v58 = vcombine.high %v2260_v60, %v2292_v53  ;;  %v2461_v32 = vcombine.high %v9479_v14, %v9471_v26  ;;  %v13378_v26 = vld [vmem:[#allocation121_spill] sm:$0xff] }
 0x2fa   : > { %v2372_v46 = vcombine.low %v2316_v55, %v2332_v47  ;;  %v2373_v4 = vcombine.high %v2316_v55, %v2332_v47  ;;  %v2388_v10 = vcombine.low %v2323_v30, %v2339_v31  ;;  %v2389_v28 = vcombine.high %v2323_v30, %v2339_v31  ;;  %v13383_v31 = vld [vmem:[#allocation96_spill] sm:$0xff] }
 0x2fb   : > { %v2404_v11 = vcombine.low %v2348_v56, %v2364_v44  ;;  %v2405_v19 = vcombine.high %v2348_v56, %v2364_v44  ;;  %v2307_v44 = vcombine.high %v2267_v27, %v2299_v61  ;;  %v2435_v55 = vrot.slane %v2421_v8, %v9389_v52  ;;  %v13389_v8 = vld [vmem:[#allocation44_spill] sm:$0xff] }
 0x2fc   : > { %3721 = vrot.lane.b32.xlu1 %v2300_v34, %s12937_s12  ;;  %s12941_s12 = smov 100   ;;  %v9875_v42 = vpop.permute.xlu0 %1213  ;;  %v2304_v34 = vcombine.low %v2260_v60, %v2292_v53  ;;  %v2380_v50 = vrot.slane %v2372_v46, %v9389_v52  ;;  %v2387_v25 = vrot.slane %v2373_v4, %v9389_v52  ;;  %v2428_v53 = vrot.slane %v2420_v35, %v9389_v52 }
 0x2fd   : > { %3717 = vrot.lane.b32.xlu0 %v2171_v6, %s12939_s15  ;;  %s12943_s15 = smov 98   ;;  %v2412_v63 = vrot.slane %v2404_v11, %v9389_v52  ;;  %v2419_v54 = vrot.slane %v2405_v19, %v9389_v52  ;;  %v2396_v60 = vrot.slane %v2388_v10, %v9389_v52  ;;  %v2445_v61 = vcombine.high %v9496_v40, %v9484_v16  ;;  %v13376_v40 = vld [vmem:[#allocation160_spill] sm:$0xff] }
 0x2fe   : > { %v2477_v46 = vcombine.high %v9512_v22, %v9502_v45  ;;  %v1349_v14 = vsel %vm1227_vm0, %v13378_v26, %v9813_v20  ;;  %v2475_v22 = vrot.slane %v2461_v32, %v9375_v9  ;;  %v13380_v19 = vld [vmem:[#allocation172_spill] sm:$0xff]  ;;  %v2555_v30 = vrot.slane %v2541_v18, %v9389_v52 }
 0x2ff   : > { %v2436_v51 = vcombine.low %v2380_v50, %v2412_v63  ;;  %v2437_v56 = vcombine.high %v2380_v50, %v2412_v63  ;;  %v2440_v17 = vcombine.low %v2396_v60, %v2428_v53  ;;  %v2459_v45 = vrot.slane %v2445_v61, %v9375_v9  ;;  %v13381_v63 = vld [vmem:[#allocation71_spill] sm:$0xff]  ;;  %v13384_v50 = vld [vmem:[#allocation210_spill] sm:$0xff] }
 0x300   : > { %3729 = vrot.lane.b32.xlu1 %v2302_v12, %s12941_s12  ;;  %s12945_s12 = smov 104   ;;  %v9889_v1 = vpop.permute.xlu0 %1221  ;;  %v2438_v12 = vcombine.low %v2387_v25, %v2419_v54  ;;  %v2491_v7 = vrot.slane %v2477_v46, %v9375_v9  ;;  %v1285_v20 = vsel %vm1227_vm0, %v13381_v63, %v13380_v19  ;;  %v2441_v57 = vcombine.high %v2396_v60, %v2428_v53 }
 0x301   : > { %3725 = vrot.lane.b32.xlu0 %v2301_v0, %s12943_s15  ;;  %s12947_s15 = smov 102   ;;  %v2493_v0 = vcombine.high %v9527_v36, %v9516_v13  ;;  %v2439_v13 = vcombine.high %v2387_v25, %v2419_v54  ;;  %v2573_v35 = vcombine.high %v9558_v59, %v9563_v41  ;;  %v13387_v25 = vld [vmem:[#allocation30_spill] sm:$0xff]  ;;  %v2524_v61 = vcombine.low %v2459_v45, %v2475_v22  ;;  %v13464_v59 = vld [vmem:[#allocation151_spill] sm:$0xff] }
 0x302   : > { %v2525_v19 = vcombine.high %v2459_v45, %v2475_v22 }
 0x303   : > { %v2507_v27 = vrot.slane %v2493_v0, %v9375_v9  ;;  %v2532_v63 = vrot.slane %v2524_v61, %v9389_v52  ;;  %v13401_v61 = vld [vmem:[#allocation73_spill] sm:$0xff] }
 0x304   : > { %3737 = vrot.lane.b32.xlu1 %v2304_v34, %s12945_s12  ;;  %s12951_s12 = smov 108   ;;  %v2403_v34 = vrot.slane %v2389_v28, %v9389_v52  ;;  %v13390_v28 = vld [vmem:[#allocation185_spill] sm:$0xff] }
 0x305   : > { %3733 = vrot.lane.b32.xlu0 %v2303_v62, %s12947_s15  ;;  %s12953_s15 = smov 106   ;;  %v9929_v62 = vsel %vm1227_vm0, %v13377_v43, %v13376_v40  ;;  %v2556_v54 = vcombine.low %v2491_v7, %v2507_v27 }
 0x306   : > { %v2442_v16 = vcombine.low %v2403_v34, %v2435_v55 }
 0x307   : > { %v2564_v40 = vrot.slane %v2556_v54, %v9389_v52  ;;  %v2539_v54 = vrot.slane %v2525_v19, %v9389_v52 }
 0x308   : > { %3745 = vrot.lane.b32.xlu1 %v2306_v5, %s12951_s12  ;;  %s13001_s12 = smov 110   ;;  %v13382_v5 = vld [vmem:[#allocation197_spill] sm:$0xff] }
 0x309   : > { %3741 = vrot.lane.b32.xlu0 %v2305_v58, %s12953_s15  ;;  %s12957_s15 = smov 116   ;;  %v1317_v4 = vsel %vm1227_vm0, %v13383_v31, %v13382_v5  ;;  %v1333_v58 = vsel %vm1227_vm0, %v13385_v33, %v13384_v50  ;;  %v2577_v33 = vcombine.high %v2532_v63, %v2564_v40 }
 0x30a   : > { %v2628_v24 = vcombine.low %v1317_v4, %v1349_v14 }
 0x30c   : > { %3753 = vrot.lane.b32.xlu1 %v2436_v51, %s12955_s17  ;;  %s12959_s17 = smov 114   ;;  %v13386_v51 = vld [vmem:[#allocation134_spill] sm:$0xff]  ;;  %v2636_v18 = vrot.slane %v2628_v24, %v9375_v9 }
 0x30d   : > { %3749 = vrot.lane.b32.xlu0 %v2307_v44, %s13001_s12  ;;  %v1237_v10 = vsel %vm1227_vm0, %v13387_v25, %v13386_v51  ;;  %v13388_v44 = vld [vmem:[#allocation147_spill] sm:$0xff]  ;;  %s13499_s12 = smov 60  }
 0x30e   : > { %v2580_v46 = vcombine.low %v1237_v10, %v9929_v62 }
 0x310   : > { %3761 = vrot.lane.b32.xlu1 %v2438_v12, %s12957_s15  ;;  %s12961_s15 = smov 120   ;;  %v1253_v12 = vsel %vm1227_vm0, %v13389_v8, %v13388_v44  ;;  %v13397_v44 = vld [vmem:[#allocation162_spill] sm:$0xff]  ;;  %v13398_v8 = vld [vmem:[#allocation60_spill] sm:$0xff] }
 0x311   : > { %3757 = vrot.lane.b32.xlu0 %v2437_v56, %s12959_s17  ;;  %s12999_s17 = smov 118   ;;  %v13391_v56 = vld [vmem:[#allocation84_spill] sm:$0xff]  ;;  %v2596_v60 = vcombine.low %v1253_v12, %v1285_v20  ;;  %v2597_v22 = vcombine.high %v1253_v12, %v1285_v20  ;;  %v9997_v20 = vsel %vm1227_vm0, %v13398_v8, %v13397_v44 }
 0x312   : > { %v9892_v29 = vpop.permute.xlu1 %3537  ;;  %v9899_v6 = vpop.permute.xlu0 %3533  ;;  %v1301_v0 = vsel %vm1227_vm0, %v13391_v56, %v13390_v28 }
 0x313   : > { %v2612_v32 = vcombine.low %v1301_v0, %v1333_v58  ;;  %v2611_v28 = vrot.slane %v2597_v22, %v9375_v9  ;;  %v13411_v22 = vld [vmem:[#allocation46_spill] sm:$0xff] }
 0x314   : > { %3769 = vrot.lane.b32.xlu1 %v2440_v17, %s12961_s15  ;;  %s12963_s15 = smov 124   ;;  %v2523_v17 = vrot.slane %v2509_v37, %v9389_v52  ;;  %v2604_v37 = vrot.slane %v2596_v60, %v9375_v9 }
 0x315   : > { %3765 = vrot.lane.b32.xlu0 %v2439_v13, %s12999_s17  ;;  %v2443_v13 = vcombine.high %v2403_v34, %v2435_v55  ;;  %v2620_v5 = vrot.slane %v2612_v32, %v9375_v9  ;;  %v2588_v55 = vrot.slane %v2580_v46, %v9375_v9  ;;  %v13402_v46 = vld [vmem:[#allocation199_spill] sm:$0xff]  ;;  %s13484_s17 = smov 62  }
 0x316   : > { %v9903_v47 = vpop.permute.xlu1 %3545  ;;  %v9910_v11 = vpop.permute.xlu0 %3541  ;;  %v2575_v26 = vcombine.high %v2523_v17, %v2555_v30  ;;  %v2574_v34 = vcombine.low %v2523_v17, %v2555_v30  ;;  %v2576_v30 = vcombine.low %v2532_v63, %v2564_v40  ;;  %v13400_v17 = vld [vmem:[#allocation174_spill] sm:$0xff] }
 0x317   : > { %13373 = vst [vmem:[#allocation104_spill] sm:$0xff] %v9903_v47  ;;  %13374 = vst [vmem:[#allocation142_spill] sm:$0xff] %v9910_v11  ;;  %v2676_v31 = vcombine.low %v2620_v5, %v2636_v18  ;;  %v2644_v24 = vcombine.low %v2588_v55, %v2604_v37  ;;  %v2645_v56 = vcombine.high %v2588_v55, %v2604_v37 }
 0x318   : > { %3777 = vrot.lane.b32.xlu1 %v2442_v16, %s12963_s15  ;;  %s12965_s15 = smov 122   ;;  %v2557_v16 = vcombine.high %v2491_v7, %v2507_v27  ;;  %v2629_v7 = vcombine.high %v1317_v4, %v1349_v14  ;;  %v2677_v4 = vcombine.high %v2620_v5, %v2636_v18  ;;  %v1286_v32 = vsel %vm1227_vm0, %v13401_v61, %v13400_v17 }
 0x319   : > { %3773 = vrot.lane.b32.xlu0 %v2441_v57, %s12965_s15  ;;  %s12997_s15 = smov 126   ;;  %v2581_v57 = vcombine.high %v1237_v10, %v9929_v62  ;;  %v2684_v25 = vrot.slane %v2676_v31, %v9389_v52  ;;  %v13409_v31 = vld [vmem:[#allocation32_spill] sm:$0xff] }
 0x31a   : > { %v9921_v36 = vpop.permute.xlu1 %3553  ;;  %v9941_v38 = vpop.permute.xlu0 %3549  ;;  %v2571_v50 = vrot.slane %v2557_v16, %v9389_v52  ;;  %v2643_v14 = vrot.slane %v2629_v7, %v9375_v9  ;;  %v13405_v16 = vld [vmem:[#allocation111_spill] sm:$0xff]  ;;  %v2691_v19 = vrot.slane %v2677_v4, %v9389_v52  ;;  %v13408_v7 = vld [vmem:[#allocation136_spill] sm:$0xff] }
 0x31b   : > { %13375 = vst [vmem:[#allocation38_spill] sm:$0xff] %v9921_v36  ;;  %13379 = vst [vmem:[#allocation155_spill] sm:$0xff] %v9941_v38  ;;  %v2595_v10 = vrot.slane %v2581_v57, %v9375_v9  ;;  %v13410_v57 = vld [vmem:[#allocation149_spill] sm:$0xff] }
 0x31c   : > { %3785 = vrot.lane.b32.xlu1 %v2573_v35, %s12993_s24  ;;  %v2613_v35 = vcombine.high %v1301_v0, %v1333_v58  ;;  %v2579_v62 = vcombine.high %v2539_v54, %v2571_v50  ;;  %v13399_v58 = vld [vmem:[#allocation123_spill] sm:$0xff]  ;;  %v2652_v0 = vrot.slane %v2644_v24, %v9389_v52  ;;  %v2578_v37 = vcombine.low %v2539_v54, %v2571_v50  ;;  %s13476_s24 = smov 52  }
 0x31d   : > { %3781 = vrot.lane.b32.xlu0 %v2443_v13, %s12997_s15  ;;  %v1350_v12 = vsel %vm1227_vm0, %v13399_v58, %v9859_v49  ;;  %v13403_v13 = vld [vmem:[#allocation98_spill] sm:$0xff]  ;;  %v13404_v49 = vld [vmem:[#allocation209_spill] sm:$0xff]  ;;  %v1254_v24 = vsel %vm1227_vm0, %v13411_v22, %v13410_v57  ;;  %v2659_v50 = vrot.slane %v2645_v56, %v9389_v52  ;;  %v2660_v54 = vcombine.low %v2595_v10, %v2611_v28  ;;  %s13483_s15 = smov 56  }
 0x31e   : > { %v9965_v53 = vpop.permute.xlu1 %3561  ;;  %v9972_v43 = vpop.permute.xlu0 %3557  ;;  %v2627_v60 = vrot.slane %v2613_v35, %v9375_v9  ;;  %v1318_v18 = vsel %vm1227_vm0, %v13403_v13, %v13402_v46  ;;  %v1334_v40 = vsel %vm1227_vm0, %v13405_v16, %v13404_v49  ;;  %v13412_v35 = vld [vmem:[#allocation187_spill] sm:$0xff]  ;;  %v2732_v4 = vcombine.low %v1254_v24, %v1286_v32 }
 0x31f   : > { %13392 = vst [vmem:[#allocation52_spill] sm:$0xff] %v9965_v53  ;;  %13393 = vst [vmem:[#allocation180_spill] sm:$0xff] %v9972_v43  ;;  %v2764_v5 = vcombine.low %v1318_v18, %v1350_v12  ;;  %v2708_v17 = vcombine.low %v2652_v0, %v2684_v25  ;;  %v2711_v16 = vcombine.high %v2659_v50, %v2691_v19 }
 0x320   : > { %3793 = vrot.lane.b32.xlu1 %v2575_v26, %s12989_s26  ;;  %v2692_v63 = vcombine.low %v2627_v60, %v2643_v14  ;;  %v2693_v61 = vcombine.high %v2627_v60, %v2643_v14  ;;  %v2661_v56 = vcombine.high %v2595_v10, %v2611_v28  ;;  %v2733_v22 = vcombine.high %v1254_v24, %v1286_v32  ;;  %s13472_s26 = smov 48  }
 0x321   : > { %3789 = vrot.lane.b32.xlu0 %v2574_v34, %s12995_s18  ;;  %v2709_v34 = vcombine.high %v2652_v0, %v2684_v25  ;;  %v2772_v13 = vrot.slane %v2764_v5, %v9375_v9  ;;  %v2710_v0 = vcombine.low %v2659_v50, %v2691_v19  ;;  %s13477_s18 = smov 58  }
 0x322   : > { %v9980_v27 = vpop.permute.xlu1 %3569  ;;  %v9985_v45 = vpop.permute.xlu0 %3565  ;;  %v2700_v46 = vrot.slane %v2692_v63, %v9389_v52  ;;  %v2707_v60 = vrot.slane %v2693_v61, %v9389_v52  ;;  %v2765_v63 = vcombine.high %v1318_v18, %v1350_v12  ;;  %v2675_v57 = vrot.slane %v2661_v56, %v9389_v52 }
 0x323   : > { %13394 = vst [vmem:[#allocation79_spill] sm:$0xff] %v9980_v27  ;;  %13395 = vst [vmem:[#allocation129_spill] sm:$0xff] %v9985_v45 }
 0x324   : > { %3801 = vrot.lane.b32.xlu1 %v2577_v33, %s12985_s28  ;;  %v1238_v33 = vsel %vm1227_vm0, %v13409_v31, %v13408_v7  ;;  %v2779_v12 = vrot.slane %v2765_v63, %v9375_v9  ;;  %v13428_v63 = vld [vmem:[#allocation110_spill] sm:$0xff]  ;;  %s13468_s28 = smov 44  }
 0x325   : > { %3797 = vrot.lane.b32.xlu0 %v2576_v30, %s12991_s25  ;;  %v13413_v30 = vld [vmem:[#allocation86_spill] sm:$0xff]  ;;  %v2716_v8 = vcombine.low %v1238_v33, %v9997_v20  ;;  %v2717_v28 = vcombine.high %v1238_v33, %v9997_v20  ;;  %v2715_v20 = vcombine.high %v2675_v57, %v2707_v60  ;;  %v13420_v33 = vld [vmem:[#allocation161_spill] sm:$0xff]  ;;  %s13473_s25 = smov 54  }
 0x326   : > { %v9989_v51 = vpop.permute.xlu1 %3577  ;;  %v10016_v26 = vpop.permute.xlu0 %3573 }
 0x327   : > { %13396 = vst [vmem:[#allocation23_spill] sm:$0xff] %v9989_v51  ;;  %13406 = vst [vmem:[#allocation154_spill] sm:$0xff] %v10016_v26  ;;  %v2724_v14 = vrot.slane %v2716_v8, %v9375_v9  ;;  %v2731_v32 = vrot.slane %v2717_v28, %v9375_v9 }
 0x328   : > { %3809 = vrot.lane.b32.xlu1 %v2579_v62, %s12980_s30  ;;  %v1302_v62 = vsel %vm1227_vm0, %v13413_v30, %v13412_v35  ;;  %s13452_s30 = smov 40  }
 0x329   : > { %3805 = vrot.lane.b32.xlu0 %v2578_v37, %s12987_s27  ;;  %v2748_v44 = vcombine.low %v1302_v62, %v1334_v40  ;;  %v2668_v37 = vrot.slane %v2660_v54, %v9389_v52  ;;  %v2749_v30 = vcombine.high %v1302_v62, %v1334_v40  ;;  %v13422_v40 = vld [vmem:[#allocation122_spill] sm:$0xff]  ;;  %v2747_v62 = vrot.slane %v2733_v22, %v9375_v9  ;;  %s13469_s27 = smov 50  }
 0x32a   : > { %v10019_v55 = vpop.permute.xlu1 %3585  ;;  %v10034_v58 = vpop.permute.xlu0 %3581  ;;  %v1351_v24 = vsel %vm1227_vm0, %v13422_v40, %v9844_v3  ;;  %v13427_v3 = vld [vmem:[#allocation212_spill] sm:$0xff]  ;;  %v13434_v40 = vld [vmem:[#allocation45_spill] sm:$0xff] }
 0x32b   : > { %13407 = vst [vmem:[#allocation51_spill] sm:$0xff] %v10019_v55  ;;  %13414 = vst [vmem:[#allocation116_spill] sm:$0xff] %v10034_v58  ;;  %v2756_v7 = vrot.slane %v2748_v44, %v9375_v9  ;;  %v2713_v10 = vcombine.high %v2668_v37, %v2700_v46  ;;  %v2712_v19 = vcombine.low %v2668_v37, %v2700_v46  ;;  %v13421_v44 = vld [vmem:[#allocation59_spill] sm:$0xff]  ;;  %v13425_v37 = vld [vmem:[#allocation198_spill] sm:$0xff] }
 0x32c   : > { %3817 = vrot.lane.b32.xlu1 %v2709_v34, %s12976_s3  ;;  %v2740_v34 = vrot.slane %v2732_v4, %v9375_v9  ;;  %v10064_v8 = vsel %vm1227_vm0, %v13421_v44, %v13420_v33  ;;  %v2763_v46 = vrot.slane %v2749_v30, %v9375_v9  ;;  %v13433_v44 = vld [vmem:[#allocation148_spill] sm:$0xff]  ;;  %s13445_s3 = smov 36  }
 0x32d   : > { %3813 = vrot.lane.b32.xlu0 %v2708_v17, %s12982_s29  ;;  %v2812_v5 = vcombine.low %v2756_v7, %v2772_v13  ;;  %v2813_v18 = vcombine.high %v2756_v7, %v2772_v13  ;;  %v13423_v13 = vld [vmem:[#allocation173_spill] sm:$0xff]  ;;  %s13453_s29 = smov 46  }
 0x32e   : > { %v10038_v49 = vpop.permute.xlu1 %3593  ;;  %v10046_v25 = vpop.permute.xlu0 %3589  ;;  %v2780_v35 = vcombine.low %v2724_v14, %v2740_v34  ;;  %v2781_v17 = vcombine.high %v2724_v14, %v2740_v34  ;;  %v13426_v7 = vld [vmem:[#allocation97_spill] sm:$0xff]  ;;  %v2714_v34 = vcombine.low %v2675_v57, %v2707_v60  ;;  %v2828_v22 = vcombine.low %v2763_v46, %v2779_v12 }
 0x32f   : > { %13415 = vst [vmem:[#allocation167_spill] sm:$0xff] %v10038_v49  ;;  %13416 = vst [vmem:[#allocation65_spill] sm:$0xff] %v10046_v25  ;;  %v2820_v50 = vrot.slane %v2812_v5, %v9389_v52  ;;  %v1335_v5 = vsel %vm1227_vm0, %v13428_v63, %v13427_v3  ;;  %v2827_v28 = vrot.slane %v2813_v18, %v9389_v52 }
 0x330   : > { %3825 = vrot.lane.b32.xlu1 %v2711_v16, %s12971_s5  ;;  %v2788_v61 = vrot.slane %v2780_v35, %v9389_v52  ;;  %v13424_v16 = vld [vmem:[#allocation72_spill] sm:$0xff]  ;;  %v2795_v57 = vrot.slane %v2781_v17, %v9389_v52  ;;  %v2796_v18 = vcombine.low %v2731_v32, %v2747_v62  ;;  %v2836_v2 = vrot.slane %v2828_v22, %v9389_v52  ;;  %s13441_s5 = smov 32  }
 0x331   : > { %3821 = vrot.lane.b32.xlu0 %v2710_v0, %s12978_s2  ;;  %v1287_v56 = vsel %vm1227_vm0, %v13424_v16, %v13423_v13  ;;  %v1319_v0 = vsel %vm1227_vm0, %v13426_v7, %v13425_v37  ;;  %v1255_v13 = vsel %vm1227_vm0, %v13434_v40, %v13433_v44  ;;  %v13435_v16 = vld [vmem:[#allocation186_spill] sm:$0xff]  ;;  %v13436_v37 = vld [vmem:[#allocation85_spill] sm:$0xff]  ;;  %v2829_v40 = vcombine.high %v2763_v46, %v2779_v12  ;;  %s13446_s2 = smov 42  }
 0x332   : > { %v10049_v31 = vpop.permute.xlu1 %3601  ;;  %v10055_v54 = vpop.permute.xlu0 %3597  ;;  %v2900_v14 = vcombine.low %v1319_v0, %v1351_v24  ;;  %v2845_v30 = vcombine.high %v2788_v61, %v2820_v50  ;;  %v1303_v7 = vsel %vm1227_vm0, %v13436_v37, %v13435_v16  ;;  %v2868_v60 = vcombine.low %v1255_v13, %v1287_v56 }
 0x333   : > { %13417 = vst [vmem:[#allocation192_spill] sm:$0xff] %v10049_v31  ;;  %13418 = vst [vmem:[#allocation91_spill] sm:$0xff] %v10055_v54  ;;  %v2884_v3 = vcombine.low %v1303_v7, %v1335_v5  ;;  %v2797_v37 = vcombine.high %v2731_v32, %v2747_v62  ;;  %v2846_v12 = vcombine.low %v2795_v57, %v2827_v28 }
 0x334   : > { %3833 = vrot.lane.b32.xlu1 %v2713_v10, %s12969_s13  ;;  %s13438_s13 = smov 34   ;;  %v2908_v44 = vrot.slane %v2900_v14, %v9375_v9  ;;  %v2876_v17 = vrot.slane %v2868_v60, %v9375_v9  ;;  %v2901_v46 = vcombine.high %v1319_v0, %v1351_v24  ;;  %v2843_v22 = vrot.slane %v2829_v40, %v9389_v52 }
 0x335   : > { %3829 = vrot.lane.b32.xlu0 %v2712_v19, %s12973_s4  ;;  %v13431_v19 = vld [vmem:[#allocation135_spill] sm:$0xff]  ;;  %v2892_v21 = vrot.slane %v2884_v3, %v9375_v9  ;;  %s13442_s4 = smov 38   ;;  %v2869_v62 = vcombine.high %v1255_v13, %v1287_v56  ;;  %v2885_v3 = vcombine.high %v1303_v7, %v1335_v5  ;;  %v13449_v56 = vld [vmem:[#allocation164_spill] sm:$0xff]  ;;  %v13450_v13 = vld [vmem:[#allocation62_spill] sm:$0xff] }
 0x336   : > { %v10059_v4 = vpop.permute.xlu1 %3609  ;;  %v10084_v10 = vpop.permute.xlu0 %3605  ;;  %v2915_v0 = vrot.slane %v2901_v46, %v9375_v9  ;;  %v13451_v5 = vld [vmem:[#allocation125_spill] sm:$0xff] }
 0x337   : > { %13419 = vst [vmem:[#allocation204_spill] sm:$0xff] %v10059_v4  ;;  %13429 = vst [vmem:[#allocation103_spill] sm:$0xff] %v10084_v10  ;;  %v2948_v14 = vcombine.low %v2892_v21, %v2908_v44  ;;  %v1352_v7 = vsel %vm1227_vm0, %v13451_v5, %v9875_v42  ;;  %v13458_v42 = vld [vmem:[#allocation211_spill] sm:$0xff]  ;;  %v13462_v5 = vld [vmem:[#allocation138_spill] sm:$0xff] }
 0x338   : > { %3841 = vrot.lane.b32.xlu1 %v2715_v20, %s12967_s22  ;;  %v13432_v20 = vld [vmem:[#allocation31_spill] sm:$0xff]  ;;  %s13437_s22 = smov 28  }
 0x339   : > { %v1239_v33 = vsel %vm1227_vm0, %v13432_v20, %v13431_v19  ;;  %3837 = vrot.lane.b32.xlu0 %v2714_v34, %s13437_s22  ;;  %v2844_v20 = vcombine.low %v2788_v61, %v2820_v50  ;;  %v2847_v34 = vcombine.high %v2795_v57, %v2827_v28  ;;  %v2949_v28 = vcombine.high %v2892_v21, %v2908_v44 }
 0x33a   : > { %v10087_v35 = vpop.permute.xlu1 %3617  ;;  %v2852_v63 = vcombine.low %v1239_v33, %v10064_v8  ;;  %v2853_v32 = vcombine.high %v1239_v33, %v10064_v8  ;;  %v2956_v57 = vrot.slane %v2948_v14, %v9389_v52  ;;  %v2883_v21 = vrot.slane %v2869_v62, %v9375_v9  ;;  %v13456_v14 = vld [vmem:[#allocation201_spill] sm:$0xff] }
 0x33b   : > { %13430 = vst [vmem:[#allocation128_spill] sm:$0xff] %v10087_v35  ;;  %v10102_v19 = vpop.permute.xlu0 %3613 }
 0x33c   : > { %3849 = vrot.lane.b32.xlu1 %v2845_v30, %s13438_s13  ;;  %13439 = vst [vmem:[#allocation24_spill] sm:$0xff] %v10102_v19  ;;  %v2804_v30 = vrot.slane %v2796_v18, %v9389_v52  ;;  %v2860_v50 = vrot.slane %v2852_v63, %v9375_v9  ;;  %v2811_v18 = vrot.slane %v2797_v37, %v9389_v52 }
 0x33d   : > { %3845 = vrot.lane.b32.xlu0 %v2844_v20, %s13441_s5  ;;  %v2867_v33 = vrot.slane %v2853_v32, %v9375_v9  ;;  %v2899_v37 = vrot.slane %v2885_v3, %v9375_v9 }
 0x33e   : > { %v10106_v16 = vpop.permute.xlu1 %3625  ;;  %v2849_v20 = vcombine.high %v2804_v30, %v2836_v2  ;;  %v2916_v60 = vcombine.low %v2860_v50, %v2876_v17  ;;  %v2848_v24 = vcombine.low %v2804_v30, %v2836_v2  ;;  %v2851_v8 = vcombine.high %v2811_v18, %v2843_v22  ;;  %v13454_v30 = vld [vmem:[#allocation176_spill] sm:$0xff] }
 0x33f   : > { %13440 = vst [vmem:[#allocation141_spill] sm:$0xff] %v10106_v16  ;;  %v10114_v61 = vpop.permute.xlu0 %3621  ;;  %v2917_v2 = vcombine.high %v2860_v50, %v2876_v17  ;;  %v2850_v17 = vcombine.low %v2811_v18, %v2843_v22  ;;  %v2963_v50 = vrot.slane %v2949_v28, %v9389_v52  ;;  %v2932_v18 = vcombine.low %v2867_v33, %v2883_v21 }
 0x340   : > { %3857 = vrot.lane.b32.xlu1 %v2847_v34, %s13442_s4  ;;  %13443 = vst [vmem:[#allocation37_spill] sm:$0xff] %v10114_v61  ;;  %v10133_v34 = vsel %vm1227_vm0, %v13450_v13, %v13449_v56  ;;  %v2924_v44 = vrot.slane %v2916_v60, %v9389_v52  ;;  %v13459_v56 = vld [vmem:[#allocation113_spill] sm:$0xff]  ;;  %v2964_v60 = vcombine.low %v2899_v37, %v2915_v0 }
 0x341   : > { %3853 = vrot.lane.b32.xlu0 %v2846_v12, %s13445_s3  ;;  %v13455_v12 = vld [vmem:[#allocation75_spill] sm:$0xff]  ;;  %v2931_v22 = vrot.slane %v2917_v2, %v9389_v52  ;;  %v2933_v2 = vcombine.high %v2867_v33, %v2883_v21 }
 0x342   : > { %v10117_v41 = vpop.permute.xlu1 %3633  ;;  %v1288_v46 = vsel %vm1227_vm0, %v13455_v12, %v13454_v30  ;;  %v2981_v13 = vcombine.high %v2924_v44, %v2956_v57  ;;  %v13463_v30 = vld [vmem:[#allocation34_spill] sm:$0xff] }
 0x343   : > { %13444 = vst [vmem:[#allocation179_spill] sm:$0xff] %v10117_v41  ;;  %v10123_v63 = vpop.permute.xlu0 %3629  ;;  %v1240_v12 = vsel %vm1227_vm0, %v13463_v30, %v13462_v5  ;;  %v2980_v30 = vcombine.low %v2924_v44, %v2956_v57  ;;  %v2965_v41 = vcombine.high %v2899_v37, %v2915_v0  ;;  %v2982_v44 = vcombine.low %v2931_v22, %v2963_v50 }
 0x344   : > { %3865 = vrot.lane.b32.xlu1 %v2849_v20, %s13446_s2  ;;  %13447 = vst [vmem:[#allocation78_spill] sm:$0xff] %v10123_v63  ;;  %v13457_v20 = vld [vmem:[#allocation100_spill] sm:$0xff]  ;;  %v2989_v21 = vcombine.high %v1240_v12, %v10133_v34 }
 0x345   : > { %3861 = vrot.lane.b32.xlu0 %v2848_v24, %s13452_s30  ;;  %v1320_v32 = vsel %vm1227_vm0, %v13457_v20, %v13456_v14  ;;  %v1336_v24 = vsel %vm1227_vm0, %v13459_v56, %v13458_v42  ;;  %v13465_v14 = vld [vmem:[#allocation48_spill] sm:$0xff]  ;;  %v2979_v37 = vrot.slane %v2965_v41, %v9389_v52 }
 0x346   : > { %v10127_v40 = vpop.permute.xlu1 %3641  ;;  %v3036_v3 = vcombine.low %v1320_v32, %v1352_v7  ;;  %v1256_v20 = vsel %vm1227_vm0, %v13465_v14, %v13464_v59  ;;  %v13467_v42 = vld [vmem:[#allocation88_spill] sm:$0xff]  ;;  %v2972_v59 = vrot.slane %v2964_v60, %v9389_v52  ;;  %v3037_v60 = vcombine.high %v1320_v32, %v1352_v7 }
 0x347   : > { %13448 = vst [vmem:[#allocation157_spill] sm:$0xff] %v10127_v40  ;;  %v10152_v62 = vpop.permute.xlu0 %3637  ;;  %v13466_v40 = vld [vmem:[#allocation189_spill] sm:$0xff]  ;;  %v3004_v28 = vcombine.low %v1256_v20, %v1288_v46 }
 0x348   : > { %3873 = vrot.lane.b32.xlu1 %v2851_v8, %s13453_s29  ;;  %13460 = vst [vmem:[#allocation55_spill] sm:$0xff] %v10152_v62  ;;  %v1304_v56 = vsel %vm1227_vm0, %v13467_v42, %v13466_v40  ;;  %v2988_v62 = vcombine.low %v1240_v12, %v10133_v34  ;;  %v3044_v14 = vrot.slane %v3036_v3, %v9375_v9  ;;  %v13480_v12 = vld [vmem:[#allocation163_spill] sm:$0xff] }
 0x349   : > { %3869 = vrot.lane.b32.xlu0 %v2850_v17, %s13468_s28  ;;  %v2983_v17 = vcombine.high %v2931_v22, %v2963_v50  ;;  %v2940_v42 = vrot.slane %v2932_v18, %v9389_v52  ;;  %v3005_v18 = vcombine.high %v1256_v20, %v1288_v46  ;;  %v3051_v41 = vrot.slane %v3037_v60, %v9375_v9 }
 0x34a   : > { %v10155_v8 = vpop.permute.xlu1 %3649  ;;  %v2996_v0 = vrot.slane %v2988_v62, %v9375_v9  ;;  %v3003_v46 = vrot.slane %v2989_v21, %v9375_v9 }
 0x34b   : > { %13461 = vst [vmem:[#allocation118_spill] sm:$0xff] %v10155_v8  ;;  %v3020_v8 = vcombine.low %v1304_v56, %v1336_v24  ;;  %v10170_v5 = vpop.permute.xlu0 %3645  ;;  %v2985_v33 = vcombine.high %v2940_v42, %v2972_v59  ;;  %v2984_v50 = vcombine.low %v2940_v42, %v2972_v59  ;;  %v13485_v42 = vld [vmem:[#allocation175_spill] sm:$0xff] }
 0x34c   : > { %3881 = vrot.lane.b32.xlu1 %v2981_v13, %s13469_s27  ;;  %13470 = vst [vmem:[#allocation169_spill] sm:$0xff] %v10170_v5  ;;  %v3012_v13 = vrot.slane %v3004_v28, %v9375_v9 }
 0x34d   : > { %3877 = vrot.lane.b32.xlu0 %v2980_v30, %s13472_s26  ;;  %v3028_v63 = vrot.slane %v3020_v8, %v9375_v9  ;;  %v2947_v8 = vrot.slane %v2933_v2, %v9389_v52  ;;  %v3021_v30 = vcombine.high %v1304_v56, %v1336_v24  ;;  %v13482_v24 = vld [vmem:[#allocation124_spill] sm:$0xff] }
 0x34e   : > { %v10174_v40 = vpop.permute.xlu1 %3657  ;;  %v3052_v28 = vcombine.low %v2996_v0, %v3012_v13  ;;  %v1353_v20 = vsel %vm1227_vm0, %v13482_v24, %v9865_v39  ;;  %v3053_v56 = vcombine.high %v2996_v0, %v3012_v13  ;;  %v13489_v39 = vld [vmem:[#allocation214_spill] sm:$0xff]  ;;  %v13493_v24 = vld [vmem:[#allocation137_spill] sm:$0xff] }
 0x34f   : > { %13471 = vst [vmem:[#allocation68_spill] sm:$0xff] %v10174_v40  ;;  %v10182_v57 = vpop.permute.xlu0 %3653  ;;  %v3084_v3 = vcombine.low %v3028_v63, %v3044_v14  ;;  %v3085_v7 = vcombine.high %v3028_v63, %v3044_v14  ;;  %v2987_v34 = vcombine.high %v2947_v8, %v2979_v37  ;;  %v3019_v63 = vrot.slane %v3005_v18, %v9375_v9 }
 0x350   : > { %3889 = vrot.lane.b32.xlu1 %v2983_v17, %s13473_s25  ;;  %13474 = vst [vmem:[#allocation194_spill] sm:$0xff] %v10182_v57  ;;  %v13481_v17 = vld [vmem:[#allocation61_spill] sm:$0xff]  ;;  %v3060_v59 = vrot.slane %v3052_v28, %v9389_v52  ;;  %v3035_v14 = vrot.slane %v3021_v30, %v9375_v9  ;;  %v2986_v13 = vcombine.low %v2947_v8, %v2979_v37 }
 0x351   : > { %3885 = vrot.lane.b32.xlu0 %v2982_v44, %s13476_s24  ;;  %v3092_v32 = vrot.slane %v3084_v3, %v9389_v52  ;;  %v10200_v2 = vsel %vm1227_vm0, %v13481_v17, %v13480_v12  ;;  %v13486_v44 = vld [vmem:[#allocation74_spill] sm:$0xff]  ;;  %v13487_v3 = vld [vmem:[#allocation200_spill] sm:$0xff]  ;;  %v3099_v28 = vrot.slane %v3085_v7, %v9389_v52  ;;  %v3067_v8 = vrot.slane %v3053_v56, %v9389_v52 }
 0x352   : > { %v10185_v40 = vpop.permute.xlu1 %3665  ;;  %v1289_v60 = vsel %vm1227_vm0, %v13486_v44, %v13485_v42  ;;  %v13490_v12 = vld [vmem:[#allocation112_spill] sm:$0xff]  ;;  %v3100_v30 = vcombine.low %v3035_v14, %v3051_v41  ;;  %v13494_v42 = vld [vmem:[#allocation33_spill] sm:$0xff]  ;;  %v3068_v7 = vcombine.low %v3003_v46, %v3019_v63 }
 0x353   : > { %13475 = vst [vmem:[#allocation93_spill] sm:$0xff] %v10185_v40  ;;  %v10191_v62 = vpop.permute.xlu0 %3661  ;;  %v3117_v17 = vcombine.high %v3060_v59, %v3092_v32  ;;  %v1241_v44 = vsel %vm1227_vm0, %v13494_v42, %v13493_v24  ;;  %v13497_v40 = vld [vmem:[#allocation188_spill] sm:$0xff]  ;;  %v3116_v42 = vcombine.low %v3060_v59, %v3092_v32 }
 0x354   : > { %3897 = vrot.lane.b32.xlu1 %v2985_v33, %s13477_s18  ;;  %13478 = vst [vmem:[#allocation205_spill] sm:$0xff] %v10191_v62  ;;  %v13488_v33 = vld [vmem:[#allocation99_spill] sm:$0xff]  ;;  %v3108_v62 = vrot.slane %v3100_v30, %v9389_v52 }
 0x355   : > { %3893 = vrot.lane.b32.xlu0 %v2984_v50, %s13483_s15  ;;  %v1321_v21 = vsel %vm1227_vm0, %v13488_v33, %v13487_v3  ;;  %v1337_v50 = vsel %vm1227_vm0, %v13490_v12, %v13489_v39  ;;  %v13496_v3 = vld [vmem:[#allocation47_spill] sm:$0xff] }
 0x356   : > { %v10195_v22 = vpop.permute.xlu1 %3673  ;;  %v3172_v0 = vcombine.low %v1321_v21, %v1353_v20  ;;  %v13498_v39 = vld [vmem:[#allocation87_spill] sm:$0xff] }
 0x357   : > { %13479 = vst [vmem:[#allocation106_spill] sm:$0xff] %v10195_v22  ;;  %v10220_v18 = vpop.permute.xlu0 %3669  ;;  %v13495_v22 = vld [vmem:[#allocation150_spill] sm:$0xff]  ;;  %v1305_v12 = vsel %vm1227_vm0, %v13498_v39, %v13497_v40  ;;  %v3069_v39 = vcombine.high %v3003_v46, %v3019_v63  ;;  %v3125_v46 = vcombine.high %v1241_v44, %v10200_v2 }
 0x358   : > { %3905 = vrot.lane.b32.xlu1 %v2987_v34, %s13484_s17  ;;  %13491 = vst [vmem:[#allocation131_spill] sm:$0xff] %v10220_v18  ;;  %v1257_v33 = vsel %vm1227_vm0, %v13496_v3, %v13495_v22  ;;  %v3124_v18 = vcombine.low %v1241_v44, %v10200_v2  ;;  %v3180_v22 = vrot.slane %v3172_v0, %v9375_v9 }
 0x359   : > { %3901 = vrot.lane.b32.xlu0 %v2986_v13, %s13499_s12  ;;  %v3140_v37 = vcombine.low %v1257_v33, %v1289_v60  ;;  %v3101_v3 = vcombine.high %v3035_v14, %v3051_v41  ;;  %v3119_v13 = vcombine.high %v3067_v8, %v3099_v28  ;;  %v3118_v41 = vcombine.low %v3067_v8, %v3099_v28 }
 0x35a   : > { %v10223_v34 = vpop.permute.xlu1 %3681  ;;  %v3132_v32 = vrot.slane %v3124_v18, %v9375_v9  ;;  %v3173_v14 = vcombine.high %v1321_v21, %v1353_v20  ;;  %v3141_v63 = vcombine.high %v1257_v33, %v1289_v60  ;;  %v3139_v44 = vrot.slane %v3125_v46, %v9375_v9  ;;  %v13511_v60 = vld [vmem:[#allocation166_spill] sm:$0xff]  ;;  %v13512_v33 = vld [vmem:[#allocation64_spill] sm:$0xff] }
 0x35b   : > { %13492 = vst [vmem:[#allocation27_spill] sm:$0xff] %v10223_v34  ;;  %v3156_v34 = vcombine.low %v1305_v12, %v1337_v50  ;;  %v10238_v24 = vpop.permute.xlu0 %3677  ;;  %v3148_v56 = vrot.slane %v3140_v37, %v9375_v9  ;;  %v3115_v30 = vrot.slane %v3101_v3, %v9389_v52  ;;  %v3083_v37 = vrot.slane %v3069_v39, %v9389_v52 }
 0x35c   : > { %3913 = vrot.lane.b32.xlu1 %v3117_v17, %s13500_s0  ;;  %13501 = vst [vmem:[#allocation144_spill] sm:$0xff] %v10238_v24  ;;  %v3076_v17 = vrot.slane %v3068_v7, %v9389_v52  ;;  %v3157_v7 = vcombine.high %v1305_v12, %v1337_v50  ;;  %v3187_v21 = vrot.slane %v3173_v14, %v9375_v9  ;;  %v13513_v50 = vld [vmem:[#allocation127_spill] sm:$0xff] }
 0x35d   : > { %3909 = vrot.lane.b32.xlu0 %v3116_v42, %s13503_s14  ;;  %v3164_v57 = vrot.slane %v3156_v34, %v9375_v9  ;;  %v3188_v34 = vcombine.low %v3132_v32, %v3148_v56  ;;  %v3123_v2 = vcombine.high %v3083_v37, %v3115_v30  ;;  %v1354_v12 = vsel %vm1227_vm0, %v13513_v50, %v9889_v1  ;;  %v13520_v1 = vld [vmem:[#allocation213_spill] sm:$0xff]  ;;  %v13524_v50 = vld [vmem:[#allocation140_spill] sm:$0xff] }
 0x35e   : > { %v10242_v40 = vpop.permute.xlu1 %3689  ;;  %v3121_v42 = vcombine.high %v3076_v17, %v3108_v62  ;;  %v3120_v20 = vcombine.low %v3076_v17, %v3108_v62  ;;  %v3189_v62 = vcombine.high %v3132_v32, %v3148_v56  ;;  %v3171_v39 = vrot.slane %v3157_v7, %v9375_v9  ;;  %v13516_v17 = vld [vmem:[#allocation178_spill] sm:$0xff] }
 0x35f   : > { %13502 = vst [vmem:[#allocation41_spill] sm:$0xff] %v10242_v40  ;;  %v10250_v59 = vpop.permute.xlu0 %3685  ;;  %v3220_v0 = vcombine.low %v3164_v57, %v3180_v22  ;;  %v3221_v28 = vcombine.high %v3164_v57, %v3180_v22  ;;  %v3155_v57 = vrot.slane %v3141_v63, %v9375_v9  ;;  %v3196_v22 = vrot.slane %v3188_v34, %v9389_v52 }
 0x360   : > { %3921 = vrot.lane.b32.xlu1 %v3119_v13, %s13504_s10  ;;  %13505 = vst [vmem:[#allocation182_spill] sm:$0xff] %v10250_v59  ;;  %v10269_v13 = vsel %vm1227_vm0, %v13512_v33, %v13511_v60  ;;  %v13521_v60 = vld [vmem:[#allocation115_spill] sm:$0xff]  ;;  %v3122_v56 = vcombine.low %v3083_v37, %v3115_v30  ;;  %v3236_v34 = vcombine.low %v3171_v39, %v3187_v21 }
 0x361   : > { %3917 = vrot.lane.b32.xlu0 %v3118_v41, %s13507_s20  ;;  %v3228_v8 = vrot.slane %v3220_v0, %v9389_v52  ;;  %v13517_v41 = vld [vmem:[#allocation77_spill] sm:$0xff]  ;;  %v13518_v0 = vld [vmem:[#allocation203_spill] sm:$0xff]  ;;  %v3235_v32 = vrot.slane %v3221_v28, %v9389_v52  ;;  %v3203_v30 = vrot.slane %v3189_v62, %v9389_v52  ;;  %v3204_v37 = vcombine.low %v3139_v44, %v3155_v57 }
 0x362   : > { %v10253_v40 = vpop.permute.xlu1 %3697  ;;  %v1290_v14 = vsel %vm1227_vm0, %v13517_v41, %v13516_v17  ;;  %v13525_v17 = vld [vmem:[#allocation36_spill] sm:$0xff]  ;;  %v3205_v62 = vcombine.high %v3139_v44, %v3155_v57 }
 0x363   : > { %13506 = vst [vmem:[#allocation81_spill] sm:$0xff] %v10253_v40  ;;  %v10259_v18 = vpop.permute.xlu0 %3693  ;;  %v3253_v33 = vcombine.high %v3196_v22, %v3228_v8  ;;  %v1242_v41 = vsel %vm1227_vm0, %v13525_v17, %v13524_v50  ;;  %v13528_v40 = vld [vmem:[#allocation191_spill] sm:$0xff]  ;;  %v3252_v17 = vcombine.low %v3196_v22, %v3228_v8  ;;  %v3254_v22 = vcombine.low %v3203_v30, %v3235_v32 }
 0x364   : > { %3929 = vrot.lane.b32.xlu1 %v3121_v42, %s13508_s8  ;;  %13509 = vst [vmem:[#allocation156_spill] sm:$0xff] %v10259_v18  ;;  %v13519_v42 = vld [vmem:[#allocation102_spill] sm:$0xff]  ;;  %v3237_v18 = vcombine.high %v3171_v39, %v3187_v21  ;;  %v3261_v57 = vcombine.high %v1242_v41, %v10269_v13 }
 0x365   : > { %3925 = vrot.lane.b32.xlu0 %v3120_v20, %s13514_s7  ;;  %v1322_v46 = vsel %vm1227_vm0, %v13519_v42, %v13518_v0  ;;  %v1338_v20 = vsel %vm1227_vm0, %v13521_v60, %v13520_v1  ;;  %v13527_v0 = vld [vmem:[#allocation50_spill] sm:$0xff] }
 0x366   : > { %v10263_v3 = vpop.permute.xlu1 %3705  ;;  %v3308_v7 = vcombine.low %v1322_v46, %v1354_v12  ;;  %v13529_v1 = vld [vmem:[#allocation90_spill] sm:$0xff]  ;;  %v3251_v39 = vrot.slane %v3237_v18, %v9389_v52 }
 0x367   : > { %13510 = vst [vmem:[#allocation54_spill] sm:$0xff] %v10263_v3  ;;  %v10288_v63 = vpop.permute.xlu0 %3701  ;;  %v13526_v3 = vld [vmem:[#allocation153_spill] sm:$0xff]  ;;  %v1306_v60 = vsel %vm1227_vm0, %v13529_v1, %v13528_v40  ;;  %v3212_v1 = vrot.slane %v3204_v37, %v9389_v52 }
 0x368   : > { %3937 = vrot.lane.b32.xlu1 %v3123_v2, %s13515_s21  ;;  %13522 = vst [vmem:[#allocation117_spill] sm:$0xff] %v10288_v63  ;;  %v1258_v42 = vsel %vm1227_vm0, %v13527_v0, %v13526_v3  ;;  %v3260_v63 = vcombine.low %v1242_v41, %v10269_v13  ;;  %v3244_v3 = vrot.slane %v3236_v34, %v9389_v52  ;;  %v13542_v41 = vld [vmem:[#allocation165_spill] sm:$0xff] }
 0x369   : > { %3933 = vrot.lane.b32.xlu0 %v3122_v56, %s13530_s6  ;;  %v3276_v28 = vcombine.low %v1258_v42, %v1290_v14  ;;  %v3316_v0 = vrot.slane %v3308_v7, %v9375_v9  ;;  %v3255_v56 = vcombine.high %v3203_v30, %v3235_v32  ;;  %v3309_v34 = vcombine.high %v1322_v46, %v1354_v12 }
 0x36a   : > { %v10291_v2 = vpop.permute.xlu1 %3713  ;;  %v3268_v21 = vrot.slane %v3260_v63, %v9375_v9  ;;  %v3257_v44 = vcombine.high %v3212_v1, %v3244_v3  ;;  %v3277_v37 = vcombine.high %v1258_v42, %v1290_v14  ;;  %v3256_v32 = vcombine.low %v3212_v1, %v3244_v3  ;;  %v13547_v1 = vld [vmem:[#allocation177_spill] sm:$0xff] }
 0x36b   : > { %13523 = vst [vmem:[#allocation168_spill] sm:$0xff] %v10291_v2  ;;  %v3292_v2 = vcombine.low %v1306_v60, %v1338_v20  ;;  %v10306_v50 = vpop.permute.xlu0 %3709  ;;  %v3323_v18 = vrot.slane %v3309_v34, %v9375_v9  ;;  %v3275_v14 = vrot.slane %v3261_v57, %v9375_v9 }
 0x36c   : > { %3945 = vrot.lane.b32.xlu1 %v3253_v33, %s13531_s11  ;;  %13532 = vst [vmem:[#allocation67_spill] sm:$0xff] %v10306_v50  ;;  %v3284_v33 = vrot.slane %v3276_v28, %v9375_v9  ;;  %s13578_s11 = smov 114  }
 0x36d   : > { %3941 = vrot.lane.b32.xlu0 %v3252_v17, %s13534_s1  ;;  %v3300_v59 = vrot.slane %v3292_v2, %v9375_v9  ;;  %v3219_v2 = vrot.slane %v3205_v62, %v9389_v52  ;;  %v3293_v17 = vcombine.high %v1306_v60, %v1338_v20  ;;  %v13544_v20 = vld [vmem:[#allocation126_spill] sm:$0xff] }
 0x36e   : > { %v10310_v40 = vpop.permute.xlu1 %3721  ;;  %v3324_v28 = vcombine.low %v3268_v21, %v3284_v33  ;;  %v1355_v42 = vsel %vm1227_vm0, %v13544_v20, %v9881_v48  ;;  %v3325_v60 = vcombine.high %v3268_v21, %v3284_v33  ;;  %v13551_v48 = vld [vmem:[#allocation215_spill] sm:$0xff] }
 0x36f   : > { %13533 = vst [vmem:[#allocation193_spill] sm:$0xff] %v10310_v40  ;;  %v10318_v8 = vpop.permute.xlu0 %3717  ;;  %v3356_v7 = vcombine.low %v3300_v59, %v3316_v0  ;;  %v3357_v12 = vcombine.high %v3300_v59, %v3316_v0  ;;  %v3259_v13 = vcombine.high %v3219_v2, %v3251_v39  ;;  %v3291_v59 = vrot.slane %v3277_v37, %v9375_v9  ;;  %v13555_v20 = vld [vmem:[#allocation139_spill] sm:$0xff] }
 0x370   : > { %3953 = vrot.lane.b32.xlu1 %v3255_v56, %s13535_s19  ;;  %13536 = vst [vmem:[#allocation92_spill] sm:$0xff] %v10318_v8  ;;  %v13543_v56 = vld [vmem:[#allocation63_spill] sm:$0xff]  ;;  %v3332_v3 = vrot.slane %v3324_v28, %v9389_v52  ;;  %v3307_v0 = vrot.slane %v3293_v17, %v9375_v9  ;;  %s13546_s19 = smov 94   ;;  %v3258_v33 = vcombine.low %v3219_v2, %v3251_v39 }
 0x371   : > { %3949 = vrot.lane.b32.xlu0 %v3254_v22, %s13538_s9  ;;  %v3364_v46 = vrot.slane %v3356_v7, %v9389_v52  ;;  %v10336_v62 = vsel %vm1227_vm0, %v13543_v56, %v13542_v41  ;;  %v13548_v22 = vld [vmem:[#allocation76_spill] sm:$0xff]  ;;  %v13549_v7 = vld [vmem:[#allocation202_spill] sm:$0xff]  ;;  %v3371_v28 = vrot.slane %v3357_v12, %v9389_v52  ;;  %v3339_v2 = vrot.slane %v3325_v60, %v9389_v52  ;;  %s13586_s9 = smov 122  }
 0x372   : > { %v10321_v40 = vpop.permute.xlu1 %3729  ;;  %v1291_v34 = vsel %vm1227_vm0, %v13548_v22, %v13547_v1  ;;  %v13552_v41 = vld [vmem:[#allocation114_spill] sm:$0xff]  ;;  %v3372_v17 = vcombine.low %v3307_v0, %v3323_v18  ;;  %v13556_v1 = vld [vmem:[#allocation35_spill] sm:$0xff]  ;;  %v3340_v12 = vcombine.low %v3275_v14, %v3291_v59 }
 0x373   : > { %13537 = vst [vmem:[#allocation206_spill] sm:$0xff] %v10321_v40  ;;  %v10327_v63 = vpop.permute.xlu0 %3725  ;;  %v3389_v56 = vcombine.high %v3332_v3, %v3364_v46  ;;  %v1243_v22 = vsel %vm1227_vm0, %v13556_v1, %v13555_v20  ;;  %v13559_v40 = vld [vmem:[#allocation190_spill] sm:$0xff]  ;;  %v3388_v1 = vcombine.low %v3332_v3, %v3364_v46 }
 0x374   : > { %3961 = vrot.lane.b32.xlu1 %v3257_v44, %s13539_s16  ;;  %13540 = vst [vmem:[#allocation105_spill] sm:$0xff] %v10327_v63  ;;  %s13545_s16 = smov 88   ;;  %v13550_v44 = vld [vmem:[#allocation101_spill] sm:$0xff]  ;;  %v3380_v63 = vrot.slane %v3372_v17, %v9389_v52 }
 0x375   : > { %3957 = vrot.lane.b32.xlu0 %v3256_v32, %s13545_s16  ;;  %v1323_v57 = vsel %vm1227_vm0, %v13550_v44, %v13549_v7  ;;  %v1339_v32 = vsel %vm1227_vm0, %v13552_v41, %v13551_v48  ;;  %v13558_v7 = vld [vmem:[#allocation49_spill] sm:$0xff]  ;;  %s13562_s16 = smov 98  }
 0x376   : > { %v10331_v30 = vpop.permute.xlu1 %3737  ;;  %v3444_v21 = vcombine.low %v1323_v57, %v1355_v42  ;;  %v13560_v48 = vld [vmem:[#allocation89_spill] sm:$0xff] }
 0x377   : > { %13541 = vst [vmem:[#allocation130_spill] sm:$0xff] %v10331_v30  ;;  %v10356_v37 = vpop.permute.xlu0 %3733  ;;  %v13557_v30 = vld [vmem:[#allocation152_spill] sm:$0xff]  ;;  %v1307_v41 = vsel %vm1227_vm0, %v13560_v48, %v13559_v40  ;;  %v3341_v48 = vcombine.high %v3275_v14, %v3291_v59 }
 0x378   : > { %3969 = vrot.lane.b32.xlu1 %v3259_v13, %s13546_s19  ;;  %13553 = vst [vmem:[#allocation26_spill] sm:$0xff] %v10356_v37  ;;  %v1259_v44 = vsel %vm1227_vm0, %v13558_v7, %v13557_v30  ;;  %s13561_s19 = smov 92   ;;  %v3396_v37 = vcombine.low %v1243_v22, %v10336_v62  ;;  %v3452_v30 = vrot.slane %v3444_v21, %v9375_v9 }
 0x379   : > { %3965 = vrot.lane.b32.xlu0 %v3258_v33, %s13561_s19  ;;  %v3412_v39 = vcombine.low %v1259_v44, %v1291_v34  ;;  %v3373_v7 = vcombine.high %v3307_v0, %v3323_v18  ;;  %v3391_v33 = vcombine.high %v3339_v2, %v3371_v28  ;;  %s13565_s19 = smov 96   ;;  %v3390_v18 = vcombine.low %v3339_v2, %v3371_v28 }
 0x37a   : > { %v10359_v13 = vpop.permute.xlu1 %3745  ;;  %v3404_v46 = vrot.slane %v3396_v37, %v9375_v9  ;;  %v3445_v0 = vcombine.high %v1323_v57, %v1355_v42  ;;  %v3413_v14 = vcombine.high %v1259_v44, %v1291_v34  ;;  %v3397_v37 = vcombine.high %v1243_v22, %v10336_v62 }
 0x37b   : > { %13554 = vst [vmem:[#allocation143_spill] sm:$0xff] %v10359_v13  ;;  %v3428_v13 = vcombine.low %v1307_v41, %v1339_v32  ;;  %v10374_v20 = vpop.permute.xlu0 %3741  ;;  %v3420_v60 = vrot.slane %v3412_v39, %v9375_v9  ;;  %v3387_v17 = vrot.slane %v3373_v7, %v9389_v52  ;;  %v3429_v39 = vcombine.high %v1307_v41, %v1339_v32 }
 0x37c   : > { %3977 = vrot.lane.b32.xlu1 %v3389_v56, %s13562_s16  ;;  %13563 = vst [vmem:[#allocation40_spill] sm:$0xff] %v10374_v20  ;;  %v3348_v56 = vrot.slane %v3340_v12, %v9389_v52  ;;  %s13566_s16 = smov 102   ;;  %v3459_v57 = vrot.slane %v3445_v0, %v9375_v9  ;;  %v3427_v34 = vrot.slane %v3413_v14, %v9375_v9 }
 0x37d   : > { %3973 = vrot.lane.b32.xlu0 %v3388_v1, %s13565_s19  ;;  %v3436_v8 = vrot.slane %v3428_v13, %v9375_v9  ;;  %s13569_s19 = smov 100   ;;  %v3460_v59 = vcombine.low %v3404_v46, %v3420_v60  ;;  %v3355_v13 = vrot.slane %v3341_v48, %v9389_v52  ;;  %v3461_v32 = vcombine.high %v3404_v46, %v3420_v60 }
 0x37e   : > { %v10378_v40 = vpop.permute.xlu1 %3753  ;;  %v3393_v1 = vcombine.high %v3348_v56, %v3380_v63  ;;  %v3392_v42 = vcombine.low %v3348_v56, %v3380_v63  ;;  %v3443_v62 = vrot.slane %v3429_v39, %v9375_v9 }
 0x37f   : > { %13564 = vst [vmem:[#allocation181_spill] sm:$0xff] %v10378_v40  ;;  %v10386_v3 = vpop.permute.xlu0 %3749  ;;  %v3492_v21 = vcombine.low %v3436_v8, %v3452_v30  ;;  %v3493_v28 = vcombine.high %v3436_v8, %v3452_v30  ;;  %v3468_v44 = vrot.slane %v3460_v59, %v9389_v52  ;;  %v3394_v22 = vcombine.low %v3355_v13, %v3387_v17 }
 0x380   : > { %3985 = vrot.lane.b32.xlu1 %v3391_v33, %s13566_s16  ;;  %13567 = vst [vmem:[#allocation80_spill] sm:$0xff] %v10386_v3  ;;  %s13570_s16 = smov 106   ;;  %v3395_v33 = vcombine.high %v3355_v13, %v3387_v17  ;;  %v3411_v8 = vrot.slane %v3397_v37, %v9375_v9  ;;  %v3508_v30 = vcombine.low %v3443_v62, %v3459_v57 }
 0x381   : > { %3981 = vrot.lane.b32.xlu0 %v3390_v18, %s13569_s19  ;;  %v3500_v2 = vrot.slane %v3492_v21, %v9389_v52  ;;  %s13573_s19 = smov 104   ;;  %v3507_v41 = vrot.slane %v3493_v28, %v9389_v52  ;;  %v3475_v60 = vrot.slane %v3461_v32, %v9389_v52  ;;  %v3509_v21 = vcombine.high %v3443_v62, %v3459_v57 }
 0x382   : > { %v10389_v40 = vpop.permute.xlu1 %3761  ;;  %v3476_v46 = vcombine.low %v3411_v8, %v3427_v34  ;;  %v3516_v17 = vrot.slane %v3508_v30, %v9389_v52  ;;  %v3477_v59 = vcombine.high %v3411_v8, %v3427_v34 }
 0x383   : > { %13568 = vst [vmem:[#allocation159_spill] sm:$0xff] %v10389_v40  ;;  %v10395_v12 = vpop.permute.xlu0 %3757  ;;  %v3525_v56 = vcombine.high %v3468_v44, %v3500_v2  ;;  %v3524_v0 = vcombine.low %v3468_v44, %v3500_v2  ;;  %v3527_v14 = vcombine.high %v3475_v60, %v3507_v41  ;;  %v3526_v37 = vcombine.low %v3475_v60, %v3507_v41 }
 0x384   : > { %3993 = vrot.lane.b32.xlu1 %v3393_v1, %s13570_s16  ;;  %13571 = vst [vmem:[#allocation57_spill] sm:$0xff] %v10395_v12  ;;  %s13574_s16 = smov 110   ;;  %v3484_v13 = vrot.slane %v3476_v46, %v9389_v52  ;;  %v3491_v2 = vrot.slane %v3477_v59, %v9389_v52 }
 0x385   : > { %3989 = vrot.lane.b32.xlu0 %v3392_v42, %s13573_s19  ;;  %s13577_s19 = smov 108   ;;  %v3523_v42 = vrot.slane %v3509_v21, %v9389_v52 }
 0x386   : > { %v10399_v7 = vpop.permute.xlu1 %3769  ;;  %v3529_v57 = vcombine.high %v3484_v13, %v3516_v17  ;;  %v3528_v32 = vcombine.low %v3484_v13, %v3516_v17 }
 0x387   : > { %13572 = vst [vmem:[#allocation120_spill] sm:$0xff] %v10399_v7  ;;  %v10406_v63 = vpop.permute.xlu0 %3765  ;;  %v3531_v62 = vcombine.high %v3491_v2, %v3523_v42  ;;  %v3530_v30 = vcombine.low %v3491_v2, %v3523_v42 }
 0x388   : > { %4001 = vrot.lane.b32.xlu1 %v3395_v33, %s13574_s16  ;;  %13575 = vst [vmem:[#allocation171_spill] sm:$0xff] %v10406_v63  ;;  %s13581_s16 = smov 112   ;;  %v10432_v33 = vld [vmem:[%s8818_s23 + $0x10] sm:$0xff]  ;;  %v13672_v63 = vld [vmem:[#allocation39_spill] sm:$0xff] }
 0x389   : > { %3997 = vrot.lane.b32.xlu0 %v3394_v22, %s13577_s19  ;;  %s13582_s19 = smov 118   ;;  %v13591_v22 = vld [vmem:[#allocation19_spill] sm:$0xff]  ;;  %v4567_v40 = vrot.slane %v10432_v33, %v13672_v63 }
 0x38a   : > { %v10410_v48 = vpop.permute.xlu1 %3777  ;;  %v4232_v8 = vrot.slane %v10432_v33, %v13591_v22 }
 0x38b   : > { %13576 = vst [vmem:[#allocation70_spill] sm:$0xff] %v10410_v48  ;;  %v10415_v18 = vpop.permute.xlu0 %3773 }
 0x38c   : > { %4009 = vrot.lane.b32.xlu1 %v3525_v56, %s13578_s11  ;;  %13579 = vst [vmem:[#allocation196_spill] sm:$0xff] %v10415_v18  ;;  %s13585_s11 = smov 116  }
 0x38d   : > { %4005 = vrot.lane.b32.xlu0 %v3524_v0, %s13581_s16  ;;  %s13590_s16 = smov 126  }
 0x38e   : > { %v10418_v1 = vpop.permute.xlu1 %3785 }
 0x38f   : > { %13580 = vst [vmem:[#allocation95_spill] sm:$0xff] %v10418_v1  ;;  %v10423_v39 = vpop.permute.xlu0 %3781 }
 0x390   : > { %4017 = vrot.lane.b32.xlu1 %v3527_v14, %s13582_s19  ;;  %13583 = vst [vmem:[#allocation207_spill] sm:$0xff] %v10423_v39  ;;  %s13589_s19 = smov 120  }
 0x391   : > { %4013 = vrot.lane.b32.xlu0 %v3526_v37, %s13585_s11  ;;  %s13855_s11 = smov 12  }
 0x392   : > { %v10426_v28 = vpop.permute.xlu1 %3793 }
 0x393   : > { %13584 = vst [vmem:[#allocation108_spill] sm:$0xff] %v10426_v28  ;;  %v10434_v34 = vpop.permute.xlu0 %3789 }
 0x394   : > { %4025 = vrot.lane.b32.xlu1 %v3529_v57, %s13586_s9  ;;  %13587 = vst [vmem:[#allocation133_spill] sm:$0xff] %v10434_v34  ;;  %s13594_s9 = smov 124  }
 0x395   : > { %4021 = vrot.lane.b32.xlu0 %v3528_v32, %s13589_s19  ;;  %s13854_s19 = smov 6  }
 0x396   : > { %v10436_v44 = vpop.permute.xlu1 %3801 }
 0x397   : > { %13588 = vst [vmem:[#allocation29_spill] sm:$0xff] %v10436_v44  ;;  %v10442_v41 = vpop.permute.xlu0 %3797 }
 0x398   : > { %4033 = vrot.lane.b32.xlu1 %v3531_v62, %s13590_s16  ;;  %13592 = vst [vmem:[#allocation146_spill] sm:$0xff] %v10442_v41  ;;  %s13852_s16 = smov 2  }
 0x399   : > { %4029 = vrot.lane.b32.xlu0 %v3530_v30, %s13594_s9  ;;  %v13609_v30 = vld [vmem:[#allocation20_spill] sm:$0xff]  ;;  %s13853_s9 = smov 8  }
 0x39a   : > { %v10444_v56 = vpop.permute.xlu1 %3809 }
 0x39b   : > { %13593 = vst [vmem:[#allocation43_spill] sm:$0xff] %v10444_v56  ;;  %v10447_v60 = vpop.permute.xlu0 %3805 }
 0x39c   : > { %4238 = vbcast.lane.b32.xlu1 %v4232_v8, 264  ;;  %13595 = vst [vmem:[#allocation184_spill] sm:$0xff] %v10447_v60 }
 0x39d   : > { %4234 = vbcast.lane.b32.xlu0 %v4232_v8, 256 }
 0x39e   : > { %v10449_v46 = vpop.permute.xlu1 %3817 }
 0x39f   : > { %13596 = vst [vmem:[#allocation83_spill] sm:$0xff] %v10449_v46  ;;  %v10451_v0 = vpop.permute.xlu0 %3813 }
 0x3a0   : > { %4246 = vbcast.lane.b32.xlu1 %v4232_v8, 280  ;;  %13597 = vst [vmem:[#allocation158_spill] sm:$0xff] %v10451_v0 }
 0x3a1   : > { %4242 = vbcast.lane.b32.xlu0 %v4232_v8, 272 }
 0x3a2   : > { %v10453_v21 = vpop.permute.xlu1 %3825 }
 0x3a3   : > { %13598 = vst [vmem:[#allocation56_spill] sm:$0xff] %v10453_v21  ;;  %v10455_v17 = vpop.permute.xlu0 %3821 }
 0x3a4   : > { %4254 = vbcast.lane.b32.xlu1 %v4232_v8, 296  ;;  %13599 = vst [vmem:[#allocation119_spill] sm:$0xff] %v10455_v17 }
 0x3a5   : > { %4250 = vbcast.lane.b32.xlu0 %v4232_v8, 288 }
 0x3a6   : > { %v10457_v14 = vpop.permute.xlu1 %3833 }
 0x3a7   : > { %13600 = vst [vmem:[#allocation170_spill] sm:$0xff] %v10457_v14  ;;  %v10459_v59 = vpop.permute.xlu0 %3829 }
 0x3a8   : > { %4262 = vbcast.lane.b32.xlu1 %v4232_v8, 312  ;;  %13601 = vst [vmem:[#allocation69_spill] sm:$0xff] %v10459_v59 }
 0x3a9   : > { %4258 = vbcast.lane.b32.xlu0 %v4232_v8, 304 }
 0x3aa   : > { %v10461_v13 = vpop.permute.xlu1 %3841 }
 0x3ab   : > { %13602 = vst [vmem:[#allocation195_spill] sm:$0xff] %v10461_v13  ;;  %v10463_v37 = vpop.permute.xlu0 %3837  ;;  %v4299_v13 = vrot.slane %v10432_v33, %v13609_v30 }
 0x3ac   : > { %4270 = vbcast.lane.b32.xlu1 %v4232_v8, 328  ;;  %13603 = vst [vmem:[#allocation94_spill] sm:$0xff] %v10463_v37 }
 0x3ad   : > { %4266 = vbcast.lane.b32.xlu0 %v4232_v8, 320 }
 0x3ae   : > { %v10465_v42 = vpop.permute.xlu1 %3849 }
 0x3af   : > { %13604 = vst [vmem:[#allocation208_spill] sm:$0xff] %v10465_v42  ;;  %v10467_v57 = vpop.permute.xlu0 %3845 }
 0x3b0   : > { %4278 = vbcast.lane.b32.xlu1 %v4232_v8, 344  ;;  %13605 = vst [vmem:[#allocation107_spill] sm:$0xff] %v10467_v57 }
 0x3b1   : > { %4274 = vbcast.lane.b32.xlu0 %v4232_v8, 336 }
 0x3b2   : > { %v10469_v2 = vpop.permute.xlu1 %3857 }
 0x3b3   : > { %13606 = vst [vmem:[#allocation132_spill] sm:$0xff] %v10469_v2  ;;  %v10471_v32 = vpop.permute.xlu0 %3853 }
 0x3b4   : > { %4286 = vbcast.lane.b32.xlu1 %v4232_v8, 360  ;;  %13607 = vst [vmem:[#allocation28_spill] sm:$0xff] %v10471_v32 }
 0x3b5   : > { %4282 = vbcast.lane.b32.xlu0 %v4232_v8, 352 }
 0x3b6   : > { %v10473_v62 = vpop.permute.xlu1 %3865 }
 0x3b7   : > { %13608 = vst [vmem:[#allocation145_spill] sm:$0xff] %v10473_v62  ;;  %v10477_v37 = vpop.permute.xlu0 %3861 }
 0x3b8   : > { %4294 = vbcast.lane.b32.xlu1 %v4232_v8, 376  ;;  %13610 = vst [vmem:[#allocation42_spill] sm:$0xff] %v10477_v37 }
 0x3b9   : > { %4290 = vbcast.lane.b32.xlu0 %v4232_v8, 368 }
 0x3ba   : > { %v10479_v42 = vpop.permute.xlu1 %3873 }
 0x3bb   : > { %13611 = vst [vmem:[#allocation183_spill] sm:$0xff] %v10479_v42  ;;  %v10481_v57 = vpop.permute.xlu0 %3869 }
 0x3bc   : > { %4305 = vbcast.lane.b32.xlu1 %v4299_v13, 264  ;;  %13612 = vst [vmem:[#allocation82_spill] sm:$0xff] %v10481_v57 }
 0x3bd   : > { %4301 = vbcast.lane.b32.xlu0 %v4299_v13, 256 }
 0x3be   : > { %v10483_v2 = vpop.permute.xlu1 %3881 }
 0x3bf   : > { %13613 = vst [vmem:[#allocation160_spill] sm:$0xff] %v10483_v2  ;;  %v10485_v32 = vpop.permute.xlu0 %3877 }
 0x3c0   : > { %4313 = vbcast.lane.b32.xlu1 %v4299_v13, 280  ;;  %13614 = vst [vmem:[#allocation58_spill] sm:$0xff] %v10485_v32 }
 0x3c1   : > { %4309 = vbcast.lane.b32.xlu0 %v4299_v13, 272 }
 0x3c2   : > { %v10487_v62 = vpop.permute.xlu1 %3889 }
 0x3c3   : > { %13615 = vst [vmem:[#allocation121_spill] sm:$0xff] %v10487_v62  ;;  %v10489_v14 = vpop.permute.xlu0 %3885 }
 0x3c4   : > { %4321 = vbcast.lane.b32.xlu1 %v4299_v13, 296  ;;  %13616 = vst [vmem:[#allocation172_spill] sm:$0xff] %v10489_v14 }
 0x3c5   : > { %4317 = vbcast.lane.b32.xlu0 %v4299_v13, 288 }
 0x3c6   : > { %v10491_v59 = vpop.permute.xlu1 %3897 }
 0x3c7   : > { %13617 = vst [vmem:[#allocation71_spill] sm:$0xff] %v10491_v59  ;;  %v10493_v8 = vpop.permute.xlu0 %3893 }
 0x3c8   : > { %4329 = vbcast.lane.b32.xlu1 %v4299_v13, 312  ;;  %13618 = vst [vmem:[#allocation197_spill] sm:$0xff] %v10493_v8 }
 0x3c9   : > { %4325 = vbcast.lane.b32.xlu0 %v4299_v13, 304 }
 0x3ca   : > { %v10495_v42 = vpop.permute.xlu1 %3905 }
 0x3cb   : > { %13619 = vst [vmem:[#allocation96_spill] sm:$0xff] %v10495_v42  ;;  %v10497_v2 = vpop.permute.xlu0 %3901  ;;  %v13626_v42 = vld [vmem:[#allocation21_spill] sm:$0xff] }
 0x3cc   : > { %4337 = vbcast.lane.b32.xlu1 %v4299_v13, 328  ;;  %13620 = vst [vmem:[#allocation210_spill] sm:$0xff] %v10497_v2  ;;  %v4366_v8 = vrot.slane %v10432_v33, %v13626_v42 }
 0x3cd   : > { %4333 = vbcast.lane.b32.xlu0 %v4299_v13, 320 }
 0x3ce   : > { %v10499_v57 = vpop.permute.xlu1 %3913 }
 0x3cf   : > { %13621 = vst [vmem:[#allocation109_spill] sm:$0xff] %v10499_v57  ;;  %v10501_v62 = vpop.permute.xlu0 %3909 }
 0x3d0   : > { %4345 = vbcast.lane.b32.xlu1 %v4299_v13, 344  ;;  %13622 = vst [vmem:[#allocation134_spill] sm:$0xff] %v10501_v62 }
 0x3d1   : > { %4341 = vbcast.lane.b32.xlu0 %v4299_v13, 336 }
 0x3d2   : > { %v10503_v32 = vpop.permute.xlu1 %3921 }
 0x3d3   : > { %13623 = vst [vmem:[#allocation30_spill] sm:$0xff] %v10503_v32  ;;  %v10505_v59 = vpop.permute.xlu0 %3917 }
 0x3d4   : > { %4353 = vbcast.lane.b32.xlu1 %v4299_v13, 360  ;;  %13624 = vst [vmem:[#allocation147_spill] sm:$0xff] %v10505_v59 }
 0x3d5   : > { %4349 = vbcast.lane.b32.xlu0 %v4299_v13, 352 }
 0x3d6   : > { %v10507_v14 = vpop.permute.xlu1 %3929 }
 0x3d7   : > { %13625 = vst [vmem:[#allocation44_spill] sm:$0xff] %v10507_v14  ;;  %v10511_v2 = vpop.permute.xlu0 %3925 }
 0x3d8   : > { %4361 = vbcast.lane.b32.xlu1 %v4299_v13, 376  ;;  %13627 = vst [vmem:[#allocation185_spill] sm:$0xff] %v10511_v2 }
 0x3d9   : > { %4357 = vbcast.lane.b32.xlu0 %v4299_v13, 368 }
 0x3da   : > { %v10513_v57 = vpop.permute.xlu1 %3937 }
 0x3db   : > { %13628 = vst [vmem:[#allocation84_spill] sm:$0xff] %v10513_v57  ;;  %v10515_v62 = vpop.permute.xlu0 %3933 }
 0x3dc   : > { %4372 = vbcast.lane.b32.xlu1 %v4366_v8, 264  ;;  %13629 = vst [vmem:[#allocation162_spill] sm:$0xff] %v10515_v62 }
 0x3dd   : > { %4368 = vbcast.lane.b32.xlu0 %v4366_v8, 256 }
 0x3de   : > { %v10517_v32 = vpop.permute.xlu1 %3945 }
 0x3df   : > { %13630 = vst [vmem:[#allocation60_spill] sm:$0xff] %v10517_v32  ;;  %v10519_v59 = vpop.permute.xlu0 %3941 }
 0x3e0   : > { %4380 = vbcast.lane.b32.xlu1 %v4366_v8, 280  ;;  %13631 = vst [vmem:[#allocation123_spill] sm:$0xff] %v10519_v59 }
 0x3e1   : > { %4376 = vbcast.lane.b32.xlu0 %v4366_v8, 272 }
 0x3e2   : > { %v10521_v14 = vpop.permute.xlu1 %3953 }
 0x3e3   : > { %13632 = vst [vmem:[#allocation174_spill] sm:$0xff] %v10521_v14  ;;  %v10523_v37 = vpop.permute.xlu0 %3949 }
 0x3e4   : > { %4388 = vbcast.lane.b32.xlu1 %v4366_v8, 296  ;;  %13633 = vst [vmem:[#allocation73_spill] sm:$0xff] %v10523_v37 }
 0x3e5   : > { %4384 = vbcast.lane.b32.xlu0 %v4366_v8, 288 }
 0x3e6   : > { %v10525_v21 = vpop.permute.xlu1 %3961 }
 0x3e7   : > { %13634 = vst [vmem:[#allocation199_spill] sm:$0xff] %v10525_v21  ;;  %v10527_v13 = vpop.permute.xlu0 %3957 }
 0x3e8   : > { %4396 = vbcast.lane.b32.xlu1 %v4366_v8, 312  ;;  %13635 = vst [vmem:[#allocation98_spill] sm:$0xff] %v10527_v13 }
 0x3e9   : > { %4392 = vbcast.lane.b32.xlu0 %v4366_v8, 304 }
 0x3ea   : > { %v10529_v57 = vpop.permute.xlu1 %3969 }
 0x3eb   : > { %13636 = vst [vmem:[#allocation209_spill] sm:$0xff] %v10529_v57  ;;  %v10531_v32 = vpop.permute.xlu0 %3965  ;;  %v13643_v57 = vld [vmem:[#allocation22_spill] sm:$0xff] }
 0x3ec   : > { %4404 = vbcast.lane.b32.xlu1 %v4366_v8, 328  ;;  %13637 = vst [vmem:[#allocation111_spill] sm:$0xff] %v10531_v32  ;;  %v4433_v13 = vrot.slane %v10432_v33, %v13643_v57 }
 0x3ed   : > { %4400 = vbcast.lane.b32.xlu0 %v4366_v8, 320 }
 0x3ee   : > { %v10533_v62 = vpop.permute.xlu1 %3977 }
 0x3ef   : > { %13638 = vst [vmem:[#allocation136_spill] sm:$0xff] %v10533_v62  ;;  %v10535_v14 = vpop.permute.xlu0 %3973 }
 0x3f0   : > { %4412 = vbcast.lane.b32.xlu1 %v4366_v8, 344  ;;  %13639 = vst [vmem:[#allocation32_spill] sm:$0xff] %v10535_v14 }
 0x3f1   : > { %4408 = vbcast.lane.b32.xlu0 %v4366_v8, 336 }
 0x3f2   : > { %v10537_v59 = vpop.permute.xlu1 %3985 }
 0x3f3   : > { %13640 = vst [vmem:[#allocation149_spill] sm:$0xff] %v10537_v59  ;;  %v10539_v21 = vpop.permute.xlu0 %3981 }
 0x3f4   : > { %4420 = vbcast.lane.b32.xlu1 %v4366_v8, 360  ;;  %13641 = vst [vmem:[#allocation46_spill] sm:$0xff] %v10539_v21 }
 0x3f5   : > { %4416 = vbcast.lane.b32.xlu0 %v4366_v8, 352 }
 0x3f6   : > { %v10541_v37 = vpop.permute.xlu1 %3993 }
 0x3f7   : > { %13642 = vst [vmem:[#allocation187_spill] sm:$0xff] %v10541_v37  ;;  %v10545_v32 = vpop.permute.xlu0 %3989 }
 0x3f8   : > { %4428 = vbcast.lane.b32.xlu1 %v4366_v8, 376  ;;  %13644 = vst [vmem:[#allocation86_spill] sm:$0xff] %v10545_v32 }
 0x3f9   : > { %4424 = vbcast.lane.b32.xlu0 %v4366_v8, 368 }
 0x3fa   : > { %v10547_v62 = vpop.permute.xlu1 %4001 }
 0x3fb   : > { %13645 = vst [vmem:[#allocation161_spill] sm:$0xff] %v10547_v62  ;;  %v10549_v14 = vpop.permute.xlu0 %3997 }
 0x3fc   : > { %4439 = vbcast.lane.b32.xlu1 %v4433_v13, 264  ;;  %13646 = vst [vmem:[#allocation59_spill] sm:$0xff] %v10549_v14 }
 0x3fd   : > { %4435 = vbcast.lane.b32.xlu0 %v4433_v13, 256 }
 0x3fe   : > { %v10551_v59 = vpop.permute.xlu1 %4009 }
 0x3ff   : > { %13647 = vst [vmem:[#allocation122_spill] sm:$0xff] %v10551_v59  ;;  %v10553_v21 = vpop.permute.xlu0 %4005 }
 0x400   : > { %4447 = vbcast.lane.b32.xlu1 %v4433_v13, 280  ;;  %13648 = vst [vmem:[#allocation173_spill] sm:$0xff] %v10553_v21 }
 0x401   : > { %4443 = vbcast.lane.b32.xlu0 %v4433_v13, 272 }
 0x402   : > { %v10555_v37 = vpop.permute.xlu1 %4017 }
 0x403   : > { %13649 = vst [vmem:[#allocation72_spill] sm:$0xff] %v10555_v37  ;;  %v10557_v2 = vpop.permute.xlu0 %4013 }
 0x404   : > { %4455 = vbcast.lane.b32.xlu1 %v4433_v13, 296  ;;  %13650 = vst [vmem:[#allocation198_spill] sm:$0xff] %v10557_v2 }
 0x405   : > { %4451 = vbcast.lane.b32.xlu0 %v4433_v13, 288 }
 0x406   : > { %v10559_v17 = vpop.permute.xlu1 %4025 }
 0x407   : > { %13651 = vst [vmem:[#allocation97_spill] sm:$0xff] %v10559_v17  ;;  %v10561_v8 = vpop.permute.xlu0 %4021 }
 0x408   : > { %4463 = vbcast.lane.b32.xlu1 %v4433_v13, 312  ;;  %13652 = vst [vmem:[#allocation212_spill] sm:$0xff] %v10561_v8 }
 0x409   : > { %4459 = vbcast.lane.b32.xlu0 %v4433_v13, 304 }
 0x40a   : > { %v10563_v62 = vpop.permute.xlu1 %4033 }
 0x40b   : > { %13653 = vst [vmem:[#allocation110_spill] sm:$0xff] %v10563_v62  ;;  %v10565_v59 = vpop.permute.xlu0 %4029  ;;  %v13658_v62 = vld [vmem:[#allocation25_spill] sm:$0xff] }
 0x40c   : > { %4471 = vbcast.lane.b32.xlu1 %v4433_v13, 328  ;;  %13654 = vst [vmem:[#allocation135_spill] sm:$0xff] %v10565_v59  ;;  %v4500_v8 = vrot.slane %v10432_v33, %v13658_v62 }
 0x40d   : > { %4467 = vbcast.lane.b32.xlu0 %v4433_v13, 320 }
 0x40e   : > { %v10567_v14 = vpop.permute.xlu1 %4238 }
 0x40f   : > { %v10569_v37 = vpop.permute.xlu0 %4234 }
 0x410   : > { %4479 = vbcast.lane.b32.xlu1 %v4433_v13, 344 }
 0x411   : > { %4475 = vbcast.lane.b32.xlu0 %v4433_v13, 336 }
 0x412   : > { %v10571_v21 = vpop.permute.xlu1 %4246 }
 0x413   : > { %13655 = vst [vmem:[#allocation31_spill] sm:$0xff] %v10571_v21  ;;  %v10573_v17 = vpop.permute.xlu0 %4242 }
 0x414   : > { %4487 = vbcast.lane.b32.xlu1 %v4433_v13, 360  ;;  %13656 = vst [vmem:[#allocation148_spill] sm:$0xff] %v10573_v17 }
 0x415   : > { %4483 = vbcast.lane.b32.xlu0 %v4433_v13, 352 }
 0x416   : > { %v10575_v2 = vpop.permute.xlu1 %4254 }
 0x417   : > { %13657 = vst [vmem:[#allocation45_spill] sm:$0xff] %v10575_v2  ;;  %v10579_v59 = vpop.permute.xlu0 %4250 }
 0x418   : > { %4495 = vbcast.lane.b32.xlu1 %v4433_v13, 376  ;;  %13659 = vst [vmem:[#allocation186_spill] sm:$0xff] %v10579_v59 }
 0x419   : > { %4491 = vbcast.lane.b32.xlu0 %v4433_v13, 368 }
 0x41a   : > { %v10581_v32 = vpop.permute.xlu1 %4262 }
 0x41b   : > { %13660 = vst [vmem:[#allocation85_spill] sm:$0xff] %v10581_v32  ;;  %v10583_v46 = vpop.permute.xlu0 %4258 }
 0x41c   : > { %4506 = vbcast.lane.b32.xlu1 %v4500_v8, 264  ;;  %13661 = vst [vmem:[#allocation164_spill] sm:$0xff] %v10583_v46 }
 0x41d   : > { %4502 = vbcast.lane.b32.xlu0 %v4500_v8, 256 }
 0x41e   : > { %v10585_v0 = vpop.permute.xlu1 %4270 }
 0x41f   : > { %13662 = vst [vmem:[#allocation62_spill] sm:$0xff] %v10585_v0  ;;  %v10587_v56 = vpop.permute.xlu0 %4266 }
 0x420   : > { %4514 = vbcast.lane.b32.xlu1 %v4500_v8, 280 }
 0x421   : > { %4510 = vbcast.lane.b32.xlu0 %v4500_v8, 272 }
 0x422   : > { %v10589_v60 = vpop.permute.xlu1 %4278 }
 0x423   : > { %13663 = vst [vmem:[#allocation125_spill] sm:$0xff] %v10589_v60  ;;  %v10591_v44 = vpop.permute.xlu0 %4274 }
 0x424   : > { %4522 = vbcast.lane.b32.xlu1 %v4500_v8, 296  ;;  %13664 = vst [vmem:[#allocation176_spill] sm:$0xff] %v10591_v44 }
 0x425   : > { %4518 = vbcast.lane.b32.xlu0 %v4500_v8, 288 }
 0x426   : > { %v10593_v41 = vpop.permute.xlu1 %4286 }
 0x427   : > { %13665 = vst [vmem:[#allocation75_spill] sm:$0xff] %v10593_v41  ;;  %v10595_v13 = vpop.permute.xlu0 %4282 }
 0x428   : > { %4530 = vbcast.lane.b32.xlu1 %v4500_v8, 312  ;;  %13666 = vst [vmem:[#allocation201_spill] sm:$0xff] %v10595_v13 }
 0x429   : > { %4526 = vbcast.lane.b32.xlu0 %v4500_v8, 304 }
 0x42a   : > { %v10597_v28 = vpop.permute.xlu1 %4294 }
 0x42b   : > { %13667 = vst [vmem:[#allocation100_spill] sm:$0xff] %v10597_v28  ;;  %v10599_v39 = vpop.permute.xlu0 %4290 }
 0x42c   : > { %4538 = vbcast.lane.b32.xlu1 %v4500_v8, 328  ;;  %13668 = vst [vmem:[#allocation211_spill] sm:$0xff] %v10599_v39 }
 0x42d   : > { %4534 = vbcast.lane.b32.xlu0 %v4500_v8, 320 }
 0x42e   : > { %v10601_v48 = vpop.permute.xlu1 %4305 }
 0x42f   : > { %v10603_v34 = vpop.permute.xlu0 %4301 }
 0x430   : > { %4546 = vbcast.lane.b32.xlu1 %v4500_v8, 344 }
 0x431   : > { %4542 = vbcast.lane.b32.xlu0 %v4500_v8, 336 }
 0x432   : > { %v10605_v1 = vpop.permute.xlu1 %4313 }
 0x433   : > { %13669 = vst [vmem:[#allocation113_spill] sm:$0xff] %v10605_v1  ;;  %v10607_v18 = vpop.permute.xlu0 %4309 }
 0x434   : > { %4554 = vbcast.lane.b32.xlu1 %v4500_v8, 360  ;;  %13670 = vst [vmem:[#allocation138_spill] sm:$0xff] %v10607_v18 }
 0x435   : > { %4550 = vbcast.lane.b32.xlu0 %v4500_v8, 352 }
 0x436   : > { %v10609_v7 = vpop.permute.xlu1 %4321 }
 0x437   : > { %13671 = vst [vmem:[#allocation34_spill] sm:$0xff] %v10609_v7  ;;  %v10613_v12 = vpop.permute.xlu0 %4317 }
 0x438   : > { %4562 = vbcast.lane.b32.xlu1 %v4500_v8, 376  ;;  %13673 = vst [vmem:[#allocation151_spill] sm:$0xff] %v10613_v12 }
 0x439   : > { %4558 = vbcast.lane.b32.xlu0 %v4500_v8, 368 }
 0x43a   : > { %v10615_v3 = vpop.permute.xlu1 %4329 }
 0x43b   : > { %13674 = vst [vmem:[#allocation48_spill] sm:$0xff] %v10615_v3  ;;  %v10617_v20 = vpop.permute.xlu0 %4325 }
 0x43c   : > { %4573 = vbcast.lane.b32.xlu1 %v4567_v40, 264  ;;  %13675 = vst [vmem:[#allocation189_spill] sm:$0xff] %v10617_v20 }
 0x43d   : > { %4569 = vbcast.lane.b32.xlu0 %v4567_v40, 256 }
 0x43e   : > { %v10619_v50 = vpop.permute.xlu1 %4337 }
 0x43f   : > { %13676 = vst [vmem:[#allocation88_spill] sm:$0xff] %v10619_v50  ;;  %v10621_v28 = vpop.permute.xlu0 %4333 }
 0x440   : > { %4581 = vbcast.lane.b32.xlu1 %v4567_v40, 280 }
 0x441   : > { %4577 = vbcast.lane.b32.xlu0 %v4567_v40, 272 }
 0x442   : > { %v10623_v32 = vpop.permute.xlu1 %4345 }
 0x443   : > { %13677 = vst [vmem:[#allocation163_spill] sm:$0xff] %v10623_v32  ;;  %v10625_v39 = vpop.permute.xlu0 %4341 }
 0x444   : > { %4589 = vbcast.lane.b32.xlu1 %v4567_v40, 296  ;;  %13678 = vst [vmem:[#allocation61_spill] sm:$0xff] %v10625_v39 }
 0x445   : > { %4585 = vbcast.lane.b32.xlu0 %v4567_v40, 288 }
 0x446   : > { %v10627_v41 = vpop.permute.xlu1 %4353 }
 0x447   : > { %13679 = vst [vmem:[#allocation124_spill] sm:$0xff] %v10627_v41  ;;  %v10629_v8 = vpop.permute.xlu0 %4349 }
 0x448   : > { %4597 = vbcast.lane.b32.xlu1 %v4567_v40, 312  ;;  %13680 = vst [vmem:[#allocation175_spill] sm:$0xff] %v10629_v8 }
 0x449   : > { %4593 = vbcast.lane.b32.xlu0 %v4567_v40, 304 }
 0x44a   : > { %v10631_v3 = vpop.permute.xlu1 %4361 }
 0x44b   : > { %13681 = vst [vmem:[#allocation74_spill] sm:$0xff] %v10631_v3  ;;  %v10633_v20 = vpop.permute.xlu0 %4357  ;;  %v13686_v3 = vld [vmem:[#allocation53_spill] sm:$0xff] }
 0x44c   : > { %4605 = vbcast.lane.b32.xlu1 %v4567_v40, 328  ;;  %13682 = vst [vmem:[#allocation200_spill] sm:$0xff] %v10633_v20  ;;  %v4634_v8 = vrot.slane %v10432_v33, %v13686_v3 }
 0x44d   : > { %4601 = vbcast.lane.b32.xlu0 %v4567_v40, 320 }
 0x44e   : > { %v10635_v46 = vpop.permute.xlu1 %4372 }
 0x44f   : > { %v10637_v24 = vpop.permute.xlu0 %4368 }
 0x450   : > { %4613 = vbcast.lane.b32.xlu1 %v4567_v40, 344 }
 0x451   : > { %4609 = vbcast.lane.b32.xlu0 %v4567_v40, 336 }
 0x452   : > { %v10639_v13 = vpop.permute.xlu1 %4380 }
 0x453   : > { %13683 = vst [vmem:[#allocation99_spill] sm:$0xff] %v10639_v13  ;;  %v10641_v41 = vpop.permute.xlu0 %4376 }
 0x454   : > { %4621 = vbcast.lane.b32.xlu1 %v4567_v40, 360  ;;  %13684 = vst [vmem:[#allocation214_spill] sm:$0xff] %v10641_v41 }
 0x455   : > { %4617 = vbcast.lane.b32.xlu0 %v4567_v40, 352 }
 0x456   : > { %v10643_v32 = vpop.permute.xlu1 %4388 }
 0x457   : > { %13685 = vst [vmem:[#allocation112_spill] sm:$0xff] %v10643_v32  ;;  %v10647_v20 = vpop.permute.xlu0 %4384 }
 0x458   : > { %4629 = vbcast.lane.b32.xlu1 %v4567_v40, 376  ;;  %13687 = vst [vmem:[#allocation137_spill] sm:$0xff] %v10647_v20 }
 0x459   : > { %4625 = vbcast.lane.b32.xlu0 %v4567_v40, 368 }
 0x45a   : > { %v10649_v60 = vpop.permute.xlu1 %4396 }
 0x45b   : > { %13688 = vst [vmem:[#allocation33_spill] sm:$0xff] %v10649_v60  ;;  %v10651_v39 = vpop.permute.xlu0 %4392 }
 0x45c   : > { %4640 = vbcast.lane.b32.xlu1 %v4634_v8, 264  ;;  %13689 = vst [vmem:[#allocation150_spill] sm:$0xff] %v10651_v39 }
 0x45d   : > { %4636 = vbcast.lane.b32.xlu0 %v4634_v8, 256 }
 0x45e   : > { %v10653_v44 = vpop.permute.xlu1 %4404 }
 0x45f   : > { %13690 = vst [vmem:[#allocation47_spill] sm:$0xff] %v10653_v44  ;;  %v10655_v5 = vpop.permute.xlu0 %4400 }
 0x460   : > { %4648 = vbcast.lane.b32.xlu1 %v4634_v8, 280 }
 0x461   : > { %4644 = vbcast.lane.b32.xlu0 %v4634_v8, 272 }
 0x462   : > { %v10657_v50 = vpop.permute.xlu1 %4412 }
 0x463   : > { %13691 = vst [vmem:[#allocation188_spill] sm:$0xff] %v10657_v50  ;;  %v10659_v0 = vpop.permute.xlu0 %4408 }
 0x464   : > { %4656 = vbcast.lane.b32.xlu1 %v4634_v8, 296  ;;  %13692 = vst [vmem:[#allocation87_spill] sm:$0xff] %v10659_v0 }
 0x465   : > { %4652 = vbcast.lane.b32.xlu0 %v4634_v8, 288 }
 0x466   : > { %v10661_v16 = vpop.permute.xlu1 %4420 }
 0x467   : > { %13693 = vst [vmem:[#allocation166_spill] sm:$0xff] %v10661_v16  ;;  %v10663_v40 = vpop.permute.xlu0 %4416 }
 0x468   : > { %4664 = vbcast.lane.b32.xlu1 %v4634_v8, 312  ;;  %13694 = vst [vmem:[#allocation64_spill] sm:$0xff] %v10663_v40 }
 0x469   : > { %4660 = vbcast.lane.b32.xlu0 %v4634_v8, 304 }
 0x46a   : > { %v10665_v60 = vpop.permute.xlu1 %4428 }
 0x46b   : > { %13695 = vst [vmem:[#allocation127_spill] sm:$0xff] %v10665_v60  ;;  %v10667_v39 = vpop.permute.xlu0 %4424  ;;  %v13699_v60 = vld [vmem:[#allocation66_spill] sm:$0xff] }
 0x46c   : > { %4672 = vbcast.lane.b32.xlu1 %v4634_v8, 328  ;;  %13696 = vst [vmem:[#allocation178_spill] sm:$0xff] %v10667_v39  ;;  %v4701_v40 = vrot.slane %v10432_v33, %v13699_v60 }
 0x46d   : > { %4668 = vbcast.lane.b32.xlu0 %v4634_v8, 320 }
 0x46e   : > { %v10669_v44 = vpop.permute.xlu1 %4439 }
 0x46f   : > { %v10671_v50 = vpop.permute.xlu0 %4435 }
 0x470   : > { %4680 = vbcast.lane.b32.xlu1 %v4634_v8, 344 }
 0x471   : > { %4676 = vbcast.lane.b32.xlu0 %v4634_v8, 336 }
 0x472   : > { %v10673_v61 = vpop.permute.xlu1 %4447 }
 0x473   : > { %13697 = vst [vmem:[#allocation77_spill] sm:$0xff] %v10673_v61  ;;  %v10675_v16 = vpop.permute.xlu0 %4443 }
 0x474   : > { %4688 = vbcast.lane.b32.xlu1 %v4634_v8, 360 }
 0x475   : > { %4684 = vbcast.lane.b32.xlu0 %v4634_v8, 352 }
 0x476   : > { %v10677_v0 = vpop.permute.xlu1 %4455 }
 0x477   : > { %13698 = vst [vmem:[#allocation203_spill] sm:$0xff] %v10677_v0  ;;  %v10681_v39 = vpop.permute.xlu0 %4451 }
 0x478   : > { %4696 = vbcast.lane.b32.xlu1 %v4634_v8, 376  ;;  %13700 = vst [vmem:[#allocation102_spill] sm:$0xff] %v10681_v39 }
 0x479   : > { %4692 = vbcast.lane.b32.xlu0 %v4634_v8, 368 }
 0x47a   : > { %v10683_v35 = vpop.permute.xlu1 %4463 }
 0x47b   : > { %13701 = vst [vmem:[#allocation213_spill] sm:$0xff] %v10683_v35  ;;  %v10685_v19 = vpop.permute.xlu0 %4459 }
 0x47c   : > { %4707 = vbcast.lane.b32.xlu1 %v4701_v40, 264  ;;  %13702 = vst [vmem:[#allocation115_spill] sm:$0xff] %v10685_v19 }
 0x47d   : > { %4703 = vbcast.lane.b32.xlu0 %v4701_v40, 256 }
 0x47e   : > { %v10687_v4 = vpop.permute.xlu1 %4471 }
 0x47f   : > { %13703 = vst [vmem:[#allocation140_spill] sm:$0xff] %v10687_v4  ;;  %v10689_v10 = vpop.permute.xlu0 %4467 }
 0x480   : > { %4715 = vbcast.lane.b32.xlu1 %v4701_v40, 280 }
 0x481   : > { %4711 = vbcast.lane.b32.xlu0 %v4701_v40, 272 }
 0x482   : > { %v10691_v31 = vpop.permute.xlu1 %4479 }
 0x483   : > { %13704 = vst [vmem:[#allocation36_spill] sm:$0xff] %v10691_v31  ;;  %v10693_v54 = vpop.permute.xlu0 %4475 }
 0x484   : > { %4723 = vbcast.lane.b32.xlu1 %v4701_v40, 296  ;;  %13705 = vst [vmem:[#allocation153_spill] sm:$0xff] %v10693_v54 }
 0x485   : > { %4719 = vbcast.lane.b32.xlu0 %v4701_v40, 288 }
 0x486   : > { %v10695_v33 = vpop.permute.xlu1 %4487 }
 0x487   : > { %13706 = vst [vmem:[#allocation50_spill] sm:$0xff] %v10695_v33  ;;  %v10697_v8 = vpop.permute.xlu0 %4483  ;;  %v10710_v33 = vld [vmem:[%s8818_s23 + $0x18] sm:$0xff]  ;;  %s13851_s23 = smov 4  }
 0x488   : > { %4731 = vbcast.lane.b32.xlu1 %v4701_v40, 312  ;;  %13707 = vst [vmem:[#allocation191_spill] sm:$0xff] %v10697_v8 }
 0x489   : > { %4727 = vbcast.lane.b32.xlu0 %v4701_v40, 304 }
 0x48a   : > { %v10699_v35 = vpop.permute.xlu1 %4495 }
 0x48b   : > { %13708 = vst [vmem:[#allocation90_spill] sm:$0xff] %v10699_v35  ;;  %v10701_v19 = vpop.permute.xlu0 %4491  ;;  %v4768_v35 = vrot.slane %v10710_v33, %v13591_v22 }
 0x48c   : > { %4739 = vbcast.lane.b32.xlu1 %v4701_v40, 328  ;;  %13709 = vst [vmem:[#allocation165_spill] sm:$0xff] %v10701_v19 }
 0x48d   : > { %4735 = vbcast.lane.b32.xlu0 %v4701_v40, 320 }
 0x48e   : > { %v10703_v4 = vpop.permute.xlu1 %4506 }
 0x48f   : > { %v10705_v31 = vpop.permute.xlu0 %4502 }
 0x490   : > { %4747 = vbcast.lane.b32.xlu1 %v4701_v40, 344 }
 0x491   : > { %4743 = vbcast.lane.b32.xlu0 %v4701_v40, 336 }
 0x492   : > { %v10707_v54 = vpop.permute.xlu1 %4514 }
 0x493   : > { %13710 = vst [vmem:[#allocation63_spill] sm:$0xff] %v10707_v54  ;;  %v10712_v49 = vpop.permute.xlu0 %4510 }
 0x494   : > { %4755 = vbcast.lane.b32.xlu1 %v4701_v40, 360  ;;  %13711 = vst [vmem:[#allocation126_spill] sm:$0xff] %v10712_v49 }
 0x495   : > { %4751 = vbcast.lane.b32.xlu0 %v4701_v40, 352 }
 0x496   : > { %v10714_v8 = vpop.permute.xlu1 %4522 }
 0x497   : > { %13712 = vst [vmem:[#allocation177_spill] sm:$0xff] %v10714_v8  ;;  %v10718_v19 = vpop.permute.xlu0 %4518 }
 0x498   : > { %4763 = vbcast.lane.b32.xlu1 %v4701_v40, 376  ;;  %13713 = vst [vmem:[#allocation76_spill] sm:$0xff] %v10718_v19 }
 0x499   : > { %4759 = vbcast.lane.b32.xlu0 %v4701_v40, 368 }
 0x49a   : > { %v10720_v7 = vpop.permute.xlu1 %4530 }
 0x49b   : > { %13714 = vst [vmem:[#allocation202_spill] sm:$0xff] %v10720_v7  ;;  %v10722_v2 = vpop.permute.xlu0 %4526 }
 0x49c   : > { %4774 = vbcast.lane.b32.xlu1 %v4768_v35, 264  ;;  %13715 = vst [vmem:[#allocation101_spill] sm:$0xff] %v10722_v2 }
 0x49d   : > { %4770 = vbcast.lane.b32.xlu0 %v4768_v35, 256 }
 0x49e   : > { %v10724_v0 = vpop.permute.xlu1 %4538 }
 0x49f   : > { %13716 = vst [vmem:[#allocation215_spill] sm:$0xff] %v10724_v0  ;;  %v10726_v32 = vpop.permute.xlu0 %4534 }
 0x4a0   : > { %4782 = vbcast.lane.b32.xlu1 %v4768_v35, 280 }
 0x4a1   : > { %4778 = vbcast.lane.b32.xlu0 %v4768_v35, 272 }
 0x4a2   : > { %v10728_v8 = vpop.permute.xlu1 %4546 }
 0x4a3   : > { %13717 = vst [vmem:[#allocation114_spill] sm:$0xff] %v10728_v8  ;;  %v10730_v25 = vpop.permute.xlu0 %4542 }
 0x4a4   : > { %4790 = vbcast.lane.b32.xlu1 %v4768_v35, 296  ;;  %13718 = vst [vmem:[#allocation139_spill] sm:$0xff] %v10730_v25 }
 0x4a5   : > { %4786 = vbcast.lane.b32.xlu0 %v4768_v35, 288 }
 0x4a6   : > { %v10732_v22 = vpop.permute.xlu1 %4554 }
 0x4a7   : > { %13719 = vst [vmem:[#allocation35_spill] sm:$0xff] %v10732_v22  ;;  %v10734_v40 = vpop.permute.xlu0 %4550 }
 0x4a8   : > { %4798 = vbcast.lane.b32.xlu1 %v4768_v35, 312  ;;  %13720 = vst [vmem:[#allocation152_spill] sm:$0xff] %v10734_v40 }
 0x4a9   : > { %4794 = vbcast.lane.b32.xlu0 %v4768_v35, 304 }
 0x4aa   : > { %v10736_v7 = vpop.permute.xlu1 %4562 }
 0x4ab   : > { %13721 = vst [vmem:[#allocation49_spill] sm:$0xff] %v10736_v7  ;;  %v10738_v2 = vpop.permute.xlu0 %4558  ;;  %v4835_v7 = vrot.slane %v10710_v33, %v13609_v30 }
 0x4ac   : > { %4806 = vbcast.lane.b32.xlu1 %v4768_v35, 328  ;;  %13722 = vst [vmem:[#allocation190_spill] sm:$0xff] %v10738_v2 }
 0x4ad   : > { %4802 = vbcast.lane.b32.xlu0 %v4768_v35, 320 }
 0x4ae   : > { %v10740_v0 = vpop.permute.xlu1 %4573 }
 0x4af   : > { %v10742_v8 = vpop.permute.xlu0 %4569 }
 0x4b0   : > { %4814 = vbcast.lane.b32.xlu1 %v4768_v35, 344 }
 0x4b1   : > { %4810 = vbcast.lane.b32.xlu0 %v4768_v35, 336 }
 0x4b2   : > { %v10744_v55 = vpop.permute.xlu1 %4581 }
 0x4b3   : > { %13723 = vst [vmem:[#allocation89_spill] sm:$0xff] %v10744_v55  ;;  %v10746_v22 = vpop.permute.xlu0 %4577 }
 0x4b4   : > { %4822 = vbcast.lane.b32.xlu1 %v4768_v35, 360  ;;  %13724 = vst [vmem:[#allocation19_spill] sm:$0xff] %v10746_v22 }
 0x4b5   : > { %4818 = vbcast.lane.b32.xlu0 %v4768_v35, 352 }
 0x4b6   : > { %v10748_v25 = vpop.permute.xlu1 %4589 }
 0x4b7   : > { %13725 = vst [vmem:[#allocation20_spill] sm:$0xff] %v10748_v25  ;;  %v10752_v2 = vpop.permute.xlu0 %4585 }
 0x4b8   : > { %4830 = vbcast.lane.b32.xlu1 %v4768_v35, 376  ;;  %13726 = vst [vmem:[#allocation21_spill] sm:$0xff] %v10752_v2 }
 0x4b9   : > { %4826 = vbcast.lane.b32.xlu0 %v4768_v35, 368 }
 0x4ba   : > { %v10754_v40 = vpop.permute.xlu1 %4597 }
 0x4bb   : > { %13727 = vst [vmem:[#allocation22_spill] sm:$0xff] %v10754_v40  ;;  %v10756_v58 = vpop.permute.xlu0 %4593 }
 0x4bc   : > { %4841 = vbcast.lane.b32.xlu1 %v4835_v7, 264  ;;  %13728 = vst [vmem:[#allocation25_spill] sm:$0xff] %v10756_v58 }
 0x4bd   : > { %4837 = vbcast.lane.b32.xlu0 %v4835_v7, 256 }
 0x4be   : > { %v10758_v51 = vpop.permute.xlu1 %4605 }
 0x4bf   : > { %13729 = vst [vmem:[#allocation39_spill] sm:$0xff] %v10758_v51  ;;  %v10760_v19 = vpop.permute.xlu0 %4601 }
 0x4c0   : > { %4849 = vbcast.lane.b32.xlu1 %v4835_v7, 280 }
 0x4c1   : > { %4845 = vbcast.lane.b32.xlu0 %v4835_v7, 272 }
 0x4c2   : > { %v10762_v25 = vpop.permute.xlu1 %4613 }
 0x4c3   : > { %13730 = vst [vmem:[#allocation53_spill] sm:$0xff] %v10762_v25  ;;  %v10764_v12 = vpop.permute.xlu0 %4609 }
 0x4c4   : > { %4857 = vbcast.lane.b32.xlu1 %v4835_v7, 296  ;;  %13731 = vst [vmem:[#allocation66_spill] sm:$0xff] %v10764_v12 }
 0x4c5   : > { %4853 = vbcast.lane.b32.xlu0 %v4835_v7, 288 }
 0x4c6   : > { %v10766_v30 = vpop.permute.xlu1 %4621 }
 0x4c7   : > { %13732 = vst [vmem:[#allocation218_spill] sm:$0xff] %v10766_v30  ;;  %v10768_v35 = vpop.permute.xlu0 %4617 }
 0x4c8   : > { %4865 = vbcast.lane.b32.xlu1 %v4835_v7, 312  ;;  %13733 = vst [vmem:[#allocation219_spill] sm:$0xff] %v10768_v35 }
 0x4c9   : > { %4861 = vbcast.lane.b32.xlu0 %v4835_v7, 304 }
 0x4ca   : > { %v10770_v40 = vpop.permute.xlu1 %4629 }
 0x4cb   : > { %13734 = vst [vmem:[#allocation220_spill] sm:$0xff] %v10770_v40  ;;  %v10772_v58 = vpop.permute.xlu0 %4625  ;;  %v4902_v40 = vrot.slane %v10710_v33, %v13626_v42 }
 0x4cc   : > { %4873 = vbcast.lane.b32.xlu1 %v4835_v7, 328  ;;  %13735 = vst [vmem:[#allocation221_spill] sm:$0xff] %v10772_v58 }
 0x4cd   : > { %4869 = vbcast.lane.b32.xlu0 %v4835_v7, 320 }
 0x4ce   : > { %v10774_v51 = vpop.permute.xlu1 %4640 }
 0x4cf   : > { %v10776_v25 = vpop.permute.xlu0 %4636 }
 0x4d0   : > { %4881 = vbcast.lane.b32.xlu1 %v4835_v7, 344 }
 0x4d1   : > { %4877 = vbcast.lane.b32.xlu0 %v4835_v7, 336 }
 0x4d2   : > { %v10778_v59 = vpop.permute.xlu1 %4648 }
 0x4d3   : > { %13736 = vst [vmem:[#allocation222_spill] sm:$0xff] %v10778_v59  ;;  %v10780_v30 = vpop.permute.xlu0 %4644 }
 0x4d4   : > { %4889 = vbcast.lane.b32.xlu1 %v4835_v7, 360  ;;  %13737 = vst [vmem:[#allocation223_spill] sm:$0xff] %v10780_v30 }
 0x4d5   : > { %4885 = vbcast.lane.b32.xlu0 %v4835_v7, 352 }
 0x4d6   : > { %v10782_v12 = vpop.permute.xlu1 %4656 }
 0x4d7   : > { %13738 = vst [vmem:[#allocation224_spill] sm:$0xff] %v10782_v12  ;;  %v10786_v58 = vpop.permute.xlu0 %4652 }
 0x4d8   : > { %4897 = vbcast.lane.b32.xlu1 %v4835_v7, 376  ;;  %13739 = vst [vmem:[#allocation225_spill] sm:$0xff] %v10786_v58 }
 0x4d9   : > { %4893 = vbcast.lane.b32.xlu0 %v4835_v7, 368 }
 0x4da   : > { %v10788_v35 = vpop.permute.xlu1 %4664 }
 0x4db   : > { %13740 = vst [vmem:[#allocation226_spill] sm:$0xff] %v10788_v35  ;;  %v10790_v2 = vpop.permute.xlu0 %4660 }
 0x4dc   : > { %4908 = vbcast.lane.b32.xlu1 %v4902_v40, 264  ;;  %13741 = vst [vmem:[#allocation227_spill] sm:$0xff] %v10790_v2 }
 0x4dd   : > { %4904 = vbcast.lane.b32.xlu0 %v4902_v40, 256 }
 0x4de   : > { %v10792_v39 = vpop.permute.xlu1 %4672 }
 0x4df   : > { %13742 = vst [vmem:[#allocation228_spill] sm:$0xff] %v10792_v39  ;;  %v10794_v20 = vpop.permute.xlu0 %4668 }
 0x4e0   : > { %4916 = vbcast.lane.b32.xlu1 %v4902_v40, 280 }
 0x4e1   : > { %4912 = vbcast.lane.b32.xlu0 %v4902_v40, 272 }
 0x4e2   : > { %v10796_v12 = vpop.permute.xlu1 %4680 }
 0x4e3   : > { %13743 = vst [vmem:[#allocation229_spill] sm:$0xff] %v10796_v12  ;;  %v10798_v26 = vpop.permute.xlu0 %4676 }
 0x4e4   : > { %4924 = vbcast.lane.b32.xlu1 %v4902_v40, 296  ;;  %13744 = vst [vmem:[#allocation230_spill] sm:$0xff] %v10798_v26 }
 0x4e5   : > { %4920 = vbcast.lane.b32.xlu0 %v4902_v40, 288 }
 0x4e6   : > { %v10800_v42 = vpop.permute.xlu1 %4688 }
 0x4e7   : > { %13745 = vst [vmem:[#allocation231_spill] sm:$0xff] %v10800_v42  ;;  %v10802_v7 = vpop.permute.xlu0 %4684 }
 0x4e8   : > { %4932 = vbcast.lane.b32.xlu1 %v4902_v40, 312  ;;  %13746 = vst [vmem:[#allocation232_spill] sm:$0xff] %v10802_v7 }
 0x4e9   : > { %4928 = vbcast.lane.b32.xlu0 %v4902_v40, 304 }
 0x4ea   : > { %v10804_v35 = vpop.permute.xlu1 %4696 }
 0x4eb   : > { %13747 = vst [vmem:[#allocation233_spill] sm:$0xff] %v10804_v35  ;;  %v10806_v2 = vpop.permute.xlu0 %4692  ;;  %v4969_v35 = vrot.slane %v10710_v33, %v13643_v57 }
 0x4ec   : > { %4940 = vbcast.lane.b32.xlu1 %v4902_v40, 328  ;;  %13748 = vst [vmem:[#allocation234_spill] sm:$0xff] %v10806_v2 }
 0x4ed   : > { %4936 = vbcast.lane.b32.xlu0 %v4902_v40, 320 }
 0x4ee   : > { %v10808_v39 = vpop.permute.xlu1 %4707 }
 0x4ef   : > { %v10810_v12 = vpop.permute.xlu0 %4703 }
 0x4f0   : > { %4948 = vbcast.lane.b32.xlu1 %v4902_v40, 344 }
 0x4f1   : > { %4944 = vbcast.lane.b32.xlu0 %v4902_v40, 336 }
 0x4f2   : > { %v10812_v58 = vpop.permute.xlu1 %4715 }
 0x4f3   : > { %13749 = vst [vmem:[#allocation235_spill] sm:$0xff] %v10812_v58  ;;  %v10814_v42 = vpop.permute.xlu0 %4711 }
 0x4f4   : > { %4956 = vbcast.lane.b32.xlu1 %v4902_v40, 360 }
 0x4f5   : > { %4952 = vbcast.lane.b32.xlu0 %v4902_v40, 352 }
 0x4f6   : > { %v10816_v26 = vpop.permute.xlu1 %4723 }
 0x4f7   : > { %13750 = vst [vmem:[#allocation236_spill] sm:$0xff] %v10816_v26  ;;  %v10820_v2 = vpop.permute.xlu0 %4719 }
 0x4f8   : > { %4964 = vbcast.lane.b32.xlu1 %v4902_v40, 376  ;;  %13751 = vst [vmem:[#allocation237_spill] sm:$0xff] %v10820_v2 }
 0x4f9   : > { %4960 = vbcast.lane.b32.xlu0 %v4902_v40, 368 }
 0x4fa   : > { %v10822_v7 = vpop.permute.xlu1 %4731 }
 0x4fb   : > { %13752 = vst [vmem:[#allocation238_spill] sm:$0xff] %v10822_v7  ;;  %v10824_v27 = vpop.permute.xlu0 %4727 }
 0x4fc   : > { %4975 = vbcast.lane.b32.xlu1 %v4969_v35, 264  ;;  %13753 = vst [vmem:[#allocation239_spill] sm:$0xff] %v10824_v27 }
 0x4fd   : > { %4971 = vbcast.lane.b32.xlu0 %v4969_v35, 256 }
 0x4fe   : > { %v10826_v45 = vpop.permute.xlu1 %4739 }
 0x4ff   : > { %13754 = vst [vmem:[#allocation240_spill] sm:$0xff] %v10826_v45  ;;  %v10828_v53 = vpop.permute.xlu0 %4735 }
 0x500   : > { %4983 = vbcast.lane.b32.xlu1 %v4969_v35, 280 }
 0x501   : > { %4979 = vbcast.lane.b32.xlu0 %v4969_v35, 272 }
 0x502   : > { %v10830_v26 = vpop.permute.xlu1 %4747 }
 0x503   : > { %13755 = vst [vmem:[#allocation241_spill] sm:$0xff] %v10830_v26  ;;  %v10832_v54 = vpop.permute.xlu0 %4743 }
 0x504   : > { %4991 = vbcast.lane.b32.xlu1 %v4969_v35, 296  ;;  %13756 = vst [vmem:[#allocation242_spill] sm:$0xff] %v10832_v54 }
 0x505   : > { %4987 = vbcast.lane.b32.xlu0 %v4969_v35, 288 }
 0x506   : > { %v10834_v57 = vpop.permute.xlu1 %4755 }
 0x507   : > { %13757 = vst [vmem:[#allocation243_spill] sm:$0xff] %v10834_v57  ;;  %v10836_v40 = vpop.permute.xlu0 %4751 }
 0x508   : > { %4999 = vbcast.lane.b32.xlu1 %v4969_v35, 312  ;;  %13758 = vst [vmem:[#allocation244_spill] sm:$0xff] %v10836_v40 }
 0x509   : > { %4995 = vbcast.lane.b32.xlu0 %v4969_v35, 304 }
 0x50a   : > { %v10838_v7 = vpop.permute.xlu1 %4763 }
 0x50b   : > { %13759 = vst [vmem:[#allocation245_spill] sm:$0xff] %v10838_v7  ;;  %v10840_v27 = vpop.permute.xlu0 %4759  ;;  %v5036_v7 = vrot.slane %v10710_v33, %v13658_v62 }
 0x50c   : > { %5007 = vbcast.lane.b32.xlu1 %v4969_v35, 328  ;;  %13760 = vst [vmem:[#allocation246_spill] sm:$0xff] %v10840_v27 }
 0x50d   : > { %5003 = vbcast.lane.b32.xlu0 %v4969_v35, 320 }
 0x50e   : > { %v10842_v45 = vpop.permute.xlu1 %4774 }
 0x50f   : > { %v10844_v26 = vpop.permute.xlu0 %4770 }
 0x510   : > { %5015 = vbcast.lane.b32.xlu1 %v4969_v35, 344 }
 0x511   : > { %5011 = vbcast.lane.b32.xlu0 %v4969_v35, 336 }
 0x512   : > { %v10846_v2 = vpop.permute.xlu1 %4782 }
 0x513   : > { %13761 = vst [vmem:[#allocation247_spill] sm:$0xff] %v10846_v2  ;;  %v10848_v57 = vpop.permute.xlu0 %4778 }
 0x514   : > { %5023 = vbcast.lane.b32.xlu1 %v4969_v35, 360  ;;  %13762 = vst [vmem:[#allocation248_spill] sm:$0xff] %v10848_v57 }
 0x515   : > { %5019 = vbcast.lane.b32.xlu0 %v4969_v35, 352 }
 0x516   : > { %v10850_v54 = vpop.permute.xlu1 %4790 }
 0x517   : > { %13763 = vst [vmem:[#allocation249_spill] sm:$0xff] %v10850_v54  ;;  %v10854_v27 = vpop.permute.xlu0 %4786 }
 0x518   : > { %5031 = vbcast.lane.b32.xlu1 %v4969_v35, 376  ;;  %13764 = vst [vmem:[#allocation250_spill] sm:$0xff] %v10854_v27 }
 0x519   : > { %5027 = vbcast.lane.b32.xlu0 %v4969_v35, 368 }
 0x51a   : > { %v10856_v40 = vpop.permute.xlu1 %4798 }
 0x51b   : > { %13765 = vst [vmem:[#allocation251_spill] sm:$0xff] %v10856_v40  ;;  %v10858_v1 = vpop.permute.xlu0 %4794 }
 0x51c   : > { %5042 = vbcast.lane.b32.xlu1 %v5036_v7, 264  ;;  %13766 = vst [vmem:[#allocation252_spill] sm:$0xff] %v10858_v1 }
 0x51d   : > { %5038 = vbcast.lane.b32.xlu0 %v5036_v7, 256 }
 0x51e   : > { %v10860_v21 = vpop.permute.xlu1 %4806 }
 0x51f   : > { %13767 = vst [vmem:[#allocation253_spill] sm:$0xff] %v10860_v21  ;;  %v10862_v2 = vpop.permute.xlu0 %4802 }
 0x520   : > { %5050 = vbcast.lane.b32.xlu1 %v5036_v7, 280 }
 0x521   : > { %5046 = vbcast.lane.b32.xlu0 %v5036_v7, 272 }
 0x522   : > { %v10864_v54 = vpop.permute.xlu1 %4814 }
 0x523   : > { %13768 = vst [vmem:[#allocation254_spill] sm:$0xff] %v10864_v54  ;;  %v10866_v59 = vpop.permute.xlu0 %4810 }
 0x524   : > { %5058 = vbcast.lane.b32.xlu1 %v5036_v7, 296  ;;  %13769 = vst [vmem:[#allocation255_spill] sm:$0xff] %v10866_v59 }
 0x525   : > { %5054 = vbcast.lane.b32.xlu0 %v5036_v7, 288 }
 0x526   : > { %v10868_v62 = vpop.permute.xlu1 %4822 }
 0x527   : > { %13770 = vst [vmem:[#allocation256_spill] sm:$0xff] %v10868_v62  ;;  %v10870_v35 = vpop.permute.xlu0 %4818 }
 0x528   : > { %5066 = vbcast.lane.b32.xlu1 %v5036_v7, 312  ;;  %13771 = vst [vmem:[#allocation257_spill] sm:$0xff] %v10870_v35 }
 0x529   : > { %5062 = vbcast.lane.b32.xlu0 %v5036_v7, 304 }
 0x52a   : > { %v10872_v40 = vpop.permute.xlu1 %4830 }
 0x52b   : > { %13772 = vst [vmem:[#allocation258_spill] sm:$0xff] %v10872_v40  ;;  %v10874_v1 = vpop.permute.xlu0 %4826  ;;  %v5103_v40 = vrot.slane %v10710_v33, %v13672_v63 }
 0x52c   : > { %5074 = vbcast.lane.b32.xlu1 %v5036_v7, 328  ;;  %13773 = vst [vmem:[#allocation259_spill] sm:$0xff] %v10874_v1 }
 0x52d   : > { %5070 = vbcast.lane.b32.xlu0 %v5036_v7, 320 }
 0x52e   : > { %v10876_v21 = vpop.permute.xlu1 %4841 }
 0x52f   : > { %v10878_v54 = vpop.permute.xlu0 %4837 }
 0x530   : > { %5082 = vbcast.lane.b32.xlu1 %v5036_v7, 344 }
 0x531   : > { %5078 = vbcast.lane.b32.xlu0 %v5036_v7, 336 }
 0x532   : > { %v10880_v27 = vpop.permute.xlu1 %4849 }
 0x533   : > { %13774 = vst [vmem:[#allocation260_spill] sm:$0xff] %v10880_v27  ;;  %v10882_v62 = vpop.permute.xlu0 %4845 }
 0x534   : > { %5090 = vbcast.lane.b32.xlu1 %v5036_v7, 360  ;;  %13775 = vst [vmem:[#allocation261_spill] sm:$0xff] %v10882_v62 }
 0x535   : > { %5086 = vbcast.lane.b32.xlu0 %v5036_v7, 352 }
 0x536   : > { %v10884_v59 = vpop.permute.xlu1 %4857 }
 0x537   : > { %13776 = vst [vmem:[#allocation262_spill] sm:$0xff] %v10884_v59  ;;  %v10888_v1 = vpop.permute.xlu0 %4853 }
 0x538   : > { %5098 = vbcast.lane.b32.xlu1 %v5036_v7, 376  ;;  %13777 = vst [vmem:[#allocation263_spill] sm:$0xff] %v10888_v1 }
 0x539   : > { %5094 = vbcast.lane.b32.xlu0 %v5036_v7, 368 }
 0x53a   : > { %v10890_v35 = vpop.permute.xlu1 %4865 }
 0x53b   : > { %13778 = vst [vmem:[#allocation264_spill] sm:$0xff] %v10890_v35  ;;  %v10892_v55 = vpop.permute.xlu0 %4861 }
 0x53c   : > { %5109 = vbcast.lane.b32.xlu1 %v5103_v40, 264  ;;  %13779 = vst [vmem:[#allocation265_spill] sm:$0xff] %v10892_v55 }
 0x53d   : > { %5105 = vbcast.lane.b32.xlu0 %v5103_v40, 256 }
 0x53e   : > { %v10894_v27 = vpop.permute.xlu1 %4873 }
 0x53f   : > { %13780 = vst [vmem:[#allocation266_spill] sm:$0xff] %v10894_v27  ;;  %v10896_v61 = vpop.permute.xlu0 %4869 }
 0x540   : > { %5117 = vbcast.lane.b32.xlu1 %v5103_v40, 280 }
 0x541   : > { %5113 = vbcast.lane.b32.xlu0 %v5103_v40, 272 }
 0x542   : > { %v10898_v59 = vpop.permute.xlu1 %4881 }
 0x543   : > { %13781 = vst [vmem:[#allocation267_spill] sm:$0xff] %v10898_v59  ;;  %v10900_v58 = vpop.permute.xlu0 %4877 }
 0x544   : > { %5125 = vbcast.lane.b32.xlu1 %v5103_v40, 296  ;;  %13782 = vst [vmem:[#allocation268_spill] sm:$0xff] %v10900_v58 }
 0x545   : > { %5121 = vbcast.lane.b32.xlu0 %v5103_v40, 288 }
 0x546   : > { %v10902_v63 = vpop.permute.xlu1 %4889 }
 0x547   : > { %13783 = vst [vmem:[#allocation269_spill] sm:$0xff] %v10902_v63  ;;  %v10904_v7 = vpop.permute.xlu0 %4885 }
 0x548   : > { %5133 = vbcast.lane.b32.xlu1 %v5103_v40, 312  ;;  %13784 = vst [vmem:[#allocation270_spill] sm:$0xff] %v10904_v7 }
 0x549   : > { %5129 = vbcast.lane.b32.xlu0 %v5103_v40, 304 }
 0x54a   : > { %v10906_v35 = vpop.permute.xlu1 %4897 }
 0x54b   : > { %13785 = vst [vmem:[#allocation271_spill] sm:$0xff] %v10906_v35  ;;  %v10908_v55 = vpop.permute.xlu0 %4893  ;;  %v5170_v35 = vrot.slane %v10710_v33, %v13686_v3 }
 0x54c   : > { %5141 = vbcast.lane.b32.xlu1 %v5103_v40, 328  ;;  %13786 = vst [vmem:[#allocation272_spill] sm:$0xff] %v10908_v55 }
 0x54d   : > { %5137 = vbcast.lane.b32.xlu0 %v5103_v40, 320 }
 0x54e   : > { %v10910_v27 = vpop.permute.xlu1 %4908 }
 0x54f   : > { %v10912_v59 = vpop.permute.xlu0 %4904 }
 0x550   : > { %5149 = vbcast.lane.b32.xlu1 %v5103_v40, 344 }
 0x551   : > { %5145 = vbcast.lane.b32.xlu0 %v5103_v40, 336 }
 0x552   : > { %v10914_v1 = vpop.permute.xlu1 %4916 }
 0x553   : > { %13787 = vst [vmem:[#allocation273_spill] sm:$0xff] %v10914_v1  ;;  %v10916_v63 = vpop.permute.xlu0 %4912 }
 0x554   : > { %5157 = vbcast.lane.b32.xlu1 %v5103_v40, 360  ;;  %13788 = vst [vmem:[#allocation274_spill] sm:$0xff] %v10916_v63 }
 0x555   : > { %5153 = vbcast.lane.b32.xlu0 %v5103_v40, 352 }
 0x556   : > { %v10918_v58 = vpop.permute.xlu1 %4924 }
 0x557   : > { %13789 = vst [vmem:[#allocation275_spill] sm:$0xff] %v10918_v58  ;;  %v10922_v55 = vpop.permute.xlu0 %4920 }
 0x558   : > { %5165 = vbcast.lane.b32.xlu1 %v5103_v40, 376  ;;  %13790 = vst [vmem:[#allocation276_spill] sm:$0xff] %v10922_v55 }
 0x559   : > { %5161 = vbcast.lane.b32.xlu0 %v5103_v40, 368 }
 0x55a   : > { %v10924_v7 = vpop.permute.xlu1 %4932 }
 0x55b   : > { %13791 = vst [vmem:[#allocation277_spill] sm:$0xff] %v10924_v7  ;;  %v10926_v13 = vpop.permute.xlu0 %4928 }
 0x55c   : > { %5176 = vbcast.lane.b32.xlu1 %v5170_v35, 264  ;;  %13792 = vst [vmem:[#allocation278_spill] sm:$0xff] %v10926_v13 }
 0x55d   : > { %5172 = vbcast.lane.b32.xlu0 %v5170_v35, 256 }
 0x55e   : > { %v10928_v1 = vpop.permute.xlu1 %4940 }
 0x55f   : > { %13793 = vst [vmem:[#allocation279_spill] sm:$0xff] %v10928_v1  ;;  %v10930_v43 = vpop.permute.xlu0 %4936 }
 0x560   : > { %5184 = vbcast.lane.b32.xlu1 %v5170_v35, 280 }
 0x561   : > { %5180 = vbcast.lane.b32.xlu0 %v5170_v35, 272 }
 0x562   : > { %v10932_v58 = vpop.permute.xlu1 %4948 }
 0x563   : > { %13794 = vst [vmem:[#allocation280_spill] sm:$0xff] %v10932_v58  ;;  %v10934_v36 = vpop.permute.xlu0 %4944 }
 0x564   : > { %5192 = vbcast.lane.b32.xlu1 %v5170_v35, 296  ;;  %13795 = vst [vmem:[#allocation281_spill] sm:$0xff] %v10934_v36 }
 0x565   : > { %5188 = vbcast.lane.b32.xlu0 %v5170_v35, 288 }
 0x566   : > { %v10936_v3 = vpop.permute.xlu1 %4956 }
 0x567   : > { %13796 = vst [vmem:[#allocation282_spill] sm:$0xff] %v10936_v3  ;;  %v10938_v40 = vpop.permute.xlu0 %4952 }
 0x568   : > { %5200 = vbcast.lane.b32.xlu1 %v5170_v35, 312  ;;  %13797 = vst [vmem:[#allocation283_spill] sm:$0xff] %v10938_v40 }
 0x569   : > { %5196 = vbcast.lane.b32.xlu0 %v5170_v35, 304 }
 0x56a   : > { %v10940_v7 = vpop.permute.xlu1 %4964 }
 0x56b   : > { %13798 = vst [vmem:[#allocation284_spill] sm:$0xff] %v10940_v7  ;;  %v10942_v13 = vpop.permute.xlu0 %4960  ;;  %v5237_v7 = vrot.slane %v10710_v33, %v13699_v60 }
 0x56c   : > { %5208 = vbcast.lane.b32.xlu1 %v5170_v35, 328  ;;  %13799 = vst [vmem:[#allocation285_spill] sm:$0xff] %v10942_v13 }
 0x56d   : > { %5204 = vbcast.lane.b32.xlu0 %v5170_v35, 320 }
 0x56e   : > { %v10944_v1 = vpop.permute.xlu1 %4975 }
 0x56f   : > { %v10946_v58 = vpop.permute.xlu0 %4971 }
 0x570   : > { %5216 = vbcast.lane.b32.xlu1 %v5170_v35, 344 }
 0x571   : > { %5212 = vbcast.lane.b32.xlu0 %v5170_v35, 336 }
 0x572   : > { %v10948_v55 = vpop.permute.xlu1 %4983 }
 0x573   : > { %13800 = vst [vmem:[#allocation286_spill] sm:$0xff] %v10948_v55  ;;  %v10950_v3 = vpop.permute.xlu0 %4979 }
 0x574   : > { %5224 = vbcast.lane.b32.xlu1 %v5170_v35, 360 }
 0x575   : > { %5220 = vbcast.lane.b32.xlu0 %v5170_v35, 352 }
 0x576   : > { %v10952_v36 = vpop.permute.xlu1 %4991 }
 0x577   : > { %13801 = vst [vmem:[#allocation287_spill] sm:$0xff] %v10952_v36  ;;  %v10956_v13 = vpop.permute.xlu0 %4987 }
 0x578   : > { %5232 = vbcast.lane.b32.xlu1 %v5170_v35, 376  ;;  %13802 = vst [vmem:[#allocation288_spill] sm:$0xff] %v10956_v13 }
 0x579   : > { %5228 = vbcast.lane.b32.xlu0 %v5170_v35, 368 }
 0x57a   : > { %v10958_v40 = vpop.permute.xlu1 %4999 }
 0x57b   : > { %13803 = vst [vmem:[#allocation289_spill] sm:$0xff] %v10958_v40  ;;  %v10960_v38 = vpop.permute.xlu0 %4995 }
 0x57c   : > { %5243 = vbcast.lane.b32.xlu1 %v5237_v7, 264  ;;  %13804 = vst [vmem:[#allocation290_spill] sm:$0xff] %v10960_v38 }
 0x57d   : > { %5239 = vbcast.lane.b32.xlu0 %v5237_v7, 256 }
 0x57e   : > { %v10962_v55 = vpop.permute.xlu1 %5007 }
 0x57f   : > { %13805 = vst [vmem:[#allocation291_spill] sm:$0xff] %v10962_v55  ;;  %v10964_v47 = vpop.permute.xlu0 %5003 }
 0x580   : > { %5251 = vbcast.lane.b32.xlu1 %v5237_v7, 280 }
 0x581   : > { %5247 = vbcast.lane.b32.xlu0 %v5237_v7, 272 }
 0x582   : > { %v10966_v36 = vpop.permute.xlu1 %5015 }
 0x583   : > { %13806 = vst [vmem:[#allocation292_spill] sm:$0xff] %v10966_v36  ;;  %v10968_v49 = vpop.permute.xlu0 %5011 }
 0x584   : > { %5259 = vbcast.lane.b32.xlu1 %v5237_v7, 296  ;;  %13807 = vst [vmem:[#allocation293_spill] sm:$0xff] %v10968_v49 }
 0x585   : > { %5255 = vbcast.lane.b32.xlu0 %v5237_v7, 288 }
 0x586   : > { %v10970_v60 = vpop.permute.xlu1 %5023 }
 0x587   : > { %13808 = vst [vmem:[#allocation294_spill] sm:$0xff] %v10970_v60  ;;  %v10972_v33 = vpop.permute.xlu0 %5019 }
 0x588   : > { %5267 = vbcast.lane.b32.xlu1 %v5237_v7, 312  ;;  %13809 = vst [vmem:[#allocation295_spill] sm:$0xff] %v10972_v33 }
 0x589   : > { %5263 = vbcast.lane.b32.xlu0 %v5237_v7, 304 }
 0x58a   : > { %v10974_v35 = vpop.permute.xlu1 %5031 }
 0x58b   : > { %13810 = vst [vmem:[#allocation296_spill] sm:$0xff] %v10974_v35  ;;  %v10976_v40 = vpop.permute.xlu0 %5027 }
 0x58c   : > { %5275 = vbcast.lane.b32.xlu1 %v5237_v7, 328  ;;  %13811 = vst [vmem:[#allocation297_spill] sm:$0xff] %v10976_v40 }
 0x58d   : > { %5271 = vbcast.lane.b32.xlu0 %v5237_v7, 320 }
 0x58e   : > { %v10978_v38 = vpop.permute.xlu1 %5042 }
 0x58f   : > { %v5039_v36 = vpop.permute.xlu0 %5038 }
 0x590   : > { %5283 = vbcast.lane.b32.xlu1 %v5237_v7, 344 }
 0x591   : > { %5279 = vbcast.lane.b32.xlu0 %v5237_v7, 336 }
 0x592   : > { %v10980_v55 = vpop.permute.xlu1 %5050 }
 0x593   : > { %13812 = vst [vmem:[#allocation298_spill] sm:$0xff] %v10980_v55  ;;  %v10982_v60 = vpop.permute.xlu0 %5046 }
 0x594   : > { %5291 = vbcast.lane.b32.xlu1 %v5237_v7, 360  ;;  %13813 = vst [vmem:[#allocation299_spill] sm:$0xff] %v10982_v60 }
 0x595   : > { %5287 = vbcast.lane.b32.xlu0 %v5237_v7, 352 }
 0x596   : > { %v10984_v49 = vpop.permute.xlu1 %5058 }
 0x597   : > { %13814 = vst [vmem:[#allocation300_spill] sm:$0xff] %v10984_v49  ;;  %v10986_v35 = vpop.permute.xlu0 %5054 }
 0x598   : > { %5299 = vbcast.lane.b32.xlu1 %v5237_v7, 376  ;;  %13815 = vst [vmem:[#allocation301_spill] sm:$0xff] %v10986_v35 }
 0x599   : > { %5295 = vbcast.lane.b32.xlu0 %v5237_v7, 368 }
 0x59a   : > { %v10988_v33 = vpop.permute.xlu1 %5066 }
 0x59b   : > { %13816 = vst [vmem:[#allocation302_spill] sm:$0xff] %v10988_v33  ;;  %v10990_v40 = vpop.permute.xlu0 %5062 }
 0x59c   : > { %13817 = vst [vmem:[#allocation303_spill] sm:$0xff] %v10990_v40 }
 0x59e   : > { %v10992_v13 = vpop.permute.xlu1 %5074 }
 0x59f   : > { %13818 = vst [vmem:[#allocation304_spill] sm:$0xff] %v10992_v13  ;;  %v10994_v18 = vpop.permute.xlu0 %5070 }
 0x5a2   : > { %v10996_v55 = vpop.permute.xlu1 %5082 }
 0x5a3   : > { %13819 = vst [vmem:[#allocation305_spill] sm:$0xff] %v10996_v55  ;;  %v10998_v62 = vpop.permute.xlu0 %5078 }
 0x5a4   : > { %13820 = vst [vmem:[#allocation306_spill] sm:$0xff] %v10998_v62 }
 0x5a6   : > { %v11000_v60 = vpop.permute.xlu1 %5090 }
 0x5a7   : > { %13821 = vst [vmem:[#allocation307_spill] sm:$0xff] %v11000_v60  ;;  %v11002_v49 = vpop.permute.xlu0 %5086 }
 0x5a8   : > { %13822 = vst [vmem:[#allocation308_spill] sm:$0xff] %v11002_v49 }
 0x5aa   : > { %v11004_v17 = vpop.permute.xlu1 %5098 }
 0x5ab   : > { %13823 = vst [vmem:[#allocation309_spill] sm:$0xff] %v11004_v17  ;;  %v11006_v35 = vpop.permute.xlu0 %5094 }
 0x5ac   : > { %13824 = vst [vmem:[#allocation310_spill] sm:$0xff] %v11006_v35 }
 0x5ae   : > { %v11008_v33 = vpop.permute.xlu1 %5109 }
 0x5af   : > { %v5106_v7 = vpop.permute.xlu0 %5105 }
 0x5b2   : > { %v11010_v40 = vpop.permute.xlu1 %5117 }
 0x5b3   : > { %13825 = vst [vmem:[#allocation311_spill] sm:$0xff] %v11010_v40  ;;  %v11012_v13 = vpop.permute.xlu0 %5113 }
 0x5b4   : > { %13826 = vst [vmem:[#allocation312_spill] sm:$0xff] %v11012_v13 }
 0x5b6   : > { %v11014_v57 = vpop.permute.xlu1 %5125 }
 0x5b7   : > { %13827 = vst [vmem:[#allocation313_spill] sm:$0xff] %v11014_v57  ;;  %v11016_v55 = vpop.permute.xlu0 %5121 }
 0x5b8   : > { %13828 = vst [vmem:[#allocation314_spill] sm:$0xff] %v11016_v55 }
 0x5ba   : > { %v11018_v62 = vpop.permute.xlu1 %5133 }
 0x5bb   : > { %13829 = vst [vmem:[#allocation315_spill] sm:$0xff] %v11018_v62  ;;  %v11020_v60 = vpop.permute.xlu0 %5129 }
 0x5bc   : > { %13830 = vst [vmem:[#allocation316_spill] sm:$0xff] %v11020_v60 }
 0x5be   : > { %v11022_v49 = vpop.permute.xlu1 %5141 }
 0x5bf   : > { %13831 = vst [vmem:[#allocation317_spill] sm:$0xff] %v11022_v49  ;;  %v11024_v17 = vpop.permute.xlu0 %5137 }
 0x5c2   : > { %v11026_v35 = vpop.permute.xlu1 %5149 }
 0x5c3   : > { %13832 = vst [vmem:[#allocation318_spill] sm:$0xff] %v11026_v35  ;;  %v11028_v11 = vpop.permute.xlu0 %5145 }
 0x5c4   : > { %13833 = vst [vmem:[#allocation319_spill] sm:$0xff] %v11028_v11 }
 0x5c6   : > { %v11030_v41 = vpop.permute.xlu1 %5157 }
 0x5c7   : > { %13834 = vst [vmem:[#allocation320_spill] sm:$0xff] %v11030_v41  ;;  %v11032_v40 = vpop.permute.xlu0 %5153 }
 0x5c8   : > { %13835 = vst [vmem:[#allocation321_spill] sm:$0xff] %v11032_v40 }
 0x5ca   : > { %v11034_v63 = vpop.permute.xlu1 %5165 }
 0x5cb   : > { %13836 = vst [vmem:[#allocation322_spill] sm:$0xff] %v11034_v63  ;;  %v11036_v57 = vpop.permute.xlu0 %5161 }
 0x5cc   : > { %13837 = vst [vmem:[#allocation323_spill] sm:$0xff] %v11036_v57 }
 0x5ce   : > { %v5177_v55 = vpop.permute.xlu1 %5176 }
 0x5cf   : > { %v5173_v62 = vpop.permute.xlu0 %5172 }
 0x5d2   : > { %v11038_v30 = vpop.permute.xlu1 %5184 }
 0x5d3   : > { %13838 = vst [vmem:[#allocation324_spill] sm:$0xff] %v11038_v30  ;;  %v11040_v60 = vpop.permute.xlu0 %5180  ;;  %v5349_v30 = vsel %vm1227_vm0, %v10671_v50, %v10946_v58  ;;  %v5397_v58 = vsel %vm1227_vm0, %v10776_v25, %v5173_v62 }
 0x5d4   : > { %13839 = vst [vmem:[#allocation325_spill] sm:$0xff] %v11040_v60 }
 0x5d6   : > { %v11044_v22 = vpop.permute.xlu1 %5192 }
 0x5d7   : > { %v11042_v49 = vpop.permute.xlu0 %5188  ;;  %13841 = vst [vmem:[#allocation327_spill] sm:$0xff] %v11044_v22  ;;  %v5317_v22 = vsel %vm1227_vm0, %v10603_v34, %v10878_v54  ;;  %v5365_v54 = vsel %vm1227_vm0, %v10705_v31, %v5039_v36 }
 0x5d8   : > { %13840 = vst [vmem:[#allocation326_spill] sm:$0xff] %v11042_v49  ;;  %v5445_v49 = vcombine.low %v5317_v22, %v5349_v30 }
 0x5da   : > { %v11048_v11 = vpop.permute.xlu1 %5200  ;;  %v5453_v34 = vrot.slane %v5445_v49, %v9375_v9 }
 0x5db   : > { %v11046_v35 = vpop.permute.xlu0 %5196  ;;  %13843 = vst [vmem:[#allocation329_spill] sm:$0xff] %v11048_v11  ;;  %v5333_v11 = vsel %vm1227_vm0, %v10637_v24, %v10912_v59  ;;  %v5381_v59 = vsel %vm1227_vm0, %v10742_v8, %v5106_v7 }
 0x5dc   : > { %13842 = vst [vmem:[#allocation328_spill] sm:$0xff] %v11046_v35 }
 0x5de   : > { %v11054_v63 = vpop.permute.xlu1 %5208 }
 0x5df   : > { %v11050_v41 = vpop.permute.xlu0 %5204  ;;  %13845 = vst [vmem:[#allocation331_spill] sm:$0xff] %v11054_v63  ;;  %v5461_v63 = vcombine.low %v5365_v54, %v5397_v58 }
 0x5e1   : > { %v5469_v62 = vrot.slane %v5461_v63, %v9375_v9 }
 0x5e2   : > { %v11067_v35 = vpop.permute.xlu1 %5216 }
 0x5e3   : > { %v11052_v40 = vpop.permute.xlu0 %5212  ;;  %13847 = vst [vmem:[#allocation333_spill] sm:$0xff] %v11067_v35 }
 0x5e4   : > { %13844 = vst [vmem:[#allocation330_spill] sm:$0xff] %v11052_v40 }
 0x5e6   : > { %v11081_v35 = vpop.permute.xlu1 %5224 }
 0x5e7   : > { %v11056_v57 = vpop.permute.xlu0 %5220  ;;  %13849 = vst [vmem:[#allocation335_spill] sm:$0xff] %v11081_v35 }
 0x5e8   : > { %13846 = vst [vmem:[#allocation332_spill] sm:$0xff] %v11056_v57  ;;  %v5301_v57 = vsel %vm1227_vm0, %v10569_v37, %v10844_v26 }
 0x5e9   : > { %v5429_v50 = vcombine.low %v5301_v57, %v5333_v11 }
 0x5ea   : > { %v11088_v13 = vpop.permute.xlu1 %5232 }
 0x5eb   : > { %v11069_v40 = vpop.permute.xlu0 %5228  ;;  %v5437_v26 = vrot.slane %v5429_v50, %v9375_v9  ;;  %13850 = vst [vmem:[#allocation336_spill] sm:$0xff] %v11088_v13  ;;  %v5430_v13 = vcombine.high %v5301_v57, %v5333_v11  ;;  %v11118_v11 = vsel %vm1227_vm0, %v10669_v44, %v10944_v1  ;;  %v11123_v57 = vsel %vm1227_vm0, %v10740_v0, %v11008_v33 }
 0x5ec   : > { %13848 = vst [vmem:[#allocation334_spill] sm:$0xff] %v11069_v40  ;;  %v11140_v0 = vsel %vm1227_vm0, %v10601_v48, %v10876_v21 }
 0x5ed   : > { %v5493_v25 = vcombine.low %v5437_v26, %v5453_v34  ;;  %v5494_v60 = vcombine.high %v5437_v26, %v5453_v34  ;;  %v5462_v34 = vcombine.high %v5365_v54, %v5397_v58  ;;  %v11177_v58 = vsel %vm1227_vm0, %v10655_v5, %v10930_v43 }
 0x5ee   : > { %v5244_v26 = vpop.permute.xlu1 %5243  ;;  %v11197_v5 = vsel %vm1227_vm0, %v10794_v20, %v11050_v41  ;;  %v11209_v20 = vsel %vm1227_vm0, %v10726_v32, %v10994_v18 }
 0x5ef   : > { %v5240_v24 = vpop.permute.xlu0 %5239  ;;  %v11091_v8 = vrot.slane %v5493_v25, %v9389_v52 }
 0x5f0   : > { %v5413_v40 = vsel %vm1227_vm0, %v10810_v12, %v5240_v24  ;;  %v5508_v24 = vrot.slane %v5494_v60, %v9389_v52  ;;  %v5444_v60 = vrot.slane %v5430_v13, %v9375_v9 }
 0x5f1   : > { %v5477_v37 = vcombine.low %v5381_v59, %v5413_v40 }
 0x5f3   : > { %v5485_v36 = vrot.slane %v5477_v37, %v9375_v9  ;;  %v11097_v50 = vpop.permute.xlu0 %5247  ;;  %v5478_v37 = vcombine.high %v5381_v59, %v5413_v40  ;;  %v11132_v40 = vsel %vm1227_vm0, %v10635_v46, %v10910_v27  ;;  %v11150_v27 = vsel %vm1227_vm0, %v10567_v14, %v10842_v45 }
 0x5f4   : > { %v5565_v48 = vcombine.low %v11150_v27, %v11132_v40  ;;  %v11172_v14 = vsel %vm1227_vm0, %v10621_v28, %v10896_v61 }
 0x5f5   : > { %v5525_v31 = vcombine.low %v5469_v62, %v5485_v36  ;;  %v5526_v49 = vcombine.high %v5469_v62, %v5485_v36  ;;  %v5446_v62 = vcombine.high %v5317_v22, %v5349_v30  ;;  %v5476_v30 = vrot.slane %v5462_v34, %v9375_v9 }
 0x5f6   : > { %v11190_v61 = vrot.slane %v5565_v48, %v9375_v9 }
 0x5f7   : > { %v11094_v7 = vrot.slane %v5525_v31, %v9389_v52  ;;  %v5540_v12 = vrot.slane %v5526_v49, %v9389_v52  ;;  %v5492_v31 = vrot.slane %v5478_v37, %v9375_v9  ;;  %v11105_v35 = vpop.permute.xlu0 %5255  ;;  %v11110_v49 = vsel %vm1227_vm0, %v10808_v39, %v5244_v26 }
 0x5f8   : > { %v5460_v22 = vrot.slane %v5446_v62, %v9375_v9  ;;  %v11127_v39 = vsel %vm1227_vm0, %v10774_v51, %v5177_v55  ;;  %v5613_v1 = vcombine.low %v11123_v57, %v11110_v49  ;;  %v11145_v51 = vsel %vm1227_vm0, %v10703_v4, %v10978_v38 }
 0x5f9   : > { %v5557_v63 = vcombine.low %v11091_v8, %v11094_v7  ;;  %v5559_v36 = vcombine.low %v5508_v24, %v5540_v12  ;;  %v5558_v25 = vcombine.high %v11091_v8, %v11094_v7  ;;  %v5541_v44 = vcombine.low %v5476_v30, %v5492_v31 }
 0x5fa   : > { %v5581_v55 = vcombine.low %v11140_v0, %v11118_v11  ;;  %v5509_v46 = vcombine.low %v5444_v60, %v5460_v22  ;;  %v5597_v13 = vcombine.low %v11145_v51, %v11127_v39  ;;  %v11163_v38 = vsel %vm1227_vm0, %v10689_v10, %v10964_v47 }
 0x5fb   : > { %7610 = vrot.lane.b32.xlu1 %v5559_v36, %s13851_s23  ;;  %7606 = vrot.lane.b32.xlu0 %v5558_v25, %s13852_s16  ;;  %v11156_v33 = vpop.permute.xlu0 %5263  ;;  %v11166_v45 = vrot.slane %v5613_v1, %v9375_v9  ;;  %v5542_v4 = vcombine.high %v5476_v30, %v5492_v31  ;;  %v5549_v21 = vrot.slane %v5541_v44, %v9389_v52 }
 0x5fc   : > { %v11180_v54 = vrot.slane %v5581_v55, %v9375_v9  ;;  %v5510_v47 = vcombine.high %v5444_v60, %v5460_v22  ;;  %v5517_v10 = vrot.slane %v5509_v46, %v9389_v52  ;;  %v5605_v59 = vrot.slane %v5597_v13, %v9375_v9 }
 0x5fd   : > { %v11187_v37 = vsel %vm1227_vm0, %v10587_v56, %v10862_v2  ;;  %v6533_v43 = vcombine.low %v11172_v14, %v11163_v38  ;;  %v5556_v62 = vrot.slane %v5542_v4, %v9389_v52  ;;  %v5560_v26 = vcombine.high %v5508_v24, %v5540_v12 }
 0x5fe   : > { %v5661_v28 = vcombine.low %v5605_v59, %v11166_v45  ;;  %v5561_v34 = vcombine.low %v5517_v10, %v5549_v21  ;;  %v6517_v56 = vcombine.low %v11187_v37, %v11177_v58  ;;  %v5629_v2 = vcombine.low %v11190_v61, %v11180_v54 }
 0x5ff   : > { %v5272_v36 = vpop.permute.xlu0 %5271  ;;  %v5524_v25 = vrot.slane %v5510_v47, %v9389_v52  ;;  %7614 = vrot.lane.b32.xlu0 %v5560_v26, %s13854_s19  ;;  %v11214_v41 = vrot.slane %v6533_v43, %v9375_v9  ;;  %v6549_v12 = vcombine.low %v11209_v20, %v11197_v5  ;;  %v11225_v31 = vsel %vm1227_vm0, %v10760_v19, %v11024_v17 }
 0x600   : > { %7618 = vrot.lane.b32.xlu1 %v5561_v34, %s13853_s9  ;;  %v11220_v24 = vsel %vm1227_vm0, %v10828_v53, %v5272_v36  ;;  %v11228_v18 = vrot.slane %v5661_v28, %v9389_v52  ;;  %v5562_v22 = vcombine.high %v5517_v10, %v5549_v21  ;;  %v11231_v30 = vrot.slane %v6517_v56, %v9375_v9  ;;  %s13856_s9 = smov 10   ;;  %v13866_v56 = vld [vmem:[#allocation142_spill] sm:$0xff] }
 0x601   : > { %v5563_v32 = vcombine.low %v5524_v25, %v5556_v62  ;;  %v6565_v60 = vcombine.low %v11225_v31, %v11220_v24  ;;  %v5637_v1 = vrot.slane %v5629_v2, %v9389_v52  ;;  %v11241_v19 = vrot.slane %v6549_v12, %v9375_v9  ;;  %v13869_v12 = vld [vmem:[#allocation261_spill] sm:$0xff] }
 0x602   : > { %v6581_v53 = vcombine.low %v11231_v30, %v11214_v41  ;;  %v5614_v46 = vcombine.high %v11123_v57, %v11110_v49  ;;  %v5582_v4 = vcombine.high %v11140_v0, %v11118_v11  ;;  %v5598_v21 = vcombine.high %v11145_v51, %v11127_v39 }
 0x603   : > { %7622 = vrot.lane.b32.xlu0 %v5562_v22, %s13856_s9  ;;  %v11244_v17 = vrot.slane %v6565_v60, %v9375_v9  ;;  %v5693_v44 = vcombine.low %v5637_v1, %v11228_v18  ;;  %v13858_v47 = vcombine.low %v9394_v15, %v9399_v23  ;;  %v5566_v57 = vcombine.high %v11150_v27, %v11132_v40  ;;  %v13871_v60 = vld [vmem:[#allocation299_spill] sm:$0xff]  ;;  %s13876_s9 = smov 18  }
 0x604   : > { %7626 = vrot.lane.b32.xlu1 %v5563_v32, %s13855_s11  ;;  %s13857_s11 = smov 16   ;;  %v11253_v13 = vrot.slane %v6581_v53, %v9389_v52  ;;  %v5628_v43 = vrot.slane %v5614_v46, %v9375_v9  ;;  %v5662_v11 = vcombine.high %v5605_v59, %v11166_v45  ;;  %v5564_v0 = vcombine.high %v5524_v25, %v5556_v62  ;;  %v13860_v45 = vld [vmem:[#allocation312_spill] sm:$0xff]  ;;  %v13863_v59 = vld [vmem:[#allocation223_spill] sm:$0xff]  ;;  %v13864_v62 = vld [vmem:[#allocation274_spill] sm:$0xff] }
 0x605   : > { %v6613_v55 = vcombine.low %v11241_v19, %v11244_v17  ;;  %v4037_v49 = vsel %vm4036_vm1, %v13858_v47, %v9899_v6  ;;  %v5415_v39 = vsel %vm1227_vm0, %v10814_v42, %v11097_v50  ;;  %v5596_v23 = vrot.slane %v5582_v4, %v9375_v9  ;;  %v13861_v42 = vld [vmem:[#allocation19_spill] sm:$0xff]  ;;  %v13870_v32 = vld [vmem:[#allocation138_spill] sm:$0xff] }
 0x606   : > { %v4039_v15 = vsel %vm4038_vm2, %v4037_v49, %v9892_v29  ;;  %v5630_v6 = vcombine.high %v11190_v61, %v11180_v54  ;;  %v5612_v40 = vrot.slane %v5598_v21, %v9375_v9  ;;  %v5580_v51 = vrot.slane %v5566_v57, %v9375_v9  ;;  %v13862_v29 = vld [vmem:[#allocation325_spill] sm:$0xff]  ;;  %v13865_v54 = vld [vmem:[#allocation214_spill] sm:$0xff] }
 0x607   : > { %v11256_v48 = vrot.slane %v6613_v55, %v9389_v52  ;;  %v5351_v27 = vsel %vm1227_vm0, %v10675_v16, %v10950_v3  ;;  %v5383_v50 = vsel %vm1227_vm0, %v13861_v42, %v13860_v45  ;;  %v5399_v28 = vsel %vm1227_vm0, %v13863_v59, %v13862_v29  ;;  %v13867_v16 = vld [vmem:[#allocation248_spill] sm:$0xff]  ;;  %v13872_v53 = vld [vmem:[#allocation126_spill] sm:$0xff] }
 0x608   : > { %7634 = vrot.lane.b32.xlu1 %v5693_v44, %s13857_s11  ;;  %s13859_s11 = smov 14   ;;  %v5335_v61 = vsel %vm1227_vm0, %v13865_v54, %v13864_v62  ;;  %v5676_v34 = vrot.slane %v5662_v11, %v9389_v52  ;;  %v5677_v26 = vcombine.low %v5612_v40, %v5628_v43  ;;  %v5749_v36 = vcombine.low %v5383_v50, %v5415_v39  ;;  %v13868_v3 = vld [vmem:[#allocation148_spill] sm:$0xff] }
 0x609   : > { %v6645_v10 = vcombine.low %v11253_v13, %v11256_v48  ;;  %7630 = vrot.lane.b32.xlu0 %v5564_v0, %s13859_s11  ;;  %v4041_v2 = vsel %vm13038_vm3, %v4039_v15, %v13866_v56  ;;  %v5303_v25 = vsel %vm1227_vm0, %v13868_v3, %v13867_v16  ;;  %v5319_v22 = vsel %vm1227_vm0, %v13870_v32, %v13869_v12  ;;  %v13873_v15 = vld [vmem:[#allocation104_spill] sm:$0xff]  ;;  %s13874_s11 = smov 20   ;;  %v5252_v3 = vpop.permute.xlu1 %5251  ;;  %v13878_v12 = vld [vmem:[#allocation38_spill] sm:$0xff] }
 0x60a   : > { %v5367_v44 = vsel %vm1227_vm0, %v13872_v53, %v13871_v60  ;;  %v5644_v55 = vrot.slane %v5630_v6, %v9389_v52  ;;  %v5645_v46 = vcombine.low %v5580_v51, %v5596_v23  ;;  %v5717_v4 = vcombine.low %v5319_v22, %v5351_v27 }
 0x60b   : > { %v5733_v21 = vcombine.low %v5367_v44, %v5399_v28  ;;  %v5701_v47 = vcombine.low %v5303_v25, %v5335_v61  ;;  %v5678_v49 = vcombine.high %v5612_v40, %v5628_v43  ;;  %v5685_v57 = vrot.slane %v5677_v26, %v9389_v52  ;;  %v13875_v43 = vld [vmem:[#allocation155_spill] sm:$0xff] }
 0x60c   : > { %v5757_v11 = vrot.slane %v5749_v36, %v9375_v9  ;;  %v5695_v0 = vcombine.low %v5644_v55, %v5676_v34  ;;  %v4043_v45 = vsel %vm4042_vm4, %v4041_v2, %v13873_v15  ;;  %v5694_v42 = vcombine.high %v5637_v1, %v11228_v18  ;;  %v13885_v15 = vld [vmem:[#allocation77_spill] sm:$0xff] }
 0x60d   : > { %v5646_v29 = vcombine.high %v5580_v51, %v5596_v23  ;;  %v5653_v59 = vrot.slane %v5645_v46, %v9389_v52  ;;  %v5725_v6 = vrot.slane %v5717_v4, %v9375_v9  ;;  %v5741_v62 = vrot.slane %v5733_v21, %v9375_v9  ;;  %v13883_v46 = vld [vmem:[#allocation235_spill] sm:$0xff] }
 0x60e   : > { %7642 = vrot.lane.b32.xlu1 %v5695_v0, %s13874_s11  ;;  %v4045_v40 = vsel %vm13039_vm5, %v4043_v45, %v13875_v43  ;;  %v5709_v54 = vrot.slane %v5701_v47, %v9375_v9  ;;  %7638 = vrot.lane.b32.xlu0 %v5694_v42, %s13876_s9  ;;  %v5692_v26 = vrot.slane %v5678_v49, %v9389_v52  ;;  %s13877_s11 = smov 24   ;;  %s13879_s9 = smov 22   ;;  %v13884_v0 = vld [vmem:[#allocation286_spill] sm:$0xff]  ;;  %v13886_v42 = vld [vmem:[#allocation311_spill] sm:$0xff] }
 0x60f   : > { %v5750_v18 = vcombine.high %v5383_v50, %v5415_v39  ;;  %v5797_v1 = vcombine.low %v5741_v62, %v5757_v11  ;;  %v5697_v23 = vcombine.low %v5653_v59, %v5685_v57  ;;  %v5696_v51 = vcombine.high %v5644_v55, %v5676_v34  ;;  %v13880_v55 = vld [vmem:[#allocation180_spill] sm:$0xff] }
 0x610   : > { %v5660_v36 = vrot.slane %v5646_v29, %v9389_v52  ;;  %v5718_v56 = vcombine.high %v5319_v22, %v5351_v27  ;;  %v5765_v2 = vcombine.low %v5709_v54, %v5725_v6  ;;  %v5734_v16 = vcombine.high %v5367_v44, %v5399_v28  ;;  %v13881_v28 = vld [vmem:[#allocation273_spill] sm:$0xff]  ;;  %v13882_v22 = vld [vmem:[#allocation99_spill] sm:$0xff] }
 0x611   : > { %v4047_v32 = vsel %vm13046_vm6, %v4045_v40, %v13878_v12  ;;  %v5702_v60 = vcombine.high %v5303_v25, %v5335_v61  ;;  %v5764_v39 = vrot.slane %v5750_v18, %v9375_v9  ;;  %v5798_v50 = vcombine.high %v5741_v62, %v5757_v11  ;;  %v13887_v29 = vld [vmem:[#allocation89_spill] sm:$0xff]  ;;  %v13896_v12 = vld [vmem:[#allocation63_spill] sm:$0xff] }
 0x612   : > { %7650 = vrot.lane.b32.xlu1 %v5697_v23, %s13877_s11  ;;  %7646 = vrot.lane.b32.xlu0 %v5696_v51, %s13879_s9  ;;  %v5805_v34 = vrot.slane %v5797_v1, %v9389_v52  ;;  %v5699_v53 = vcombine.low %v5660_v36, %v5692_v26  ;;  %v4049_v27 = vsel %vm13040_vm7, %v4047_v32, %v13880_v55  ;;  %s13890_s11 = smov 26   ;;  %v13891_v1 = vld [vmem:[#allocation247_spill] sm:$0xff] }
 0x613   : > { %v11335_v44 = vsel %vm1227_vm0, %v13882_v22, %v13881_v28  ;;  %v5416_v4 = vsel %vm1227_vm0, %v13883_v46, %v5252_v3  ;;  %v5698_v61 = vcombine.high %v5653_v59, %v5685_v57  ;;  %v5732_v25 = vrot.slane %v5718_v56, %v9375_v9  ;;  %v13888_v57 = vld [vmem:[#allocation324_spill] sm:$0xff]  ;;  %v13889_v59 = vld [vmem:[#allocation222_spill] sm:$0xff]  ;;  %v13892_v23 = vld [vmem:[#allocation31_spill] sm:$0xff] }
 0x614   : > { %v5766_v21 = vcombine.high %v5709_v54, %v5725_v6  ;;  %v5773_v47 = vrot.slane %v5765_v2, %v9389_v52  ;;  %v5748_v49 = vrot.slane %v5734_v16, %v9375_v9  ;;  %v5716_v11 = vrot.slane %v5702_v60, %v9375_v9  ;;  %v13893_v56 = vld [vmem:[#allocation260_spill] sm:$0xff]  ;;  %v13894_v2 = vld [vmem:[#allocation113_spill] sm:$0xff]  ;;  %v13895_v3 = vld [vmem:[#allocation298_spill] sm:$0xff] }
 0x615   : > { %v5352_v45 = vsel %vm1227_vm0, %v13885_v15, %v13884_v0  ;;  %v5384_v62 = vsel %vm1227_vm0, %v13887_v29, %v13886_v42  ;;  %v5400_v6 = vsel %vm1227_vm0, %v13889_v59, %v13888_v57  ;;  %v5812_v40 = vrot.slane %v5798_v50, %v9389_v52  ;;  %v13898_v42 = vld [vmem:[#allocation52_spill] sm:$0xff] }
 0x616   : > { %7658 = vrot.lane.b32.xlu1 %v5699_v53, %s13437_s22  ;;  %7654 = vrot.lane.b32.xlu0 %v5698_v61, %s13890_s11  ;;  %v5885_v43 = vcombine.low %v5384_v62, %v5416_v4  ;;  %v5813_v54 = vcombine.low %v5748_v49, %v5764_v39  ;;  %v5829_v18 = vcombine.low %v5773_v47, %v5805_v34  ;;  %s13897_s22 = smov 30  }
 0x617   : > { %v5304_v51 = vsel %vm1227_vm0, %v13892_v23, %v13891_v1  ;;  %v5320_v16 = vsel %vm1227_vm0, %v13894_v2, %v13893_v56  ;;  %v5368_v32 = vsel %vm1227_vm0, %v13896_v12, %v13895_v3  ;;  %v5700_v60 = vcombine.high %v5660_v36, %v5692_v26  ;;  %v13900_v2 = vld [vmem:[#allocation79_spill] sm:$0xff] }
 0x618   : > { %v5853_v53 = vcombine.low %v5320_v16, %v5352_v45  ;;  %v5780_v55 = vrot.slane %v5766_v21, %v9389_v52  ;;  %v5781_v28 = vcombine.low %v5716_v11, %v5732_v25  ;;  %v5869_v50 = vcombine.low %v5368_v32, %v5400_v6 }
 0x619   : > { %v5837_v22 = vcombine.low %v5304_v51, %v11335_v44  ;;  %v5893_v46 = vrot.slane %v5885_v43, %v9375_v9  ;;  %v5814_v61 = vcombine.high %v5748_v49, %v5764_v39  ;;  %v5821_v0 = vrot.slane %v5813_v54, %v9389_v52 }
 0x61a   : > { %7666 = vrot.lane.b32.xlu1 %v5829_v18, %s13441_s5  ;;  %7662 = vrot.lane.b32.xlu0 %v5700_v60, %s13897_s22  ;;  %v5831_v15 = vcombine.low %v5780_v55, %v5812_v40  ;;  %v4051_v26 = vsel %vm13045_vm8, %v4049_v27, %v13898_v42  ;;  %v5830_v36 = vcombine.high %v5773_v47, %v5805_v34  ;;  %v13899_v18 = vld [vmem:[#allocation129_spill] sm:$0xff] }
 0x61b   : > { %v5861_v21 = vrot.slane %v5853_v53, %v9375_v9  ;;  %v5782_v29 = vcombine.high %v5716_v11, %v5732_v25  ;;  %v5789_v57 = vrot.slane %v5781_v28, %v9389_v52  ;;  %v5877_v59 = vrot.slane %v5869_v50, %v9375_v9  ;;  %v13903_v50 = vld [vmem:[#allocation276_spill] sm:$0xff] }
 0x61c   : > { %v4053_v43 = vsel %vm13043_vm9, %v4051_v26, %v13899_v18  ;;  %v5845_v39 = vrot.slane %v5837_v22, %v9375_v9  ;;  %v5886_v49 = vcombine.high %v5384_v62, %v5416_v4  ;;  %v5828_v34 = vrot.slane %v5814_v61, %v9389_v52  ;;  %v13904_v22 = vld [vmem:[#allocation137_spill] sm:$0xff]  ;;  %v13905_v61 = vld [vmem:[#allocation288_spill] sm:$0xff] }
 0x61d   : > { %v5933_v27 = vcombine.low %v5877_v59, %v5893_v46  ;;  %v5833_v47 = vcombine.low %v5789_v57, %v5821_v0  ;;  %v5838_v25 = vcombine.high %v5304_v51, %v11335_v44  ;;  %v5832_v11 = vcombine.high %v5780_v55, %v5812_v40  ;;  %v13901_v40 = vld [vmem:[#allocation154_spill] sm:$0xff] }
 0x61e   : > { %7674 = vrot.lane.b32.xlu1 %v5831_v15, %s13445_s3  ;;  %7670 = vrot.lane.b32.xlu0 %v5830_v36, %s13438_s13  ;;  %v5854_v54 = vcombine.high %v5320_v16, %v5352_v45  ;;  %v5901_v1 = vcombine.low %v5845_v39, %v5861_v21  ;;  %v5796_v23 = vrot.slane %v5782_v29, %v9389_v52  ;;  %v13906_v15 = vld [vmem:[#allocation102_spill] sm:$0xff] }
 0x61f   : > { %v5870_v56 = vcombine.high %v5368_v32, %v5400_v6  ;;  %v4055_v3 = vsel %vm13042_vm10, %v4053_v43, %v13900_v2  ;;  %v5900_v4 = vrot.slane %v5886_v49, %v9375_v9  ;;  %v5934_v62 = vcombine.high %v5877_v59, %v5893_v46  ;;  %v13902_v6 = vld [vmem:[#allocation237_spill] sm:$0xff]  ;;  %v13909_v36 = vld [vmem:[#allocation326_spill] sm:$0xff] }
 0x620   : > { %v5941_v12 = vrot.slane %v5933_v27, %v9389_v52  ;;  %v5835_v44 = vcombine.low %v5796_v23, %v5828_v34  ;;  %v4057_v45 = vsel %vm13041_vm11, %v4055_v3, %v13901_v40  ;;  %v5852_v51 = vrot.slane %v5838_v25, %v9375_v9  ;;  %v13912_v49 = vld [vmem:[#allocation186_spill] sm:$0xff]  ;;  %v13914_v25 = vld [vmem:[#allocation151_spill] sm:$0xff] }
 0x621   : > { %v5417_v16 = vsel %vm1227_vm0, %v13902_v6, %v11105_v35  ;;  %v5834_v32 = vcombine.high %v5789_v57, %v5821_v0  ;;  %v5868_v60 = vrot.slane %v5854_v54, %v9375_v9  ;;  %v5902_v53 = vcombine.high %v5845_v39, %v5861_v21  ;;  %v13907_v35 = vld [vmem:[#allocation314_spill] sm:$0xff]  ;;  %v13908_v0 = vld [vmem:[#allocation21_spill] sm:$0xff] }
 0x622   : > { %7682 = vrot.lane.b32.xlu1 %v5833_v47, %s13452_s30  ;;  %7678 = vrot.lane.b32.xlu0 %v5832_v11, %s13442_s4  ;;  %v5909_v55 = vrot.slane %v5901_v1, %v9389_v52  ;;  %v5884_v28 = vrot.slane %v5870_v56, %v9375_v9  ;;  %v11402_v46 = vsel %vm1227_vm0, %v13904_v22, %v13903_v50  ;;  %v13910_v21 = vld [vmem:[#allocation225_spill] sm:$0xff]  ;;  %v13911_v39 = vld [vmem:[#allocation250_spill] sm:$0xff]  ;;  %v13913_v47 = vld [vmem:[#allocation263_spill] sm:$0xff] }
 0x623   : > { %v5353_v42 = vsel %vm1227_vm0, %v13906_v15, %v13905_v61  ;;  %v5385_v26 = vsel %vm1227_vm0, %v13908_v0, %v13907_v35  ;;  %v5401_v29 = vsel %vm1227_vm0, %v13910_v21, %v13909_v36  ;;  %v5948_v57 = vrot.slane %v5934_v62, %v9389_v52  ;;  %v13915_v54 = vld [vmem:[#allocation301_spill] sm:$0xff]  ;;  %v13916_v1 = vld [vmem:[#allocation76_spill] sm:$0xff]  ;;  %v13917_v15 = vld [vmem:[#allocation23_spill] sm:$0xff] }
 0x624   : > { %v5949_v59 = vcombine.low %v5884_v28, %v5900_v4  ;;  %v6021_v18 = vcombine.low %v5385_v26, %v5417_v16  ;;  %v5965_v43 = vcombine.low %v5909_v55, %v5941_v12  ;;  %v5305_v27 = vsel %vm1227_vm0, %v13912_v49, %v13911_v39  ;;  %v13918_v21 = vld [vmem:[#allocation116_spill] sm:$0xff]  ;;  %v5260_v49 = vpop.permute.xlu1 %5259 }
 0x625   : > { %v5321_v11 = vsel %vm1227_vm0, %v13914_v25, %v13913_v47  ;;  %v5369_v56 = vsel %vm1227_vm0, %v13916_v1, %v13915_v54  ;;  %v5836_v2 = vcombine.high %v5796_v23, %v5828_v34  ;;  %v5916_v3 = vrot.slane %v5902_v53, %v9389_v52  ;;  %v13919_v47 = vld [vmem:[#allocation51_spill] sm:$0xff] }
 0x626   : > { %7690 = vrot.lane.b32.xlu1 %v5835_v44, %s13468_s28  ;;  %7686 = vrot.lane.b32.xlu0 %v5834_v32, %s13446_s2  ;;  %v5917_v44 = vcombine.low %v5852_v51, %v5868_v60  ;;  %v5989_v62 = vcombine.low %v5321_v11, %v5353_v42  ;;  %v6005_v40 = vcombine.low %v5369_v56, %v5401_v29 }
 0x627   : > { %v5973_v6 = vcombine.low %v5305_v27, %v11402_v46  ;;  %v5950_v32 = vcombine.high %v5884_v28, %v5900_v4  ;;  %v5957_v50 = vrot.slane %v5949_v59, %v9389_v52  ;;  %v6029_v22 = vrot.slane %v6021_v18, %v9375_v9 }
 0x628   : > { %v5967_v61 = vcombine.low %v5916_v3, %v5948_v57  ;;  %v4059_v34 = vsel %vm13024_vm12, %v4057_v45, %v13917_v15  ;;  %v5966_v23 = vcombine.high %v5909_v55, %v5941_v12  ;;  %v5918_v53 = vcombine.high %v5852_v51, %v5868_v60 }
 0x629   : > { %v5925_v35 = vrot.slane %v5917_v44, %v9389_v52  ;;  %v5997_v0 = vrot.slane %v5989_v62, %v9375_v9  ;;  %v6013_v36 = vrot.slane %v6005_v40, %v9375_v9  ;;  %v4061_v4 = vsel %vm13017_vm13, %v4059_v34, %v13918_v21  ;;  %v13926_v34 = vld [vmem:[#allocation313_spill] sm:$0xff] }
 0x62a   : > { %7698 = vrot.lane.b32.xlu1 %v5965_v43, %s13472_s26  ;;  %7694 = vrot.lane.b32.xlu0 %v5836_v2, %s13453_s29  ;;  %v5981_v28 = vrot.slane %v5973_v6, %v9375_v9  ;;  %v5964_v45 = vrot.slane %v5950_v32, %v9389_v52  ;;  %v6022_v12 = vcombine.high %v5385_v26, %v5417_v16  ;;  %vm13020_vm13 = vcmask 261120  }
 0x62b   : > { %v6069_v51 = vcombine.low %v6013_v36, %v6029_v22  ;;  %v5969_v60 = vcombine.low %v5925_v35, %v5957_v50  ;;  %v5968_v55 = vcombine.high %v5916_v3, %v5948_v57  ;;  %v5932_v59 = vrot.slane %v5918_v53, %v9389_v52  ;;  %v13923_v3 = vld [vmem:[#allocation236_spill] sm:$0xff] }
 0x62c   : > { %v5990_v18 = vcombine.high %v5321_v11, %v5353_v42  ;;  %v6037_v43 = vcombine.low %v5981_v28, %v5997_v0  ;;  %v6006_v39 = vcombine.high %v5369_v56, %v5401_v29  ;;  %v4063_v25 = vsel %vm13019_vm14, %v4061_v4, %v13919_v47  ;;  %v13920_v42 = vld [vmem:[#allocation65_spill] sm:$0xff]  ;;  %v13921_v11 = vld [vmem:[#allocation275_spill] sm:$0xff]  ;;  %v13922_v56 = vld [vmem:[#allocation112_spill] sm:$0xff] }
 0x62d   : > { %v5974_v54 = vcombine.high %v5305_v27, %v11402_v46  ;;  %v6036_v16 = vrot.slane %v6022_v12, %v9375_v9  ;;  %v6070_v26 = vcombine.high %v6013_v36, %v6029_v22  ;;  %v6077_v57 = vrot.slane %v6069_v51, %v9389_v52  ;;  %v13924_v22 = vld [vmem:[#allocation287_spill] sm:$0xff]  ;;  %v13930_v12 = vld [vmem:[#allocation249_spill] sm:$0xff] }
 0x62e   : > { %7706 = vrot.lane.b32.xlu1 %v5967_v61, %s13476_s24  ;;  %7702 = vrot.lane.b32.xlu0 %v5966_v23, %s13469_s27  ;;  %v5971_v1 = vcombine.low %v5932_v59, %v5964_v45  ;;  %v4065_v29 = vsel %vm13018_vm15, %v4063_v25, %v13920_v42  ;;  %v11454_v2 = vsel %vm1227_vm0, %v13922_v56, %v13921_v11  ;;  %v13925_v61 = vld [vmem:[#allocation203_spill] sm:$0xff]  ;;  %v13927_v23 = vld [vmem:[#allocation20_spill] sm:$0xff]  ;;  %v13931_v51 = vld [vmem:[#allocation45_spill] sm:$0xff]  ;;  %vm13021_vm15 = vcmask 277504  }
 0x62f   : > { %v5418_v44 = vsel %vm1227_vm0, %v13923_v3, %v5260_v49  ;;  %v5970_v46 = vcombine.high %v5925_v35, %v5957_v50  ;;  %v6004_v27 = vrot.slane %v5990_v18, %v9375_v9  ;;  %v6038_v62 = vcombine.high %v5981_v28, %v5997_v0  ;;  %v13928_v50 = vld [vmem:[#allocation327_spill] sm:$0xff]  ;;  %v13929_v35 = vld [vmem:[#allocation224_spill] sm:$0xff]  ;;  %v13933_v18 = vld [vmem:[#allocation34_spill] sm:$0xff] }
 0x630   : > { %v6045_v40 = vrot.slane %v6037_v43, %v9389_v52  ;;  %v6020_v6 = vrot.slane %v6006_v39, %v9375_v9  ;;  %v5988_v32 = vrot.slane %v5974_v54, %v9375_v9  ;;  %v5354_v15 = vsel %vm1227_vm0, %v13925_v61, %v13924_v22  ;;  %v13934_v39 = vld [vmem:[#allocation300_spill] sm:$0xff]  ;;  %v13935_v49 = vld [vmem:[#allocation177_spill] sm:$0xff]  ;;  %v13936_v61 = vld [vmem:[#allocation167_spill] sm:$0xff] }
 0x631   : > { %v5386_v53 = vsel %vm1227_vm0, %v13927_v23, %v13926_v34  ;;  %v5402_v0 = vsel %vm1227_vm0, %v13929_v35, %v13928_v50  ;;  %v6084_v21 = vrot.slane %v6070_v26, %v9389_v52  ;;  %v5370_v47 = vsel %vm1227_vm0, %v13935_v49, %v13934_v39  ;;  %v13937_v35 = vld [vmem:[#allocation91_spill] sm:$0xff] }
 0x632   : > { %7714 = vrot.lane.b32.xlu1 %v5969_v60, %s13483_s15  ;;  %7710 = vrot.lane.b32.xlu0 %v5968_v55, %s13473_s25  ;;  %v6157_v36 = vcombine.low %v5386_v53, %v5418_v44  ;;  %v6085_v4 = vcombine.low %v6020_v6, %v6036_v16  ;;  %v6101_v28 = vcombine.low %v6045_v40, %v6077_v57  ;;  %v13932_v55 = vld [vmem:[#allocation262_spill] sm:$0xff]  ;;  %vm13022_vm14 = vcmask 293888  }
 0x633   : > { %v5306_v60 = vsel %vm1227_vm0, %v13931_v51, %v13930_v12  ;;  %v5322_v43 = vsel %vm1227_vm0, %v13933_v18, %v13932_v55  ;;  %v5972_v25 = vcombine.high %v5932_v59, %v5964_v45  ;;  %v6053_v42 = vcombine.low %v5988_v32, %v6004_v27  ;;  %v13938_v51 = vld [vmem:[#allocation192_spill] sm:$0xff] }
 0x634   : > { %v6125_v54 = vcombine.low %v5322_v43, %v5354_v15  ;;  %v6141_v26 = vcombine.low %v5370_v47, %v5402_v0  ;;  %v6109_v11 = vcombine.low %v5306_v60, %v11454_v2  ;;  %v6165_v56 = vrot.slane %v6157_v36, %v9375_v9 }
 0x635   : > { %v6086_v3 = vcombine.high %v6020_v6, %v6036_v16  ;;  %v4067_v45 = vsel %vm13020_vm13, %v4065_v29, %v13936_v61  ;;  %v6102_v59 = vcombine.high %v6045_v40, %v6077_v57  ;;  %v6054_v34 = vcombine.high %v5988_v32, %v6004_v27 }
 0x636   : > { %7722 = vrot.lane.b32.xlu1 %v5971_v1, %s13499_s12  ;;  %7718 = vrot.lane.b32.xlu0 %v5970_v46, %s13477_s18  ;;  %v6052_v1 = vrot.slane %v6038_v62, %v9389_v52  ;;  %v6093_v46 = vrot.slane %v6085_v4, %v9389_v52  ;;  %v6133_v62 = vrot.slane %v6125_v54, %v9375_v9  ;;  %vm13023_vm13 = vcmask 310272  }
 0x637   : > { %v6061_v23 = vrot.slane %v6053_v42, %v9389_v52  ;;  %v6149_v50 = vrot.slane %v6141_v26, %v9375_v9  ;;  %v4069_v36 = vsel %vm13021_vm15, %v4067_v45, %v13937_v35  ;;  %v6117_v16 = vrot.slane %v6109_v11, %v9375_v9  ;;  %v13940_v26 = vld [vmem:[#allocation204_spill] sm:$0xff] }
 0x638   : > { %v6103_v22 = vcombine.low %v6052_v1, %v6084_v21  ;;  %v6158_v6 = vcombine.high %v5386_v53, %v5418_v44  ;;  %v6100_v57 = vrot.slane %v6086_v3, %v9389_v52  ;;  %v6104_v27 = vcombine.high %v6052_v1, %v6084_v21  ;;  %v13941_v3 = vld [vmem:[#allocation24_spill] sm:$0xff] }
 0x639   : > { %v6205_v29 = vcombine.low %v6149_v50, %v6165_v56  ;;  %v6105_v40 = vcombine.low %v6061_v23, %v6093_v46  ;;  %v6126_v32 = vcombine.high %v5322_v43, %v5354_v15  ;;  %v6173_v4 = vcombine.low %v6117_v16, %v6133_v62  ;;  %v13939_v15 = vld [vmem:[#allocation103_spill] sm:$0xff] }
 0x63a   : > { %7730 = vrot.lane.b32.xlu1 %v6101_v28, %s13503_s14  ;;  %7726 = vrot.lane.b32.xlu0 %v5972_v25, %s13484_s17  ;;  %v6068_v28 = vrot.slane %v6054_v34, %v9389_v52  ;;  %v6142_v12 = vcombine.high %v5370_v47, %v5402_v0  ;;  %v4071_v55 = vsel %vm13022_vm14, %v4069_v36, %v13938_v51  ;;  %vm13027_vm15 = vcmask 326656   ;;  %v13943_v36 = vld [vmem:[#allocation37_spill] sm:$0xff] }
 0x63b   : > { %v6110_v18 = vcombine.high %v5306_v60, %v11454_v2  ;;  %v6172_v44 = vrot.slane %v6158_v6, %v9375_v9  ;;  %v6206_v53 = vcombine.high %v6149_v50, %v6165_v56  ;;  %v6213_v39 = vrot.slane %v6205_v29, %v9389_v52 }
 0x63c   : > { %v6107_v21 = vcombine.low %v6068_v28, %v6100_v57  ;;  %v4073_v43 = vsel %vm13023_vm13, %v4071_v55, %v13939_v15  ;;  %v6106_v0 = vcombine.high %v6061_v23, %v6093_v46  ;;  %v6140_v49 = vrot.slane %v6126_v32, %v9375_v9  ;;  %v13942_v23 = vld [vmem:[#allocation128_spill] sm:$0xff]  ;;  %v13946_v32 = vld [vmem:[#allocation141_spill] sm:$0xff]  ;;  %v13950_v15 = vld [vmem:[#allocation179_spill] sm:$0xff] }
 0x63d   : > { %v6174_v47 = vcombine.high %v6117_v16, %v6133_v62  ;;  %v6181_v25 = vrot.slane %v6173_v4, %v9389_v52  ;;  %v6156_v2 = vrot.slane %v6142_v12, %v9375_v9  ;;  %vm13025_vm14 = vcmask 343040   ;;  %v11525_v62 = vpop.permute.xlu1 %5267  ;;  %v13947_v12 = vld [vmem:[#allocation78_spill] sm:$0xff] }
 0x63e   : > { %7738 = vrot.lane.b32.xlu1 %v6103_v22, %s13507_s20  ;;  %7734 = vrot.lane.b32.xlu0 %v6102_v59, %s13500_s0  ;;  %v6124_v60 = vrot.slane %v6110_v18, %v9375_v9  ;;  %v6220_v54 = vrot.slane %v6206_v53, %v9389_v52  ;;  %v4075_v11 = vsel %vm13027_vm15, %v4073_v43, %v13940_v26  ;;  %vm13029_vm13 = vcmask 359424   ;;  %v13952_v43 = vld [vmem:[#allocation279_spill] sm:$0xff]  ;;  %v13960_v26 = vld [vmem:[#allocation228_spill] sm:$0xff] }
 0x63f   : > { %v6221_v1 = vcombine.low %v6156_v2, %v6172_v44  ;;  %v6237_v42 = vcombine.low %v6181_v25, %v6213_v39  ;;  %v6108_v56 = vcombine.high %v6068_v28, %v6100_v57  ;;  %v4077_v46 = vsel %vm13025_vm14, %v4075_v11, %v13941_v3 }
 0x640   : > { %v6188_v22 = vrot.slane %v6174_v47, %v9389_v52  ;;  %v6189_v61 = vcombine.low %v6124_v60, %v6140_v49  ;;  %vm13044_vm12 = vcmask 375808   ;;  %v6222_v45 = vcombine.high %v6156_v2, %v6172_v44  ;;  %v13955_v47 = vld [vmem:[#allocation291_spill] sm:$0xff] }
 0x641   : > { %v6229_v59 = vrot.slane %v6221_v1, %v9389_v52  ;;  %v4079_v50 = vsel %vm13029_vm13, %v4077_v46, %v13942_v23  ;;  %v6238_v35 = vcombine.high %v6181_v25, %v6213_v39  ;;  %vm13032_vm14 = vcmask 392192   ;;  %v5276_v53 = vpop.permute.xlu1 %5275  ;;  %v13956_v25 = vld [vmem:[#allocation140_spill] sm:$0xff] }
 0x642   : > { %7746 = vrot.lane.b32.xlu1 %v6105_v40, %s13514_s7  ;;  %7742 = vrot.lane.b32.xlu0 %v6104_v27, %s13504_s10  ;;  %v6239_v34 = vcombine.low %v6188_v22, %v6220_v54  ;;  %v4081_v16 = vsel %vm13044_vm12, %v4079_v50, %v13943_v36  ;;  %v6190_v6 = vcombine.high %v6124_v60, %v6140_v49  ;;  %vm13030_vm15 = vcmask 408576   ;;  %v13957_v60 = vld [vmem:[#allocation317_spill] sm:$0xff]  ;;  %v13966_v50 = vld [vmem:[#allocation304_spill] sm:$0xff] }
 0x643   : > { %v6197_v29 = vrot.slane %v6189_v61, %v9389_v52  ;;  %v6236_v57 = vrot.slane %v6222_v45, %v9389_v52  ;;  %v6566_v40 = vcombine.high %v11225_v31, %v11220_v24  ;;  %v4083_v4 = vsel %vm13032_vm14, %v4081_v16, %v13946_v32  ;;  %v13963_v61 = vld [vmem:[#allocation62_spill] sm:$0xff]  ;;  %v5280_v16 = vpop.permute.xlu0 %5279 }
 0x644   : > { %vm13031_vm13 = vcmask 424960   ;;  %v6240_v28 = vcombine.high %v6188_v22, %v6220_v54  ;;  %v4085_v51 = vsel %vm13030_vm15, %v4083_v4, %v13947_v12  ;;  %v6204_v55 = vrot.slane %v6190_v6, %v9389_v52  ;;  %v13958_v54 = vld [vmem:[#allocation39_spill] sm:$0xff]  ;;  %v13962_v22 = vld [vmem:[#allocation253_spill] sm:$0xff] }
 0x645   : > { %v6241_v27 = vcombine.low %v6197_v29, %v6229_v59  ;;  %v6534_v18 = vcombine.high %v11172_v14, %v11163_v38  ;;  %v6550_v44 = vcombine.high %v11209_v20, %v11197_v5  ;;  %v6518_v24 = vcombine.high %v11187_v37, %v11177_v58  ;;  %v13951_v14 = vld [vmem:[#allocation240_spill] sm:$0xff]  ;;  %v11586_v3 = vpop.permute.xlu1 %5283  ;;  %v13968_v4 = vld [vmem:[#allocation55_spill] sm:$0xff] }
 0x646   : > { %7754 = vrot.lane.b32.xlu1 %v6107_v21, %s13530_s6  ;;  %7750 = vrot.lane.b32.xlu0 %v6106_v0, %s13508_s8  ;;  %s13945_s6 = smov 82   ;;  %v6580_v31 = vrot.slane %v6566_v40, %v9375_v9  ;;  %v6614_v39 = vcombine.high %v11241_v19, %v11244_v17  ;;  %v6243_v21 = vcombine.low %v6204_v55, %v6236_v57  ;;  %vm13033_vm15 = vcmask 441344   ;;  %v13953_v0 = vld [vmem:[#allocation47_spill] sm:$0xff] }
 0x647   : > { %v4087_v38 = vsel %vm13031_vm13, %v4085_v51, %v13950_v15  ;;  %v11557_v5 = vsel %vm1227_vm0, %v13951_v14, %v5276_v53  ;;  %v6242_v20 = vcombine.high %v6197_v29, %v6229_v59  ;;  %v11562_v58 = vsel %vm1227_vm0, %v13953_v0, %v13952_v43  ;;  %v13964_v59 = vld [vmem:[#allocation266_spill] sm:$0xff] }
 0x648   : > { %v6548_v37 = vrot.slane %v6534_v18, %v9375_v9  ;;  %v6582_v19 = vcombine.high %v11231_v30, %v11214_v41  ;;  %v6564_v17 = vrot.slane %v6550_v44, %v9375_v9  ;;  %v6532_v49 = vrot.slane %v6518_v24, %v9375_v9 }
 0x649   : > { %v11573_v2 = vsel %vm1227_vm0, %v13956_v25, %v13955_v47  ;;  %v5390_v1 = vsel %vm1227_vm0, %v13958_v54, %v13957_v60  ;;  %v6628_v30 = vrot.slane %v6614_v39, %v9389_v52  ;;  %v6646_v46 = vcombine.high %v11253_v13, %v11256_v48  ;;  %v11612_v15 = vpop.permute.xlu1 %5291 }
 0x64a   : > { %7762 = vrot.lane.b32.xlu1 %v6237_v42, %s13534_s1  ;;  %7758 = vrot.lane.b32.xlu0 %v6108_v56, %s13515_s21  ;;  %s13944_s1 = smov 84   ;;  %v13959_v42 = vld [vmem:[#allocation331_spill] sm:$0xff]  ;;  %v6701_v41 = vcombine.low %v5390_v1, %v11557_v5  ;;  %v6629_v56 = vcombine.low %v6564_v17, %v6580_v31  ;;  %v5310_v45 = vsel %vm1227_vm0, %v13963_v61, %v13962_v22  ;;  %vm13034_vm13 = vcmask 457728   ;;  %v13975_v22 = vld [vmem:[#allocation242_spill] sm:$0xff] }
 0x64b   : > { %v11581_v11 = vsel %vm1227_vm0, %v13960_v26, %v13959_v42  ;;  %v6244_v6 = vcombine.high %v6204_v55, %v6236_v57  ;;  %v6596_v40 = vrot.slane %v6582_v19, %v9389_v52  ;;  %v6653_v12 = vcombine.low %v5310_v45, %v11562_v58 }
 0x64c   : > { %v6709_v51 = vrot.slane %v6701_v41, %v9375_v9  ;;  %v6630_v57 = vcombine.high %v6564_v17, %v6580_v31  ;;  %v6637_v55 = vrot.slane %v6629_v56, %v9389_v52  ;;  %vm13036_vm14 = vcmask 474112   ;;  %v13971_v17 = vld [vmem:[#allocation169_spill] sm:$0xff]  ;;  %v13974_v56 = vld [vmem:[#allocation118_spill] sm:$0xff] }
 0x64d   : > { %v6648_v18 = vcombine.high %v6596_v40, %v6628_v30  ;;  %v6647_v44 = vcombine.low %v6596_v40, %v6628_v30  ;;  %v6598_v24 = vcombine.high %v6532_v49, %v6548_v37  ;;  %v6661_v31 = vrot.slane %v6653_v12, %v9375_v9  ;;  %v11633_v30 = vpop.permute.xlu1 %5299  ;;  %v13984_v12 = vld [vmem:[#allocation230_spill] sm:$0xff] }
 0x64e   : > { %7770 = vrot.lane.b32.xlu1 %v6239_v34, %s13944_s1  ;;  %7766 = vrot.lane.b32.xlu0 %v6238_v35, %s13945_s6  ;;  %s13948_s1 = smov 88   ;;  %s13949_s6 = smov 86   ;;  %v13965_v34 = vld [vmem:[#allocation88_spill] sm:$0xff]  ;;  %v13967_v35 = vld [vmem:[#allocation215_spill] sm:$0xff]  ;;  %v6702_v43 = vcombine.high %v5390_v1, %v11557_v5  ;;  %v6654_v47 = vcombine.high %v5310_v45, %v11562_v58 }
 0x64f   : > { %v5326_v23 = vsel %vm1227_vm0, %v13965_v34, %v13964_v59  ;;  %v5374_v36 = vsel %vm1227_vm0, %v13967_v35, %v13966_v50  ;;  %v6612_v42 = vrot.slane %v6598_v24, %v9389_v52  ;;  %v13977_v35 = vld [vmem:[#allocation281_spill] sm:$0xff]  ;;  %v13986_v24 = vld [vmem:[#allocation255_spill] sm:$0xff] }
 0x650   : > { %v6669_v29 = vcombine.low %v5326_v23, %v11573_v2  ;;  %v6685_v32 = vcombine.low %v5374_v36, %v11581_v11  ;;  %v6670_v60 = vcombine.high %v5326_v23, %v11573_v2  ;;  %v6686_v26 = vcombine.high %v5374_v36, %v11581_v11  ;;  %v13978_v36 = vld [vmem:[#allocation87_spill] sm:$0xff] }
 0x651   : > { %v6716_v5 = vrot.slane %v6702_v43, %v9375_v9  ;;  %v11640_v11 = vsel %vm1227_vm0, %v13975_v22, %v5280_v16  ;;  %v13980_v16 = vld [vmem:[#allocation153_spill] sm:$0xff]  ;;  %v13990_v43 = vld [vmem:[#allocation306_spill] sm:$0xff] }
 0x652   : > { %7778 = vrot.lane.b32.xlu1 %v6241_v27, %s13948_s1  ;;  %7774 = vrot.lane.b32.xlu0 %v6240_v28, %s13949_s6  ;;  %s13954_s1 = smov 92   ;;  %s13961_s6 = smov 90   ;;  %v6597_v27 = vcombine.low %v6532_v49, %v6548_v37  ;;  %v4089_v28 = vsel %vm13033_vm15, %v4087_v38, %v13968_v4  ;;  %v6677_v53 = vrot.slane %v6669_v29, %v9375_v9  ;;  %v13970_v38 = vld [vmem:[#allocation157_spill] sm:$0xff]  ;;  %vm13035_vm15 = vcmask 490496  }
 0x653   : > { %v4091_v14 = vsel %vm13034_vm13, %v4089_v28, %v13970_v38  ;;  %v6644_v37 = vrot.slane %v6630_v57, %v9389_v52  ;;  %vm13037_vm13 = vcmask 506880   ;;  %v6684_v59 = vrot.slane %v6670_v60, %v9375_v9  ;;  %v13979_v29 = vld [vmem:[#allocation293_spill] sm:$0xff]  ;;  %v13983_v28 = vld [vmem:[#allocation330_spill] sm:$0xff]  ;;  %v13988_v38 = vld [vmem:[#allocation268_spill] sm:$0xff] }
 0x654   : > { %v6605_v39 = vrot.slane %v6597_v27, %v9389_v52  ;;  %v4093_v49 = vsel %vm13036_vm14, %v4091_v14, %v13971_v17  ;;  %v6717_v54 = vcombine.low %v6661_v31, %v6677_v53  ;;  %v6718_v34 = vcombine.high %v6661_v31, %v6677_v53  ;;  %v13981_v27 = vld [vmem:[#allocation319_spill] sm:$0xff]  ;;  %v13989_v14 = vld [vmem:[#allocation61_spill] sm:$0xff] }
 0x655   : > { %v6652_v58 = vcombine.high %v6612_v42, %v6644_v37  ;;  %v4095_v2 = vsel %vm13035_vm15, %v4093_v49, %v13974_v56  ;;  %v6651_v45 = vcombine.low %v6612_v42, %v6644_v37  ;;  %v6700_v50 = vrot.slane %v6686_v26, %v9375_v9 }
 0x656   : > { %7786 = vrot.lane.b32.xlu1 %v6243_v21, %s13954_s1  ;;  %7782 = vrot.lane.b32.xlu0 %v6242_v20, %s13961_s6  ;;  %s13969_s1 = smov 94   ;;  %v6693_v21 = vrot.slane %v6685_v32, %v9375_v9  ;;  %v11618_v20 = vpop.permute.xlu0 %5287  ;;  %v6650_v19 = vcombine.high %v6605_v39, %v6637_v55  ;;  %v6649_v25 = vcombine.low %v6605_v39, %v6637_v55  ;;  %v13982_v32 = vld [vmem:[#allocation66_spill] sm:$0xff]  ;;  %v13987_v39 = vld [vmem:[#allocation176_spill] sm:$0xff]  ;;  %vm4098_vm15 = vcmask 523264  }
 0x657   : > { %v6725_v23 = vrot.slane %v6717_v54, %v9389_v52  ;;  %v11656_v40 = vsel %vm1227_vm0, %v13980_v16, %v13979_v29  ;;  %v5391_v4 = vsel %vm1227_vm0, %v13982_v32, %v13981_v27  ;;  %v6765_v55 = vcombine.low %v6700_v50, %v6716_v5  ;;  %v13993_v54 = vld [vmem:[#allocation194_spill] sm:$0xff]  ;;  %v13997_v32 = vld [vmem:[#allocation205_spill] sm:$0xff] }
 0x658   : > { %v6749_v0 = vcombine.low %v6693_v21, %v6709_v51  ;;  %v6750_v1 = vcombine.high %v6693_v21, %v6709_v51  ;;  %v11664_v51 = vsel %vm1227_vm0, %v13984_v12, %v13983_v28  ;;  %v11672_v21 = vsel %vm1227_vm0, %v13987_v39, %v13986_v24 }
 0x659   : > { %v5327_v31 = vsel %vm1227_vm0, %v13989_v14, %v13988_v38  ;;  %v6732_v49 = vrot.slane %v6718_v34, %v9389_v52  ;;  %v4097_v42 = vsel %vm13037_vm13, %v4095_v2, %v13993_v54  ;;  %vm4100_vm14 = vcmask 539648   ;;  %v14001_v38 = vld [vmem:[#allocation163_spill] sm:$0xff] }
 0x65a   : > { %7858 = vrot.lane.b32.xlu1 %v6646_v46, %s13852_s16  ;;  %7790 = vrot.lane.b32.xlu0 %v6244_v6, %s13969_s1  ;;  %s13973_s16 = smov 8   ;;  %v6757_v41 = vrot.slane %v6749_v0, %v9389_v52  ;;  %v6668_v46 = vrot.slane %v6654_v47, %v9375_v9  ;;  %v11642_v61 = vpop.permute.xlu0 %5295  ;;  %v11651_v6 = vsel %vm1227_vm0, %v13978_v36, %v13977_v35  ;;  %v13991_v0 = vld [vmem:[#allocation139_spill] sm:$0xff]  ;;  %v13995_v36 = vld [vmem:[#allocation68_spill] sm:$0xff]  ;;  %vm4102_vm13 = vcmask 556032  }
 0x65b   : > { %v6764_v57 = vrot.slane %v6750_v1, %v9389_v52  ;;  %v5375_v37 = vsel %vm1227_vm0, %v13991_v0, %v13990_v43  ;;  %v6789_v26 = vcombine.low %v11672_v21, %v11651_v6  ;;  %v6766_v1 = vcombine.high %v6700_v50, %v6716_v5  ;;  %v14003_v43 = vld [vmem:[#allocation36_spill] sm:$0xff] }
 0x65c   : > { %v6733_v47 = vcombine.low %v6668_v46, %v6684_v59  ;;  %v6821_v60 = vcombine.low %v5375_v37, %v11664_v51  ;;  %v4099_v5 = vsel %vm4098_vm15, %v4097_v42, %v13995_v36  ;;  %v6806_v12 = vcombine.high %v5327_v31, %v11656_v40 }
 0x65d   : > { %v6784_v56 = vcombine.high %v6732_v49, %v6764_v57  ;;  %v6783_v22 = vcombine.low %v6732_v49, %v6764_v57  ;;  %v6797_v50 = vrot.slane %v6789_v26, %v9375_v9  ;;  %v6780_v16 = vrot.slane %v6766_v1, %v9389_v52  ;;  %v14005_v49 = vld [vmem:[#allocation241_spill] sm:$0xff]  ;;  %v14006_v1 = vld [vmem:[#allocation280_spill] sm:$0xff] }
 0x65e   : > { %7866 = vrot.lane.b32.xlu1 %v6648_v18, %s13854_s19  ;;  %7862 = vrot.lane.b32.xlu0 %v6647_v44, %s13851_s23  ;;  %s13972_s19 = smov 10   ;;  %s13976_s23 = smov 14   ;;  %v6837_v18 = vcombine.low %v5391_v4, %v11640_v11  ;;  %v6782_v44 = vcombine.high %v6725_v23, %v6757_v41  ;;  %v6741_v34 = vrot.slane %v6733_v47, %v9389_v52 }
 0x65f   : > { %v6829_v2 = vrot.slane %v6821_v60, %v9375_v9  ;;  %v4101_v28 = vsel %vm4100_vm14, %v4099_v5, %v13997_v32 }
 0x662   : > { %7874 = vrot.lane.b32.xlu1 %v6650_v19, %s13972_s19  ;;  %7870 = vrot.lane.b32.xlu0 %v6649_v25, %s13973_s16  ;;  %s13985_s19 = smov 12   ;;  %v6781_v19 = vcombine.low %v6725_v23, %v6757_v41  ;;  %v6805_v25 = vcombine.low %v5327_v31, %v11656_v40  ;;  %s13992_s16 = smov 18   ;;  %v6773_v41 = vrot.slane %v6765_v55, %v9389_v52  ;;  %v14000_v40 = vld [vmem:[#allocation267_spill] sm:$0xff]  ;;  %v14002_v31 = vld [vmem:[#allocation292_spill] sm:$0xff] }
 0x663   : > { %v11719_v14 = vsel %vm1227_vm0, %v14001_v38, %v14000_v40  ;;  %v11726_v8 = vsel %vm1227_vm0, %v14003_v43, %v14002_v31 }
 0x664   : > { %v6813_v23 = vrot.slane %v6805_v25, %v9375_v9  ;;  %v6786_v27 = vcombine.high %v6741_v34, %v6773_v41  ;;  %v6785_v57 = vcombine.low %v6741_v34, %v6773_v41  ;;  %v14007_v41 = vld [vmem:[#allocation188_spill] sm:$0xff]  ;;  %v14011_v34 = vld [vmem:[#allocation229_spill] sm:$0xff] }
 0x666   : > { %7882 = vrot.lane.b32.xlu1 %v6652_v58, %s13976_s23  ;;  %7878 = vrot.lane.b32.xlu0 %v6651_v45, %s13985_s19  ;;  %s13994_s23 = smov 16   ;;  %v6845_v58 = vrot.slane %v6837_v18, %v9375_v9  ;;  %v6734_v45 = vcombine.high %v6668_v46, %v6684_v59  ;;  %s13996_s19 = smov 20   ;;  %v6838_v46 = vcombine.high %v5391_v4, %v11640_v11  ;;  %v13998_v11 = vld [vmem:[#allocation254_spill] sm:$0xff]  ;;  %v13999_v4 = vld [vmem:[#allocation125_spill] sm:$0xff] }
 0x667   : > { %v6853_v18 = vcombine.low %v6797_v50, %v6813_v23  ;;  %v11714_v39 = vsel %vm1227_vm0, %v13999_v4, %v13998_v11  ;;  %v6854_v60 = vcombine.high %v6797_v50, %v6813_v23 }
 0x668   : > { %v6885_v59 = vcombine.low %v6829_v2, %v6845_v58  ;;  %v6748_v55 = vrot.slane %v6734_v45, %v9389_v52  ;;  %v6852_v7 = vrot.slane %v6838_v46, %v9375_v9  ;;  %v14010_v45 = vld [vmem:[#allocation333_spill] sm:$0xff]  ;;  %v14014_v46 = vld [vmem:[#allocation114_spill] sm:$0xff] }
 0x669   : > { %v6861_v54 = vrot.slane %v6853_v18, %v9389_v52  ;;  %v11754_v23 = vsel %vm1227_vm0, %v14011_v34, %v14010_v45  ;;  %v14018_v34 = vld [vmem:[#allocation257_spill] sm:$0xff] }
 0x66a   : > { %7890 = vrot.lane.b32.xlu1 %v6782_v44, %s13992_s16  ;;  %7886 = vrot.lane.b32.xlu0 %v6781_v19, %s13994_s23  ;;  %v6822_v44 = vcombine.high %v5375_v37, %v11664_v51  ;;  %v6790_v51 = vcombine.high %v11672_v21, %v11651_v6  ;;  %v6893_v0 = vrot.slane %v6885_v59, %v9389_v52  ;;  %s14363_s16 = sld [smem:[#allocation11_spill]] }
 0x66b   : > { %v6788_v37 = vcombine.high %v6748_v55, %v6780_v16  ;;  %v11737_v6 = vsel %vm1227_vm0, %v14005_v49, %v11586_v3  ;;  %v6787_v47 = vcombine.low %v6748_v55, %v6780_v16  ;;  %v14013_v16 = vld [vmem:[#allocation305_spill] sm:$0xff] }
 0x66c   : > { %v6836_v42 = vrot.slane %v6822_v44, %v9375_v9  ;;  %v6804_v3 = vrot.slane %v6790_v51, %v9375_v9  ;;  %v6918_v50 = vcombine.high %v6861_v54, %v6893_v0  ;;  %v11764_v59 = vsel %vm1227_vm0, %v14014_v46, %v14013_v16  ;;  %v14015_v51 = vld [vmem:[#allocation93_spill] sm:$0xff] }
 0x66d   : > { %v7611_v53 = vpop.permute.xlu1 %7610  ;;  %v7607_v17 = vpop.permute.xlu0 %7606  ;;  %v6917_v32 = vcombine.low %v6861_v54, %v6893_v0  ;;  %v6957_v55 = vcombine.low %v11764_v59, %v11754_v23  ;;  %v4103_v31 = vsel %vm4102_vm13, %v4101_v28, %v14015_v51  ;;  %v14026_v51 = vld [vmem:[#allocation191_spill] sm:$0xff] }
 0x66e   : > { %7898 = vrot.lane.b32.xlu1 %v6784_v56, %s13879_s9  ;;  %7894 = vrot.lane.b32.xlu0 %v6783_v22, %s13996_s19  ;;  %v8109_v24 = vsel %vm4036_vm1, %v5557_v63, %v7607_v17  ;;  %s14004_s9 = smov 24   ;;  %v6886_v63 = vcombine.high %v6829_v2, %v6845_v58  ;;  %v11732_v17 = vrot.slane %v6806_v12, %v9375_v9  ;;  %v14008_v56 = vld [vmem:[#allocation318_spill] sm:$0xff]  ;;  %v14009_v22 = vld [vmem:[#allocation53_spill] sm:$0xff] }
 0x66f   : > { %v8110_v21 = vsel %vm4038_vm2, %v8109_v24, %v7611_v53  ;;  %v5344_v58 = vsel %vm1227_vm0, %v14007_v41, %v14006_v1  ;;  %v5392_v53 = vsel %vm1227_vm0, %v14009_v22, %v14008_v56  ;;  %v6901_v5 = vcombine.low %v6836_v42, %v6852_v7 }
 0x670   : > { %v6973_v2 = vcombine.low %v5392_v53, %v11737_v6  ;;  %v6900_v36 = vrot.slane %v6886_v63, %v9389_v52  ;;  %v6868_v12 = vrot.slane %v6854_v60, %v9389_v52  ;;  %v6925_v24 = vcombine.low %v11714_v39, %v5344_v58 }
 0x671   : > { %v7615_v29 = vpop.permute.xlu0 %7614  ;;  %v6902_v4 = vcombine.high %v6836_v42, %v6852_v7  ;;  %v6909_v40 = vrot.slane %v6901_v5, %v9389_v52  ;;  %v6926_v28 = vcombine.high %v11714_v39, %v5344_v58  ;;  %v6942_v1 = vcombine.high %v11719_v14, %v11726_v8 }
 0x672   : > { %v7619_v35 = vpop.permute.xlu1 %7618  ;;  %7906 = vrot.lane.b32.xlu1 %v6786_v27, %s13890_s11  ;;  %7902 = vrot.lane.b32.xlu0 %v6785_v57, %s14004_s9  ;;  %v8111_v26 = vsel %vm13038_vm3, %v8110_v21, %v7615_v29  ;;  %s14012_s11 = smov 28   ;;  %v6941_v29 = vcombine.low %v11719_v14, %v11726_v8  ;;  %v6869_v57 = vcombine.low %v6804_v3, %v11732_v17  ;;  %vm4104_vm3 = vcmask 572416   ;;  %v14019_v14 = vld [vmem:[#allocation201_spill] sm:$0xff] }
 0x673   : > { %v8112_v27 = vsel %vm4042_vm4, %v8111_v26, %v7619_v35  ;;  %v6981_v35 = vrot.slane %v6973_v2, %v9375_v9  ;;  %v6920_v38 = vcombine.high %v6868_v12, %v6900_v36  ;;  %v6919_v0 = vcombine.low %v6868_v12, %v6900_v36  ;;  %v14020_v2 = vld [vmem:[#allocation270_spill] sm:$0xff]  ;;  %v14021_v36 = vld [vmem:[#allocation175_spill] sm:$0xff] }
 0x674   : > { %v11780_v43 = vrot.slane %v6941_v29, %v9375_v9  ;;  %v6877_v49 = vrot.slane %v6869_v57, %v9389_v52  ;;  %v6965_v21 = vrot.slane %v6957_v55, %v9375_v9  ;;  %v6933_v60 = vrot.slane %v6925_v24, %v9375_v9 }
 0x675   : > { %v7623_v25 = vpop.permute.xlu0 %7622  ;;  %v6916_v54 = vrot.slane %v6902_v4, %v9389_v52  ;;  %v11809_v8 = vsel %vm1227_vm0, %v14019_v14, %v14018_v34  ;;  %v11814_v5 = vsel %vm1227_vm0, %v14021_v36, %v14020_v2  ;;  %v14023_v4 = vld [vmem:[#allocation283_spill] sm:$0xff] }
 0x676   : > { %v7627_v19 = vpop.permute.xlu1 %7626  ;;  %7914 = vrot.lane.b32.xlu1 %v6788_v37, %s13897_s22  ;;  %7910 = vrot.lane.b32.xlu0 %v6787_v47, %s14012_s11  ;;  %v8113_v18 = vsel %vm13039_vm5, %v8112_v27, %v7623_v25  ;;  %v6870_v37 = vcombine.high %v6804_v3, %v11732_v17  ;;  %v14016_v47 = vld [vmem:[#allocation131_spill] sm:$0xff]  ;;  %vm4106_vm5 = vcmask 588800   ;;  %v7021_v17 = vcombine.low %v6965_v21, %v6981_v35  ;;  %s14361_s22 = sld [smem:[#allocation18_spill]] }
 0x677   : > { %v8114_v63 = vsel %vm13046_vm6, %v8113_v18, %v7627_v19  ;;  %v4105_v25 = vsel %vm4104_vm3, %v4103_v31, %v14016_v47  ;;  %v6974_v19 = vcombine.high %v5392_v53, %v11737_v6  ;;  %v6922_v26 = vcombine.high %v6877_v49, %v6909_v40  ;;  %v14017_v53 = vld [vmem:[#allocation106_spill] sm:$0xff] }
 0x678   : > { %v6921_v56 = vcombine.low %v6877_v49, %v6909_v40  ;;  %v6989_v39 = vcombine.low %v6933_v60, %v11780_v43  ;;  %v6884_v58 = vrot.slane %v6870_v37, %v9389_v52  ;;  %v6958_v6 = vcombine.high %v11764_v59, %v11754_v23  ;;  %v14024_v40 = vld [vmem:[#allocation64_spill] sm:$0xff] }
 0x679   : > { %v4107_v45 = vsel %vm4106_vm5, %v4105_v25, %v14017_v53  ;;  %v6988_v23 = vrot.slane %v6974_v19, %v9375_v9  ;;  %v7022_v29 = vcombine.high %v6965_v21, %v6981_v35  ;;  %v7029_v16 = vrot.slane %v7021_v17, %v9389_v52  ;;  %v14029_v37 = vld [vmem:[#allocation332_spill] sm:$0xff] }
 0x67a   : > { %7922 = vrot.lane.b32.xlu1 %v6918_v50, %s13438_s13  ;;  %v7635_v44 = vpop.permute.xlu1 %7634  ;;  %7918 = vrot.lane.b32.xlu0 %v6917_v32, %s13441_s5  ;;  %v11817_v50 = vrot.slane %v6926_v28, %v9375_v9  ;;  %v6924_v59 = vcombine.high %v6884_v58, %v6916_v54  ;;  %v6956_v27 = vrot.slane %v6942_v1, %v9375_v9  ;;  %v14022_v32 = vld [vmem:[#allocation244_spill] sm:$0xff]  ;;  %vm13050_vm6 = vcmask 670720   ;;  %s14186_s13 = smov 124  }
 0x67b   : > { %v7631_v11 = vpop.permute.xlu0 %7630  ;;  %v11826_v12 = vsel %vm1227_vm0, %v14022_v32, %v11618_v20  ;;  %v6923_v18 = vcombine.low %v6884_v58, %v6916_v54  ;;  %v6997_v24 = vrot.slane %v6989_v39, %v9389_v52  ;;  %v14025_v20 = vld [vmem:[#allocation295_spill] sm:$0xff]  ;;  %v14030_v49 = vld [vmem:[#allocation232_spill] sm:$0xff] }
 0x67c   : > { %v8115_v7 = vsel %vm13040_vm7, %v8114_v63, %v7631_v11  ;;  %vm13047_vm7 = vcmask 605184   ;;  %v6972_v11 = vrot.slane %v6958_v6, %v9375_v9  ;;  %v11842_v31 = vsel %vm1227_vm0, %v14026_v51, %v14025_v20  ;;  %v14027_v63 = vld [vmem:[#allocation321_spill] sm:$0xff]  ;;  %v14031_v17 = vld [vmem:[#allocation308_spill] sm:$0xff]  ;;  %s14365_s23 = sshll.u32 %s14361_s22, 5 }
 0x67d   : > { %v8116_v41 = vsel %vm13045_vm8, %v8115_v7, %v7635_v44  ;;  %v6990_v44 = vcombine.high %v6933_v60, %v11780_v43  ;;  %v14028_v43 = vld [vmem:[#allocation219_spill] sm:$0xff]  ;;  %v11850_v21 = vsel %vm1227_vm0, %v14030_v49, %v14029_v37  ;;  %v7036_v7 = vrot.slane %v7022_v29, %v9389_v52  ;;  %v14032_v54 = vld [vmem:[#allocation152_spill] sm:$0xff]  ;;  %s151_s19 = scalar_lea.vmem [#allocation5], %s14365_s23 }
 0x67e   : > { %7930 = vrot.lane.b32.xlu1 %v6920_v38, %s13442_s4  ;;  %7926 = vrot.lane.b32.xlu0 %v6919_v0, %s13445_s3  ;;  %v11837_v38 = vsel %vm1227_vm0, %v14024_v40, %v14023_v4  ;;  %v5393_v0 = vsel %vm1227_vm0, %v14028_v43, %v14027_v63  ;;  %v7037_v47 = vcombine.low %v6972_v11, %v6988_v23  ;;  %v14035_v6 = vld [vmem:[#allocation144_spill] sm:$0xff]  ;;  %vm4114_vm8 = vcmask 654336   ;;  %s14171_s3 = smov 118   ;;  %s14176_s4 = smov 120  }
 0x67f   : > { %v7109_v25 = vcombine.low %v5393_v0, %v11826_v12  ;;  %v7054_v60 = vcombine.high %v6997_v24, %v7029_v16  ;;  %v7005_v19 = vcombine.low %v11817_v50, %v6956_v27  ;;  %v7061_v53 = vcombine.low %v11809_v8, %v11837_v38  ;;  %v14039_v40 = vld [vmem:[#allocation252_spill] sm:$0xff]  ;;  %s8308_s9 = sshll.u32 %s151_s19, 4  ;;  %s8309_s9 = int_to_ptr.vmem [resolvable:$true] %s8308_s9 }
 0x680   : > { %v7643_v42 = vpop.permute.xlu1 %7642  ;;  %v7639_v3 = vpop.permute.xlu0 %7638  ;;  %v7038_v34 = vcombine.high %v6972_v11, %v6988_v23  ;;  %v7045_v14 = vrot.slane %v7037_v47, %v9389_v52  ;;  %v14040_v20 = vld [vmem:[#allocation164_spill] sm:$0xff]  ;;  %v7078_v63 = vcombine.high %v11814_v5, %v11842_v31 }
 0x681   : > { %v8117_v22 = vsel %vm13043_vm9, %v8116_v41, %v7639_v3  ;;  %v7053_v41 = vcombine.low %v6997_v24, %v7029_v16  ;;  %v7004_v3 = vrot.slane %v6990_v44, %v9389_v52  ;;  %vm13049_vm9 = vcmask 621568  }
 0x682   : > { %7938 = vrot.lane.b32.xlu1 %v6922_v26, %s13446_s2  ;;  %7934 = vrot.lane.b32.xlu0 %v6921_v56, %s13452_s30  ;;  %v8118_v57 = vsel %vm13042_vm10, %v8117_v22, %v7643_v42  ;;  %v11859_v42 = vsel %vm1227_vm0, %v14032_v54, %v14031_v17  ;;  %v7077_v56 = vcombine.low %v11814_v5, %v11842_v31  ;;  %vm14034_vm10 = vcmask 211968   ;;  %v14045_v5 = vld [vmem:[#allocation269_spill] sm:$0xff]  ;;  %v14046_v31 = vld [vmem:[#allocation124_spill] sm:$0xff]  ;;  %v14047_v54 = vld [vmem:[#allocation294_spill] sm:$0xff]  ;;  %s14161_s30 = smov 114   ;;  %s14166_s2 = smov 116  }
 0x683   : > { %v7093_v39 = vcombine.low %v11859_v42, %v11850_v21  ;;  %v4109_v22 = vsel %vm13047_vm7, %v4107_v45, %v14035_v6  ;;  %v7117_v2 = vrot.slane %v7109_v25, %v9375_v9  ;;  %v7056_v29 = vcombine.high %v7004_v3, %v7036_v7  ;;  %v14043_v25 = vld [vmem:[#allocation256_spill] sm:$0xff] }
 0x684   : > { %v7651_v46 = vpop.permute.xlu1 %7650  ;;  %v7647_v55 = vpop.permute.xlu0 %7646  ;;  %v7006_v16 = vcombine.high %v11817_v50, %v6956_v27  ;;  %v7055_v32 = vcombine.low %v7004_v3, %v7036_v7  ;;  %v7013_v45 = vrot.slane %v7005_v19, %v9389_v52  ;;  %v7069_v50 = vrot.slane %v7061_v53, %v9375_v9 }
 0x685   : > { %v8119_v35 = vsel %vm13041_vm11, %v8118_v57, %v7647_v55  ;;  %vm14033_vm11 = vcmask 195584   ;;  %v7085_v57 = vrot.slane %v7077_v56, %v9375_v9  ;;  %v7101_v55 = vrot.slane %v7093_v39, %v9375_v9 }
 0x686   : > { %7946 = vrot.lane.b32.xlu1 %v6924_v59, %s13453_s29  ;;  %7942 = vrot.lane.b32.xlu0 %v6923_v18, %s13468_s28  ;;  %v8120_v26 = vsel %vm14033_vm11, %v8119_v35, %v7651_v46  ;;  %vm14037_vm11 = vcmask 244736   ;;  %v14038_v18 = vld [vmem:[#allocation27_spill] sm:$0xff]  ;;  %v7052_v27 = vrot.slane %v7038_v34, %v9389_v52  ;;  %v7110_v24 = vcombine.high %v5393_v0, %v11826_v12  ;;  %s14153_s28 = smov 110   ;;  %s14158_s29 = smov 112  }
 0x687   : > { %v11885_v44 = vsel %vm13049_vm9, %v4109_v22, %v14038_v18  ;;  %v7157_v11 = vcombine.low %v7101_v55, %v7117_v2  ;;  %v7058_v4 = vcombine.high %v7013_v45, %v7045_v14  ;;  %v11894_v51 = vsel %vm1227_vm0, %v14040_v20, %v14039_v40 }
 0x688   : > { %v7659_v28 = vpop.permute.xlu1 %7658  ;;  %v7655_v1 = vpop.permute.xlu0 %7654  ;;  %v7057_v49 = vcombine.low %v7013_v45, %v7045_v14  ;;  %v7020_v7 = vrot.slane %v7006_v16, %v9389_v52  ;;  %v7125_v47 = vcombine.low %v7069_v50, %v7085_v57  ;;  %v7094_v12 = vcombine.high %v11859_v42, %v11850_v21  ;;  %v14056_v45 = vld [vmem:[#allocation335_spill] sm:$0xff] }
 0x689   : > { %v8121_v58 = vsel %vm14034_vm10, %v8120_v26, %v7655_v1  ;;  %vm14036_vm10 = vcmask 228352   ;;  %v11912_v19 = vsel %vm1227_vm0, %v14046_v31, %v14045_v5  ;;  %v7062_v17 = vcombine.high %v11809_v8, %v11837_v38  ;;  %v14048_v26 = vld [vmem:[#allocation50_spill] sm:$0xff]  ;;  %v14049_v8 = vld [vmem:[#allocation243_spill] sm:$0xff]  ;;  %v14065_v5 = vld [vmem:[#allocation189_spill] sm:$0xff] }
 0x68a   : > { %7954 = vrot.lane.b32.xlu1 %v7054_v60, %s13469_s27  ;;  %7950 = vrot.lane.b32.xlu0 %v7053_v41, %s13472_s26  ;;  %v8122_v46 = vsel %vm14036_vm10, %v8121_v58, %v7659_v28  ;;  %vm14041_vm10 = vcmask 261120   ;;  %v14044_v28 = vld [vmem:[#allocation75_spill] sm:$0xff]  ;;  %v11919_v21 = vsel %vm1227_vm0, %v14048_v26, %v14047_v54  ;;  %v11923_v42 = vrot.slane %v7110_v24, %v9375_v9  ;;  %s14146_s26 = smov 106   ;;  %s14149_s27 = smov 108  }
 0x68b   : > { %v11907_v60 = vsel %vm1227_vm0, %v14044_v28, %v14043_v25  ;;  %v7158_v1 = vcombine.high %v7101_v55, %v7117_v2  ;;  %v7165_v41 = vrot.slane %v7157_v11, %v9389_v52  ;;  %v7060_v56 = vcombine.high %v7020_v7, %v7052_v27  ;;  %v14064_v28 = vld [vmem:[#allocation265_spill] sm:$0xff] }
 0x68c   : > { %v7667_v36 = vpop.permute.xlu1 %7666  ;;  %v7663_v59 = vpop.permute.xlu0 %7662  ;;  %v11927_v39 = vrot.slane %v7078_v63, %v9375_v9  ;;  %v11932_v38 = vsel %vm1227_vm0, %v14049_v8, %v11612_v15  ;;  %v7059_v22 = vcombine.low %v7020_v7, %v7052_v27  ;;  %v7126_v53 = vcombine.high %v7069_v50, %v7085_v57  ;;  %v14057_v57 = vld [vmem:[#allocation231_spill] sm:$0xff] }
 0x68d   : > { %v8123_v23 = vsel %vm14037_vm11, %v8122_v46, %v7663_v59  ;;  %vm14042_vm11 = vcmask 277504   ;;  %v7133_v34 = vrot.slane %v7125_v47, %v9389_v52  ;;  %v7108_v14 = vrot.slane %v7094_v12, %v9375_v9  ;;  %v14054_v46 = vld [vmem:[#allocation320_spill] sm:$0xff]  ;;  %v14055_v59 = vld [vmem:[#allocation218_spill] sm:$0xff]  ;;  %v14062_v12 = vld [vmem:[#allocation259_spill] sm:$0xff] }
 0x68e   : > { %7962 = vrot.lane.b32.xlu1 %v7056_v29, %s13473_s25  ;;  %7958 = vrot.lane.b32.xlu0 %v7055_v32, %s13476_s24  ;;  %v8124_v43 = vsel %vm14041_vm10, %v8123_v23, %v7667_v36  ;;  %vm14050_vm10 = vcmask 293888   ;;  %v14052_v36 = vld [vmem:[#allocation282_spill] sm:$0xff]  ;;  %v7076_v15 = vrot.slane %v7062_v17, %v9375_v9  ;;  %v11946_v32 = vsel %vm1227_vm0, %v14055_v59, %v14054_v46  ;;  %v14072_v46 = vld [vmem:[#allocation165_spill] sm:$0xff]  ;;  %s14132_s24 = smov 102   ;;  %s14145_s25 = smov 104  }
 0x68f   : > { %v14053_v29 = vld [vmem:[#allocation166_spill] sm:$0xff]  ;;  %v11951_v55 = vsel %vm1227_vm0, %v14057_v57, %v14056_v45  ;;  %v7245_v23 = vcombine.low %v11946_v32, %v11932_v38  ;;  %v7172_v18 = vrot.slane %v7158_v1, %v9389_v52  ;;  %v7173_v50 = vcombine.low %v7108_v14, %v11923_v42 }
 0x690   : > { %v7675_v35 = vpop.permute.xlu1 %7674  ;;  %v7671_v37 = vpop.permute.xlu0 %7670  ;;  %v5346_v16 = vsel %vm1227_vm0, %v14053_v29, %v14052_v36  ;;  %v7190_v24 = vcombine.high %v7133_v34, %v7165_v41  ;;  %v7213_v11 = vcombine.low %v11912_v19, %v11919_v21  ;;  %v11980_v31 = vsel %vm1227_vm0, %v14065_v5, %v14064_v28  ;;  %v14068_v36 = vld [vmem:[#allocation200_spill] sm:$0xff]  ;;  %v14070_v29 = vld [vmem:[#allocation150_spill] sm:$0xff] }
 0x691   : > { %v8125_v0 = vsel %vm14042_vm11, %v8124_v43, %v7671_v37  ;;  %vm14051_vm11 = vcmask 310272   ;;  %v7189_v43 = vcombine.low %v7133_v34, %v7165_v41  ;;  %v7140_v37 = vrot.slane %v7126_v53, %v9389_v52 }
 0x692   : > { %7970 = vrot.lane.b32.xlu1 %v7058_v4, %s13477_s18  ;;  %7966 = vrot.lane.b32.xlu0 %v7057_v49, %s13483_s15  ;;  %v8126_v58 = vsel %vm14050_vm10, %v8125_v0, %v7675_v35  ;;  %v14058_v35 = vld [vmem:[#allocation307_spill] sm:$0xff]  ;;  %vm14060_vm10 = vcmask 326656   ;;  %v7141_v49 = vcombine.low %v7076_v15, %v11927_v39  ;;  %v7197_v17 = vcombine.low %v11907_v60, %v5346_v16  ;;  %s14121_s18 = smov 100   ;;  %s14195_s15 = smov 126  }
 0x693   : > { %v14059_v4 = vld [vmem:[#allocation35_spill] sm:$0xff]  ;;  %v7198_v54 = vcombine.high %v11907_v60, %v5346_v16  ;;  %v11986_v26 = vrot.slane %v7245_v23, %v9375_v9  ;;  %v7174_v1 = vcombine.high %v7108_v14, %v11923_v42  ;;  %v7181_v41 = vrot.slane %v7173_v50, %v9389_v52 }
 0x694   : > { %v7683_v3 = vpop.permute.xlu1 %7682  ;;  %v7679_v6 = vpop.permute.xlu0 %7678  ;;  %v11963_v40 = vsel %vm1227_vm0, %v14059_v4, %v14058_v35  ;;  %v14063_v0 = vld [vmem:[#allocation211_spill] sm:$0xff]  ;;  %v7214_v8 = vcombine.high %v11912_v19, %v11919_v21  ;;  %v7142_v53 = vcombine.high %v7076_v15, %v11927_v39  ;;  %v7149_v34 = vrot.slane %v7141_v49, %v9389_v52  ;;  %v14069_v21 = vld [vmem:[#allocation278_spill] sm:$0xff]  ;;  %v14071_v15 = vld [vmem:[#allocation297_spill] sm:$0xff] }
 0x695   : > { %v8127_v2 = vsel %vm14051_vm11, %v8126_v58, %v7679_v6  ;;  %v7229_v7 = vcombine.low %v11963_v40, %v11951_v55  ;;  %vm14061_vm11 = vcmask 343040   ;;  %v11975_v25 = vsel %vm1227_vm0, %v14063_v0, %v14062_v12 }
 0x696   : > { %7978 = vrot.lane.b32.xlu1 %v7060_v56, %s13484_s17  ;;  %7974 = vrot.lane.b32.xlu0 %v7059_v22, %s13499_s12  ;;  %v8128_v20 = vsel %vm14060_vm10, %v8127_v2, %v7683_v3  ;;  %v7192_v56 = vcombine.high %v7140_v37, %v7172_v18  ;;  %v11993_v58 = vrot.slane %v7213_v11, %v9375_v9  ;;  %vm14066_vm10 = vcmask 359424   ;;  %v14067_v2 = vld [vmem:[#allocation272_spill] sm:$0xff]  ;;  %s14112_s17 = smov 98   ;;  %s14181_s12 = smov 122  }
 0x697   : > { %v7191_v22 = vcombine.low %v7140_v37, %v7172_v18  ;;  %v7237_v42 = vrot.slane %v7229_v7, %v9375_v9  ;;  %v12004_v19 = vsel %vm1227_vm0, %v14068_v36, %v14067_v2  ;;  %v12009_v16 = vsel %vm1227_vm0, %v14070_v29, %v14069_v21  ;;  %v14076_v37 = vld [vmem:[#allocation178_spill] sm:$0xff]  ;;  %v14086_v2 = vld [vmem:[#allocation221_spill] sm:$0xff]  ;;  %v14087_v21 = vld [vmem:[#allocation328_spill] sm:$0xff] }
 0x698   : > { %v7691_v27 = vpop.permute.xlu1 %7690  ;;  %v7687_v63 = vpop.permute.xlu0 %7686  ;;  %v7205_v39 = vrot.slane %v7197_v17, %v9375_v9  ;;  %v12015_v59 = vsel %vm1227_vm0, %v14072_v46, %v14071_v15  ;;  %v7246_v45 = vcombine.high %v11946_v32, %v11932_v38  ;;  %v7188_v23 = vrot.slane %v7174_v1, %v9389_v52  ;;  %v14077_v7 = vld [vmem:[#allocation290_spill] sm:$0xff]  ;;  %v14088_v29 = vld [vmem:[#allocation227_spill] sm:$0xff] }
 0x699   : > { %v8129_v47 = vsel %vm14061_vm11, %v8128_v20, %v7687_v63  ;;  %v7293_v57 = vcombine.low %v7237_v42, %v11986_v26  ;;  %v7194_v50 = vcombine.high %v7149_v34, %v7181_v41  ;;  %vm14073_vm11 = vcmask 392192   ;;  %v14090_v15 = vld [vmem:[#allocation234_spill] sm:$0xff] }
 0x69a   : > { %7986 = vrot.lane.b32.xlu1 %v7190_v24, %s13500_s0  ;;  %7982 = vrot.lane.b32.xlu0 %v7189_v43, %s13503_s14  ;;  %v8130_v6 = vsel %vm14066_vm10, %v8129_v47, %v7691_v27  ;;  %v12023_v27 = vrot.slane %v7198_v54, %v9375_v9  ;;  %v12026_v24 = vrot.slane %v7214_v8, %v9375_v9  ;;  %vm14074_vm10 = vcmask 408576   ;;  %v14075_v43 = vld [vmem:[#allocation285_spill] sm:$0xff]  ;;  %v14078_v47 = vld [vmem:[#allocation115_spill] sm:$0xff]  ;;  %s14091_s0 = smov 76  }
 0x69b   : > { %v7193_v4 = vcombine.low %v7149_v34, %v7181_v41  ;;  %v7261_v20 = vcombine.low %v7205_v39, %v11993_v58  ;;  %v7156_v38 = vrot.slane %v7142_v53, %v9389_v52  ;;  %v7230_v32 = vcombine.high %v11963_v40, %v11951_v55  ;;  %v14079_v41 = vld [vmem:[#allocation246_spill] sm:$0xff]  ;;  %v14084_v34 = vld [vmem:[#allocation25_spill] sm:$0xff] }
 0x69c   : > { %v7699_v3 = vpop.permute.xlu1 %7698  ;;  %v7695_v60 = vpop.permute.xlu0 %7694  ;;  %v12038_v49 = vsel %vm1227_vm0, %v14076_v37, %v14075_v43  ;;  %v12043_v12 = vsel %vm1227_vm0, %v14078_v47, %v14077_v7  ;;  %v7262_v0 = vcombine.high %v7205_v39, %v11993_v58  ;;  %v7349_v28 = vcombine.low %v12004_v19, %v12015_v59  ;;  %v14089_v39 = vld [vmem:[#allocation334_spill] sm:$0xff]  ;;  %v14095_v37 = vld [vmem:[#allocation303_spill] sm:$0xff]  ;;  %v14096_v7 = vld [vmem:[#allocation101_spill] sm:$0xff] }
 0x69d   : > { %v8131_v14 = vsel %vm13044_vm12, %v8130_v6, %v7695_v60  ;;  %v12050_v55 = vrot.slane %v7246_v45, %v9375_v9  ;;  %v7294_v40 = vcombine.high %v7237_v42, %v11986_v26  ;;  %v7301_v5 = vrot.slane %v7293_v57, %v9389_v52  ;;  %v14081_v60 = vld [vmem:[#allocation239_spill] sm:$0xff] }
 0x69e   : > { %7994 = vrot.lane.b32.xlu1 %v7192_v56, %s13504_s10  ;;  %7990 = vrot.lane.b32.xlu0 %v7191_v22, %s13507_s20  ;;  %v8132_v11 = vsel %vm14073_vm11, %v8131_v14, %v7699_v3  ;;  %vm13048_vm11 = vcmask 637952   ;;  %v7196_v54 = vcombine.high %v7156_v38, %v7188_v23  ;;  %v7277_v1 = vcombine.low %v12023_v27, %v12026_v24  ;;  %v14085_v14 = vld [vmem:[#allocation323_spill] sm:$0xff]  ;;  %s14102_s10 = smov 86   ;;  %s14104_s20 = smov 84  }
 0x69f   : > { %v12059_v3 = vsel %vm1227_vm0, %v14079_v41, %v11642_v61  ;;  %v7195_v58 = vcombine.low %v7156_v38, %v7188_v23  ;;  %v7269_v6 = vrot.slane %v7261_v20, %v9389_v52  ;;  %v7244_v26 = vrot.slane %v7230_v32, %v9375_v9  ;;  %v14083_v61 = vld [vmem:[#allocation316_spill] sm:$0xff] }
 0x6a0   : > { %v7707_v18 = vpop.permute.xlu1 %7706  ;;  %v7703_v35 = vpop.permute.xlu0 %7702  ;;  %v12067_v22 = vsel %vm1227_vm0, %v14081_v60, %v11156_v33  ;;  %vm14082_vm12 = vcmask 441344   ;;  %v12074_v42 = vsel %vm1227_vm0, %v14084_v34, %v14083_v61  ;;  %v12079_v36 = vsel %vm1227_vm0, %v14086_v2, %v14085_v14 }
 0x6a1   : > { %v8133_v63 = vsel %vm14074_vm10, %v8132_v11, %v7703_v35  ;;  %vm14080_vm10 = vcmask 424960   ;;  %v12084_v33 = vsel %vm1227_vm0, %v14088_v29, %v14087_v21  ;;  %v12089_v46 = vsel %vm1227_vm0, %v14090_v15, %v14089_v39  ;;  %v14092_v11 = vld [vmem:[#allocation310_spill] sm:$0xff] }
 0x6a2   : > { %8002 = vrot.lane.b32.xlu1 %v7194_v50, %s13508_s8  ;;  %7998 = vrot.lane.b32.xlu0 %v7193_v4, %s13514_s7  ;;  %v8134_v56 = vsel %vm14080_vm10, %v8133_v63, %v7707_v18  ;;  %v7308_v45 = vrot.slane %v7294_v40, %v9389_v52  ;;  %v7309_v57 = vcombine.low %v7244_v26, %v12050_v55  ;;  %v14093_v35 = vld [vmem:[#allocation190_spill] sm:$0xff]  ;;  %vm14097_vm10 = vcmask 474112   ;;  %s14098_s7 = smov 82   ;;  %s14099_s8 = smov 80  }
 0x6a3   : > { %v7381_v23 = vcombine.low %v12079_v36, %v12059_v3  ;;  %v7326_v50 = vcombine.high %v7269_v6, %v7301_v5  ;;  %v12099_v4 = vsel %vm1227_vm0, %v14093_v35, %v14092_v11  ;;  %v6293_v20 = vcombine.low %v12074_v42, %v12067_v22 }
 0x6a4   : > { %v7715_v17 = vpop.permute.xlu1 %7714  ;;  %v7711_v8 = vpop.permute.xlu0 %7710  ;;  %v7325_v63 = vcombine.low %v7269_v6, %v7301_v5  ;;  %v7276_v43 = vrot.slane %v7262_v0, %v9389_v52  ;;  %v12108_v47 = vsel %vm1227_vm0, %v14096_v7, %v14095_v37  ;;  %v7365_v40 = vcombine.low %v12099_v4, %v12089_v46  ;;  %v14106_v37 = vld [vmem:[#allocation156_spill] sm:$0xff] }
 0x6a5   : > { %v8135_v53 = vsel %vm14082_vm12, %v8134_v56, %v7711_v8  ;;  %vm14094_vm12 = vcmask 457728   ;;  %v6245_v41 = vcombine.low %v11894_v51, %v12009_v16  ;;  %v7333_v5 = vcombine.low %v11975_v25, %v12038_v49 }
 0x6a6   : > { %8010 = vrot.lane.b32.xlu1 %v7196_v54, %s13515_s21  ;;  %8006 = vrot.lane.b32.xlu0 %v7195_v58, %s14091_s0  ;;  %v8136_v38 = vsel %vm14094_vm12, %v8135_v53, %v7715_v17  ;;  %v6261_v0 = vcombine.low %v11980_v31, %v12043_v12  ;;  %v6277_v17 = vcombine.low %v12108_v47, %v12084_v33  ;;  %vm14100_vm12 = vcmask 490496   ;;  %s14107_s21 = smov 88  }
 0x6a7   : > { %v7310_v56 = vcombine.high %v7244_v26, %v12050_v55  ;;  %v7317_v8 = vrot.slane %v7309_v57, %v9389_v52  ;;  %v12126_v58 = vrot.slane %v7381_v23, %v9375_v9  ;;  %v7328_v60 = vcombine.high %v7276_v43, %v7308_v45 }
 0x6a8   : > { %v7723_v18 = vpop.permute.xlu1 %7722  ;;  %v7719_v32 = vpop.permute.xlu0 %7718  ;;  %v12129_v53 = vrot.slane %v7349_v28, %v9375_v9  ;;  %v12132_v61 = vrot.slane %v6293_v20, %v9375_v9  ;;  %v7327_v2 = vcombine.low %v7276_v43, %v7308_v45  ;;  %v7278_v55 = vcombine.high %v12023_v27, %v12026_v24  ;;  %v14103_v28 = vld [vmem:[#allocation182_spill] sm:$0xff]  ;;  %v14105_v20 = vld [vmem:[#allocation41_spill] sm:$0xff] }
 0x6a9   : > { %v8137_v54 = vsel %vm14097_vm10, %v8136_v38, %v7719_v32  ;;  %v7285_v26 = vrot.slane %v7277_v1, %v9389_v52  ;;  %v12139_v21 = vrot.slane %v7365_v40, %v9375_v9  ;;  %vm14101_vm10 = vcmask 506880  }
 0x6aa   : > { %8018 = vrot.lane.b32.xlu1 %v7326_v50, %s14098_s7  ;;  %8014 = vrot.lane.b32.xlu0 %v7325_v63, %s14099_s8  ;;  %v8138_v34 = vsel %vm14100_vm12, %v8137_v54, %v7723_v18  ;;  %v4113_v39 = vsel %vm13048_vm11, %v11885_v44, %v14103_v28  ;;  %v12147_v15 = vrot.slane %v6261_v0, %v9375_v9  ;;  %vm13066_vm12 = vcmask 687104   ;;  %s14372_s7 = sld [smem:[#allocation338_spill]] }
 0x6ab   : > { %v12150_v45 = vrot.slane %v6277_v17, %v9375_v9  ;;  %v12154_v27 = vrot.slane %v7333_v5, %v9375_v9  ;;  %v7324_v24 = vrot.slane %v7310_v56, %v9389_v52  ;;  %v7429_v1 = vcombine.low %v12139_v21, %v12126_v58 }
 0x6ac   : > { %v7731_v6 = vpop.permute.xlu1 %7730  ;;  %v7727_v14 = vpop.permute.xlu0 %7726  ;;  %v7330_v23 = vcombine.high %v7285_v26, %v7317_v8  ;;  %v12160_v44 = vrot.slane %v6245_v41, %v9375_v9  ;;  %v7329_v35 = vcombine.low %v7285_v26, %v7317_v8  ;;  %v4115_v38 = vsel %vm4114_vm8, %v4113_v39, %v14105_v20 }
 0x6ad   : > { %v8139_v29 = vsel %vm14101_vm10, %v8138_v34, %v7727_v14  ;;  %v6341_v18 = vcombine.low %v12150_v45, %v12132_v61  ;;  %v7292_v32 = vrot.slane %v7278_v55, %v9389_v52  ;;  %v7397_v63 = vcombine.low %v12154_v27, %v12129_v53 }
 0x6ae   : > { %8026 = vrot.lane.b32.xlu1 %v7328_v60, %s14102_s10  ;;  %8022 = vrot.lane.b32.xlu0 %v7327_v2, %s14104_s20  ;;  %v8140_v50 = vsel %vm4098_vm15, %v8139_v29, %v7731_v6  ;;  %v4117_v7 = vsel %vm13050_vm6, %v4115_v38, %v14106_v37  ;;  %v6309_v40 = vcombine.low %v12160_v44, %v12147_v15  ;;  %vm13054_vm10 = vcmask 703488   ;;  %v14108_v6 = vld [vmem:[#allocation81_spill] sm:$0xff]  ;;  %s8292_s10 = scalar_lea.sflag [#allocation4], %s14361_s22 }
 0x6af   : > { %v7437_v54 = vrot.slane %v7429_v1, %v9389_v52  ;;  %v7332_v5 = vcombine.high %v7292_v32, %v7324_v24  ;;  %v6349_v0 = vrot.slane %v6341_v18, %v9389_v52  ;;  %v7331_v8 = vcombine.low %v7292_v32, %v7324_v24  ;;  %v14109_v2 = vld [vmem:[#allocation117_spill] sm:$0xff] }
 0x6b0   : > { %v7739_v57 = vpop.permute.xlu1 %7738  ;;  %v7735_v11 = vpop.permute.xlu0 %7734  ;;  %v4119_v60 = vsel %vm13066_vm12, %v4117_v7, %v14108_v6  ;;  %v7405_v34 = vrot.slane %v7397_v63, %v9389_v52  ;;  %v6317_v26 = vrot.slane %v6309_v40, %v9389_v52  ;;  %v6262_v29 = vcombine.high %v11980_v31, %v12043_v12  ;;  %v14115_v63 = vld [vmem:[#allocation277_spill] sm:$0xff]  ;;  %v14117_v6 = vld [vmem:[#allocation258_spill] sm:$0xff]  ;;  %s14373_s20 = smov %s14372_s7 }
 0x6b1   : > { %v8141_v43 = vsel %vm4100_vm14, %v8140_v50, %v7735_v11  ;;  %v12187_v55 = vsel %vm13054_vm10, %v4119_v60, %v14109_v2  ;;  %v7382_v28 = vcombine.high %v12079_v36, %v12059_v3  ;;  %v7430_v39 = vcombine.high %v12139_v21, %v12126_v58  ;;  %v14118_v60 = vld [vmem:[#allocation100_spill] sm:$0xff] }
 0x6b2   : > { %8034 = vrot.lane.b32.xlu1 %v7330_v23, %s13961_s6  ;;  %8030 = vrot.lane.b32.xlu0 %v7329_v35, %s14107_s21  ;;  %v8142_v17 = vsel %vm4102_vm13, %v8141_v43, %v7739_v57  ;;  %s14110_s6 = smov 92   ;;  %v7461_v1 = vcombine.low %v7405_v34, %v7437_v54  ;;  %v6294_v57 = vcombine.high %v12074_v42, %v12067_v22  ;;  %v14116_v43 = vld [vmem:[#allocation33_spill] sm:$0xff]  ;;  %v14120_v2 = vld [vmem:[#allocation48_spill] sm:$0xff]  ;;  %s8568_s21 = scalar_lea.vmem %s8309_s9, 512 }
 0x6b3   : > { %v6342_v23 = vcombine.high %v12150_v45, %v12132_v61  ;;  %v6373_v11 = vcombine.low %v6317_v26, %v6349_v0  ;;  %v7350_v31 = vcombine.high %v12004_v19, %v12015_v59  ;;  %v7398_v12 = vcombine.high %v12154_v27, %v12129_v53  ;;  %v14113_v27 = vld [vmem:[#allocation251_spill] sm:$0xff]  ;;  %p8569_p8 = scmp.ne.s32.totalorder %s8309_s9, %s8568_s21 }
 0x6b4   : > { %v7747_v41 = vpop.permute.xlu1 %7746  ;;  %v7743_v56 = vpop.permute.xlu0 %7742  ;;  %v7366_v3 = vcombine.high %v12099_v4, %v12089_v46  ;;  %v6246_v22 = vcombine.high %v11894_v51, %v12009_v16  ;;  %v7334_v42 = vcombine.high %v11975_v25, %v12038_v49  ;;  %v6310_v58 = vcombine.high %v12160_v44, %v12147_v15  ;;  %v14114_v44 = vld [vmem:[#allocation85_spill] sm:$0xff] }
 0x6b5   : > { %v8143_v14 = vsel %vm4104_vm3, %v8142_v17, %v7743_v56  ;;  %v6278_v19 = vcombine.high %v12108_v47, %v12084_v33  ;;  %v12220_v59 = vrot.slane %v6262_v29, %v9375_v9  ;;  %v12223_v46 = vrot.slane %v7382_v28, %v9375_v9  ;;  %p8570_p13 = pnand %p8569_p8, %p8780_p9 }
 0x6b6   : > { %8042 = vrot.lane.b32.xlu1 %v7332_v5, %s13969_s1  ;;  %8038 = vrot.lane.b32.xlu0 %v7331_v8, %s14110_s6  ;;  %v8144_v18 = vsel %vm4106_vm5, %v8143_v14, %v7747_v41  ;;  %s14111_s1 = smov 96   ;;  %v7444_v4 = vrot.slane %v7430_v39, %v9389_v52  ;;  %v7462_v16 = vcombine.high %v7405_v34, %v7437_v54  ;;  %v14119_v14 = vld [vmem:[#allocation264_spill] sm:$0xff]  ;;  %v14122_v39 = vld [vmem:[#allocation271_spill] sm:$0xff]  ;;  %s8718_s6 = smov [#allocation5]  }
 0x6b7   : > { %v12227_v25 = vrot.slane %v6294_v57, %v9375_v9  ;;  %v6356_v49 = vrot.slane %v6342_v23, %v9389_v52  ;;  %v6374_v47 = vcombine.high %v6317_v26, %v6349_v0  ;;  %v12232_v61 = vrot.slane %v7350_v31, %v9375_v9  ;;  %v14124_v23 = vld [vmem:[#allocation296_spill] sm:$0xff]  ;;  %p8571_p0 = pneg %p8570_p13 }
 0x6b8   : > { %v7755_v24 = vpop.permute.xlu1 %7754  ;;  %v7751_v50 = vpop.permute.xlu0 %7750  ;;  %v7412_v21 = vrot.slane %v7398_v12, %v9389_v52  ;;  %v12236_v15 = vrot.slane %v7366_v3, %v9375_v9  ;;  %v12243_v35 = vsel %vm1227_vm0, %v14114_v44, %v14113_v27  ;;  %v12246_v20 = vrot.slane %v6246_v22, %v9375_v9  ;;  %v14126_v31 = vld [vmem:[#allocation284_spill] sm:$0xff]  ;;  %v14127_v12 = vld [vmem:[#allocation127_spill] sm:$0xff]  ;;  %v14129_v22 = vld [vmem:[#allocation213_spill] sm:$0xff] }
 0x6b9   : > { %v8145_v36 = vsel %vm13047_vm7, %v8144_v18, %v7751_v50  ;;  %vm13052_vm7 = vcmask 719872   ;;  %v6324_v38 = vrot.slane %v6310_v58, %v9389_v52  ;;  %v12250_v32 = vrot.slane %v6278_v19, %v9375_v9  ;;  %v14125_v18 = vld [vmem:[#allocation90_spill] sm:$0xff] }
 0x6ba   : > { %8046 = vrot.lane.b32.xlu1 %v7461_v1, %s14111_s1  ;;  %7794 = vrot.lane.b32.xlu0 %v6373_v11, %s14111_s1  ;;  %v8146_v53 = vsel %vm13049_vm9, %v8145_v36, %v7755_v24  ;;  %v12256_v37 = vsel %vm1227_vm0, %v14116_v43, %v14115_v63  ;;  %v12259_v7 = vrot.slane %v7334_v42, %v9375_v9  ;;  %vm13053_vm9 = vcmask 752640   ;;  %v14123_v24 = vld [vmem:[#allocation74_spill] sm:$0xff]  ;;  %v14128_v36 = vld [vmem:[#allocation289_spill] sm:$0xff] }
 0x6bb   : > { %v7445_v40 = vcombine.low %v12236_v15, %v12223_v46  ;;  %v7463_v41 = vcombine.low %v7412_v21, %v7444_v4  ;;  %v6325_v5 = vcombine.low %v12246_v20, %v12220_v59  ;;  %v6357_v0 = vcombine.low %v12250_v32, %v12227_v25  ;;  %v14131_v43 = vld [vmem:[#allocation238_spill] sm:$0xff] }
 0x6bc   : > { %v7763_v51 = vpop.permute.xlu1 %7762  ;;  %v7759_v33 = vpop.permute.xlu0 %7758  ;;  %v6375_v8 = vcombine.low %v6324_v38, %v6356_v49  ;;  %v12271_v34 = vsel %vm1227_vm0, %v14118_v60, %v14117_v6  ;;  %v12276_v26 = vsel %vm1227_vm0, %v14120_v2, %v14119_v14  ;;  %v7413_v29 = vcombine.low %v12259_v7, %v12232_v61 }
 0x6bd   : > { %v8147_v45 = vsel %vm13048_vm11, %v8146_v53, %v7759_v33  ;;  %vm13051_vm11 = vcmask 736256   ;;  %v12285_v1 = vsel %vm1227_vm0, %v14123_v24, %v14122_v39  ;;  %v6381_v57 = vcombine.low %v12243_v35, %v12256_v37  ;;  %v14130_v33 = vld [vmem:[#allocation245_spill] sm:$0xff] }
 0x6be   : > { %8050 = vrot.lane.b32.xlu1 %v7462_v16, %s14112_s17  ;;  %7798 = vrot.lane.b32.xlu0 %v6374_v47, %s14112_s17  ;;  %v8148_v17 = vsel %vm4114_vm8, %v8147_v45, %v7763_v51  ;;  %v12292_v50 = vsel %vm1227_vm0, %v14125_v18, %v14124_v23  ;;  %v12299_v3 = vsel %vm1227_vm0, %v14127_v12, %v14126_v31  ;;  %v14142_v39 = vld [vmem:[#allocation49_spill] sm:$0xff] }
 0x6bf   : > { %v12304_v42 = vsel %vm1227_vm0, %v14129_v22, %v14128_v36  ;;  %v7453_v58 = vrot.slane %v7445_v40, %v9389_v52  ;;  %v7464_v51 = vcombine.high %v7412_v21, %v7444_v4  ;;  %v6333_v16 = vrot.slane %v6325_v5, %v9389_v52  ;;  %v14133_v40 = vld [vmem:[#allocation315_spill] sm:$0xff]  ;;  %v14137_v5 = vld [vmem:[#allocation336_spill] sm:$0xff]  ;;  %v14143_v36 = vld [vmem:[#allocation302_spill] sm:$0xff] }
 0x6c0   : > { %v7771_v54 = vpop.permute.xlu1 %7770  ;;  %v7767_v56 = vpop.permute.xlu0 %7766  ;;  %v6365_v53 = vrot.slane %v6357_v0, %v9389_v52  ;;  %v12312_v47 = vsel %vm1227_vm0, %v14130_v33, %v11633_v30  ;;  %v6376_v27 = vcombine.high %v6324_v38, %v6356_v49  ;;  %v7485_v44 = vcombine.low %v12285_v1, %v12292_v50  ;;  %v14135_v49 = vld [vmem:[#allocation322_spill] sm:$0xff]  ;;  %v14136_v38 = vld [vmem:[#allocation220_spill] sm:$0xff]  ;;  %v14138_v0 = vld [vmem:[#allocation233_spill] sm:$0xff] }
 0x6c1   : > { %v8149_v28 = vsel %vm13050_vm6, %v8148_v17, %v7767_v56  ;;  %vm13055_vm6 = vcmask 769024   ;;  %v7421_v63 = vrot.slane %v7413_v29, %v9389_v52  ;;  %v12320_v4 = vsel %vm1227_vm0, %v14131_v43, %v11525_v62  ;;  %v14139_v56 = vld [vmem:[#allocation329_spill] sm:$0xff] }
 0x6c2   : > { %8054 = vrot.lane.b32.xlu1 %v7463_v41, %s14121_s18  ;;  %7802 = vrot.lane.b32.xlu0 %v6375_v8, %s14121_s18  ;;  %v8150_v11 = vsel %vm13066_vm12, %v8149_v28, %v7771_v54  ;;  %v14134_v54 = vld [vmem:[#allocation22_spill] sm:$0xff]  ;;  %v12332_v41 = vsel %vm1227_vm0, %v14136_v38, %v14135_v49  ;;  %v12337_v17 = vsel %vm1227_vm0, %v14138_v0, %v14137_v5  ;;  %v14141_v28 = vld [vmem:[#allocation309_spill] sm:$0xff]  ;;  %vm14187_vm12 = vcmask 310272  }
 0x6c3   : > { %v12327_v30 = vsel %vm1227_vm0, %v14134_v54, %v14133_v40  ;;  %v14140_v8 = vld [vmem:[#allocation226_spill] sm:$0xff]  ;;  %v7517_v60 = vcombine.low %v12332_v41, %v12312_v47  ;;  %v7446_v14 = vcombine.high %v12236_v15, %v12223_v46  ;;  %v7465_v29 = vcombine.low %v7421_v63, %v7453_v58 }
 0x6c4   : > { %v7779_v19 = vpop.permute.xlu1 %7778  ;;  %v7775_v45 = vpop.permute.xlu0 %7774  ;;  %v12344_v6 = vsel %vm1227_vm0, %v14140_v8, %v14139_v56  ;;  %v12353_v24 = vsel %vm1227_vm0, %v14142_v39, %v14141_v28  ;;  %v6429_v23 = vcombine.low %v12327_v30, %v12320_v4  ;;  %v6358_v18 = vcombine.high %v12250_v32, %v12227_v25  ;;  %v14144_v46 = vld [vmem:[#allocation202_spill] sm:$0xff]  ;;  %v14148_v56 = vld [vmem:[#allocation67_spill] sm:$0xff] }
 0x6c5   : > { %v8151_v21 = vsel %vm13054_vm10, %v8150_v11, %v7775_v45  ;;  %v6377_v31 = vcombine.low %v6333_v16, %v6365_v53  ;;  %v7414_v12 = vcombine.high %v12259_v7, %v12232_v61  ;;  %v12364_v15 = vsel %vm1227_vm0, %v14144_v46, %v14143_v36  ;;  %v14152_v36 = vld [vmem:[#allocation92_spill] sm:$0xff] }
 0x6c6   : > { %8058 = vrot.lane.b32.xlu1 %v7464_v51, %s14132_s24  ;;  %7806 = vrot.lane.b32.xlu0 %v6376_v27, %s14132_s24  ;;  %v8152_v62 = vsel %vm13052_vm7, %v8151_v21, %v7779_v19  ;;  %v7501_v22 = vcombine.low %v12353_v24, %v12337_v17  ;;  %v6397_v25 = vcombine.low %v12276_v26, %v12304_v42  ;;  %vm14150_vm0 = vcmask 48128  }
 0x6c7   : > { %v6326_v32 = vcombine.high %v12246_v20, %v12220_v59  ;;  %v6413_v61 = vcombine.low %v12364_v15, %v12344_v6  ;;  %v7469_v51 = vcombine.low %v12271_v34, %v12299_v3  ;;  %v12381_v33 = vrot.slane %v7517_v60, %v9375_v9 }
 0x6c8   : > { %v7787_v2 = vpop.permute.xlu1 %7786  ;;  %v7783_v11 = vpop.permute.xlu0 %7782  ;;  %v7460_v45 = vrot.slane %v7446_v14, %v9389_v52  ;;  %v7466_v43 = vcombine.high %v7421_v63, %v7453_v58  ;;  %v12385_v21 = vrot.slane %v6429_v23, %v9375_v9  ;;  %v6372_v59 = vrot.slane %v6358_v18, %v9389_v52 }
 0x6c9   : > { %v8153_v19 = vsel %vm13051_vm11, %v8152_v62, %v7783_v11  ;;  %v6378_v54 = vcombine.high %v6333_v16, %v6365_v53  ;;  %v12393_v49 = vrot.slane %v7485_v44, %v9375_v9  ;;  %v7428_v38 = vrot.slane %v7414_v12, %v9389_v52 }
 0x6ca   : > { %8062 = vrot.lane.b32.xlu1 %v7465_v29, %s14145_s25  ;;  %7810 = vrot.lane.b32.xlu0 %v6377_v31, %s14145_s25  ;;  %v8154_v7 = vsel %vm13053_vm9, %v8153_v19, %v7787_v2  ;;  %v12397_v5 = vrot.slane %v7501_v22, %v9375_v9  ;;  %v12404_v63 = vrot.slane %v6397_v25, %v9375_v9  ;;  %vm14154_vm10 = vcmask 80896  }
 0x6cb   : > { %v6340_v13 = vrot.slane %v6326_v32, %v9389_v52  ;;  %v12408_v48 = vrot.slane %v6413_v61, %v9375_v9  ;;  %v12415_v53 = vrot.slane %v7469_v51, %v9375_v9  ;;  %v7467_v62 = vcombine.low %v7428_v38, %v7460_v45 }
 0x6cc   : > { %v7859_v27 = vpop.permute.xlu1 %7858  ;;  %v7791_v40 = vpop.permute.xlu0 %7790  ;;  %v7565_v44 = vcombine.low %v12397_v5, %v12381_v33  ;;  %v12425_v60 = vrot.slane %v6381_v57, %v9375_v9  ;;  %v14151_v57 = vld [vmem:[#allocation168_spill] sm:$0xff]  ;;  %v7468_v12 = vcombine.high %v7428_v38, %v7460_v45  ;;  %v14155_v45 = vld [vmem:[#allocation193_spill] sm:$0xff] }
 0x6cd   : > { %v8172_v20 = vsel %vm4036_vm1, %v6645_v10, %v7859_v27  ;;  %v12400_v58 = vsel %vm13055_vm6, %v8154_v7, %v7791_v40  ;;  %v14147_v10 = vld [vmem:[#allocation54_spill] sm:$0xff]  ;;  %v6379_v2 = vcombine.low %v6340_v13, %v6372_v59  ;;  %v7533_v29 = vcombine.low %v12415_v53, %v12393_v49 }
 0x6ce   : > { %8066 = vrot.lane.b32.xlu1 %v7466_v43, %s14146_s26  ;;  %7814 = vrot.lane.b32.xlu0 %v6378_v54, %s14146_s26  ;;  %v4123_v16 = vsel %vm13052_vm7, %v12187_v55, %v14147_v10  ;;  %v6477_v55 = vcombine.low %v12408_v48, %v12385_v21  ;;  %v6445_v39 = vcombine.low %v12425_v60, %v12404_v63  ;;  %vm13056_vm7 = vcmask 801792   ;;  %v14156_v54 = vld [vmem:[#allocation105_spill] sm:$0xff] }
 0x6cf   : > { %v4125_v8 = vsel %vm13051_vm11, %v4123_v16, %v14148_v56  ;;  %v7573_v11 = vrot.slane %v7565_v44, %v9389_v52  ;;  %vm13065_vm11 = vcmask 785408   ;;  %v6380_v25 = vcombine.high %v6340_v13, %v6372_v59 }
 0x6d0   : > { %v7867_v0 = vpop.permute.xlu1 %7866  ;;  %v7863_v14 = vpop.permute.xlu0 %7862  ;;  %v4127_v18 = vsel %vm13053_vm9, %v4125_v8, %v14151_v57  ;;  %v6485_v22 = vrot.slane %v6477_v55, %v9389_v52  ;;  %v7541_v32 = vrot.slane %v7533_v29, %v9389_v52  ;;  %vm13058_vm9 = vcmask 834560   ;;  %v14163_v8 = vld [vmem:[#allocation206_spill] sm:$0xff] }
 0x6d1   : > { %v8173_v28 = vsel %vm4038_vm2, %v8172_v20, %v7863_v14  ;;  %v4129_v46 = vsel %vm13055_vm6, %v4127_v18, %v14152_v36  ;;  %v6453_v7 = vrot.slane %v6445_v39, %v9389_v52  ;;  %v7518_v43 = vcombine.high %v12332_v41, %v12312_v47 }
 0x6d2   : > { %8070 = vrot.lane.b32.xlu1 %v7467_v62, %s14149_s27  ;;  %v8174_v23 = vsel %vm14150_vm0, %v8173_v28, %v7867_v0  ;;  %7818 = vrot.lane.b32.xlu0 %v6379_v2, %s14149_s27  ;;  %vm13057_vm0 = vcmask 818176   ;;  %v4131_v27 = vsel %vm13065_vm11, %v4129_v46, %v14155_v45  ;;  %v7566_v59 = vcombine.high %v12397_v5, %v12381_v33  ;;  %v14164_v28 = vld [vmem:[#allocation26_spill] sm:$0xff] }
 0x6d3   : > { %v7597_v40 = vcombine.low %v7541_v32, %v7573_v11  ;;  %v4133_v38 = vsel %vm13056_vm7, %v4131_v27, %v14156_v54  ;;  %vm13059_vm6 = vcmask 850944   ;;  %v6430_v13 = vcombine.high %v12327_v30, %v12320_v4  ;;  %v14173_v54 = vld [vmem:[#allocation143_spill] sm:$0xff] }
 0x6d4   : > { %v7875_v31 = vpop.permute.xlu1 %7874  ;;  %v7871_v19 = vpop.permute.xlu0 %7870  ;;  %v6478_v10 = vcombine.high %v12408_v48, %v12385_v21  ;;  %v6509_v44 = vcombine.low %v6453_v7, %v6485_v22  ;;  %v7486_v47 = vcombine.high %v12285_v1, %v12292_v50  ;;  %v7534_v41 = vcombine.high %v12415_v53, %v12393_v49 }
 0x6d5   : > { %v8175_v61 = vsel %vm4042_vm4, %v8174_v23, %v7871_v19  ;;  %v7502_v33 = vcombine.high %v12353_v24, %v12337_v17  ;;  %v6398_v4 = vcombine.high %v12276_v26, %v12304_v42  ;;  %v6446_v30 = vcombine.high %v12425_v60, %v12404_v63 }
 0x6d6   : > { %8074 = vrot.lane.b32.xlu1 %v7468_v12, %s14153_s28  ;;  %v8176_v51 = vsel %vm14154_vm10, %v8175_v61, %v7875_v31  ;;  %7822 = vrot.lane.b32.xlu0 %v6380_v25, %s14153_s28  ;;  %vm14157_vm10 = vcmask 97280   ;;  %v6414_v21 = vcombine.high %v12364_v15, %v12344_v6  ;;  %vm14159_vm7 = vcmask 113664   ;;  %v14169_v61 = vld [vmem:[#allocation40_spill] sm:$0xff] }
 0x6d7   : > { %v7470_v50 = vcombine.high %v12271_v34, %v12299_v3  ;;  %v12480_v17 = vrot.slane %v7518_v43, %v9375_v9  ;;  %v7580_v24 = vrot.slane %v7566_v59, %v9389_v52  ;;  %v7598_v26 = vcombine.high %v7541_v32, %v7573_v11 }
 0x6d8   : > { %v7883_v20 = vpop.permute.xlu1 %7882  ;;  %v7879_v16 = vpop.permute.xlu0 %7878  ;;  %v6382_v42 = vcombine.high %v12243_v35, %v12256_v37  ;;  %v12486_v63 = vrot.slane %v6430_v13, %v9375_v9  ;;  %v6492_v6 = vrot.slane %v6478_v10, %v9389_v52  ;;  %v6510_v48 = vcombine.high %v6453_v7, %v6485_v22  ;;  %v14168_v22 = vld [vmem:[#allocation130_spill] sm:$0xff] }
 0x6d9   : > { %v8177_v5 = vsel %vm14157_vm10, %v8176_v51, %v7879_v16  ;;  %v12490_v53 = vrot.slane %v7486_v47, %v9375_v9  ;;  %v7548_v34 = vrot.slane %v7534_v41, %v9389_v52  ;;  %v7516_v3 = vrot.slane %v7502_v33, %v9375_v9 }
 0x6da   : > { %8078 = vrot.lane.b32.xlu1 %v7597_v40, %s14158_s29  ;;  %v8178_v1 = vsel %vm14159_vm7, %v8177_v5, %v7883_v20  ;;  %7826 = vrot.lane.b32.xlu0 %v6509_v44, %s14158_s29  ;;  %vm14160_vm7 = vcmask 130048   ;;  %v12497_v35 = vrot.slane %v6398_v4, %v9375_v9  ;;  %v6460_v37 = vrot.slane %v6446_v30, %v9389_v52  ;;  %v14174_v44 = vld [vmem:[#allocation80_spill] sm:$0xff] }
 0x6db   : > { %v6428_v62 = vrot.slane %v6414_v21, %v9375_v9  ;;  %vm14162_vm10 = vcmask 146432   ;;  %v4135_v60 = vsel %vm13057_vm0, %v4133_v38, %v14163_v8  ;;  %v7484_v55 = vrot.slane %v7470_v50, %v9375_v9  ;;  %v14178_v50 = vld [vmem:[#allocation181_spill] sm:$0xff]  ;;  %v14184_v8 = vld [vmem:[#allocation171_spill] sm:$0xff] }
 0x6dc   : > { %v7891_v49 = vpop.permute.xlu1 %7890  ;;  %v7887_v15 = vpop.permute.xlu0 %7886  ;;  %v7581_v14 = vcombine.low %v7516_v3, %v12480_v17  ;;  %v7599_v29 = vcombine.low %v7548_v34, %v7580_v24  ;;  %v4137_v39 = vsel %vm13058_vm9, %v4135_v60, %v14164_v28  ;;  %v6396_v23 = vrot.slane %v6382_v42, %v9375_v9  ;;  %v14179_v42 = vld [vmem:[#allocation57_spill] sm:$0xff] }
 0x6dd   : > { %v8179_v0 = vsel %vm14160_vm7, %v8178_v1, %v7887_v15  ;;  %v6493_v57 = vcombine.low %v6428_v62, %v12486_v63  ;;  %v6511_v11 = vcombine.low %v6460_v37, %v6492_v6  ;;  %vm13060_vm7 = vcmask 867328  }
 0x6de   : > { %8082 = vrot.lane.b32.xlu1 %v7598_v26, %s14161_s30  ;;  %v8180_v56 = vsel %vm14162_vm10, %v8179_v0, %v7891_v49  ;;  %7830 = vrot.lane.b32.xlu0 %v6510_v48, %s14161_s30  ;;  %v7549_v31 = vcombine.low %v7484_v55, %v12490_v53  ;;  %vm14165_vm10 = vcmask 162816   ;;  %v6461_v36 = vcombine.low %v6396_v23, %v12497_v35 }
 0x6df   : > { %vm14167_vm0 = vcmask 179200   ;;  %v4139_v9 = vsel %vm13059_vm6, %v4137_v39, %v14168_v22  ;;  %v7589_v19 = vrot.slane %v7581_v14, %v9389_v52  ;;  %v7600_v32 = vcombine.high %v7548_v34, %v7580_v24 }
 0x6e0   : > { %v7899_v2 = vpop.permute.xlu1 %7898  ;;  %v7895_v18 = vpop.permute.xlu0 %7894  ;;  %v4141_v7 = vsel %vm13060_vm7, %v4139_v9, %v14169_v61  ;;  %vm13061_vm9 = vcmask 883712   ;;  %v6501_v51 = vrot.slane %v6493_v57, %v9389_v52  ;;  %v6512_v27 = vcombine.high %v6460_v37, %v6492_v6  ;;  %v14189_v57 = vld [vmem:[#allocation196_spill] sm:$0xff] }
 0x6e1   : > { %v8181_v12 = vsel %vm14165_vm10, %v8180_v56, %v7895_v18  ;;  %vm13062_vm10 = vcmask 900096   ;;  %v7557_v43 = vrot.slane %v7549_v31, %v9389_v52  ;;  %v6469_v20 = vrot.slane %v6461_v36, %v9389_v52  ;;  %v14191_v36 = vld [vmem:[#allocation216_spill] sm:$0xff] }
 0x6e2   : > { %8086 = vrot.lane.b32.xlu1 %v7599_v29, %s14166_s2  ;;  %v8182_v46 = vsel %vm14167_vm0, %v8181_v12, %v7899_v2  ;;  %7834 = vrot.lane.b32.xlu0 %v6511_v11, %s14166_s2  ;;  %vm14170_vm0 = vcmask 195584   ;;  %vm14172_vm6 = vcmask 211968   ;;  %v4143_v38 = vsel %vm13061_vm9, %v4141_v7, %v14173_v54  ;;  %v14188_v29 = vld [vmem:[#allocation120_spill] sm:$0xff]  ;;  %v14190_v12 = vld [vmem:[#allocation95_spill] sm:$0xff]  ;;  %v14198_v7 = vld [vmem:[#allocation70_spill] sm:$0xff] }
 0x6e3   : > { %v7582_v13 = vcombine.high %v7516_v3, %v12480_v17  ;;  %v7601_v16 = vcombine.low %v7557_v43, %v7589_v19  ;;  %v4145_v47 = vsel %vm13062_vm10, %v4143_v38, %v14174_v44  ;;  %vm13063_vm7 = vcmask 916480   ;;  %v14203_v38 = vld [vmem:[#allocation146_spill] sm:$0xff] }
 0x6e4   : > { %v7907_v25 = vpop.permute.xlu1 %7906  ;;  %v7903_v45 = vpop.permute.xlu0 %7902  ;;  %v6494_v41 = vcombine.high %v6428_v62, %v12486_v63  ;;  %v6513_v5 = vcombine.low %v6469_v20, %v6501_v51  ;;  %v7550_v4 = vcombine.high %v7484_v55, %v12490_v53  ;;  %v6462_v21 = vcombine.high %v6396_v23, %v12497_v35  ;;  %v14183_v35 = vld [vmem:[#allocation159_spill] sm:$0xff] }
 0x6e5   : > { %v8183_v59 = vsel %vm14170_vm0, %v8182_v46, %v7903_v45  ;;  %vm13064_vm0 = vcmask 932864   ;;  %vm14177_vm9 = vcmask 244736   ;;  %v4147_v17 = vsel %vm13063_vm7, %v4145_v47, %v14178_v50  ;;  %v14192_v46 = vld [vmem:[#allocation217_spill] sm:$0xff]  ;;  %v14211_v50 = vld [vmem:[#allocation43_spill] sm:$0xff] }
 0x6e6   : > { %8090 = vrot.lane.b32.xlu1 %v7600_v32, %s14171_s3  ;;  %v8184_v40 = vsel %vm14172_vm6, %v8183_v59, %v7907_v25  ;;  %7838 = vrot.lane.b32.xlu0 %v6512_v27, %s14171_s3  ;;  %vm14175_vm6 = vcmask 228352   ;;  %v7596_v24 = vrot.slane %v7582_v13, %v9389_v52  ;;  %v7602_v26 = vcombine.high %v7557_v43, %v7589_v19  ;;  %v14196_v25 = vld [vmem:[#allocation133_spill] sm:$0xff]  ;;  %v14199_v27 = vld [vmem:[#allocation207_spill] sm:$0xff] }
 0x6e7   : > { %v4149_v63 = vsel %vm13064_vm0, %v4147_v17, %v14179_v42  ;;  %vm4150_vm10 = vcmask 949248   ;;  %v6508_v6 = vrot.slane %v6494_v41, %v9389_v52  ;;  %v6514_v48 = vcombine.high %v6469_v20, %v6501_v51  ;;  %v14200_v20 = vld [vmem:[#allocation108_spill] sm:$0xff]  ;;  %v14205_v47 = vld [vmem:[#allocation29_spill] sm:$0xff] }
 0x6e8   : > { %v7915_v10 = vpop.permute.xlu1 %7914  ;;  %v7911_v33 = vpop.permute.xlu0 %7910  ;;  %v7564_v53 = vrot.slane %v7550_v4, %v9389_v52  ;;  %v6476_v3 = vrot.slane %v6462_v21, %v9389_v52  ;;  %vm14182_vm7 = vcmask 277504   ;;  %v4151_v37 = vsel %vm4150_vm10, %v4149_v63, %v14183_v35 }
 0x6e9   : > { %v8185_v30 = vsel %vm14175_vm6, %v8184_v40, %v7911_v33  ;;  %vm4152_vm6 = vcmask 965632   ;;  %vm13070_vm0 = vcmask 982016   ;;  %vm14185_vm11 = vcmask 293888  }
 0x6ea   : > { %8094 = vrot.lane.b32.xlu1 %v7601_v16, %s14176_s4  ;;  %v8186_v1 = vsel %vm14177_vm9, %v8185_v30, %v7915_v10  ;;  %7842 = vrot.lane.b32.xlu0 %v6513_v5, %s14176_s4  ;;  %vm14180_vm9 = vcmask 261120   ;;  %v7603_v56 = vcombine.low %v7564_v53, %v7596_v24  ;;  %v4153_v60 = vsel %vm4152_vm6, %v4151_v37, %v14184_v8  ;;  %v14208_v5 = vld [vmem:[#allocation184_spill] sm:$0xff] }
 0x6eb   : > { %v6515_v14 = vcombine.low %v6476_v3, %v6508_v6  ;;  %v4155_v28 = vsel %vm13070_vm0, %v4153_v60, %v14188_v29  ;;  %v7604_v23 = vcombine.high %v7564_v53, %v7596_v24  ;;  %v6516_v31 = vcombine.high %v6476_v3, %v6508_v6  ;;  %v14226_v60 = vld [vmem:[#allocation69_spill] sm:$0xff]  ;;  %v14229_v29 = vld [vmem:[#allocation170_spill] sm:$0xff] }
 0x6ec   : > { %v7923_v49 = vpop.permute.xlu1 %7922  ;;  %v7919_v15 = vpop.permute.xlu0 %7918  ;;  %v14193_v22 = vcombine.low %v14191_v36, %v14192_v46  ;;  %vm14216_vm0 = vcmask 441344  }
 0x6ed   : > { %v8187_v34 = vsel %vm14180_vm9, %v8186_v1, %v7919_v15  ;;  %vm13067_vm9 = vcmask 998400   ;;  %v14217_v15 = vld [vmem:[#allocation83_spill] sm:$0xff] }
 0x6ee   : > { %8098 = vrot.lane.b32.xlu1 %v7602_v26, %s14181_s12  ;;  %v8188_v0 = vsel %vm14182_vm7, %v8187_v34, %v7923_v49  ;;  %7846 = vrot.lane.b32.xlu0 %v6514_v48, %s14181_s12  ;;  %v4157_v18 = vsel %vm13067_vm9, %v4155_v28, %v14189_v57  ;;  %vm13069_vm7 = vcmask 1014784   ;;  %v4162_v9 = vsel %vm4036_vm1, %v14193_v22, %v14190_v12  ;;  %v14214_v49 = vld [vmem:[#allocation158_spill] sm:$0xff]  ;;  %v14220_v34 = vld [vmem:[#allocation119_spill] sm:$0xff] }
 0x6ef   : > { %v4163_v32 = vsel %vm4038_vm2, %v4162_v9, %v14196_v25  ;;  %vm14197_vm9 = vcmask 343040   ;;  %v4159_v51 = vsel %vm13069_vm7, %v4157_v18, %v14198_v7  ;;  %vm14201_vm1 = vcmask 48128   ;;  %v14235_v12 = vld [vmem:[#allocation107_spill] sm:$0xff]  ;;  %v14237_v9 = vld [vmem:[#allocation208_spill] sm:$0xff] }
 0x6f0   : > { %v7931_v62 = vpop.permute.xlu1 %7930  ;;  %v7927_v55 = vpop.permute.xlu0 %7926  ;;  %v4164_v40 = vsel %vm14201_vm1, %v4163_v32, %v14200_v20  ;;  %vm14204_vm2 = vcmask 375808   ;;  %vm14209_vm7 = vcmask 97280   ;;  %vm14210_vm1 = vcmask 408576   ;;  %v14239_v25 = vld [vmem:[#allocation28_spill] sm:$0xff] }
 0x6f1   : > { %v8189_v2 = vsel %vm14185_vm11, %v8188_v0, %v7927_v55  ;;  %vm13068_vm11 = vcmask 1031168   ;;  %v4165_v13 = vsel %vm4042_vm4, %v4164_v40, %v14203_v38  ;;  %vm14213_vm4 = vcmask 424960  }
 0x6f2   : > { %8102 = vrot.lane.b32.xlu1 %v7603_v56, %s14186_s13  ;;  %v8190_v52 = vsel %vm14187_vm12, %v8189_v2, %v7931_v62  ;;  %7850 = vrot.lane.b32.xlu0 %v6515_v14, %s14186_s13  ;;  %vm14194_vm12 = vcmask 326656   ;;  %v12580_v43 = vsel %vm13068_vm11, %v4159_v51, %v14199_v27  ;;  %vm14207_vm11 = vcmask 392192   ;;  %v14223_v62 = vld [vmem:[#allocation56_spill] sm:$0xff]  ;;  %v14243_v27 = vld [vmem:[#allocation42_spill] sm:$0xff] }
 0x6f3   : > { %v14241_v51 = vld [vmem:[#allocation132_spill] sm:$0xff] }
 0x6f4   : > { %v7939_v39 = vpop.permute.xlu1 %7938  ;;  %v7935_v11 = vpop.permute.xlu0 %7934 }
 0x6f5   : > { %v8191_v19 = vsel %vm14194_vm12, %v8190_v52, %v7935_v11  ;;  %vm14202_vm12 = vcmask 359424   ;;  %v14233_v11 = vld [vmem:[#allocation195_spill] sm:$0xff] }
 0x6f6   : > { %8106 = vrot.lane.b32.xlu1 %v7604_v23, %s14195_s15  ;;  %7854 = vrot.lane.b32.xlu0 %v6516_v31, %s14195_s15  ;;  %v8192_v61 = vsel %vm14197_vm9, %v8191_v19, %v7939_v39  ;;  %vm14206_vm9 = vcmask 80896   ;;  %v14231_v39 = vld [vmem:[#allocation94_spill] sm:$0xff] }
 0x6f7   : > { %v4166_v41 = vsel %vm14206_vm9, %v4165_v13, %v14205_v47  ;;  %vm14221_vm9 = vcmask 162816   ;;  %v14247_v13 = vld [vmem:[#allocation82_spill] sm:$0xff]  ;;  %v14249_v47 = vld [vmem:[#allocation183_spill] sm:$0xff] }
 0x6f8   : > { %v7947_v45 = vpop.permute.xlu1 %7946  ;;  %v7943_v59 = vpop.permute.xlu0 %7942  ;;  %v4167_v4 = vsel %vm14209_vm7, %v4166_v41, %v14208_v5  ;;  %vm14219_vm7 = vcmask 457728  }
 0x6f9   : > { %v8193_v54 = vsel %vm14202_vm12, %v8192_v61, %v7943_v59  ;;  %vm14212_vm12 = vcmask 113664  }
 0x6fa   : > { %8246 = vrot.lane.b32.xlu1 %v12580_v43, %s13503_s14  ;;  %v8194_v10 = vsel %vm14204_vm2, %v8193_v54, %v7947_v45  ;;  %v4168_v17 = vsel %vm14212_vm12, %v4167_v4, %v14211_v50  ;;  %vm14215_vm2 = vcmask 130048   ;;  %vm14224_vm12 = vcmask 179200   ;;  %v14245_v54 = vld [vmem:[#allocation145_spill] sm:$0xff]  ;;  %v14255_v50 = vld [vmem:[#allocation172_spill] sm:$0xff] }
 0x6fb   : > { %v4169_v26 = vsel %vm14215_vm2, %v4168_v17, %v14214_v49  ;;  %vm14228_vm2 = vcmask 506880  }
 0x6fc   : > { %v7955_v16 = vpop.permute.xlu1 %7954  ;;  %v7951_v44 = vpop.permute.xlu0 %7950 }
 0x6fd   : > { %v8195_v33 = vsel %vm14207_vm11, %v8194_v10, %v7951_v44  ;;  %vm14218_vm11 = vcmask 146432  }
 0x6fe   : > { %v8196_v30 = vsel %vm14210_vm1, %v8195_v33, %v7955_v16  ;;  %v4170_v48 = vsel %vm14218_vm11, %v4169_v26, %v14217_v15  ;;  %vm14222_vm1 = vcmask 474112   ;;  %vm14230_vm11 = vcmask 211968   ;;  %v14251_v33 = vld [vmem:[#allocation58_spill] sm:$0xff]  ;;  %v14257_v26 = vld [vmem:[#allocation121_spill] sm:$0xff] }
 0x6ff   : > { %v4171_v3 = vsel %vm14221_vm9, %v4170_v48, %v14220_v34  ;;  %vm14234_vm9 = vcmask 244736  }
 0x700   : > { %v7963_v21 = vpop.permute.xlu1 %7962  ;;  %v7959_v1 = vpop.permute.xlu0 %7958  ;;  %v4172_v56 = vsel %vm14224_vm12, %v4171_v3, %v14223_v62  ;;  %vm14238_vm12 = vcmask 277504   ;;  %v14263_v3 = vld [vmem:[#allocation210_spill] sm:$0xff]  ;;  %v14265_v62 = vld [vmem:[#allocation96_spill] sm:$0xff] }
 0x701   : > { %v8197_v24 = vsel %vm14213_vm4, %v8196_v30, %v7959_v1  ;;  %vm14225_vm4 = vcmask 490496  }
 0x702   : > { %v8198_v42 = vsel %vm14216_vm0, %v8197_v24, %v7963_v21  ;;  %vm14227_vm0 = vcmask 195584   ;;  %v14253_v21 = vld [vmem:[#allocation160_spill] sm:$0xff] }
 0x703   : > { %v4173_v55 = vsel %vm14227_vm0, %v4172_v56, %v14226_v60  ;;  %vm14242_vm0 = vcmask 310272  }
 0x704   : > { %v7971_v63 = vpop.permute.xlu1 %7970  ;;  %v7967_v6 = vpop.permute.xlu0 %7966  ;;  %v4174_v28 = vsel %vm14230_vm11, %v4173_v55, %v14229_v29  ;;  %vm14246_vm11 = vcmask 343040  }
 0x705   : > { %v8199_v53 = vsel %vm14219_vm7, %v8198_v42, %v7967_v6  ;;  %vm14232_vm7 = vcmask 228352  }
 0x706   : > { %v8200_v0 = vsel %vm14222_vm1, %v8199_v53, %v7971_v63  ;;  %v4175_v23 = vsel %vm14232_vm7, %v4174_v28, %v14231_v39  ;;  %vm14236_vm1 = vcmask 261120   ;;  %vm14248_vm7 = vcmask 359424   ;;  %v14259_v63 = vld [vmem:[#allocation197_spill] sm:$0xff]  ;;  %v14261_v53 = vld [vmem:[#allocation71_spill] sm:$0xff] }
 0x707   : > { %v4176_v31 = vsel %vm14234_vm9, %v4175_v23, %v14233_v11  ;;  %vm14250_vm9 = vcmask 375808   ;;  %v14268_v28 = vld [vmem:[#allocation109_spill] sm:$0xff]  ;;  %v14269_v23 = vld [vmem:[#allocation147_spill] sm:$0xff] }
 0x708   : > { %v7979_v35 = vpop.permute.xlu1 %7978  ;;  %v7975_v37 = vpop.permute.xlu0 %7974  ;;  %v4177_v36 = vsel %vm14236_vm1, %v4176_v31, %v14235_v12  ;;  %vm14252_vm1 = vcmask 392192  }
 0x709   : > { %v8201_v8 = vsel %vm14225_vm4, %v8200_v0, %v7975_v37  ;;  %v4178_v19 = vsel %vm14238_vm12, %v4177_v36, %v14237_v9  ;;  %vm14240_vm4 = vcmask 293888   ;;  %vm14254_vm12 = vcmask 408576   ;;  %v14270_v36 = vld [vmem:[#allocation30_spill] sm:$0xff] }
 0x70a   : > { %v8202_v14 = vsel %vm14228_vm2, %v8201_v8, %v7979_v35  ;;  %v4179_v32 = vsel %vm14240_vm4, %v4178_v19, %v14239_v25  ;;  %vm14244_vm2 = vcmask 326656   ;;  %vm14256_vm4 = vcmask 424960   ;;  %v14267_v8 = vld [vmem:[#allocation134_spill] sm:$0xff]  ;;  %v14271_v25 = vld [vmem:[#allocation185_spill] sm:$0xff] }
 0x70b   : > { %v4180_v45 = vsel %vm14242_vm0, %v4179_v32, %v14241_v51  ;;  %vm14258_vm0 = vcmask 441344  }
 0x70c   : > { %v7987_v2 = vpop.permute.xlu1 %7986  ;;  %v7983_v52 = vpop.permute.xlu0 %7982  ;;  %v4181_v59 = vsel %vm14244_vm2, %v4180_v45, %v14243_v27  ;;  %vm14260_vm2 = vcmask 457728  }
 0x70d   : > { %v4182_v38 = vsel %vm14246_vm11, %v4181_v59, %v14245_v54  ;;  %vm14262_vm11 = vcmask 474112   ;;  %v8203_v19 = vsel %vm4098_vm15, %v8202_v14, %v7983_v52  ;;  %v14272_v59 = vld [vmem:[#allocation44_spill] sm:$0xff] }
 0x70e   : > { %v4183_v10 = vsel %vm14248_vm7, %v4182_v38, %v14247_v13  ;;  %vm14264_vm7 = vcmask 490496   ;;  %v8204_v45 = vsel %vm4100_vm14, %v8203_v19, %v7987_v2  ;;  %v14274_v13 = vld [vmem:[#allocation162_spill] sm:$0xff]  ;;  %v14276_v14 = vld [vmem:[#allocation84_spill] sm:$0xff] }
 0x70f   : > { %v4184_v41 = vsel %vm14250_vm9, %v4183_v10, %v14249_v47  ;;  %vm14266_vm9 = vcmask 506880  }
 0x710   : > { %v7995_v57 = vpop.permute.xlu1 %7994  ;;  %v7991_v18 = vpop.permute.xlu0 %7990  ;;  %v4185_v5 = vsel %vm14252_vm1, %v4184_v41, %v14251_v33  ;;  %vm14273_vm1 = vcmask 605184  }
 0x711   : > { %v4186_v1 = vsel %vm14254_vm12, %v4185_v5, %v14253_v21  ;;  %v8205_v38 = vsel %vm4102_vm13, %v8204_v45, %v7991_v18  ;;  %vm14275_vm12 = vcmask 621568   ;;  %v14278_v21 = vld [vmem:[#allocation123_spill] sm:$0xff]  ;;  %v14280_v18 = vld [vmem:[#allocation60_spill] sm:$0xff] }
 0x712   : > { %v4187_v17 = vsel %vm14256_vm4, %v4186_v1, %v14255_v50  ;;  %v8206_v41 = vsel %vm4104_vm3, %v8205_v38, %v7995_v57  ;;  %vm14277_vm4 = vcmask 637952  }
 0x713   : > { %v4188_v42 = vsel %vm14258_vm0, %v4187_v17, %v14257_v26  ;;  %vm14282_vm0 = vmmov %vm14275_vm12 }
 0x714   : > { %v8003_v46 = vpop.permute.xlu1 %8002  ;;  %v7999_v22 = vpop.permute.xlu0 %7998  ;;  %v4189_v6 = vsel %vm14260_vm2, %v4188_v42, %v14259_v63  ;;  %v14283_v63 = vld [vmem:[#allocation73_spill] sm:$0xff]  ;;  %vm14285_vm2 = vmmov %vm14277_vm4 }
 0x715   : > { %v4190_v34 = vsel %vm14262_vm11, %v4189_v6, %v14261_v53  ;;  %v8207_v5 = vsel %vm4106_vm5, %v8206_v41, %v7999_v22  ;;  %v14286_v22 = vld [vmem:[#allocation174_spill] sm:$0xff]  ;;  %vm14289_vm11 = vcmask 719872  }
 0x716   : > { %v4191_v0 = vsel %vm14264_vm7, %v4190_v34, %v14263_v3 }
 0x717   : > { %v4192_v56 = vsel %vm14266_vm9, %v4191_v0, %v14265_v62  ;;  %v14288_v62 = vld [vmem:[#allocation98_spill] sm:$0xff]  ;;  %vm14292_vm9 = vcmask 736256  }
 0x718   : > { %v8011_v61 = vpop.permute.xlu1 %8010  ;;  %v8007_v7 = vpop.permute.xlu0 %8006  ;;  %v4193_v60 = vsel %vm4098_vm15, %v4192_v56, %v14267_v8 }
 0x719   : > { %v4194_v39 = vsel %vm4100_vm14, %v4193_v60, %v14268_v28  ;;  %vm14279_vm14 = vmmov %vm14273_vm1 }
 0x71a   : > { %v4195_v11 = vsel %vm4102_vm13, %v4194_v39, %v14269_v23  ;;  %v8208_v50 = vsel %vm14279_vm14, %v8207_v5, %v8003_v46  ;;  %vm14281_vm13 = vcmask 670720   ;;  %v14294_v23 = vld [vmem:[#allocation111_spill] sm:$0xff]  ;;  %vm14299_vm14 = vmmov %vm14289_vm11 }
 0x71b   : > { %v4196_v9 = vsel %vm4104_vm3, %v4195_v11, %v14270_v36  ;;  %v8209_v42 = vsel %vm14282_vm0, %v8208_v50, %v8007_v7  ;;  %vm14284_vm3 = vcmask 687104   ;;  %vm14290_vm7 = vmmov %vm14281_vm13  ;;  %v14291_v7 = vld [vmem:[#allocation199_spill] sm:$0xff] }
 0x71c   : > { %v8019_v20 = vpop.permute.xlu1 %8018  ;;  %v8015_v40 = vpop.permute.xlu0 %8014  ;;  %v4197_v32 = vsel %vm4106_vm5, %v4196_v9, %v14271_v25  ;;  %v8210_v53 = vsel %vm14285_vm2, %v8209_v42, %v8011_v61  ;;  %vm14287_vm5 = vcmask 703488   ;;  %vm14302_vm0 = vmmov %vm14292_vm9 }
 0x71d   : > { %v4198_v54 = vsel %vm14273_vm1, %v4197_v32, %v14272_v59  ;;  %v8211_v0 = vsel %vm4114_vm8, %v8210_v53, %v8015_v40  ;;  %vm14293_vm1 = vmmov %vm14284_vm3  ;;  %v14297_v40 = vld [vmem:[#allocation209_spill] sm:$0xff]  ;;  %v14300_v32 = vld [vmem:[#allocation32_spill] sm:$0xff] }
 0x71e   : > { %v4199_v10 = vsel %vm14275_vm12, %v4198_v54, %v14274_v13  ;;  %v8212_v8 = vsel %vm14290_vm7, %v8211_v0, %v8019_v20  ;;  %vm14295_vm12 = vcmask 752640   ;;  %v14303_v54 = vld [vmem:[#allocation136_spill] sm:$0xff]  ;;  %vm14310_vm7 = vcmask 834560  }
 0x71f   : > { %v4200_v52 = vsel %vm14277_vm4, %v4199_v10, %v14276_v14  ;;  %vm14296_vm4 = vmmov %vm14287_vm5 }
 0x720   : > { %v8027_v16 = vpop.permute.xlu1 %8026  ;;  %v8023_v44 = vpop.permute.xlu0 %8022  ;;  %v4201_v2 = vsel %vm4114_vm8, %v4200_v52, %v14278_v21  ;;  %vm14298_vm8 = vcmask 769024   ;;  %vm14305_vm2 = vmmov %vm14295_vm12  ;;  %v14309_v52 = vld [vmem:[#allocation149_spill] sm:$0xff]  ;;  %v14312_v21 = vld [vmem:[#allocation86_spill] sm:$0xff] }
 0x721   : > { %v4202_v26 = vsel %vm14281_vm13, %v4201_v2, %v14280_v18  ;;  %v8213_v39 = vsel %vm14293_vm1, %v8212_v8, %v8023_v44  ;;  %vm14301_vm13 = vcmask 785408   ;;  %vm14313_vm1 = vcmask 850944  }
 0x722   : > { %v4203_v57 = vsel %vm14284_vm3, %v4202_v26, %v14283_v63  ;;  %v8214_v36 = vsel %vm14296_vm4, %v8213_v39, %v8027_v16  ;;  %vm14304_vm3 = vcmask 801792   ;;  %v14306_v16 = vld [vmem:[#allocation46_spill] sm:$0xff] }
 0x723   : > { %v4204_v3 = vsel %vm14287_vm5, %v4203_v57, %v14286_v22  ;;  %vm14307_vm5 = vcmask 818176   ;;  %vm14315_vm4 = vmmov %vm14304_vm3  ;;  %v14320_v57 = vld [vmem:[#allocation187_spill] sm:$0xff] }
 0x724   : > { %v12638_v4 = vpop.permute.xlu1 %8034  ;;  %v8031_v30 = vpop.permute.xlu0 %8030  ;;  %v4205_v46 = vsel %vm14289_vm11, %v4204_v3, %v14288_v62  ;;  %vm14308_vm11 = vmmov %vm14298_vm8 }
 0x725   : > { %v4206_v28 = vsel %vm14292_vm9, %v4205_v46, %v14291_v7  ;;  %v8215_v25 = vsel %vm14299_vm14, %v8214_v36, %v8031_v30  ;;  %vm14311_vm9 = vmmov %vm14301_vm13 }
 0x726   : > { %v4207_v61 = vsel %vm14295_vm12, %v4206_v28, %v14294_v23  ;;  %v8216_v59 = vsel %vm14302_vm0, %v8215_v25, %v12638_v4  ;;  %vm14314_vm12 = vmmov %vm14311_vm9 }
 0x727   : > { %v4208_v19 = vsel %vm14298_vm8, %v4207_v61, %v14297_v40  ;;  %vm14316_vm8 = vmmov %vm14304_vm3 }
 0x728   : > { %v12644_v24 = vpop.permute.xlu1 %8042  ;;  %v8039_v49 = vpop.permute.xlu0 %8038  ;;  %v4209_v20 = vsel %vm14301_vm13, %v4208_v19, %v14300_v32  ;;  %vm14317_vm14 = vmmov %vm14307_vm5 }
 0x729   : > { %v4210_v38 = vsel %vm14304_vm3, %v4209_v20, %v14303_v54  ;;  %v8217_v13 = vsel %vm14305_vm2, %v8216_v59, %v8039_v49  ;;  %vm14318_vm13 = vmmov %vm14307_vm5  ;;  %vm14321_vm3 = vcmask 867328   ;;  %v14351_v54 = vld [vmem:[#allocation72_spill] sm:$0xff] }
 0x72a   : > { %v4211_v10 = vsel %vm14307_vm5, %v4210_v38, %v14306_v16  ;;  %v8218_v30 = vsel %vm14308_vm11, %v8217_v13, %v12644_v24  ;;  %vm14319_vm0 = vmmov %vm14310_vm7  ;;  %vm14325_vm11 = vcmask 883712   ;;  %v14353_v16 = vld [vmem:[#allocation212_spill] sm:$0xff] }
 0x72b   : > { %v4212_v5 = vsel %vm14310_vm7, %v4211_v10, %v14309_v52  ;;  %vm14322_vm2 = vmmov %vm14319_vm0 }
 0x72c   : > { %v12650_v15 = vpop.permute.xlu1 %8046  ;;  %v12652_v48 = vpop.permute.xlu0 %7794  ;;  %v4213_v2 = vsel %vm14313_vm1, %v4212_v5, %v14312_v21  ;;  %vm14323_vm5 = vmmov %vm14313_vm1  ;;  %v14359_v5 = vld [vmem:[#allocation110_spill] sm:$0xff] }
 0x72d   : > { %v8219_v4 = vsel %vm14311_vm9, %v8218_v30, %v12650_v15  ;;  %v8156_v49 = vsel %vm14314_vm12, %v12400_v58, %v12652_v48  ;;  %v4214_v53 = vsel %vm14321_vm3, %v4213_v2, %v14320_v57  ;;  %v14324_v48 = vld [vmem:[#allocation59_spill] sm:$0xff]  ;;  %vm14326_vm7 = vmmov %vm14313_vm1 }
 0x72e   : > { %vm14327_vm9 = vmmov %vm14321_vm3 }
 0x72f   : > { %vm14328_vm1 = vmmov %vm14321_vm3 }
 0x730   : > { %v12658_v35 = vpop.permute.xlu1 %8050  ;;  %v12660_v37 = vpop.permute.xlu0 %7798  ;;  %vm14329_vm12 = vmmov %vm14325_vm11 }
 0x731   : > { %v8220_v50 = vsel %vm14315_vm4, %v8219_v4, %v12658_v35  ;;  %v8157_v24 = vsel %vm14316_vm8, %v8156_v49, %v12660_v37  ;;  %v4215_v35 = vsel %vm14325_vm11, %v4214_v53, %v14324_v48  ;;  %vm14330_vm4 = vmmov %vm14325_vm11  ;;  %vm14331_vm8 = vcmask 900096  }
 0x734   : > { %v8055_v55 = vpop.permute.xlu1 %8054  ;;  %v7803_v29 = vpop.permute.xlu0 %7802 }
 0x735   : > { %v8221_v18 = vsel %vm14317_vm14, %v8220_v50, %v8055_v55  ;;  %v8158_v42 = vsel %vm14318_vm13, %v8157_v24, %v7803_v29  ;;  %vm14333_vm14 = vmmov %vm14331_vm8 }
 0x736   : > { %vm14334_vm13 = vmmov %vm14331_vm8 }
 0x738   : > { %v8059_v31 = vpop.permute.xlu1 %8058  ;;  %v7807_v12 = vpop.permute.xlu0 %7806 }
 0x739   : > { %v8222_v15 = vsel %vm14319_vm0, %v8221_v18, %v8059_v31  ;;  %v8159_v22 = vsel %vm14322_vm2, %v8158_v42, %v7807_v12  ;;  %v14332_v12 = vld [vmem:[#allocation161_spill] sm:$0xff]  ;;  %vm14335_vm0 = vcmask 916480  }
 0x73a   : > { %vm14337_vm3 = vmmov %vm14335_vm0 }
 0x73b   : > { %vm14338_vm2 = vmmov %vm14335_vm0 }
 0x73c   : > { %v8063_v51 = vpop.permute.xlu1 %8062  ;;  %v7811_v27 = vpop.permute.xlu0 %7810 }
 0x73d   : > { %v8223_v58 = vsel %vm14323_vm5, %v8222_v15, %v8063_v51  ;;  %v8160_v37 = vsel %vm14326_vm7, %v8159_v22, %v7811_v27  ;;  %v4216_v51 = vsel %vm14333_vm14, %v4215_v35, %v14332_v12  ;;  %v14336_v27 = vld [vmem:[#allocation173_spill] sm:$0xff]  ;;  %vm14339_vm5 = vcmask 932864  }
 0x73e   : > { %vm14340_vm11 = vmmov %vm14339_vm5 }
 0x73f   : > { %vm14342_vm7 = vmmov %vm14339_vm5 }
 0x740   : > { %v8067_v47 = vpop.permute.xlu1 %8066  ;;  %v7815_v33 = vpop.permute.xlu0 %7814 }
 0x741   : > { %v8224_v55 = vsel %vm14327_vm9, %v8223_v58, %v8067_v47  ;;  %v8161_v3 = vsel %vm14328_vm1, %v8160_v37, %v7815_v33  ;;  %v4217_v47 = vsel %vm14337_vm3, %v4216_v51, %v14336_v27  ;;  %vm14343_vm9 = vcmask 982016  }
 0x742   : > { %vm14345_vm1 = vmmov %vm14343_vm9 }
 0x744   : > { %v8071_v1 = vpop.permute.xlu1 %8070  ;;  %v7819_v17 = vpop.permute.xlu0 %7818 }
 0x745   : > { %v8225_v29 = vsel %vm14329_vm12, %v8224_v55, %v8071_v1  ;;  %v8162_v0 = vsel %vm14330_vm4, %v8161_v3, %v7819_v17  ;;  %vm14346_vm12 = vcmask 998400  }
 0x746   : > { %vm14347_vm4 = vmmov %vm14346_vm12 }
 0x747   : > { %vm14356_vm3 = vmmov %vm14347_vm4 }
 0x748   : > { %v8075_v6 = vpop.permute.xlu1 %8074  ;;  %v7823_v34 = vpop.permute.xlu0 %7822 }
 0x749   : > { %v8226_v62 = vsel %vm14331_vm8, %v8225_v29, %v8075_v6  ;;  %v8163_v8 = vsel %vm14334_vm13, %v8162_v0, %v7823_v34  ;;  %v14341_v34 = vld [vmem:[#allocation122_spill] sm:$0xff]  ;;  %vm14348_vm8 = vcmask 1014784   ;;  %vm14350_vm13 = vcmask 1031168  }
 0x74a   : > { %vm14349_vm14 = vmmov %vm14348_vm8 }
 0x74c   : > { %v8079_v56 = vpop.permute.xlu1 %8078  ;;  %v7827_v60 = vpop.permute.xlu0 %7826 }
 0x74d   : > { %v8227_v7 = vsel %vm14335_vm0, %v8226_v62, %v8079_v56  ;;  %v8164_v33 = vsel %vm14338_vm2, %v8163_v8, %v7827_v60  ;;  %v4218_v56 = vsel %vm14342_vm7, %v4217_v47, %v14341_v34  ;;  %v14344_v60 = vld [vmem:[#allocation198_spill] sm:$0xff]  ;;  %vm14352_vm0 = vmmov %vm14350_vm13 }
 0x74e   : > { %vm14358_vm2 = vmmov %vm14348_vm8 }
 0x750   : > { %v8083_v11 = vpop.permute.xlu1 %8082  ;;  %v7831_v9 = vpop.permute.xlu0 %7830 }
 0x751   : > { %v8228_v1 = vsel %vm14339_vm5, %v8227_v7, %v8083_v11  ;;  %v8165_v28 = vsel %vm14340_vm11, %v8164_v33, %v7831_v9  ;;  %v4219_v11 = vsel %vm4150_vm10, %v4218_v56, %v14344_v60  ;;  %vm14362_vm5 = vcmask 261120  }
 0x752   : > { %v4220_v38 = vsel %vm4152_vm6, %v4219_v11, %v14351_v54  ;;  %vm14364_vm11 = vcmask 785408   ;;  %vm14366_vm7 = vmmov %vm14362_vm5 }
 0x754   : > { %v8087_v45 = vpop.permute.xlu1 %8086  ;;  %v7835_v44 = vpop.permute.xlu0 %7834 }
 0x755   : > { %v8229_v17 = vsel %vm4150_vm10, %v8228_v1, %v8087_v45  ;;  %v8166_v39 = vsel %vm4150_vm10, %v8165_v28, %v7835_v44  ;;  %vm14354_vm10 = vmmov %vm14345_vm1 }
 0x756   : > { %v4221_v10 = vsel %vm14354_vm10, %v4220_v38, %v14353_v16 }
 0x758   : > { %v8091_v41 = vpop.permute.xlu1 %8090  ;;  %v7839_v14 = vpop.permute.xlu0 %7838 }
 0x759   : > { %v8230_v23 = vsel %vm4152_vm6, %v8229_v17, %v8091_v41  ;;  %v8167_v36 = vsel %vm4152_vm6, %v8166_v39, %v7839_v14  ;;  %v14355_v41 = vld [vmem:[#allocation97_spill] sm:$0xff]  ;;  %v14357_v14 = vld [vmem:[#allocation135_spill] sm:$0xff]  ;;  %vm14360_vm6 = vmmov %vm14352_vm0 }
 0x75a   : > { %v4222_v30 = vsel %vm14356_vm3, %v4221_v10, %v14355_v41 }
 0x75b   : > { %v4223_v52 = vsel %vm14358_vm2, %v4222_v30, %v14357_v14 }
 0x75c   : > { %v8095_v26 = vpop.permute.xlu1 %8094  ;;  %v7843_v63 = vpop.permute.xlu0 %7842  ;;  %v4224_v4 = vsel %vm14360_vm6, %v4223_v52, %v14359_v5 }
 0x75d   : > { %v8231_v40 = vsel %vm14343_vm9, %v8230_v23, %v8095_v26  ;;  %v8168_v9 = vsel %vm14345_vm1, %v8167_v36, %v7843_v63  ;;  %vm14367_vm9 = vmmov %vm14364_vm11 }
 0x75e   : > { %vm14368_vm1 = vmmov %vm14362_vm5 }
 0x760   : > { %v8099_v31 = vpop.permute.xlu1 %8098  ;;  %v7847_v46 = vpop.permute.xlu0 %7846 }
 0x761   : > { %v8232_v19 = vsel %vm14346_vm12, %v8231_v40, %v8099_v31  ;;  %v8169_v25 = vsel %vm14347_vm4, %v8168_v9, %v7847_v46  ;;  %vm14370_vm12 = vmmov %vm14367_vm9 }
 0x762   : > { %vm14371_vm4 = vmmov %vm14368_vm1 }
 0x764   : > { %v8103_v6 = vpop.permute.xlu1 %8102  ;;  %v7851_v61 = vpop.permute.xlu0 %7850 }
 0x765   : > { %v8233_v32 = vsel %vm14348_vm8, %v8232_v19, %v8103_v6  ;;  %v8170_v45 = vsel %vm14349_vm14, %v8169_v25, %v7851_v61  ;;  %vm14374_vm8 = vmmov %vm14367_vm9 }
 0x768   : > { %v8107_v20 = vpop.permute.xlu1 %8106  ;;  %v7855_v44 = vpop.permute.xlu0 %7854 }
 0x769   : > { %v8234_v59 = vsel %vm14350_vm13, %v8233_v32, %v8107_v20  ;;  %v8171_v13 = vsel %vm14352_vm0, %v8170_v45, %v7855_v44 }
 0x76a   : > { %8256 = vrot.lane.b32.xlu1 %v8234_v59, %s13441_s5  ;;  %8236 = vrot.lane.b32.xlu0 %v8171_v13, %s13441_s5 }
 0x76c   : > { %v8247_v21 = vpop.permute.xlu1 %8246 }
 0x76e   : > { %8269 = vrot.lane.b32.xlu1 %v8234_v59, %s14111_s1  ;;  %8249 = vrot.lane.b32.xlu0 %v8171_v13, %s14111_s1 }
 0x772   : > { %8252 = vrot.lane.b32.xlu1 %v12580_v43, %s14111_s1  ;;  %8266 = vrot.lane.b32.xlu0 %v4224_v4, %s13503_s14 }
 0x776   : > { %8272 = vrot.lane.b32.xlu1 %v4224_v4, %s14111_s1  ;;  %8240 = vrot.lane.b32.xlu0 %v12580_v43, %s13441_s5  ;;  %s8572_s1 = sshll.u32 %s8718_s6, 4  ;;  %s8573_s1 = int_to_ptr.vmem [resolvable:$false] %s8572_s1 }
 0x777   : > { %s8574_s17 = scalar_lea.vmem %s8573_s1, 1024  ;;  %p8575_p2 = scmp.lt.s32.totalorder %s8309_s9, %s8573_s1 }
 0x778   : > { %p8576_p3 = scmp.lt.s32.totalorder %s8574_s17, %s8568_s21 }
 0x77a   : > { %8263 = vrot.lane.b32.xlu1 %v8234_v59, %s13503_s14  ;;  %8260 = vrot.lane.b32.xlu0 %v4224_v4, %s13441_s5  ;;  %s8410_s5 = sshll.u32 %s14363_s16, 9  ;;  %p8577_p5 = por %p8576_p3, %p8575_p2 }
 0x77b   : > { %s12814_s8 = scalar_lea.hbm %s14372_s7, %s8410_s5 }
 0x77c   : > { %p8578_p6 = pnand %p8577_p5, %p8571_p0 }
 0x77e   : > { %8243 = vrot.lane.b32.xlu0 %v8171_v13, %s13503_s14 }
 0x7dc   : > { %v8257_v2 = vpop.permute.xlu1 %8256  ;;  %v8237_v49 = vpop.permute.xlu0 %8236 }
 0x7dd   : > { %v8281_v37 = vsel %vm14368_vm1, %v4224_v4, %v8257_v2  ;;  %v8275_v31 = vsel %vm14371_vm4, %v12580_v43, %v8237_v49 }
 0x7e0   : > { %v8270_v50 = vpop.permute.xlu1 %8269  ;;  %v8250_v24 = vpop.permute.xlu0 %8249 }
 0x7e1   : > { %v8278_v18 = vsel %vm14362_vm5, %v8247_v21, %v8250_v24 }
 0x7e4   : > { %v8253_v26 = vpop.permute.xlu1 %8252  ;;  %v8267_v15 = vpop.permute.xlu0 %8266 }
 0x7e5   : > { %v8279_v42 = vsel %vm4098_vm15, %v8278_v18, %v8253_v26  ;;  %v8284_v57 = vsel %vm14366_vm7, %v8267_v15, %v8270_v50 }
 0x7e6   : > { %v8280_v63 = vsel %vm14364_vm11, %v8279_v42, %v8171_v13 }
 0x7e7   : > { %8288 = vst [vmem:[%s151_s19 + $0x8] sm:$0xff] %v8280_v63 }
 0x7e8   : > { %v8273_v53 = vpop.permute.xlu1 %8272  ;;  %v8241_v58 = vpop.permute.xlu0 %8240 }
 0x7e9   : > { %v8285_v22 = vsel %vm4098_vm15, %v8284_v57, %v8273_v53  ;;  %v8276_v0 = vsel %vm4098_vm15, %v8275_v31, %v8241_v58 }
 0x7ea   : > { %v8286_v48 = vsel %vm14367_vm9, %v8285_v22, %v8234_v59 }
 0x7eb   : > { %8290 = vst [vmem:[%s151_s19 + $0x18] sm:$0xff] %v8286_v48 }
 0x7ec   : > { %v8264_v35 = vpop.permute.xlu1 %8263  ;;  %v8261_v55 = vpop.permute.xlu0 %8260 }
 0x7ed   : > { %v8282_v3 = vsel %vm4098_vm15, %v8281_v37, %v8261_v55 }
 0x7ee   : > { %v8283_v29 = vsel %vm14370_vm12, %v8282_v3, %v8264_v35 }
 0x7ef   : > { %8289 = vst [vmem:[%s151_s19 + $0x10] sm:$0xff] %v8283_v29 }
 0x7f0   : > { %v8244_v62 = vpop.permute.xlu0 %8243 }
 0x7f1   : > { %v8277_v46 = vsel %vm14374_vm8, %v8276_v0, %v8244_v62 }
 0x7f2   : > { %8287 = vst [vmem:[%s151_s19] sm:$0xff] %v8277_v46 }
 0x7f3   : > { %8581 = shalt.err (!%p8578_p6)
}
 0x7f4   : > { %s8582_s18 = scalar_lea.hbm %s12814_s8, 512  ;;  %s8586_s26 = scalar_lea.hbm %s14373_s20, 4096 }
 0x7f5   : > { %p8583_p7 = scmp.ne.s32.totalorder %s12814_s8, %s8582_s18  ;;  %p8587_p12 = scmp.lt.s32.totalorder %s12814_s8, %s14373_s20 }
 0x7f6   : > { %p8588_p1 = scmp.lt.s32.totalorder %s8586_s26, %s8582_s18 }
 0x7f7   : > { %p8584_p10 = pnand %p8583_p7, %p8780_p9 }
 0x7f8   : > { %p8589_p8 = por %p8588_p1, %p8587_p12 }
 0x7f9   : > { %p8585_p4 = pneg %p8584_p10 }
 0x7fb   : > { %p8590_p13 = pnand %p8589_p8, %p8585_p4 }
 0x7fd   : > { %8593 = shalt.err (!%p8590_p13)
}
 0x7fe   : > { %8413 = dma.vmem_to_hbm [thread:$0]  (%p8780_p9), %s8309_s9, 512, %s12814_s8, %s8292_s10  }
 0x7ff PF: > { %s14375_s29 = sld [smem:[#allocation13_spill]] }
 0x800   : > { %s14376_s30 = sld [smem:[#allocation8_spill]] }
 0x805   : > { %p8424_p0 = scmp.ge.s32.totalorder %s14375_s29, 2 }
 0x806   : > { %s8320_s3 = sand.u32 1, %s14376_s30  }
 0x807   : > { %p8420_p2 = pnand %p8424_p0, %p8787_p11  ;;  %s8321_s4 = scalar_lea.sflag [#allocation4], %s8320_s3 }
 0x809   : > { %p8421_p3 = pneg %p8420_p2 }
 0x80b   : > { %8623 = dma.done.wait (%p8421_p3), %s8321_s4, 512  }
 0x80c   : > { %8625 = vsyncadd (%p8421_p3), %s8321_s4, 4294966784  ;;  %s17_s11 = sadd.s32 1, %s14375_s29   ;;  %s14378_s6 = sld [smem:[#allocation9_spill]] }
 0x80d   : > { %p14_p5 = scmp.ge.s32.totalorder %s17_s11, 10   ;;  %s14379_s7 = sld [smem:[#allocation10_spill]] }
 0x80e   : > { %s14380_s8 = sld [smem:[#allocation16_spill]] }
 0x80f   : > { %s14381_s9 = sld [smem:[#allocation12_spill]]  ;;  %16 = sbr.rel (!%p14_p5) target bundleno = 9 (0x9), region = 72 }
 0x810   : > { %s14382_s10 = sld [smem:[#allocation14_spill]] }
 0x814   :  { %8326 = vsyncpa [#allocation3], 1 }
 0x815   :  { %8328 = vsyncpa [#allocation3 + $0x1], 1 }
 0x816   :  { %8329 = vsyncpa [#allocation4], 1 }
 0x817   :  { %8331 = vsyncpa [#allocation4 + $0x1], 1 }

</bundles_post_ra>
